<compile_context>
chip_gen: v5e
topology: v5e:2x2
jax: 0.10.0
libtpu: 0.0.40
codegen_flags: <defaults>
</compile_context>

<pallas_src>
import functools

import jax
import jax.numpy as jnp
import numpy as np
from jax.experimental import pallas as pl
from jax.experimental.pallas import tpu as pltpu


def _round_up(x, m):
    return ((x + m - 1) // m) * m


def _mxu_pack_factor():
    """2 on 256-wide-MXU generations (v6e / v7x), else 1 (native 128x128 on v5e and older)."""
    try:
        kind = jax.devices()[0].device_kind.lower()
    except Exception:
        return 1
    return 2 if any(t in kind for t in ("v6", "v7", "6e", "7x")) else 1


def _snam_kernel(x_ref, wd_ref, vec_ref, fsc_ref, out_ref, *, depth, G, W, NP):
    """One (N tile, feature block) step.

    x_ref   : (F, tn)   f32   lane-dense transposed inputs (F = NP * G features)
    wd_ref  : (NP, depth-1, G*W, G*W)  bf16/f32  block-diagonal transposed hidden weights
    vec_ref : (NP, G*W, 3 + depth-1)   f32  per-feature columns [w1, b1, w3, bm_0, ...]
    fsc_ref : (1, F, 2) f32   per-feature [b3, constrained_r*output_trunc*softmax]
    out_ref : (1, tn)   f32   lane-dense accumulator, resident across the feature axis
    """
    j = pl.program_id(1)

    @pl.when(j == 0)
    def _():
        out_ref[...] = jnp.zeros_like(out_ref)

    tn = out_ref.shape[1]
    fsc = fsc_ref[0]                                       # (F, 2)
    acc = jnp.zeros((1, tn), jnp.float32)

    for q in range(NP):                                    # statically unrolled packed groups
        vec = vec_ref[q]                                   # (G*W, NV) f32

        # ---- layer 1 (transposed): h[w, n] = relu(w1[w] * x[n] + b1[w]) per feature (VPU)
        h_parts = []
        for g in range(G):
            xrow = x_ref[q * G + g:q * G + g + 1, :]       # (1, tn)
            w1c = vec[g * W:(g + 1) * W, 0:1]              # (W, 1)
            b1c = vec[g * W:(g + 1) * W, 1:2]              # (W, 1)
            h_parts.append(jnp.maximum(w1c * xrow + b1c, 0.0))   # (W, tn)
        h = jnp.concatenate(h_parts, axis=0) if G > 1 else h_parts[0]   # (G*W, tn) f32

        # ---- hidden layers: block-diagonal (G*W, G*W) weights on the MXU, bf16 in / f32 acc
        for d in range(depth - 1):
            wd = wd_ref[q, d]                              # (G*W, G*W)
            h = jnp.dot(wd, h.astype(wd.dtype), preferred_element_type=jnp.float32)
            h = jnp.maximum(h + vec[:, 3 + d:4 + d], 0.0)

        # ---- output layer (W -> 1 per feature): VPU multiply + sublane reduce (XLU)
        y_rows = []
        for g in range(G):
            w3c = vec[g * W:(g + 1) * W, 2:3]              # (W, 1)
            y_rows.append(jnp.sum(w3c * h[g * W:(g + 1) * W, :],
                                  axis=0, keepdims=True))  # (1, tn)
        yq = jnp.concatenate(y_rows, axis=0) if G > 1 else y_rows[0]    # (G, tn)

        # ---- batched tanh (EUP) + folded softmax weight, reduced over the group's features
        b3c = fsc[q * G:(q + 1) * G, 0:1]                  # (G, 1)
        swc = fsc[q * G:(q + 1) * G, 1:2]                  # (G, 1)
        acc = acc + jnp.sum(swc * jnp.tanh(yq + b3c), axis=0, keepdims=True)

    out_ref[...] += acc


def sparse_nam_forward(x, params, anneal=1.0, output_trunc=1.0, constrained_r=5.0,
                       *, n_tile=1024, feat_block=8, use_bf16=True, pack=None):
    """x: (N, p) float32. Returns (N, 1) float32."""
    N, p = x.shape
    w1, b1, wm, bm, w3, b3, beta = (params[k] for k in
                                    ("w1", "b1", "wm", "bm", "w3", "b3", "beta"))
    depth = wm.shape[1] + 1
    W = w1.shape[-1]
    assert depth >= 2, "kernel requires at least one (W,W) hidden linear (depth >= 2)"
    assert W % 8 == 0, "hidden width must be a multiple of 8 (128 recommended)"

    G = pack if pack is not None else _mxu_pack_factor()   # block-diag packing factor
    F = feat_block                                         # features per grid step
    assert F % 8 == 0 and F % G == 0
    NP = F // G
    GW = G * W
    NV = 3 + (depth - 1)

    p_pad = _round_up(p, F)
    n_groups = p_pad // G
    n_blocks = p_pad // F

    # --- batch tiling: big tiles (amortize weight re-streaming), but keep >= 2 tiles (v7x)
    n128 = _round_up(N, 128)
    tn = min(n_tile, n128)
    if tn == n128 and n128 >= 256:
        tn = _round_up(n128 // 2, 128)
    N_pad = _round_up(N, tn)

    f32 = jnp.float32

    def padp(a):
        return jnp.pad(a.astype(f32), ((0, p_pad - p),) + ((0, 0),) * (a.ndim - 1))

    w1p = padp(w1).reshape(p_pad, W)                       # (p_pad, W)
    b1p = padp(b1).reshape(p_pad, W)
    w3p = padp(w3).reshape(p_pad, W)
    bmp = padp(bm).reshape(p_pad, depth - 1, W)
    wmp = padp(wm)                                         # (p_pad, depth-1, W, W)
    b3f = padp(b3).reshape(p_pad)

    # softmax weights folded with constrained_r * output_trunc; zero for dummy features.
    sw = (float(constrained_r) * float(output_trunc)
          * jax.nn.softmax(beta.astype(f32) * anneal, axis=1)).reshape(p)
    swp = jnp.pad(sw, (0, p_pad - p))

    # Hidden weights: per-feature transposed (h_next^T = W^T h^T), block-diag packed per group.
    wmT = jnp.swapaxes(wmp, -1, -2).reshape(n_groups, G, depth - 1, W, W)
    wd_pk = jnp.zeros((n_groups, depth - 1, GW, GW), f32)
    for g in range(G):
        wd_pk = wd_pk.at[:, :, g * W:(g + 1) * W, g * W:(g + 1) * W].set(wmT[:, g])
    wd_pk = wd_pk.astype(jnp.bfloat16 if use_bf16 else f32)

    # Per-feature length-W column vectors stacked lane-wise: [w1, b1, w3, bm_0, bm_1, ...]
    cols = [w1p, b1p, w3p] + [bmp[:, d] for d in range(depth - 1)]
    vec_pk = jnp.stack(cols, axis=-1).reshape(n_groups, GW, NV)

    # Per-feature scalars: [b3, folded softmax weight]
    fsc = jnp.stack([b3f, swp], axis=-1).reshape(n_blocks, F, 2)

    # Lane-dense transposed input (batch on lanes); padded rows are inert (sw=0 / sliced off).
    xT = jnp.pad(x.astype(f32).T, ((0, p_pad - p), (0, N_pad - N)))    # (p_pad, N_pad)

    kernel = functools.partial(_snam_kernel, depth=depth, G=G, W=W, NP=NP)
    grid = (N_pad // tn, n_blocks)

    out2 = pl.pallas_call(
        kernel,
        out_shape=jax.ShapeDtypeStruct((1, N_pad), f32),
        grid_spec=pltpu.PrefetchScalarGridSpec(
            num_scalar_prefetch=0,
            grid=grid,
            in_specs=[
                pl.BlockSpec((F, tn), lambda i, j: (j, i)),                     # x^T
                pl.BlockSpec((NP, depth - 1, GW, GW), lambda i, j: (j, 0, 0, 0)),  # hidden W
                pl.BlockSpec((NP, GW, NV), lambda i, j: (j, 0, 0)),             # w1/b1/w3/bm
                pl.BlockSpec((1, F, 2), lambda i, j: (j, 0, 0)),                # b3 / sw
            ],
            out_specs=pl.BlockSpec((1, tn), lambda i, j: (0, i)),               # lane-dense acc
        ),
        compiler_params=pltpu.CompilerParams(
            dimension_semantics=("parallel", "arbitrary"),
            vmem_limit_bytes=64 * 1024 * 1024),
    )(xT, wd_pk, vec_pk, fsc)

    return out2.reshape(-1)[:N][:, None]


def init_params(key, p, depth, width):
    """Deterministic init matching ParallelLinear.reset_parameters:
       uniform(-bound, bound), bound = sqrt(3)*sqrt(2)/sqrt(fan_in). beta_logits ~ U(1,1)=1."""
    def u(k, shape, fan_in):
        bound = np.sqrt(3.0) * np.sqrt(2.0) / np.sqrt(fan_in)
        return jax.random.uniform(k, shape, jnp.float32, -bound, bound)

    keys = jax.random.split(key, 2 * (depth + 1))
    params = {
        "w1": u(keys[0], (p, 1, width), 1),
        "b1": u(keys[1], (p, 1, width), 1),
        "wm": jnp.stack([u(keys[2 + 2 * d], (p, width, width), width)
                         for d in range(depth - 1)], axis=1),   # (p, depth-1, W, W)
        "bm": jnp.stack([u(keys[3 + 2 * d], (p, 1, width), width)
                         for d in range(depth - 1)], axis=1),   # (p, depth-1, 1, W)
        "w3": u(keys[2 * depth], (p, width, 1), width),
        "b3": u(keys[2 * depth + 1], (p, 1, 1), width),
        "beta": jnp.ones((1, p), jnp.float32),
    }
    return params


def ref_forward(x, params, anneal=1.0, output_trunc=1.0, constrained_r=5.0):
    """Pure-JAX f32 reference mirroring the PyTorch forward."""
    w1, b1, wm, bm, w3, b3, beta = (params[k] for k in
                                    ("w1", "b1", "wm", "bm", "w3", "b3", "beta"))
    h = jnp.transpose(x, (1, 0))[:, :, None]                  # (p, N, 1)
    h = jnp.maximum(jnp.matmul(h, w1) + b1, 0.0)              # (p, N, W)
    for d in range(wm.shape[1]):
        h = jnp.maximum(jnp.matmul(h, wm[:, d]) + bm[:, d], 0.0)
    y = jnp.matmul(h, w3) + b3                                # (p, N, 1)
    y = output_trunc * jnp.tanh(y)
    y = jnp.transpose(y, (1, 0, 2))[:, :, 0]                  # (N, p)  (torch.squeeze)
    sw = jax.nn.softmax(beta * anneal, axis=1)                # (1, p)
    return constrained_r * jnp.sum(y * sw, axis=1, keepdims=True)


if __name__ == "__main__":
    # N=512 -> two 256-row batch tiles; p=12 exercises feature padding to 16 (two blocks of 8);
    # width=128 (lane/MXU aligned); depth=3 (two hidden matmuls per feature).
    N, P, WIDTH, DEPTH = 512, 12, 128, 3
    OUTPUT_TRUNC, CONSTRAINED_R, ANNEAL = 1.0, 5.0, 1.0

    key = jax.random.PRNGKey(0)
    k_params, k_x = jax.random.split(key)
    params = init_params(k_params, P, DEPTH, WIDTH)
    x = jax.random.normal(k_x, (N, P), jnp.float32)

    out = sparse_nam_forward(x, params, anneal=ANNEAL,
                             output_trunc=OUTPUT_TRUNC, constrained_r=CONSTRAINED_R)
    out = jax.block_until_ready(out)

    ref = ref_forward(x, params, anneal=ANNEAL,
                      output_trunc=OUTPUT_TRUNC, constrained_r=CONSTRAINED_R)
    assert out.shape == (N, 1)
    # bf16 hidden matmuls (f32 accumulation) vs a pure-f32 reference: loosened tolerance.
    np.testing.assert_allclose(np.asarray(out), np.asarray(ref), rtol=5e-2, atol=8e-2)

    print("KERNEL_OK")
</pallas_src>

<mosaic_0001>
module attributes {stable_mosaic.version = 11 : i64} {
  func.func @_snam_kernel(%arg0: i32, %arg1: i32, %arg2: memref<8x256xf32, #tpu.memory_space<vmem>>, %arg3: memref<8x2x128x128xbf16, #tpu.memory_space<vmem>>, %arg4: memref<8x128x5xf32, #tpu.memory_space<vmem>>, %arg5: memref<1x8x2xf32, #tpu.memory_space<vmem>>, %arg6: memref<1x256xf32, #tpu.memory_space<vmem>>) attributes {dimension_semantics = [#tpu.dimension_semantics<parallel>, #tpu.dimension_semantics<arbitrary>], iteration_bounds = array<i64: 2, 2>, scalar_prefetch = 0 : i64, scratch_operands = 0 : i64, tpu.core_type = #tpu.core_type<tc>, window_params = [{transform_indices = @transform_0, window_bounds = array<i64: 8, 256>}, {transform_indices = @transform_1, window_bounds = array<i64: 8, 2, 128, 128>}, {transform_indices = @transform_2, window_bounds = array<i64: 8, 128, 5>}, {transform_indices = @transform_3, window_bounds = array<i64: 1, 8, 2>}, {transform_indices = @transform_4, window_bounds = array<i64: 1, 256>}]} {
    %c0_i32 = arith.constant 0 : i32
    %0 = arith.cmpi eq, %arg1, %c0_i32 : i32
    %1 = arith.extui %0 : i1 to i32
    %c0_i32_0 = arith.constant 0 : i32
    %2 = arith.cmpi ne, %1, %c0_i32_0 : i32
    scf.if %2 {
      %cst_160 = arith.constant 0.000000e+00 : f32
      %369 = vector.broadcast %cst_160 : f32 to vector<1x256xf32>
      %c0_161 = arith.constant 0 : index
      %c0_162 = arith.constant 0 : index
      %370 = vector.load %arg6[%c0_161, %c0_162] : memref<1x256xf32, #tpu.memory_space<vmem>>, vector<1x256xf32>
      tpu.vector_store %arg6[%c0_161, %c0_162], %369 {strides = array<i32>} : memref<1x256xf32, #tpu.memory_space<vmem>>, vector<1x256xf32>,
    } else {
    }
    %c0 = arith.constant 0 : index
    %c0_1 = arith.constant 0 : index
    %c0_2 = arith.constant 0 : index
    %3 = vector.load %arg5[%c0, %c0_1, %c0_2] : memref<1x8x2xf32, #tpu.memory_space<vmem>>, vector<1x8x2xf32>
    %4 = vector.shape_cast %3 : vector<1x8x2xf32> to vector<8x2xf32>
    %cst = arith.constant 0.000000e+00 : f32
    %5 = vector.broadcast %cst : f32 to vector<1x256xf32>
    %c0_3 = arith.constant 0 : index
    %c0_4 = arith.constant 0 : index
    %c0_5 = arith.constant 0 : index
    %6 = vector.load %arg4[%c0_3, %c0_4, %c0_5] : memref<8x128x5xf32, #tpu.memory_space<vmem>>, vector<1x128x5xf32>
    %7 = vector.shape_cast %6 : vector<1x128x5xf32> to vector<128x5xf32>
    %c0_6 = arith.constant 0 : index
    %c0_7 = arith.constant 0 : index
    %8 = vector.load %arg2[%c0_6, %c0_7] : memref<8x256xf32, #tpu.memory_space<vmem>>, vector<1x256xf32>
    %9 = vector.extract_strided_slice %7 {offsets = [0, 0], sizes = [128, 1], strides = [1, 1]} : vector<128x5xf32> to vector<128x1xf32>
    %10 = vector.extract_strided_slice %7 {offsets = [0, 1], sizes = [128, 1], strides = [1, 1]} : vector<128x5xf32> to vector<128x1xf32>
    %11 = vector.broadcast %9 : vector<128x1xf32> to vector<128x256xf32>
    %12 = vector.broadcast %8 : vector<1x256xf32> to vector<128x256xf32>
    %13 = arith.mulf %11, %12 : vector<128x256xf32>
    %14 = vector.broadcast %10 : vector<128x1xf32> to vector<128x256xf32>
    %15 = arith.addf %13, %14 : vector<128x256xf32>
    %cst_8 = arith.constant 0.000000e+00 : f32
    %16 = vector.broadcast %cst_8 : f32 to vector<128x256xf32>
    %17 = arith.maximumf %15, %16 : vector<128x256xf32>
    %c0_9 = arith.constant 0 : index
    %c0_10 = arith.constant 0 : index
    %c0_11 = arith.constant 0 : index
    %c0_12 = arith.constant 0 : index
    %18 = vector.load %arg3[%c0_9, %c0_10, %c0_11, %c0_12] : memref<8x2x128x128xbf16, #tpu.memory_space<vmem>>, vector<1x1x128x128xbf16>
    %19 = vector.shape_cast %18 : vector<1x1x128x128xbf16> to vector<128x128xbf16>
    %20 = arith.truncf %17 : vector<128x256xf32> to vector<128x256xbf16>
    %cst_13 = arith.constant dense<0.000000e+00> : vector<128x256xf32>
    %21 = tpu.matmul %19, %20, %cst_13 {dimension_numbers = #tpu.dot_dimension_numbers<[1], [0], [0], [1], [0, 0, 1, 1], [], []>} : vector<128x128xbf16>, vector<128x256xbf16>, vector<128x256xf32> -> vector<128x256xf32>
    %22 = vector.extract_strided_slice %7 {offsets = [0, 3], sizes = [128, 1], strides = [1, 1]} : vector<128x5xf32> to vector<128x1xf32>
    %23 = vector.broadcast %22 : vector<128x1xf32> to vector<128x256xf32>
    %24 = arith.addf %21, %23 : vector<128x256xf32>
    %cst_14 = arith.constant 0.000000e+00 : f32
    %25 = vector.broadcast %cst_14 : f32 to vector<128x256xf32>
    %26 = arith.maximumf %24, %25 : vector<128x256xf32>
    %c0_15 = arith.constant 0 : index
    %c1 = arith.constant 1 : index
    %c0_16 = arith.constant 0 : index
    %c0_17 = arith.constant 0 : index
    %27 = vector.load %arg3[%c0_15, %c1, %c0_16, %c0_17] : memref<8x2x128x128xbf16, #tpu.memory_space<vmem>>, vector<1x1x128x128xbf16>
    %28 = vector.shape_cast %27 : vector<1x1x128x128xbf16> to vector<128x128xbf16>
    %29 = arith.truncf %26 : vector<128x256xf32> to vector<128x256xbf16>
    %cst_18 = arith.constant dense<0.000000e+00> : vector<128x256xf32>
    %30 = tpu.matmul %28, %29, %cst_18 {dimension_numbers = #tpu.dot_dimension_numbers<[1], [0], [0], [1], [0, 0, 1, 1], [], []>} : vector<128x128xbf16>, vector<128x256xbf16>, vector<128x256xf32> -> vector<128x256xf32>
    %31 = vector.extract_strided_slice %7 {offsets = [0, 4], sizes = [128, 1], strides = [1, 1]} : vector<128x5xf32> to vector<128x1xf32>
    %32 = vector.broadcast %31 : vector<128x1xf32> to vector<128x256xf32>
    %33 = arith.addf %30, %32 : vector<128x256xf32>
    %cst_19 = arith.constant 0.000000e+00 : f32
    %34 = vector.broadcast %cst_19 : f32 to vector<128x256xf32>
    %35 = arith.maximumf %33, %34 : vector<128x256xf32>
    %36 = vector.extract_strided_slice %7 {offsets = [0, 2], sizes = [128, 1], strides = [1, 1]} : vector<128x5xf32> to vector<128x1xf32>
    %37 = vector.broadcast %36 : vector<128x1xf32> to vector<128x256xf32>
    %38 = arith.mulf %37, %35 : vector<128x256xf32>
    %cst_20 = arith.constant dense<0.000000e+00> : vector<256xf32>
    %39 = vector.multi_reduction <add>, %38, %cst_20 [0] : vector<128x256xf32> to vector<256xf32>
    %40 = vector.shape_cast %39 : vector<256xf32> to vector<1x256xf32>
    %41 = vector.extract_strided_slice %4 {offsets = [0, 0], sizes = [1, 1], strides = [1, 1]} : vector<8x2xf32> to vector<1x1xf32>
    %42 = vector.extract_strided_slice %4 {offsets = [0, 1], sizes = [1, 1], strides = [1, 1]} : vector<8x2xf32> to vector<1x1xf32>
    %43 = vector.broadcast %41 : vector<1x1xf32> to vector<1x256xf32>
    %44 = arith.addf %40, %43 : vector<1x256xf32>
    %45 = math.tanh %44 : vector<1x256xf32>
    %46 = vector.broadcast %42 : vector<1x1xf32> to vector<1x256xf32>
    %47 = arith.mulf %46, %45 : vector<1x256xf32>
    %cst_21 = arith.constant dense<0.000000e+00> : vector<256xf32>
    %48 = vector.multi_reduction <add>, %47, %cst_21 [0] : vector<1x256xf32> to vector<256xf32>
    %49 = vector.shape_cast %48 : vector<256xf32> to vector<1x256xf32>
    %50 = arith.addf %5, %49 : vector<1x256xf32>
    %c1_22 = arith.constant 1 : index
    %c0_23 = arith.constant 0 : index
    %c0_24 = arith.constant 0 : index
    %51 = vector.load %arg4[%c1_22, %c0_23, %c0_24] : memref<8x128x5xf32, #tpu.memory_space<vmem>>, vector<1x128x5xf32>
    %52 = vector.shape_cast %51 : vector<1x128x5xf32> to vector<128x5xf32>
    %c1_25 = arith.constant 1 : index
    %c0_26 = arith.constant 0 : index
    %53 = vector.load %arg2[%c1_25, %c0_26] : memref<8x256xf32, #tpu.memory_space<vmem>>, vector<1x256xf32>
    %54 = vector.extract_strided_slice %52 {offsets = [0, 0], sizes = [128, 1], strides = [1, 1]} : vector<128x5xf32> to vector<128x1xf32>
    %55 = vector.extract_strided_slice %52 {offsets = [0, 1], sizes = [128, 1], strides = [1, 1]} : vector<128x5xf32> to vector<128x1xf32>
    %56 = vector.broadcast %54 : vector<128x1xf32> to vector<128x256xf32>
    %57 = vector.broadcast %53 : vector<1x256xf32> to vector<128x256xf32>
    %58 = arith.mulf %56, %57 : vector<128x256xf32>
    %59 = vector.broadcast %55 : vector<128x1xf32> to vector<128x256xf32>
    %60 = arith.addf %58, %59 : vector<128x256xf32>
    %cst_27 = arith.constant 0.000000e+00 : f32
    %61 = vector.broadcast %cst_27 : f32 to vector<128x256xf32>
    %62 = arith.maximumf %60, %61 : vector<128x256xf32>
    %c1_28 = arith.constant 1 : index
    %c0_29 = arith.constant 0 : index
    %c0_30 = arith.constant 0 : index
    %c0_31 = arith.constant 0 : index
    %63 = vector.load %arg3[%c1_28, %c0_29, %c0_30, %c0_31] : memref<8x2x128x128xbf16, #tpu.memory_space<vmem>>, vector<1x1x128x128xbf16>
    %64 = vector.shape_cast %63 : vector<1x1x128x128xbf16> to vector<128x128xbf16>
    %65 = arith.truncf %62 : vector<128x256xf32> to vector<128x256xbf16>
    %cst_32 = arith.constant dense<0.000000e+00> : vector<128x256xf32>
    %66 = tpu.matmul %64, %65, %cst_32 {dimension_numbers = #tpu.dot_dimension_numbers<[1], [0], [0], [1], [0, 0, 1, 1], [], []>} : vector<128x128xbf16>, vector<128x256xbf16>, vector<128x256xf32> -> vector<128x256xf32>
    %67 = vector.extract_strided_slice %52 {offsets = [0, 3], sizes = [128, 1], strides = [1, 1]} : vector<128x5xf32> to vector<128x1xf32>
    %68 = vector.broadcast %67 : vector<128x1xf32> to vector<128x256xf32>
    %69 = arith.addf %66, %68 : vector<128x256xf32>
    %cst_33 = arith.constant 0.000000e+00 : f32
    %70 = vector.broadcast %cst_33 : f32 to vector<128x256xf32>
    %71 = arith.maximumf %69, %70 : vector<128x256xf32>
    %c1_34 = arith.constant 1 : index
    %c1_35 = arith.constant 1 : index
    %c0_36 = arith.constant 0 : index
    %c0_37 = arith.constant 0 : index
    %72 = vector.load %arg3[%c1_34, %c1_35, %c0_36, %c0_37] : memref<8x2x128x128xbf16, #tpu.memory_space<vmem>>, vector<1x1x128x128xbf16>
    %73 = vector.shape_cast %72 : vector<1x1x128x128xbf16> to vector<128x128xbf16>
    %74 = arith.truncf %71 : vector<128x256xf32> to vector<128x256xbf16>
    %cst_38 = arith.constant dense<0.000000e+00> : vector<128x256xf32>
    %75 = tpu.matmul %73, %74, %cst_38 {dimension_numbers = #tpu.dot_dimension_numbers<[1], [0], [0], [1], [0, 0, 1, 1], [], []>} : vector<128x128xbf16>, vector<128x256xbf16>, vector<128x256xf32> -> vector<128x256xf32>
    %76 = vector.extract_strided_slice %52 {offsets = [0, 4], sizes = [128, 1], strides = [1, 1]} : vector<128x5xf32> to vector<128x1xf32>
    %77 = vector.broadcast %76 : vector<128x1xf32> to vector<128x256xf32>
    %78 = arith.addf %75, %77 : vector<128x256xf32>
    %cst_39 = arith.constant 0.000000e+00 : f32
    %79 = vector.broadcast %cst_39 : f32 to vector<128x256xf32>
    %80 = arith.maximumf %78, %79 : vector<128x256xf32>
    %81 = vector.extract_strided_slice %52 {offsets = [0, 2], sizes = [128, 1], strides = [1, 1]} : vector<128x5xf32> to vector<128x1xf32>
    %82 = vector.broadcast %81 : vector<128x1xf32> to vector<128x256xf32>
    %83 = arith.mulf %82, %80 : vector<128x256xf32>
    %cst_40 = arith.constant dense<0.000000e+00> : vector<256xf32>
    %84 = vector.multi_reduction <add>, %83, %cst_40 [0] : vector<128x256xf32> to vector<256xf32>
    %85 = vector.shape_cast %84 : vector<256xf32> to vector<1x256xf32>
    %86 = vector.extract_strided_slice %4 {offsets = [1, 0], sizes = [1, 1], strides = [1, 1]} : vector<8x2xf32> to vector<1x1xf32>
    %87 = vector.extract_strided_slice %4 {offsets = [1, 1], sizes = [1, 1], strides = [1, 1]} : vector<8x2xf32> to vector<1x1xf32>
    %88 = vector.broadcast %86 : vector<1x1xf32> to vector<1x256xf32>
    %89 = arith.addf %85, %88 : vector<1x256xf32>
    %90 = math.tanh %89 : vector<1x256xf32>
    %91 = vector.broadcast %87 : vector<1x1xf32> to vector<1x256xf32>
    %92 = arith.mulf %91, %90 : vector<1x256xf32>
    %cst_41 = arith.constant dense<0.000000e+00> : vector<256xf32>
    %93 = vector.multi_reduction <add>, %92, %cst_41 [0] : vector<1x256xf32> to vector<256xf32>
    %94 = vector.shape_cast %93 : vector<256xf32> to vector<1x256xf32>
    %95 = arith.addf %50, %94 : vector<1x256xf32>
    %c2 = arith.constant 2 : index
    %c0_42 = arith.constant 0 : index
    %c0_43 = arith.constant 0 : index
    %96 = vector.load %arg4[%c2, %c0_42, %c0_43] : memref<8x128x5xf32, #tpu.memory_space<vmem>>, vector<1x128x5xf32>
    %97 = vector.shape_cast %96 : vector<1x128x5xf32> to vector<128x5xf32>
    %c2_44 = arith.constant 2 : index
    %c0_45 = arith.constant 0 : index
    %98 = vector.load %arg2[%c2_44, %c0_45] : memref<8x256xf32, #tpu.memory_space<vmem>>, vector<1x256xf32>
    %99 = vector.extract_strided_slice %97 {offsets = [0, 0], sizes = [128, 1], strides = [1, 1]} : vector<128x5xf32> to vector<128x1xf32>
    %100 = vector.extract_strided_slice %97 {offsets = [0, 1], sizes = [128, 1], strides = [1, 1]} : vector<128x5xf32> to vector<128x1xf32>
    %101 = vector.broadcast %99 : vector<128x1xf32> to vector<128x256xf32>
    %102 = vector.broadcast %98 : vector<1x256xf32> to vector<128x256xf32>
    %103 = arith.mulf %101, %102 : vector<128x256xf32>
    %104 = vector.broadcast %100 : vector<128x1xf32> to vector<128x256xf32>
    %105 = arith.addf %103, %104 : vector<128x256xf32>
    %cst_46 = arith.constant 0.000000e+00 : f32
    %106 = vector.broadcast %cst_46 : f32 to vector<128x256xf32>
    %107 = arith.maximumf %105, %106 : vector<128x256xf32>
    %c2_47 = arith.constant 2 : index
    %c0_48 = arith.constant 0 : index
    %c0_49 = arith.constant 0 : index
    %c0_50 = arith.constant 0 : index
    %108 = vector.load %arg3[%c2_47, %c0_48, %c0_49, %c0_50] : memref<8x2x128x128xbf16, #tpu.memory_space<vmem>>, vector<1x1x128x128xbf16>
    %109 = vector.shape_cast %108 : vector<1x1x128x128xbf16> to vector<128x128xbf16>
    %110 = arith.truncf %107 : vector<128x256xf32> to vector<128x256xbf16>
    %cst_51 = arith.constant dense<0.000000e+00> : vector<128x256xf32>
    %111 = tpu.matmul %109, %110, %cst_51 {dimension_numbers = #tpu.dot_dimension_numbers<[1], [0], [0], [1], [0, 0, 1, 1], [], []>} : vector<128x128xbf16>, vector<128x256xbf16>, vector<128x256xf32> -> vector<128x256xf32>
    %112 = vector.extract_strided_slice %97 {offsets = [0, 3], sizes = [128, 1], strides = [1, 1]} : vector<128x5xf32> to vector<128x1xf32>
    %113 = vector.broadcast %112 : vector<128x1xf32> to vector<128x256xf32>
    %114 = arith.addf %111, %113 : vector<128x256xf32>
    %cst_52 = arith.constant 0.000000e+00 : f32
    %115 = vector.broadcast %cst_52 : f32 to vector<128x256xf32>
    %116 = arith.maximumf %114, %115 : vector<128x256xf32>
    %c2_53 = arith.constant 2 : index
    %c1_54 = arith.constant 1 : index
    %c0_55 = arith.constant 0 : index
    %c0_56 = arith.constant 0 : index
    %117 = vector.load %arg3[%c2_53, %c1_54, %c0_55, %c0_56] : memref<8x2x128x128xbf16, #tpu.memory_space<vmem>>, vector<1x1x128x128xbf16>
    %118 = vector.shape_cast %117 : vector<1x1x128x128xbf16> to vector<128x128xbf16>
    %119 = arith.truncf %116 : vector<128x256xf32> to vector<128x256xbf16>
    %cst_57 = arith.constant dense<0.000000e+00> : vector<128x256xf32>
    %120 = tpu.matmul %118, %119, %cst_57 {dimension_numbers = #tpu.dot_dimension_numbers<[1], [0], [0], [1], [0, 0, 1, 1], [], []>} : vector<128x128xbf16>, vector<128x256xbf16>, vector<128x256xf32> -> vector<128x256xf32>
    %121 = vector.extract_strided_slice %97 {offsets = [0, 4], sizes = [128, 1], strides = [1, 1]} : vector<128x5xf32> to vector<128x1xf32>
    %122 = vector.broadcast %121 : vector<128x1xf32> to vector<128x256xf32>
    %123 = arith.addf %120, %122 : vector<128x256xf32>
    %cst_58 = arith.constant 0.000000e+00 : f32
    %124 = vector.broadcast %cst_58 : f32 to vector<128x256xf32>
    %125 = arith.maximumf %123, %124 : vector<128x256xf32>
    %126 = vector.extract_strided_slice %97 {offsets = [0, 2], sizes = [128, 1], strides = [1, 1]} : vector<128x5xf32> to vector<128x1xf32>
    %127 = vector.broadcast %126 : vector<128x1xf32> to vector<128x256xf32>
    %128 = arith.mulf %127, %125 : vector<128x256xf32>
    %cst_59 = arith.constant dense<0.000000e+00> : vector<256xf32>
    %129 = vector.multi_reduction <add>, %128, %cst_59 [0] : vector<128x256xf32> to vector<256xf32>
    %130 = vector.shape_cast %129 : vector<256xf32> to vector<1x256xf32>
    %131 = vector.extract_strided_slice %4 {offsets = [2, 0], sizes = [1, 1], strides = [1, 1]} : vector<8x2xf32> to vector<1x1xf32>
    %132 = vector.extract_strided_slice %4 {offsets = [2, 1], sizes = [1, 1], strides = [1, 1]} : vector<8x2xf32> to vector<1x1xf32>
    %133 = vector.broadcast %131 : vector<1x1xf32> to vector<1x256xf32>
    %134 = arith.addf %130, %133 : vector<1x256xf32>
    %135 = math.tanh %134 : vector<1x256xf32>
    %136 = vector.broadcast %132 : vector<1x1xf32> to vector<1x256xf32>
    %137 = arith.mulf %136, %135 : vector<1x256xf32>
    %cst_60 = arith.constant dense<0.000000e+00> : vector<256xf32>
    %138 = vector.multi_reduction <add>, %137, %cst_60 [0] : vector<1x256xf32> to vector<256xf32>
    %139 = vector.shape_cast %138 : vector<256xf32> to vector<1x256xf32>
    %140 = arith.addf %95, %139 : vector<1x256xf32>
    %c3 = arith.constant 3 : index
    %c0_61 = arith.constant 0 : index
    %c0_62 = arith.constant 0 : index
    %141 = vector.load %arg4[%c3, %c0_61, %c0_62] : memref<8x128x5xf32, #tpu.memory_space<vmem>>, vector<1x128x5xf32>
    %142 = vector.shape_cast %141 : vector<1x128x5xf32> to vector<128x5xf32>
    %c3_63 = arith.constant 3 : index
    %c0_64 = arith.constant 0 : index
    %143 = vector.load %arg2[%c3_63, %c0_64] : memref<8x256xf32, #tpu.memory_space<vmem>>, vector<1x256xf32>
    %144 = vector.extract_strided_slice %142 {offsets = [0, 0], sizes = [128, 1], strides = [1, 1]} : vector<128x5xf32> to vector<128x1xf32>
    %145 = vector.extract_strided_slice %142 {offsets = [0, 1], sizes = [128, 1], strides = [1, 1]} : vector<128x5xf32> to vector<128x1xf32>
    %146 = vector.broadcast %144 : vector<128x1xf32> to vector<128x256xf32>
    %147 = vector.broadcast %143 : vector<1x256xf32> to vector<128x256xf32>
    %148 = arith.mulf %146, %147 : vector<128x256xf32>
    %149 = vector.broadcast %145 : vector<128x1xf32> to vector<128x256xf32>
    %150 = arith.addf %148, %149 : vector<128x256xf32>
    %cst_65 = arith.constant 0.000000e+00 : f32
    %151 = vector.broadcast %cst_65 : f32 to vector<128x256xf32>
    %152 = arith.maximumf %150, %151 : vector<128x256xf32>
    %c3_66 = arith.constant 3 : index
    %c0_67 = arith.constant 0 : index
    %c0_68 = arith.constant 0 : index
    %c0_69 = arith.constant 0 : index
    %153 = vector.load %arg3[%c3_66, %c0_67, %c0_68, %c0_69] : memref<8x2x128x128xbf16, #tpu.memory_space<vmem>>, vector<1x1x128x128xbf16>
    %154 = vector.shape_cast %153 : vector<1x1x128x128xbf16> to vector<128x128xbf16>
    %155 = arith.truncf %152 : vector<128x256xf32> to vector<128x256xbf16>
    %cst_70 = arith.constant dense<0.000000e+00> : vector<128x256xf32>
    %156 = tpu.matmul %154, %155, %cst_70 {dimension_numbers = #tpu.dot_dimension_numbers<[1], [0], [0], [1], [0, 0, 1, 1], [], []>} : vector<128x128xbf16>, vector<128x256xbf16>, vector<128x256xf32> -> vector<128x256xf32>
    %157 = vector.extract_strided_slice %142 {offsets = [0, 3], sizes = [128, 1], strides = [1, 1]} : vector<128x5xf32> to vector<128x1xf32>
    %158 = vector.broadcast %157 : vector<128x1xf32> to vector<128x256xf32>
    %159 = arith.addf %156, %158 : vector<128x256xf32>
    %cst_71 = arith.constant 0.000000e+00 : f32
    %160 = vector.broadcast %cst_71 : f32 to vector<128x256xf32>
    %161 = arith.maximumf %159, %160 : vector<128x256xf32>
    %c3_72 = arith.constant 3 : index
    %c1_73 = arith.constant 1 : index
    %c0_74 = arith.constant 0 : index
    %c0_75 = arith.constant 0 : index
    %162 = vector.load %arg3[%c3_72, %c1_73, %c0_74, %c0_75] : memref<8x2x128x128xbf16, #tpu.memory_space<vmem>>, vector<1x1x128x128xbf16>
    %163 = vector.shape_cast %162 : vector<1x1x128x128xbf16> to vector<128x128xbf16>
    %164 = arith.truncf %161 : vector<128x256xf32> to vector<128x256xbf16>
    %cst_76 = arith.constant dense<0.000000e+00> : vector<128x256xf32>
    %165 = tpu.matmul %163, %164, %cst_76 {dimension_numbers = #tpu.dot_dimension_numbers<[1], [0], [0], [1], [0, 0, 1, 1], [], []>} : vector<128x128xbf16>, vector<128x256xbf16>, vector<128x256xf32> -> vector<128x256xf32>
    %166 = vector.extract_strided_slice %142 {offsets = [0, 4], sizes = [128, 1], strides = [1, 1]} : vector<128x5xf32> to vector<128x1xf32>
    %167 = vector.broadcast %166 : vector<128x1xf32> to vector<128x256xf32>
    %168 = arith.addf %165, %167 : vector<128x256xf32>
    %cst_77 = arith.constant 0.000000e+00 : f32
    %169 = vector.broadcast %cst_77 : f32 to vector<128x256xf32>
    %170 = arith.maximumf %168, %169 : vector<128x256xf32>
    %171 = vector.extract_strided_slice %142 {offsets = [0, 2], sizes = [128, 1], strides = [1, 1]} : vector<128x5xf32> to vector<128x1xf32>
    %172 = vector.broadcast %171 : vector<128x1xf32> to vector<128x256xf32>
    %173 = arith.mulf %172, %170 : vector<128x256xf32>
    %cst_78 = arith.constant dense<0.000000e+00> : vector<256xf32>
    %174 = vector.multi_reduction <add>, %173, %cst_78 [0] : vector<128x256xf32> to vector<256xf32>
    %175 = vector.shape_cast %174 : vector<256xf32> to vector<1x256xf32>
    %176 = vector.extract_strided_slice %4 {offsets = [3, 0], sizes = [1, 1], strides = [1, 1]} : vector<8x2xf32> to vector<1x1xf32>
    %177 = vector.extract_strided_slice %4 {offsets = [3, 1], sizes = [1, 1], strides = [1, 1]} : vector<8x2xf32> to vector<1x1xf32>
    %178 = vector.broadcast %176 : vector<1x1xf32> to vector<1x256xf32>
    %179 = arith.addf %175, %178 : vector<1x256xf32>
    %180 = math.tanh %179 : vector<1x256xf32>
    %181 = vector.broadcast %177 : vector<1x1xf32> to vector<1x256xf32>
    %182 = arith.mulf %181, %180 : vector<1x256xf32>
    %cst_79 = arith.constant dense<0.000000e+00> : vector<256xf32>
    %183 = vector.multi_reduction <add>, %182, %cst_79 [0] : vector<1x256xf32> to vector<256xf32>
    %184 = vector.shape_cast %183 : vector<256xf32> to vector<1x256xf32>
    %185 = arith.addf %140, %184 : vector<1x256xf32>
    %c4 = arith.constant 4 : index
    %c0_80 = arith.constant 0 : index
    %c0_81 = arith.constant 0 : index
    %186 = vector.load %arg4[%c4, %c0_80, %c0_81] : memref<8x128x5xf32, #tpu.memory_space<vmem>>, vector<1x128x5xf32>
    %187 = vector.shape_cast %186 : vector<1x128x5xf32> to vector<128x5xf32>
    %c4_82 = arith.constant 4 : index
    %c0_83 = arith.constant 0 : index
    %188 = vector.load %arg2[%c4_82, %c0_83] : memref<8x256xf32, #tpu.memory_space<vmem>>, vector<1x256xf32>
    %189 = vector.extract_strided_slice %187 {offsets = [0, 0], sizes = [128, 1], strides = [1, 1]} : vector<128x5xf32> to vector<128x1xf32>
    %190 = vector.extract_strided_slice %187 {offsets = [0, 1], sizes = [128, 1], strides = [1, 1]} : vector<128x5xf32> to vector<128x1xf32>
    %191 = vector.broadcast %189 : vector<128x1xf32> to vector<128x256xf32>
    %192 = vector.broadcast %188 : vector<1x256xf32> to vector<128x256xf32>
    %193 = arith.mulf %191, %192 : vector<128x256xf32>
    %194 = vector.broadcast %190 : vector<128x1xf32> to vector<128x256xf32>
    %195 = arith.addf %193, %194 : vector<128x256xf32>
    %cst_84 = arith.constant 0.000000e+00 : f32
    %196 = vector.broadcast %cst_84 : f32 to vector<128x256xf32>
    %197 = arith.maximumf %195, %196 : vector<128x256xf32>
    %c4_85 = arith.constant 4 : index
    %c0_86 = arith.constant 0 : index
    %c0_87 = arith.constant 0 : index
    %c0_88 = arith.constant 0 : index
    %198 = vector.load %arg3[%c4_85, %c0_86, %c0_87, %c0_88] : memref<8x2x128x128xbf16, #tpu.memory_space<vmem>>, vector<1x1x128x128xbf16>
    %199 = vector.shape_cast %198 : vector<1x1x128x128xbf16> to vector<128x128xbf16>
    %200 = arith.truncf %197 : vector<128x256xf32> to vector<128x256xbf16>
    %cst_89 = arith.constant dense<0.000000e+00> : vector<128x256xf32>
    %201 = tpu.matmul %199, %200, %cst_89 {dimension_numbers = #tpu.dot_dimension_numbers<[1], [0], [0], [1], [0, 0, 1, 1], [], []>} : vector<128x128xbf16>, vector<128x256xbf16>, vector<128x256xf32> -> vector<128x256xf32>
    %202 = vector.extract_strided_slice %187 {offsets = [0, 3], sizes = [128, 1], strides = [1, 1]} : vector<128x5xf32> to vector<128x1xf32>
    %203 = vector.broadcast %202 : vector<128x1xf32> to vector<128x256xf32>
    %204 = arith.addf %201, %203 : vector<128x256xf32>
    %cst_90 = arith.constant 0.000000e+00 : f32
    %205 = vector.broadcast %cst_90 : f32 to vector<128x256xf32>
    %206 = arith.maximumf %204, %205 : vector<128x256xf32>
    %c4_91 = arith.constant 4 : index
    %c1_92 = arith.constant 1 : index
    %c0_93 = arith.constant 0 : index
    %c0_94 = arith.constant 0 : index
    %207 = vector.load %arg3[%c4_91, %c1_92, %c0_93, %c0_94] : memref<8x2x128x128xbf16, #tpu.memory_space<vmem>>, vector<1x1x128x128xbf16>
    %208 = vector.shape_cast %207 : vector<1x1x128x128xbf16> to vector<128x128xbf16>
    %209 = arith.truncf %206 : vector<128x256xf32> to vector<128x256xbf16>
    %cst_95 = arith.constant dense<0.000000e+00> : vector<128x256xf32>
    %210 = tpu.matmul %208, %209, %cst_95 {dimension_numbers = #tpu.dot_dimension_numbers<[1], [0], [0], [1], [0, 0, 1, 1], [], []>} : vector<128x128xbf16>, vector<128x256xbf16>, vector<128x256xf32> -> vector<128x256xf32>
    %211 = vector.extract_strided_slice %187 {offsets = [0, 4], sizes = [128, 1], strides = [1, 1]} : vector<128x5xf32> to vector<128x1xf32>
    %212 = vector.broadcast %211 : vector<128x1xf32> to vector<128x256xf32>
    %213 = arith.addf %210, %212 : vector<128x256xf32>
    %cst_96 = arith.constant 0.000000e+00 : f32
    %214 = vector.broadcast %cst_96 : f32 to vector<128x256xf32>
    %215 = arith.maximumf %213, %214 : vector<128x256xf32>
    %216 = vector.extract_strided_slice %187 {offsets = [0, 2], sizes = [128, 1], strides = [1, 1]} : vector<128x5xf32> to vector<128x1xf32>
    %217 = vector.broadcast %216 : vector<128x1xf32> to vector<128x256xf32>
    %218 = arith.mulf %217, %215 : vector<128x256xf32>
    %cst_97 = arith.constant dense<0.000000e+00> : vector<256xf32>
    %219 = vector.multi_reduction <add>, %218, %cst_97 [0] : vector<128x256xf32> to vector<256xf32>
    %220 = vector.shape_cast %219 : vector<256xf32> to vector<1x256xf32>
    %221 = vector.extract_strided_slice %4 {offsets = [4, 0], sizes = [1, 1], strides = [1, 1]} : vector<8x2xf32> to vector<1x1xf32>
    %222 = vector.extract_strided_slice %4 {offsets = [4, 1], sizes = [1, 1], strides = [1, 1]} : vector<8x2xf32> to vector<1x1xf32>
    %223 = vector.broadcast %221 : vector<1x1xf32> to vector<1x256xf32>
    %224 = arith.addf %220, %223 : vector<1x256xf32>
    %225 = math.tanh %224 : vector<1x256xf32>
    %226 = vector.broadcast %222 : vector<1x1xf32> to vector<1x256xf32>
    %227 = arith.mulf %226, %225 : vector<1x256xf32>
    %cst_98 = arith.constant dense<0.000000e+00> : vector<256xf32>
    %228 = vector.multi_reduction <add>, %227, %cst_98 [0] : vector<1x256xf32> to vector<256xf32>
    %229 = vector.shape_cast %228 : vector<256xf32> to vector<1x256xf32>
    %230 = arith.addf %185, %229 : vector<1x256xf32>
    %c5 = arith.constant 5 : index
    %c0_99 = arith.constant 0 : index
    %c0_100 = arith.constant 0 : index
    %231 = vector.load %arg4[%c5, %c0_99, %c0_100] : memref<8x128x5xf32, #tpu.memory_space<vmem>>, vector<1x128x5xf32>
    %232 = vector.shape_cast %231 : vector<1x128x5xf32> to vector<128x5xf32>
    %c5_101 = arith.constant 5 : index
    %c0_102 = arith.constant 0 : index
    %233 = vector.load %arg2[%c5_101, %c0_102] : memref<8x256xf32, #tpu.memory_space<vmem>>, vector<1x256xf32>
    %234 = vector.extract_strided_slice %232 {offsets = [0, 0], sizes = [128, 1], strides = [1, 1]} : vector<128x5xf32> to vector<128x1xf32>
    %235 = vector.extract_strided_slice %232 {offsets = [0, 1], sizes = [128, 1], strides = [1, 1]} : vector<128x5xf32> to vector<128x1xf32>
    %236 = vector.broadcast %234 : vector<128x1xf32> to vector<128x256xf32>
    %237 = vector.broadcast %233 : vector<1x256xf32> to vector<128x256xf32>
    %238 = arith.mulf %236, %237 : vector<128x256xf32>
    %239 = vector.broadcast %235 : vector<128x1xf32> to vector<128x256xf32>
    %240 = arith.addf %238, %239 : vector<128x256xf32>
    %cst_103 = arith.constant 0.000000e+00 : f32
    %241 = vector.broadcast %cst_103 : f32 to vector<128x256xf32>
    %242 = arith.maximumf %240, %241 : vector<128x256xf32>
    %c5_104 = arith.constant 5 : index
    %c0_105 = arith.constant 0 : index
    %c0_106 = arith.constant 0 : index
    %c0_107 = arith.constant 0 : index
    %243 = vector.load %arg3[%c5_104, %c0_105, %c0_106, %c0_107] : memref<8x2x128x128xbf16, #tpu.memory_space<vmem>>, vector<1x1x128x128xbf16>
    %244 = vector.shape_cast %243 : vector<1x1x128x128xbf16> to vector<128x128xbf16>
    %245 = arith.truncf %242 : vector<128x256xf32> to vector<128x256xbf16>
    %cst_108 = arith.constant dense<0.000000e+00> : vector<128x256xf32>
    %246 = tpu.matmul %244, %245, %cst_108 {dimension_numbers = #tpu.dot_dimension_numbers<[1], [0], [0], [1], [0, 0, 1, 1], [], []>} : vector<128x128xbf16>, vector<128x256xbf16>, vector<128x256xf32> -> vector<128x256xf32>
    %247 = vector.extract_strided_slice %232 {offsets = [0, 3], sizes = [128, 1], strides = [1, 1]} : vector<128x5xf32> to vector<128x1xf32>
    %248 = vector.broadcast %247 : vector<128x1xf32> to vector<128x256xf32>
    %249 = arith.addf %246, %248 : vector<128x256xf32>
    %cst_109 = arith.constant 0.000000e+00 : f32
    %250 = vector.broadcast %cst_109 : f32 to vector<128x256xf32>
    %251 = arith.maximumf %249, %250 : vector<128x256xf32>
    %c5_110 = arith.constant 5 : index
    %c1_111 = arith.constant 1 : index
    %c0_112 = arith.constant 0 : index
    %c0_113 = arith.constant 0 : index
    %252 = vector.load %arg3[%c5_110, %c1_111, %c0_112, %c0_113] : memref<8x2x128x128xbf16, #tpu.memory_space<vmem>>, vector<1x1x128x128xbf16>
    %253 = vector.shape_cast %252 : vector<1x1x128x128xbf16> to vector<128x128xbf16>
    %254 = arith.truncf %251 : vector<128x256xf32> to vector<128x256xbf16>
    %cst_114 = arith.constant dense<0.000000e+00> : vector<128x256xf32>
    %255 = tpu.matmul %253, %254, %cst_114 {dimension_numbers = #tpu.dot_dimension_numbers<[1], [0], [0], [1], [0, 0, 1, 1], [], []>} : vector<128x128xbf16>, vector<128x256xbf16>, vector<128x256xf32> -> vector<128x256xf32>
    %256 = vector.extract_strided_slice %232 {offsets = [0, 4], sizes = [128, 1], strides = [1, 1]} : vector<128x5xf32> to vector<128x1xf32>
    %257 = vector.broadcast %256 : vector<128x1xf32> to vector<128x256xf32>
    %258 = arith.addf %255, %257 : vector<128x256xf32>
    %cst_115 = arith.constant 0.000000e+00 : f32
    %259 = vector.broadcast %cst_115 : f32 to vector<128x256xf32>
    %260 = arith.maximumf %258, %259 : vector<128x256xf32>
    %261 = vector.extract_strided_slice %232 {offsets = [0, 2], sizes = [128, 1], strides = [1, 1]} : vector<128x5xf32> to vector<128x1xf32>
    %262 = vector.broadcast %261 : vector<128x1xf32> to vector<128x256xf32>
    %263 = arith.mulf %262, %260 : vector<128x256xf32>
    %cst_116 = arith.constant dense<0.000000e+00> : vector<256xf32>
    %264 = vector.multi_reduction <add>, %263, %cst_116 [0] : vector<128x256xf32> to vector<256xf32>
    %265 = vector.shape_cast %264 : vector<256xf32> to vector<1x256xf32>
    %266 = vector.extract_strided_slice %4 {offsets = [5, 0], sizes = [1, 1], strides = [1, 1]} : vector<8x2xf32> to vector<1x1xf32>
    %267 = vector.extract_strided_slice %4 {offsets = [5, 1], sizes = [1, 1], strides = [1, 1]} : vector<8x2xf32> to vector<1x1xf32>
    %268 = vector.broadcast %266 : vector<1x1xf32> to vector<1x256xf32>
    %269 = arith.addf %265, %268 : vector<1x256xf32>
    %270 = math.tanh %269 : vector<1x256xf32>
    %271 = vector.broadcast %267 : vector<1x1xf32> to vector<1x256xf32>
    %272 = arith.mulf %271, %270 : vector<1x256xf32>
    %cst_117 = arith.constant dense<0.000000e+00> : vector<256xf32>
    %273 = vector.multi_reduction <add>, %272, %cst_117 [0] : vector<1x256xf32> to vector<256xf32>
    %274 = vector.shape_cast %273 : vector<256xf32> to vector<1x256xf32>
    %275 = arith.addf %230, %274 : vector<1x256xf32>
    %c6 = arith.constant 6 : index
    %c0_118 = arith.constant 0 : index
    %c0_119 = arith.constant 0 : index
    %276 = vector.load %arg4[%c6, %c0_118, %c0_119] : memref<8x128x5xf32, #tpu.memory_space<vmem>>, vector<1x128x5xf32>
    %277 = vector.shape_cast %276 : vector<1x128x5xf32> to vector<128x5xf32>
    %c6_120 = arith.constant 6 : index
    %c0_121 = arith.constant 0 : index
    %278 = vector.load %arg2[%c6_120, %c0_121] : memref<8x256xf32, #tpu.memory_space<vmem>>, vector<1x256xf32>
    %279 = vector.extract_strided_slice %277 {offsets = [0, 0], sizes = [128, 1], strides = [1, 1]} : vector<128x5xf32> to vector<128x1xf32>
    %280 = vector.extract_strided_slice %277 {offsets = [0, 1], sizes = [128, 1], strides = [1, 1]} : vector<128x5xf32> to vector<128x1xf32>
    %281 = vector.broadcast %279 : vector<128x1xf32> to vector<128x256xf32>
    %282 = vector.broadcast %278 : vector<1x256xf32> to vector<128x256xf32>
    %283 = arith.mulf %281, %282 : vector<128x256xf32>
    %284 = vector.broadcast %280 : vector<128x1xf32> to vector<128x256xf32>
    %285 = arith.addf %283, %284 : vector<128x256xf32>
    %cst_122 = arith.constant 0.000000e+00 : f32
    %286 = vector.broadcast %cst_122 : f32 to vector<128x256xf32>
    %287 = arith.maximumf %285, %286 : vector<128x256xf32>
    %c6_123 = arith.constant 6 : index
    %c0_124 = arith.constant 0 : index
    %c0_125 = arith.constant 0 : index
    %c0_126 = arith.constant 0 : index
    %288 = vector.load %arg3[%c6_123, %c0_124, %c0_125, %c0_126] : memref<8x2x128x128xbf16, #tpu.memory_space<vmem>>, vector<1x1x128x128xbf16>
    %289 = vector.shape_cast %288 : vector<1x1x128x128xbf16> to vector<128x128xbf16>
    %290 = arith.truncf %287 : vector<128x256xf32> to vector<128x256xbf16>
    %cst_127 = arith.constant dense<0.000000e+00> : vector<128x256xf32>
    %291 = tpu.matmul %289, %290, %cst_127 {dimension_numbers = #tpu.dot_dimension_numbers<[1], [0], [0], [1], [0, 0, 1, 1], [], []>} : vector<128x128xbf16>, vector<128x256xbf16>, vector<128x256xf32> -> vector<128x256xf32>
    %292 = vector.extract_strided_slice %277 {offsets = [0, 3], sizes = [128, 1], strides = [1, 1]} : vector<128x5xf32> to vector<128x1xf32>
    %293 = vector.broadcast %292 : vector<128x1xf32> to vector<128x256xf32>
    %294 = arith.addf %291, %293 : vector<128x256xf32>
    %cst_128 = arith.constant 0.000000e+00 : f32
    %295 = vector.broadcast %cst_128 : f32 to vector<128x256xf32>
    %296 = arith.maximumf %294, %295 : vector<128x256xf32>
    %c6_129 = arith.constant 6 : index
    %c1_130 = arith.constant 1 : index
    %c0_131 = arith.constant 0 : index
    %c0_132 = arith.constant 0 : index
    %297 = vector.load %arg3[%c6_129, %c1_130, %c0_131, %c0_132] : memref<8x2x128x128xbf16, #tpu.memory_space<vmem>>, vector<1x1x128x128xbf16>
    %298 = vector.shape_cast %297 : vector<1x1x128x128xbf16> to vector<128x128xbf16>
    %299 = arith.truncf %296 : vector<128x256xf32> to vector<128x256xbf16>
    %cst_133 = arith.constant dense<0.000000e+00> : vector<128x256xf32>
    %300 = tpu.matmul %298, %299, %cst_133 {dimension_numbers = #tpu.dot_dimension_numbers<[1], [0], [0], [1], [0, 0, 1, 1], [], []>} : vector<128x128xbf16>, vector<128x256xbf16>, vector<128x256xf32> -> vector<128x256xf32>
    %301 = vector.extract_strided_slice %277 {offsets = [0, 4], sizes = [128, 1], strides = [1, 1]} : vector<128x5xf32> to vector<128x1xf32>
    %302 = vector.broadcast %301 : vector<128x1xf32> to vector<128x256xf32>
    %303 = arith.addf %300, %302 : vector<128x256xf32>
    %cst_134 = arith.constant 0.000000e+00 : f32
    %304 = vector.broadcast %cst_134 : f32 to vector<128x256xf32>
    %305 = arith.maximumf %303, %304 : vector<128x256xf32>
    %306 = vector.extract_strided_slice %277 {offsets = [0, 2], sizes = [128, 1], strides = [1, 1]} : vector<128x5xf32> to vector<128x1xf32>
    %307 = vector.broadcast %306 : vector<128x1xf32> to vector<128x256xf32>
    %308 = arith.mulf %307, %305 : vector<128x256xf32>
    %cst_135 = arith.constant dense<0.000000e+00> : vector<256xf32>
    %309 = vector.multi_reduction <add>, %308, %cst_135 [0] : vector<128x256xf32> to vector<256xf32>
    %310 = vector.shape_cast %309 : vector<256xf32> to vector<1x256xf32>
    %311 = vector.extract_strided_slice %4 {offsets = [6, 0], sizes = [1, 1], strides = [1, 1]} : vector<8x2xf32> to vector<1x1xf32>
    %312 = vector.extract_strided_slice %4 {offsets = [6, 1], sizes = [1, 1], strides = [1, 1]} : vector<8x2xf32> to vector<1x1xf32>
    %313 = vector.broadcast %311 : vector<1x1xf32> to vector<1x256xf32>
    %314 = arith.addf %310, %313 : vector<1x256xf32>
    %315 = math.tanh %314 : vector<1x256xf32>
    %316 = vector.broadcast %312 : vector<1x1xf32> to vector<1x256xf32>
    %317 = arith.mulf %316, %315 : vector<1x256xf32>
    %cst_136 = arith.constant dense<0.000000e+00> : vector<256xf32>
    %318 = vector.multi_reduction <add>, %317, %cst_136 [0] : vector<1x256xf32> to vector<256xf32>
    %319 = vector.shape_cast %318 : vector<256xf32> to vector<1x256xf32>
    %320 = arith.addf %275, %319 : vector<1x256xf32>
    %c7 = arith.constant 7 : index
    %c0_137 = arith.constant 0 : index
    %c0_138 = arith.constant 0 : index
    %321 = vector.load %arg4[%c7, %c0_137, %c0_138] : memref<8x128x5xf32, #tpu.memory_space<vmem>>, vector<1x128x5xf32>
    %322 = vector.shape_cast %321 : vector<1x128x5xf32> to vector<128x5xf32>
    %c7_139 = arith.constant 7 : index
    %c0_140 = arith.constant 0 : index
    %323 = vector.load %arg2[%c7_139, %c0_140] : memref<8x256xf32, #tpu.memory_space<vmem>>, vector<1x256xf32>
    %324 = vector.extract_strided_slice %322 {offsets = [0, 0], sizes = [128, 1], strides = [1, 1]} : vector<128x5xf32> to vector<128x1xf32>
    %325 = vector.extract_strided_slice %322 {offsets = [0, 1], sizes = [128, 1], strides = [1, 1]} : vector<128x5xf32> to vector<128x1xf32>
    %326 = vector.broadcast %324 : vector<128x1xf32> to vector<128x256xf32>
    %327 = vector.broadcast %323 : vector<1x256xf32> to vector<128x256xf32>
    %328 = arith.mulf %326, %327 : vector<128x256xf32>
    %329 = vector.broadcast %325 : vector<128x1xf32> to vector<128x256xf32>
    %330 = arith.addf %328, %329 : vector<128x256xf32>
    %cst_141 = arith.constant 0.000000e+00 : f32
    %331 = vector.broadcast %cst_141 : f32 to vector<128x256xf32>
    %332 = arith.maximumf %330, %331 : vector<128x256xf32>
    %c7_142 = arith.constant 7 : index
    %c0_143 = arith.constant 0 : index
    %c0_144 = arith.constant 0 : index
    %c0_145 = arith.constant 0 : index
    %333 = vector.load %arg3[%c7_142, %c0_143, %c0_144, %c0_145] : memref<8x2x128x128xbf16, #tpu.memory_space<vmem>>, vector<1x1x128x128xbf16>
    %334 = vector.shape_cast %333 : vector<1x1x128x128xbf16> to vector<128x128xbf16>
    %335 = arith.truncf %332 : vector<128x256xf32> to vector<128x256xbf16>
    %cst_146 = arith.constant dense<0.000000e+00> : vector<128x256xf32>
    %336 = tpu.matmul %334, %335, %cst_146 {dimension_numbers = #tpu.dot_dimension_numbers<[1], [0], [0], [1], [0, 0, 1, 1], [], []>} : vector<128x128xbf16>, vector<128x256xbf16>, vector<128x256xf32> -> vector<128x256xf32>
    %337 = vector.extract_strided_slice %322 {offsets = [0, 3], sizes = [128, 1], strides = [1, 1]} : vector<128x5xf32> to vector<128x1xf32>
    %338 = vector.broadcast %337 : vector<128x1xf32> to vector<128x256xf32>
    %339 = arith.addf %336, %338 : vector<128x256xf32>
    %cst_147 = arith.constant 0.000000e+00 : f32
    %340 = vector.broadcast %cst_147 : f32 to vector<128x256xf32>
    %341 = arith.maximumf %339, %340 : vector<128x256xf32>
    %c7_148 = arith.constant 7 : index
    %c1_149 = arith.constant 1 : index
    %c0_150 = arith.constant 0 : index
    %c0_151 = arith.constant 0 : index
    %342 = vector.load %arg3[%c7_148, %c1_149, %c0_150, %c0_151] : memref<8x2x128x128xbf16, #tpu.memory_space<vmem>>, vector<1x1x128x128xbf16>
    %343 = vector.shape_cast %342 : vector<1x1x128x128xbf16> to vector<128x128xbf16>
    %344 = arith.truncf %341 : vector<128x256xf32> to vector<128x256xbf16>
    %cst_152 = arith.constant dense<0.000000e+00> : vector<128x256xf32>
    %345 = tpu.matmul %343, %344, %cst_152 {dimension_numbers = #tpu.dot_dimension_numbers<[1], [0], [0], [1], [0, 0, 1, 1], [], []>} : vector<128x128xbf16>, vector<128x256xbf16>, vector<128x256xf32> -> vector<128x256xf32>
    %346 = vector.extract_strided_slice %322 {offsets = [0, 4], sizes = [128, 1], strides = [1, 1]} : vector<128x5xf32> to vector<128x1xf32>
    %347 = vector.broadcast %346 : vector<128x1xf32> to vector<128x256xf32>
    %348 = arith.addf %345, %347 : vector<128x256xf32>
    %cst_153 = arith.constant 0.000000e+00 : f32
    %349 = vector.broadcast %cst_153 : f32 to vector<128x256xf32>
    %350 = arith.maximumf %348, %349 : vector<128x256xf32>
    %351 = vector.extract_strided_slice %322 {offsets = [0, 2], sizes = [128, 1], strides = [1, 1]} : vector<128x5xf32> to vector<128x1xf32>
    %352 = vector.broadcast %351 : vector<128x1xf32> to vector<128x256xf32>
    %353 = arith.mulf %352, %350 : vector<128x256xf32>
    %cst_154 = arith.constant dense<0.000000e+00> : vector<256xf32>
    %354 = vector.multi_reduction <add>, %353, %cst_154 [0] : vector<128x256xf32> to vector<256xf32>
    %355 = vector.shape_cast %354 : vector<256xf32> to vector<1x256xf32>
    %356 = vector.extract_strided_slice %4 {offsets = [7, 0], sizes = [1, 1], strides = [1, 1]} : vector<8x2xf32> to vector<1x1xf32>
    %357 = vector.extract_strided_slice %4 {offsets = [7, 1], sizes = [1, 1], strides = [1, 1]} : vector<8x2xf32> to vector<1x1xf32>
    %358 = vector.broadcast %356 : vector<1x1xf32> to vector<1x256xf32>
    %359 = arith.addf %355, %358 : vector<1x256xf32>
    %360 = math.tanh %359 : vector<1x256xf32>
    %361 = vector.broadcast %357 : vector<1x1xf32> to vector<1x256xf32>
    %362 = arith.mulf %361, %360 : vector<1x256xf32>
    %cst_155 = arith.constant dense<0.000000e+00> : vector<256xf32>
    %363 = vector.multi_reduction <add>, %362, %cst_155 [0] : vector<1x256xf32> to vector<256xf32>
    %364 = vector.shape_cast %363 : vector<256xf32> to vector<1x256xf32>
    %365 = arith.addf %320, %364 : vector<1x256xf32>
    %c0_156 = arith.constant 0 : index
    %c0_157 = arith.constant 0 : index
    %366 = vector.load %arg6[%c0_156, %c0_157] : memref<1x256xf32, #tpu.memory_space<vmem>>, vector<1x256xf32>
    %367 = arith.addf %366, %365 : vector<1x256xf32>
    %c0_158 = arith.constant 0 : index
    %c0_159 = arith.constant 0 : index
    %368 = vector.load %arg6[%c0_158, %c0_159] : memref<1x256xf32, #tpu.memory_space<vmem>>, vector<1x256xf32>
    tpu.vector_store %arg6[%c0_158, %c0_159], %367 {strides = array<i32>} : memref<1x256xf32, #tpu.memory_space<vmem>>, vector<1x256xf32>,
    return
  }
  func.func @transform_0(%arg0: i32, %arg1: i32) -> (i32, i32) {
    %c0_i32 = arith.constant 0 : i32
    return %arg1, %arg0 : i32, i32
  }
  func.func @transform_1(%arg0: i32, %arg1: i32) -> (i32, i32, i32, i32) {
    %c0_i32 = arith.constant 0 : i32
    %c0_i32_0 = arith.constant 0 : i32
    %c0_i32_1 = arith.constant 0 : i32
    %c0_i32_2 = arith.constant 0 : i32
    return %arg1, %c0_i32, %c0_i32_0, %c0_i32_1 : i32, i32, i32, i32
  }
  func.func @transform_2(%arg0: i32, %arg1: i32) -> (i32, i32, i32) {
    %c0_i32 = arith.constant 0 : i32
    %c0_i32_0 = arith.constant 0 : i32
    %c0_i32_1 = arith.constant 0 : i32
    return %arg1, %c0_i32, %c0_i32_0 : i32, i32, i32
  }
  func.func @transform_3(%arg0: i32, %arg1: i32) -> (i32, i32, i32) {
    %c0_i32 = arith.constant 0 : i32
    %c0_i32_0 = arith.constant 0 : i32
    %c0_i32_1 = arith.constant 0 : i32
    return %arg1, %c0_i32, %c0_i32_0 : i32, i32, i32
  }
  func.func @transform_4(%arg0: i32, %arg1: i32) -> (i32, i32) {
    %c0_i32 = arith.constant 0 : i32
    %c0_i32_0 = arith.constant 0 : i32
    return %c0_i32, %arg0 : i32, i32
  }
}

</mosaic_0001>

<bundles_post_ra>
// kernel: tpu_custom_call.1
= control target key start
LH: loop header
LB: loop body
LE: loop exit
PB: predicated region body
PF: predicated region fallthrough
CT: control target
= control target key end

     0   :  { %9 = vsyncpa [#allocation3], 0  ;;  %s15150_s0 = inlined_call_operand.vmem [shape: f32[16,512], index: 0, kind: input, shape index: {}]   ;;  %s15151_s1 = inlined_call_operand.vmem [shape: bf16[16,2,128,128], index: 1, kind: input, shape index: {}]   ;;  %s15152_s2 = inlined_call_operand.vmem [shape: f32[16,128,5], index: 2, kind: input, shape index: {}]   ;;  %s15153_s3 = inlined_call_operand.vmem [shape: f32[2,8,2], index: 3, kind: input, shape index: {}]   ;;  %s15154_s4 = inlined_call_operand.hbm [shape: f32[1,512], index: 4, kind: output, shape index: {}]  }
   0x1   :  { %11 = vsyncpa [#allocation3 + $0x1], 0  ;;  %s9736_s15 = smov 0   ;;  %s9738_s16 = smov 0  }
   0x2   :  { %s9740_s17 = smov 0   ;;  %s9742_s18 = smov 0  }
   0x3   :  { %s9744_s19 = smov 0   ;;  %s9746_s20 = smov 0  }
   0x4   :  { %s9748_s21 = smov 0   ;;  %s9750_s22 = smov 0  }
   0x5 LB: > { %15558 = sst [smem:[#allocation5_spill]] %s9695_s20  ;;  %s8187_s23 = sadd.s32 4294967295, %s9703_s22   ;;  %s9703_s22 = sphi %s9750_s22, %s17_s22   ;;  %s9699_s21 = sphi %s9748_s21, %s16783_s21   ;;  %s9695_s20 = sphi %s9746_s20, %s16782_s20   ;;  %s9691_s19 = sphi %s9744_s19, %s16781_s19   ;;  %s9687_s18 = sphi %s9742_s18, %s16780_s18   ;;  %s9683_s17 = sphi %s9740_s17, %s16786_s17   ;;  %s9679_s16 = sphi %s9738_s16, %s16785_s16   ;;  %s9675_s15 = sphi %s9736_s15, %s16784_s15  }
   0x6   : > { %15559 = sst [smem:[#allocation6_spill]] %s9699_s21  ;;  %s8188_s24 = sadd.s32 4294967294, %s9703_s22  }
   0x7   : > { %s26_s25 = sadd.s32 1, %s9695_s20  ;;  %s29_s26 = sadd.s32 1, %s9699_s21 }
   0x8   : > { %p27_p0 = scmp.ge.s32.totalorder %s26_s25, 2  ;;  %p152_p1 = scmp.ne.s32.totalorder %s9683_s17, %s9679_s16 }
   0x9   : > { %p153_p2 = scmp.eq.s32.totalorder %s8187_s23, 3  ;;  %p158_p4 = scmp.ne.s32.totalorder %s9679_s16, %s9675_s15 }
   0xa   : > { %s16788_s25 = smov (%p27_p0, %s26_s25), 0  ;;  %s16790_s26 = smov (!%p27_p0, %s29_s26), %s9699_s21 }
   0xb   : > { %15560 = sst [smem:[#allocation7_spill]] %s16788_s25  ;;  %p9783_p3 = por %p153_p2, %p152_p1 }
   0xc   : > { %p31_p5 = scmp.ge.s32.totalorder %s16790_s26, 2  ;;  %p159_p6 = scmp.eq.s32.totalorder %s8188_s24, 3 }
   0xd   : > { %p8191_p7 = scmp.ge.s32.totalorder %s9703_s22, 1  ;;  %p217_p8 = scmp.lt.s32.totalorder %s9703_s22, 5 }
   0xe   : > { %s16792_s26 = smov (%p31_p5, %s16790_s26), 0  ;;  %p9793_p9 = por %p159_p6, %p158_p4 }
   0xf   : > { %15562 = sst [smem:[#allocation8_spill]] %s16792_s26  ;;  %p218_p10 = pnand %p8191_p7, %p217_p8 }
  0x10   : > { %s139_s29 = ssub.s32 %s9699_s21, %s16792_s26  ;;  %s142_s30 = sadd.s32 1, %s9683_s17 }
  0x11   : > { %p140_p11 = scmp.eq.s32.totalorder %s139_s29, 0  ;;  %221 = sbr.rel (%p218_p10) target bundleno = 2412 (0x96c), region = 36 }
  0x13   : > { %s9801_s5 = scalar_select %p140_p11, %s9683_s17, %s142_s30  }
  0x15   : > { %15564 = sst [smem:[#allocation9_spill]] %s9801_s5 }
  0x16   : > { %s15156_s6 = sand.u32 1, %s9679_s16   ;;  %s9804_s7 = sshll.u32 %s9691_s19, 1 }
  0x17   : > { %s8192_s8 = sshll.u32 %s15156_s6, 1  ;;  %p264_p12 = scmp.lt.s32.totalorder %s9687_s18, 1 }
  0x18   : > { %p266_p13 = scmp.lt.s32.totalorder %s9804_s7, 3  ;;  %s8196_s12 = sshll.u32 %s9687_s18, 3 }
  0x19   : > { %s265_s9 = scalar_select %p264_p12, %s9687_s18, 1 }
  0x1a   : > { %s267_s10 = scalar_select %p266_p13, %s9804_s7, 3 }
  0x1b   : > { %s8194_s11 = sshll.u32 %s265_s9, 2  ;;  %p274_p0 = scmp.lt.s32.totalorder %s8196_s12, 15 }
  0x1c   : > { %s269_s13 = sadd.s32 %s8194_s11, %s267_s10  ;;  %s8202_s23 = sshll.u32 %s265_s9, 3 }
  0x1d   : > { %s8195_s14 = sshll.u32 %s269_s13, 3  ;;  %s9821_s25 = scalar_lea.vmem %s15153_s3, %s8202_s23 }
  0x1e   : > { %s9816_s30 = scalar_lea.vmem %s15150_s0, %s8195_s14  ;;  %s16794_s12 = smov (!%p274_p0, %s8196_s12), 15 }
  0x1f   : > { %s9079_s6 = sshll.u32 %s16794_s12, 7  ;;  %s9833_s13 = scalar_lea.vmem [#allocation2], %s8192_s8 }
  0x20   : > { %s9826_s5 = scalar_lea.vmem %s15151_s1, %s9079_s6  ;;  %s9831_s9 = scalar_lea.vmem %s15152_s2, %s9079_s6 }
  0x21   : > { %p8203_p1 = scmp.ne.s32.totalorder %s9687_s18, 0 }
  0x23   : > { %295 = sbr.rel (%p8203_p1) target bundleno = 44 (0x2c), region = 40 }
  0x28   : > { %v296_v0 = vlaneseq  ;;  %v9705_v1 = vmov 0.0  }
  0x2a   : > { %vm298_vm0 = vcmp.lt.s32.totalorder %v296_v0, 256 }
  0x2b   : > { %300 = vst.msk [vmem:[%s9833_s13] sm:$0x3] %vm298_vm0, %v9705_v1 }
  0x2c PF: > { %v9838_v2 = vld [vmem:[%s9831_s9 + $0x20] sm:$0xff]  ;;  %v9841_v3 = vld [vmem:[%s9831_s9 + $0x10] sm:$0xff]  ;;  %v15167_v5 = vmov 0   ;;  %v9853_v6 = vld [vmem:[%s9831_s9 + $0x28] sm:$0xff]  ;;  %v15165_v19 = vmov 1   ;;  %v15163_v20 = vmov 3   ;;  %s8070_s21 = scalar_lea.hbm %s15154_s4, %s9804_s7 }
  0x2d   : > { %v9844_v4 = vld [vmem:[%s9831_s9] sm:$0xff]  ;;  %9288 = vset.pattern.permute.xlu2 %v15167_v5  ;;  %9287 = vset.pattern.permute.xlu1 %v15167_v5  ;;  %v9856_v7 = vld [vmem:[%s9831_s9 + $0x18] sm:$0xff]  ;;  %v9859_v8 = vld [vmem:[%s9831_s9 + $0x8] sm:$0xff]  ;;  %v15161_v33 = vmov 4   ;;  %v15159_v57 = vmov 2   ;;  %vm8050_vm1 = vcmask 1040384  }
  0x2e   : > { %9286 = vset.pattern.permute.xlu0 %v15167_v5  ;;  %341 = vperm.xlu2 %9288, %v9838_v2   ;;  %v9865_v9 = vld [vmem:[%s9831_s9 + $0x40] sm:$0xff]  ;;  %v9868_v10 = vld [vmem:[%s9831_s9 + $0x38] sm:$0xff]  ;;  %v9871_v11 = vld [vmem:[%s9831_s9 + $0x30] sm:$0xff]  ;;  %s8074_s26 = sshll.u32 %s8070_s21, 4  ;;  %s9629_s23 = scalar_lea.hbm %s15154_s4, 4  ;;  %s8075_s26 = int_to_ptr.hbm [resolvable:$true] %s8074_s26 }
  0x2f   : > { %331 = vperm.xlu1 %9287, %v9841_v3   ;;  %321 = vperm.xlu0 %9286, %v9844_v4   ;;  %v9877_v12 = vld [vmem:[%s9831_s9 + $0x58] sm:$0xff]  ;;  %v9880_v13 = vld [vmem:[%s9831_s9 + $0x50] sm:$0xff]  ;;  %v9883_v14 = vld [vmem:[%s9831_s9 + $0x48] sm:$0xff]  ;;  %s9623_s8 = sshra.s32 %s8075_s26, 4  ;;  %s9624_s8 = int_to_ptr.hbm [resolvable:$true] %s9623_s8 }
  0x30   : > { %v9889_v15 = vld [vmem:[%s9831_s9 + $0x70] sm:$0xff]  ;;  %v9892_v16 = vld [vmem:[%s9831_s9 + $0x68] sm:$0xff]  ;;  %v9895_v17 = vld [vmem:[%s9831_s9 + $0x60] sm:$0xff]  ;;  %s9625_s7 = scalar_lea.hbm %s9624_s8, 2  ;;  %p9630_p6 = scmp.lt.s32.totalorder %s9624_s8, %s15154_s4 }
  0x31   : > { %v9901_v18 = vld [vmem:[%s9831_s9 + $0x78] sm:$0xff]  ;;  %v9954_v28 = vld [vmem:[%s9831_s9 + $0x90] sm:$0xff]  ;;  %v9991_v40 = vld [vmem:[%s9831_s9 + $0xe8] sm:$0xff]  ;;  %p9626_p2 = scmp.ne.s32.totalorder %s9624_s8, %s9625_s7  ;;  %p9631_p7 = scmp.lt.s32.totalorder %s9629_s23, %s9625_s7 }
  0x32   : > { %v9965_v31 = vld [vmem:[%s9831_s9 + $0xb8] sm:$0xff]  ;;  %v9978_v36 = vld [vmem:[%s9831_s9 + $0xd0] sm:$0xff]  ;;  %v9999_v45 = vld [vmem:[%s9821_s25] sm:$0xff]  ;;  %s8072_s25 = sshll.u32 %s9833_s13, 4  ;;  %s8073_s25 = int_to_ptr.vmem [resolvable:$true] %s8072_s25 }
  0x33   : > { %v10010_v48 = vld [vmem:[%s9831_s9 + $0x98] sm:$0xff]  ;;  %v10020_v52 = vld [vmem:[%s9831_s9 + $0xb0] sm:$0xff]  ;;  %v10030_v56 = vld [vmem:[%s9831_s9 + $0xc8] sm:$0xff]  ;;  %p9627_p4 = pnand %p9626_p2, %p9783_p3  ;;  %p9632_p8 = por %p9631_p7, %p9630_p6 }
  0x34   : > { %15565 = vst [vmem:[#allocation10_spill] sm:$0xff] %v10030_v56  ;;  %v318_v61 = vld [vmem:[%s9816_s30] ss:$8 sm:$0x3] }
  0x35   : > { %v10043_v62 = vld [vmem:[%s9831_s9 + $0xe0] sm:$0xff]  ;;  %v10045_v0 = vperm.slane %v318_v61, 0  ;;  %v10047_v1 = vperm.slane %v318_v61, 1  ;;  %p9628_p5 = pneg %p9627_p4 }
  0x36   : > { %346 = vperm.xlu2 %9288, %v9853_v6   ;;  %15567 = vst [vmem:[#allocation12_spill] sm:$0xff] %v10043_v62 }
  0x37   : > { %336 = vperm.xlu1 %9287, %v9856_v7   ;;  %326 = vperm.xlu0 %9286, %v9859_v8   ;;  %p9633_p10 = pnand %p9632_p8, %p9628_p5 }
  0x3e   : > { %361 = vperm.xlu2 %9288, %v9865_v9  }
  0x3f   : > { %356 = vperm.xlu1 %9287, %v9868_v10   ;;  %351 = vperm.xlu0 %9286, %v9871_v11  }
  0x46   : > { %376 = vperm.xlu2 %9288, %v9877_v12  }
  0x47   : > { %371 = vperm.xlu1 %9287, %v9880_v13   ;;  %366 = vperm.xlu0 %9286, %v9883_v14  }
  0x4e   : > { %391 = vperm.xlu2 %9288, %v9889_v15  }
  0x4f   : > { %386 = vperm.xlu1 %9287, %v9892_v16   ;;  %381 = vperm.xlu0 %9286, %v9895_v17  }
  0x56   : > { %9290 = vset.pattern.permute.xlu2 %v15165_v19 }
  0x57   : > { %9289 = vset.pattern.permute.xlu1 %v15165_v19  ;;  %396 = vperm.xlu0 %9286, %v9901_v18  }
  0x58   : > { %441 = vperm.xlu2 %9290, %v9859_v8   ;;  %437 = vperm.xlu1 %9289, %v9844_v4  }
  0x5f   : > { %9291 = vset.pattern.permute.xlu0 %v15165_v19 }
  0x60   : > { %453 = vperm.xlu2 %9290, %v9838_v2   ;;  %449 = vperm.xlu1 %9289, %v9856_v7  }
  0x61   : > { %445 = vperm.xlu0 %9291, %v9841_v3  }
  0x68   : > { %461 = vperm.xlu2 %9290, %v9871_v11   ;;  %457 = vperm.xlu1 %9289, %v9853_v6  }
  0x69   : > { %465 = vperm.xlu0 %9291, %v9868_v10  }
  0x70   : > { %473 = vperm.xlu2 %9290, %v9883_v14   ;;  %469 = vperm.xlu1 %9289, %v9865_v9  }
  0x71   : > { %477 = vperm.xlu0 %9291, %v9880_v13  }
  0x78   : > { %485 = vperm.xlu2 %9290, %v9895_v17   ;;  %481 = vperm.xlu1 %9289, %v9877_v12  }
  0x79   : > { %489 = vperm.xlu0 %9291, %v9892_v16  }
  0x80   : > { %497 = vperm.xlu2 %9290, %v9901_v18   ;;  %493 = vperm.xlu1 %9289, %v9889_v15  }
  0x81   : > { %9292 = vset.pattern.permute.xlu0 %v15163_v20 }
  0x82   : > { %597 = vperm.xlu0 %9292, %v9844_v4  }
  0x88   : > { %9294 = vset.pattern.permute.xlu2 %v15163_v20  ;;  %9293 = vset.pattern.permute.xlu1 %v15163_v20  ;;  %v9927_v21 = vpop.permute.xlu2 %341 }
  0x89   : > { %605 = vperm.xlu2 %9294, %v9841_v3   ;;  %601 = vperm.xlu1 %9293, %v9859_v8  }
  0x8a   : > { %617 = vperm.xlu0 %9292, %v9853_v6  }
  0x90   : > { %v9932_v22 = vpop.permute.xlu2 %346 }
  0x91   : > { %613 = vperm.xlu2 %9294, %v9838_v2   ;;  %609 = vperm.xlu1 %9293, %v9856_v7  }
  0x92   : > { %629 = vperm.xlu0 %9292, %v9865_v9  }
  0x98   : > { %v9937_v23 = vpop.permute.xlu2 %361 }
  0x99   : > { %625 = vperm.xlu2 %9294, %v9868_v10   ;;  %621 = vperm.xlu1 %9293, %v9871_v11  }
  0x9a   : > { %641 = vperm.xlu0 %9292, %v9877_v12  }
  0xa0   : > { %v9942_v24 = vpop.permute.xlu2 %376 }
  0xa1   : > { %v9944_v25 = vpop.permute.xlu1 %331  ;;  %637 = vperm.xlu2 %9294, %v9880_v13   ;;  %633 = vperm.xlu1 %9293, %v9883_v14   ;;  %v9948_v26 = vpop.permute.xlu0 %321 }
  0xa2   : > { %653 = vperm.xlu0 %9292, %v9889_v15  }
  0xa8   : > { %v9951_v27 = vpop.permute.xlu2 %391 }
  0xa9   : > { %v9956_v29 = vpop.permute.xlu1 %336  ;;  %649 = vperm.xlu2 %9294, %v9892_v16   ;;  %645 = vperm.xlu1 %9293, %v9895_v17   ;;  %v9960_v30 = vpop.permute.xlu0 %326 }
  0xaa   : > { %9304 = vset.pattern.permute.xlu0 %v15165_v19 }
  0xab   : > { %1415 = vperm.xlu0 %9304, %v9954_v28  }
  0xb1   : > { %v9967_v32 = vpop.permute.xlu1 %356  ;;  %9295 = vset.pattern.permute.xlu2 %v15161_v33  ;;  %657 = vperm.xlu1 %9293, %v9901_v18   ;;  %v9971_v34 = vpop.permute.xlu0 %351 }
  0xb2   : > { %v9973_v35 = vpop.permute.xlu2 %441  ;;  %872 = vperm.xlu2 %9295, %v9844_v4  }
  0xb3   : > { %1435 = vperm.xlu0 %9304, %v9965_v31  }
  0xb9   : > { %v9980_v37 = vpop.permute.xlu1 %371  ;;  %9296 = vset.pattern.permute.xlu1 %v15161_v33  ;;  %v9983_v38 = vpop.permute.xlu0 %366  ;;  %v10065_v33 = vld [vmem:[%s9831_s9 + $0xf8] sm:$0xff] }
  0xba   : > { %v9985_v39 = vpop.permute.xlu2 %453  ;;  %884 = vperm.xlu2 %9295, %v9856_v7   ;;  %880 = vperm.xlu1 %9296, %v9841_v3  }
  0xbb   : > { %1447 = vperm.xlu0 %9304, %v9978_v36  }
  0xc1   : > { %v387_v41 = vpop.permute.xlu1 %386  ;;  %v382_v42 = vpop.permute.xlu0 %381 }
  0xc2   : > { %v9993_v43 = vpop.permute.xlu2 %461  ;;  %892 = vperm.xlu2 %9295, %v9853_v6   ;;  %888 = vperm.xlu1 %9296, %v9838_v2   ;;  %v428_v61 = vmul.f32 %v10045_v0, %v382_v42 }
  0xc3   : > { %1459 = vperm.xlu0 %9304, %v9991_v40  }
  0xc9   : > { %v397_v44 = vpop.permute.xlu0 %396 }
  0xca   : > { %v10001_v46 = vpop.permute.xlu2 %473  ;;  %904 = vperm.xlu2 %9295, %v9865_v9   ;;  %900 = vperm.xlu1 %9296, %v9868_v10   ;;  %v10005_v47 = vpop.permute.xlu1 %437  ;;  %v435_v10 = vmul.f32 %v10047_v1, %v397_v44 }
  0xcb   : > { %9305 = vset.pattern.permute.xlu0 %v15167_v5 }
  0xcc   : > { %1253 = vperm.xlu0 %9305, %v9999_v45  }
  0xd2   : > { %v486_v49 = vpop.permute.xlu2 %485  ;;  %916 = vperm.xlu2 %9295, %v9877_v12   ;;  %912 = vperm.xlu1 %9296, %v9880_v13   ;;  %v10014_v50 = vpop.permute.xlu1 %449  ;;  %v432_v13 = vmul.f32 %v10045_v0, %v9951_v27 }
  0xd3   : > { %v10016_v51 = vpop.permute.xlu0 %445 }
  0xd4   : > { %1306 = vperm.xlu0 %9305, %v10010_v48  }
  0xda   : > { %v498_v53 = vpop.permute.xlu2 %497  ;;  %928 = vperm.xlu2 %9295, %v9889_v15   ;;  %924 = vperm.xlu1 %9296, %v9892_v16   ;;  %v10024_v54 = vpop.permute.xlu1 %457  ;;  %v430_v16 = vmul.f32 %v10045_v0, %v387_v41 }
  0xdb   : > { %v10026_v55 = vpop.permute.xlu0 %465  ;;  %v531_v19 = vadd.f32 %v498_v53, %v435_v10 }
  0xdc   : > { %1321 = vperm.xlu0 %9305, %v10020_v52  }
  0xe2   : > { %9298 = vset.pattern.permute.xlu2 %v15159_v57  ;;  %9297 = vset.pattern.permute.xlu1 %v15159_v57  ;;  %v10034_v58 = vpop.permute.xlu1 %469  ;;  %v429_v57 = vmul.f32 %v10047_v1, %v382_v42 }
  0xe3   : > { %v478_v59 = vpop.permute.xlu0 %477  ;;  %v10036_v60 = vpop.permute.xlu2 %605  ;;  %1118 = vperm.xlu2 %9298, %v9859_v8   ;;  %1114 = vperm.xlu1 %9297, %v9844_v4   ;;  %v434_v4 = vmul.f32 %v10045_v0, %v397_v44 }
  0xe4   : > { %15566 = vst [vmem:[#allocation11_spill] sm:$0xff] %v10036_v60  ;;  %1336 = vperm.xlu0 %9305, %v10030_v56   ;;  %v524_v56 = vadd.f32 %v486_v49, %v428_v61 }
  0xe5   : > { %v530_v20 = vadd.f32 %v498_v53, %v434_v4  ;;  %v525_v4 = vadd.f32 %v486_v49, %v429_v57 }
  0xe7   : > { %v562_v10 = vmax.f32 %v530_v20, 0.0  ;;  %v421_v20 = vmul.f32 %v10047_v1, %v9937_v23 }
  0xea   : > { %v482_v63 = vpop.permute.xlu1 %481 }
  0xeb   : > { %v10049_v3 = vpop.permute.xlu2 %613  ;;  %1130 = vperm.xlu2 %9298, %v9838_v2   ;;  %1126 = vperm.xlu1 %9297, %v9856_v7   ;;  %v490_v8 = vpop.permute.xlu0 %489  ;;  %v433_v2 = vmul.f32 %v10047_v1, %v9951_v27  ;;  %v431_v7 = vmul.f32 %v10047_v1, %v387_v41  ;;  %v426_v27 = vmul.f32 %v10045_v0, %v9942_v24 }
  0xec   : > { %15568 = vst [vmem:[#allocation13_spill] sm:$0xff] %v10049_v3  ;;  %1351 = vperm.xlu0 %9305, %v10043_v62   ;;  %v526_v5 = vadd.f32 %v490_v8, %v430_v16  ;;  %v427_v41 = vmul.f32 %v10047_v1, %v9942_v24 }
  0xed   : > { %v527_v60 = vadd.f32 %v490_v8, %v431_v7 }
  0xee   : > { %v523_v7 = vadd.f32 %v482_v63, %v427_v41  ;;  %v558_v49 = vmax.f32 %v526_v5, 0.0  ;;  %v557_v5 = vmax.f32 %v525_v4, 0.0  ;;  %v517_v41 = vadd.f32 %v10034_v58, %v421_v20 }
  0xef   : > { %v559_v57 = vmax.f32 %v527_v60, 0.0  ;;  %v419_v4 = vmul.f32 %v10047_v1, %v9967_v32  ;;  %v415_v20 = vmul.f32 %v10047_v1, %v9932_v22 }
  0xf2   : > { %v494_v44 = vpop.permute.xlu1 %493 }
  0xf3   : > { %v10067_v3 = vpop.permute.xlu2 %625  ;;  %1138 = vperm.xlu2 %9298, %v9871_v11   ;;  %1134 = vperm.xlu1 %9297, %v9853_v6   ;;  %v528_v62 = vadd.f32 %v494_v44, %v432_v13  ;;  %v529_v42 = vadd.f32 %v494_v44, %v433_v2  ;;  %v563_v11 = vmax.f32 %v531_v19, 0.0  ;;  %v424_v6 = vmul.f32 %v10045_v0, %v9980_v37 }
  0xf4   : > { %15569 = vst [vmem:[#allocation14_spill] sm:$0xff] %v10067_v3  ;;  %1366 = vperm.xlu0 %9305, %v10065_v33   ;;  %v10076_v53 = vpop.permute.xlu0 %597  ;;  %v425_v13 = vmul.f32 %v10047_v1, %v9980_v37  ;;  %v522_v2 = vadd.f32 %v482_v63, %v426_v27  ;;  %v420_v44 = vmul.f32 %v10045_v0, %v9937_v23  ;;  %v8397_v63 = vld [vmem:[%s9831_s9 + $0x100] sm:$0xff]  ;;  %v556_v27 = vmax.f32 %v524_v56, 0.0 }
  0xf5   : > { %15570 = vst [vmem:[#allocation15_spill] sm:$0xff] %v10076_v53  ;;  %v560_v8 = vmax.f32 %v528_v62, 0.0  ;;  %v561_v16 = vmax.f32 %v529_v42, 0.0  ;;  %v422_v19 = vmul.f32 %v10045_v0, %v9983_v38  ;;  %v423_v62 = vmul.f32 %v10047_v1, %v9983_v38 }
  0xf6   : > { %v520_v42 = vadd.f32 %v478_v59, %v424_v6  ;;  %v521_v37 = vadd.f32 %v478_v59, %v425_v13  ;;  %v516_v60 = vadd.f32 %v10034_v58, %v420_v44  ;;  %v592_v38 = vpack.c.bf16 %v558_v49, %v556_v27 }
  0xf7   : > { %v594_v24 = vpack.c.bf16 %v562_v10, %v560_v8  ;;  %v595_v61 = vpack.c.bf16 %v563_v11, %v561_v16  ;;  %v593_v10 = vpack.c.bf16 %v559_v57, %v557_v5  ;;  %v554_v59 = vmax.f32 %v522_v2, 0.0 }
  0xf8   : > { %v555_v16 = vmax.f32 %v523_v7, 0.0  ;;  %v418_v56 = vmul.f32 %v10045_v0, %v9967_v32  ;;  %v416_v58 = vmul.f32 %v10045_v0, %v9971_v34  ;;  %v518_v11 = vadd.f32 %v10001_v46, %v422_v19 }
  0xf9   : > { %708 = vmatpush.bf16.msra.mxu0 %v594_v24  ;;  %757 = vmatpush.bf16.msra.mxu1 %v595_v61  ;;  %v519_v6 = vadd.f32 %v10001_v46, %v423_v62  ;;  %v552_v13 = vmax.f32 %v520_v42, 0.0  ;;  %v553_v2 = vmax.f32 %v521_v37, 0.0  ;;  %v515_v7 = vadd.f32 %v10026_v55, %v419_v4  ;;  %v8402_v62 = vld [vmem:[%s9831_s9 + $0x128] sm:$0xff] }
  0xfa   : > { %v514_v32 = vadd.f32 %v10026_v55, %v418_v56  ;;  %v548_v49 = vmax.f32 %v516_v60, 0.0  ;;  %v412_v57 = vmul.f32 %v10045_v0, %v9927_v21  ;;  %v413_v44 = vmul.f32 %v10047_v1, %v9927_v21 }
  0xfb   : > { %v10093_v8 = vpop.permute.xlu2 %637  ;;  %1150 = vperm.xlu2 %9298, %v9883_v14   ;;  %1146 = vperm.xlu1 %9297, %v9865_v9   ;;  %v10097_v23 = vpop.permute.xlu1 %601  ;;  %v417_v14 = vmul.f32 %v10047_v1, %v9971_v34  ;;  %v590_v24 = vpack.c.bf16 %v554_v59, %v552_v13  ;;  %v591_v61 = vpack.c.bf16 %v555_v16, %v553_v2  ;;  %v549_v34 = vmax.f32 %v517_v41, 0.0 }
  0xfc   : > { %15571 = vst [vmem:[#allocation16_spill] sm:$0xff] %v10093_v8  ;;  %2259 = vperm.xlu0 %9305, %v8397_v63   ;;  %v10107_v9 = vpop.permute.xlu0 %617  ;;  %v414_v46 = vmul.f32 %v10045_v0, %v9932_v22  ;;  %v512_v19 = vadd.f32 %v9993_v43, %v416_v58  ;;  %v550_v42 = vmax.f32 %v518_v11, 0.0  ;;  %v551_v37 = vmax.f32 %v519_v6, 0.0 }
  0xfd   : > { %15572 = vst [vmem:[#allocation17_spill] sm:$0xff] %v10097_v23  ;;  %709 = vmatpush.bf16.msra.mxu0 %v592_v38  ;;  %758 = vmatpush.bf16.msra.mxu1 %v593_v10  ;;  %v513_v55 = vadd.f32 %v9993_v43, %v417_v14  ;;  %v408_v63 = vmul.f32 %v10045_v0, %v9944_v25  ;;  %v546_v38 = vmax.f32 %v514_v32, 0.0  ;;  %v547_v10 = vmax.f32 %v515_v7, 0.0 }
  0xfe   : > { %15573 = vst [vmem:[#allocation18_spill] sm:$0xff] %v10107_v9  ;;  %v409_v21 = vmul.f32 %v10047_v1, %v9944_v25  ;;  %v510_v27 = vadd.f32 %v10024_v54, %v414_v46  ;;  %v511_v5 = vadd.f32 %v10024_v54, %v415_v20  ;;  %v588_v60 = vpack.c.bf16 %v550_v42, %v548_v49 }
  0xff   : > { %v589_v41 = vpack.c.bf16 %v551_v37, %v549_v34  ;;  %v404_v59 = vmul.f32 %v10045_v0, %v9948_v26  ;;  %v410_v25 = vmul.f32 %v10045_v0, %v9956_v29  ;;  %v411_v54 = vmul.f32 %v10047_v1, %v9956_v29 }
 0x100   : > { %v508_v16 = vadd.f32 %v9985_v39, %v412_v57  ;;  %v509_v56 = vadd.f32 %v9985_v39, %v413_v44  ;;  %v544_v4 = vmax.f32 %v512_v19, 0.0  ;;  %v545_v58 = vmax.f32 %v513_v55, 0.0 }
 0x101   : > { %710 = vmatpush.bf16.msra.mxu0 %v590_v24  ;;  %759 = vmatpush.bf16.msra.mxu1 %v591_v61  ;;  %v506_v14 = vadd.f32 %v10014_v50, %v410_v25  ;;  %v507_v11 = vadd.f32 %v10014_v50, %v411_v54  ;;  %v504_v29 = vadd.f32 %v10016_v51, %v408_v63  ;;  %v542_v2 = vmax.f32 %v510_v27, 0.0  ;;  %v8405_v24 = vld [vmem:[%s9831_s9 + $0x140] sm:$0xff]  ;;  %v8411_v54 = vld [vmem:[%s9831_s9 + $0x170] sm:$0xff] }
 0x102   : > { %v586_v6 = vpack.c.bf16 %v546_v38, %v544_v4  ;;  %v587_v13 = vpack.c.bf16 %v547_v10, %v545_v58  ;;  %v543_v32 = vmax.f32 %v511_v5, 0.0  ;;  %v405_v39 = vmul.f32 %v10047_v1, %v9948_v26  ;;  %v10171_v27 = vld [vmem:[%s9831_s9 + $0x80] sm:$0xff]  ;;  %v8512_v4 = vld [vmem:[%s9831_s9 + $0x190] sm:$0xff]  ;;  %v10199_v58 = vld [vmem:[%s9831_s9 + $0xa8] sm:$0xff] }
 0x103   : > { %v10130_v22 = vpop.permute.xlu2 %649  ;;  %1162 = vperm.xlu2 %9298, %v9895_v17   ;;  %1158 = vperm.xlu1 %9297, %v9877_v12   ;;  %v10134_v43 = vpop.permute.xlu1 %609  ;;  %v406_v17 = vmul.f32 %v10045_v0, %v9960_v30  ;;  %v505_v0 = vadd.f32 %v10016_v51, %v409_v21  ;;  %v407_v7 = vmul.f32 %v10047_v1, %v9960_v30  ;;  %v540_v61 = vmax.f32 %v508_v16, 0.0  ;;  %v10188_v16 = vld [vmem:[%s9831_s9 + $0x88] sm:$0xff] }
 0x104   : > { %15574 = vst [vmem:[#allocation19_spill] sm:$0xff] %v10134_v43  ;;  %2284 = vperm.xlu0 %9305, %v8402_v62   ;;  %v10144_v12 = vpop.permute.xlu0 %629  ;;  %v541_v49 = vmax.f32 %v509_v56, 0.0  ;;  %v500_v34 = vadd.f32 %v10005_v47, %v404_v59  ;;  %v538_v51 = vmax.f32 %v506_v14, 0.0  ;;  %v539_v57 = vmax.f32 %v507_v11, 0.0  ;;  %v9081_v59 = vld [vmem:[%s9826_s5] sm:$0xff] }
 0x105   : > { %15575 = vst [vmem:[#allocation20_spill] sm:$0xff] %v10144_v12  ;;  %711 = vmatpush.bf16.msra.mxu0 %v588_v60  ;;  %760 = vmatpush.bf16.msra.mxu1 %v589_v41  ;;  %v502_v50 = vadd.f32 %v9973_v35, %v406_v17  ;;  %v584_v26 = vpack.c.bf16 %v542_v2, %v540_v61  ;;  %v536_v30 = vmax.f32 %v504_v29, 0.0  ;;  %v537_v1 = vmax.f32 %v505_v0, 0.0  ;;  %v10204_v11 = vld [vmem:[%s9831_s9 + $0xa0] sm:$0xff]  ;;  %v9082_v0 = vld [vmem:[%s9826_s5 + $0x8] sm:$0xff]  ;;  %v10227_v61 = vld [vmem:[%s9831_s9 + $0xd8] sm:$0xff] }
 0x106   : > { %v585_v46 = vpack.c.bf16 %v543_v32, %v541_v49  ;;  %v503_v20 = vadd.f32 %v9973_v35, %v407_v7  ;;  %v501_v19 = vadd.f32 %v10005_v47, %v405_v39  ;;  %v532_v42 = vmax.f32 %v500_v34, 0.0  ;;  %v8408_v35 = vld [vmem:[%s9831_s9 + $0x158] sm:$0xff]  ;;  %v10215_v2 = vld [vmem:[%s9831_s9 + $0xc0] sm:$0xff]  ;;  %v9083_v34 = vld [vmem:[%s9826_s5 + $0x10] sm:$0xff] }
 0x107   : > { %v534_v37 = vmax.f32 %v502_v50, 0.0  ;;  %v15579_v47 = vmov 0   ;;  %v15580_v5 = vmov 1   ;;  %v15644_v9 = vmov 2  }
 0x108   : > { %v533_v63 = vmax.f32 %v501_v19, 0.0  ;;  %v535_v21 = vmax.f32 %v503_v20, 0.0  ;;  %v10251_v20 = vld [vmem:[%s9831_s9 + $0x108] sm:$0xff] }
 0x109   : > { %712 = vmatpush.bf16.msra.mxu0 %v586_v6  ;;  %761 = vmatpush.bf16.msra.mxu1 %v587_v13  ;;  %v580_v41 = vpack.c.bf16 %v534_v37, %v532_v42  ;;  %v8517_v13 = vld [vmem:[%s9831_s9 + $0x1b8] sm:$0xff]  ;;  %v10267_v37 = vld [vmem:[%s9831_s9 + $0x130] sm:$0xff] }
 0x10a   : > { %v581_v10 = vpack.c.bf16 %v535_v21, %v533_v63  ;;  %15594 = vst [vmem:[#allocation37_spill] sm:$0xff] %v10267_v37 }
 0x10b   : > { %1174 = vperm.xlu2 %9298, %v9901_v18   ;;  %1170 = vperm.xlu1 %9297, %v9889_v15   ;;  %v10161_v44 = vpop.permute.xlu1 %621  ;;  %v582_v15 = vpack.c.bf16 %v538_v51, %v536_v30  ;;  %v583_v18 = vpack.c.bf16 %v539_v57, %v537_v1  ;;  %v8523_v57 = vld [vmem:[%s9831_s9 + $0x1e8] sm:$0xff] }
 0x10c   : > { %15576 = vst [vmem:[#allocation21_spill] sm:$0xff] %v10161_v44  ;;  %2299 = vperm.xlu0 %9305, %v8405_v24   ;;  %v10165_v55 = vpop.permute.xlu2 %872  ;;  %v10167_v62 = vpop.permute.xlu0 %641  ;;  %v8520_v24 = vld [vmem:[%s9831_s9 + $0x1d0] sm:$0xff] }
 0x10d   : > { %15577 = vst [vmem:[#allocation22_spill] sm:$0xff] %v10165_v55  ;;  %713 = vmatpush.bf16.msra.mxu0 %v584_v26  ;;  %762 = vmatpush.bf16.msra.mxu1 %v585_v46  ;;  %v10240_v26 = vld [vmem:[%s9831_s9 + $0xf0] sm:$0xff] }
 0x10e   : > { %15578 = vst [vmem:[#allocation23_spill] sm:$0xff] %v10167_v62 }
 0x111   : > { %714 = vmatpush.bf16.msra.mxu0 %v582_v15  ;;  %763 = vmatpush.bf16.msra.mxu1 %v583_v18  ;;  %v9084_v15 = vld [vmem:[%s9826_s5 + $0x18] sm:$0xff] }
 0x113   : > { %9300 = vset.pattern.permute.xlu2 %v15579_v47  ;;  %9299 = vset.pattern.permute.xlu1 %v15580_v5  ;;  %v10175_v60 = vpop.permute.xlu1 %633 }
 0x114   : > { %15581 = vst [vmem:[#allocation24_spill] sm:$0xff] %v10175_v60  ;;  %2314 = vperm.xlu0 %9305, %v8408_v35   ;;  %1291 = vperm.xlu2 %9300, %v10171_v27   ;;  %v10178_v38 = vpop.permute.xlu2 %884  ;;  %v10181_v25 = vpop.permute.xlu0 %653 }
 0x115   : > { %15582 = vst [vmem:[#allocation25_spill] sm:$0xff] %v10178_v38  ;;  %1261 = vperm.xlu1 %9299, %v9999_v45   ;;  %715 = vmatpush.bf16.msra.mxu0 %v580_v41  ;;  %v10279_v41 = vld [vmem:[%s9831_s9 + $0x148] sm:$0xff] }
 0x116   : > { %764 = vmatpush.bf16.msra.mxu1 %v581_v10  ;;  %15597 = vst [vmem:[#allocation40_spill] sm:$0xff] %v10279_v41  ;;  %v9085_v10 = vld [vmem:[%s9826_s5 + $0x20] sm:$0xff] }
 0x118   : > { %716 = vmatmul.bf16.vlgmr.msra.gmra.mxu0 %v9081_v59 }
 0x119   : > { %765 = vmatmul.bf16.vlgmr.msra.gmra.mxu1 %v9081_v59 }
 0x11b   : > { %v10185_v17 = vpop.permute.xlu1 %645 }
 0x11c   : > { %2329 = vperm.xlu0 %9305, %v8411_v54   ;;  %1301 = vperm.xlu2 %9300, %v9954_v28   ;;  %v10191_v56 = vpop.permute.xlu2 %892 }
 0x11d   : > { %15583 = vst [vmem:[#allocation26_spill] sm:$0xff] %v10191_v56  ;;  %9301 = vset.pattern.permute.xlu1 %v15579_v47  ;;  %v10194_v45 = vpop.permute.xlu0 %1415 }
 0x11e   : > { %1296 = vperm.xlu1 %9301, %v10188_v16  }
 0x123   : > { %v10201_v14 = vpop.permute.xlu1 %657 }
 0x124   : > { %3237 = vperm.xlu0 %9305, %v8512_v4   ;;  %1316 = vperm.xlu2 %9300, %v10199_v58   ;;  %v10207_v29 = vpop.permute.xlu2 %904 }
 0x125   : > { %15584 = vst [vmem:[#allocation27_spill] sm:$0xff] %v10207_v29  ;;  %v10210_v6 = vpop.permute.xlu0 %1435 }
 0x126   : > { %1311 = vperm.xlu1 %9301, %v10204_v11  }
 0x128   : > { %721 = vmatmul.bf16.gmra.mxu0 %v9082_v0 }
 0x129   : > { %770 = vmatmul.bf16.gmra.mxu1 %v9082_v0  ;;  %v10292_v0 = vld [vmem:[%s9831_s9 + $0x160] sm:$0xff] }
 0x12a   : > { %15600 = vst [vmem:[#allocation43_spill] sm:$0xff] %v10292_v0 }
 0x12c   : > { %3262 = vperm.xlu0 %9305, %v8517_v13   ;;  %1331 = vperm.xlu2 %9300, %v10215_v2   ;;  %v10218_v32 = vpop.permute.xlu2 %916  ;;  %v10220_v39 = vpop.permute.xlu1 %880  ;;  %v15601_v13 = vld [vmem:[#allocation10_spill] sm:$0xff] }
 0x12d   : > { %15585 = vst [vmem:[#allocation28_spill] sm:$0xff] %v10218_v32  ;;  %v10222_v7 = vpop.permute.xlu0 %1447  ;;  %v9087_v32 = vld [vmem:[%s9826_s5 + $0x30] sm:$0xff] }
 0x12e   : > { %15586 = vst [vmem:[#allocation29_spill] sm:$0xff] %v10220_v39  ;;  %1326 = vperm.xlu1 %9301, %v9965_v31  }
 0x134   : > { %3277 = vperm.xlu0 %9305, %v8520_v24   ;;  %1346 = vperm.xlu2 %9300, %v10227_v61   ;;  %v10230_v49 = vpop.permute.xlu2 %928  ;;  %v10232_v50 = vpop.permute.xlu1 %888 }
 0x135   : > { %15587 = vst [vmem:[#allocation30_spill] sm:$0xff] %v10230_v49  ;;  %v10235_v51 = vpop.permute.xlu0 %1459 }
 0x136   : > { %15588 = vst [vmem:[#allocation31_spill] sm:$0xff] %v10232_v50  ;;  %1341 = vperm.xlu1 %9301, %v9978_v36  }
 0x138   : > { %726 = vmatmul.bf16.gmra.mxu0 %v9083_v34 }
 0x139   : > { %775 = vmatmul.bf16.gmra.mxu1 %v9083_v34 }
 0x13c   : > { %3292 = vperm.xlu0 %9305, %v8523_v57   ;;  %1361 = vperm.xlu2 %9300, %v10240_v26   ;;  %v10243_v46 = vpop.permute.xlu1 %900 }
 0x13d   : > { %15589 = vst [vmem:[#allocation32_spill] sm:$0xff] %v10243_v46  ;;  %v10245_v30 = vpop.permute.xlu2 %1118  ;;  %v8521_v46 = vld [vmem:[%s9831_s9 + $0x1d8] sm:$0xff] }
 0x13e   : > { %15590 = vst [vmem:[#allocation33_spill] sm:$0xff] %v10245_v30  ;;  %1356 = vperm.xlu1 %9301, %v9991_v40   ;;  %v10248_v1 = vpop.permute.xlu0 %1253  ;;  %v8510_v30 = vld [vmem:[%s9831_s9 + $0x180] sm:$0xff] }
 0x13f   : > { %15591 = vst [vmem:[#allocation34_spill] sm:$0xff] %v10248_v1  ;;  %v9086_v1 = vld [vmem:[%s9826_s5 + $0x28] sm:$0xff] }
 0x144   : > { %9324 = vset.pattern.permute.xlu0 %v15580_v5  ;;  %9303 = vset.pattern.permute.xlu2 %v15580_v5  ;;  %v10255_v19 = vpop.permute.xlu1 %912 }
 0x145   : > { %15592 = vst [vmem:[#allocation35_spill] sm:$0xff] %v10255_v19  ;;  %2379 = vperm.xlu0 %9324, %v10251_v20   ;;  %1411 = vperm.xlu2 %9303, %v10188_v16   ;;  %v10260_v18 = vpop.permute.xlu2 %1130 }
 0x146   : > { %15593 = vst [vmem:[#allocation36_spill] sm:$0xff] %v10260_v18  ;;  %9302 = vset.pattern.permute.xlu1 %v15580_v5  ;;  %v10263_v42 = vpop.permute.xlu0 %1306  ;;  %v8518_v18 = vld [vmem:[%s9831_s9 + $0x1c0] sm:$0xff] }
 0x147   : > { %1407 = vperm.xlu1 %9302, %v10171_v27  }
 0x148   : > { %731 = vmatmul.bf16.gmra.mxu0 %v9084_v15 }
 0x149   : > { %780 = vmatmul.bf16.gmra.mxu1 %v9084_v15  ;;  %v10304_v15 = vld [vmem:[%s9831_s9 + $0x178] sm:$0xff] }
 0x14a   : > { %15604 = vst [vmem:[#allocation45_spill] sm:$0xff] %v10304_v15 }
 0x14c   : > { %v10269_v63 = vpop.permute.xlu1 %924 }
 0x14d   : > { %15595 = vst [vmem:[#allocation38_spill] sm:$0xff] %v10269_v63  ;;  %2399 = vperm.xlu0 %9324, %v10267_v37   ;;  %1423 = vperm.xlu2 %9303, %v10204_v11   ;;  %v10273_v21 = vpop.permute.xlu2 %1138 }
 0x14e   : > { %15596 = vst [vmem:[#allocation39_spill] sm:$0xff] %v10273_v21  ;;  %v10275_v35 = vpop.permute.xlu0 %1321 }
 0x14f   : > { %1419 = vperm.xlu1 %9302, %v10010_v48  }
 0x155   : > { %2411 = vperm.xlu0 %9324, %v10279_v41   ;;  %1431 = vperm.xlu2 %9303, %v10020_v52   ;;  %v10284_v59 = vpop.permute.xlu2 %1150  ;;  %v10286_v54 = vpop.permute.xlu1 %1114 }
 0x156   : > { %15598 = vst [vmem:[#allocation41_spill] sm:$0xff] %v10284_v59  ;;  %v10288_v4 = vpop.permute.xlu0 %1336 }
 0x157   : > { %15599 = vst [vmem:[#allocation42_spill] sm:$0xff] %v10286_v54  ;;  %1427 = vperm.xlu1 %9302, %v10199_v58   ;;  %v9088_v54 = vld [vmem:[%s9826_s5 + $0x38] sm:$0xff] }
 0x158   : > { %736 = vmatmul.bf16.gmra.mxu0 %v9085_v10 }
 0x159   : > { %785 = vmatmul.bf16.gmra.mxu1 %v9085_v10  ;;  %v15605_v10 = vld [vmem:[#allocation12_spill] sm:$0xff] }
 0x15d   : > { %2423 = vperm.xlu0 %9324, %v10292_v0   ;;  %1443 = vperm.xlu2 %9303, %v15601_v13   ;;  %v10296_v24 = vpop.permute.xlu2 %1162  ;;  %v10298_v34 = vpop.permute.xlu1 %1126 }
 0x15e   : > { %15602 = vst [vmem:[#allocation10_spill] sm:$0xff] %v10296_v24  ;;  %v10300_v57 = vpop.permute.xlu0 %1351 }
 0x15f   : > { %15603 = vst [vmem:[#allocation44_spill] sm:$0xff] %v10298_v34  ;;  %1439 = vperm.xlu1 %9302, %v10215_v2  }
 0x165   : > { %2435 = vperm.xlu0 %9324, %v10304_v15   ;;  %1455 = vperm.xlu2 %9303, %v15605_v10   ;;  %v10309_v59 = vpop.permute.xlu2 %1174  ;;  %v10311_v21 = vpop.permute.xlu1 %1134 }
 0x166   : > { %15606 = vst [vmem:[#allocation12_spill] sm:$0xff] %v10309_v59  ;;  %v10313_v24 = vpop.permute.xlu0 %1366  ;;  %v8515_v59 = vld [vmem:[%s9831_s9 + $0x1a8] sm:$0xff] }
 0x167   : > { %15607 = vst [vmem:[#allocation46_spill] sm:$0xff] %v10311_v21  ;;  %1451 = vperm.xlu1 %9302, %v10227_v61   ;;  %v15610_v21 = vmov 3  }
 0x168   : > { %741 = vmatmul.bf16.gmra.mxu0 %v9086_v1 }
 0x169   : > { %790 = vmatmul.bf16.gmra.mxu1 %v9086_v1 }
 0x16d   : > { %3343 = vperm.xlu0 %9324, %v8510_v30   ;;  %1467 = vperm.xlu2 %9303, %v10065_v33   ;;  %v10318_v63 = vpop.permute.xlu1 %1146 }
 0x16e   : > { %15608 = vst [vmem:[#allocation47_spill] sm:$0xff] %v10318_v63  ;;  %v10320_v49 = vpop.permute.xlu2 %1291  ;;  %v10322_v19 = vpop.permute.xlu0 %2259 }
 0x16f   : > { %15609 = vst [vmem:[#allocation48_spill] sm:$0xff] %v10322_v19  ;;  %1463 = vperm.xlu1 %9302, %v10240_v26  }
 0x175   : > { %3363 = vperm.xlu0 %9324, %v8515_v59   ;;  %9307 = vset.pattern.permute.xlu2 %v15610_v21  ;;  %v10328_v1 = vpop.permute.xlu1 %1158 }
 0x176   : > { %15611 = vst [vmem:[#allocation49_spill] sm:$0xff] %v10328_v1  ;;  %1576 = vperm.xlu2 %9307, %v9954_v28   ;;  %v10331_v30 = vpop.permute.xlu2 %1301  ;;  %v10333_v63 = vpop.permute.xlu0 %2284 }
 0x177   : > { %15612 = vst [vmem:[#allocation50_spill] sm:$0xff] %v10333_v63  ;;  %9306 = vset.pattern.permute.xlu1 %v15610_v21  ;;  %v15623_v63 = vmov 4  }
 0x178   : > { %1572 = vperm.xlu1 %9306, %v10188_v16   ;;  %746 = vmatmul.bf16.gmra.mxu0 %v9087_v32 }
 0x179   : > { %795 = vmatmul.bf16.gmra.mxu1 %v9087_v32 }
 0x17d   : > { %3375 = vperm.xlu0 %9324, %v8518_v18   ;;  %v10338_v59 = vpop.permute.xlu1 %1170 }
 0x17e   : > { %15613 = vst [vmem:[#allocation51_spill] sm:$0xff] %v10338_v59  ;;  %1584 = vperm.xlu2 %9307, %v10204_v11   ;;  %v10341_v1 = vpop.permute.xlu2 %1316  ;;  %v10343_v34 = vpop.permute.xlu0 %2299  ;;  %v8524_v59 = vld [vmem:[%s9831_s9 + $0x1f0] sm:$0xff] }
 0x17f   : > { %15614 = vst [vmem:[#allocation52_spill] sm:$0xff] %v10343_v34 }
 0x180   : > { %1580 = vperm.xlu1 %9306, %v10010_v48  }
 0x185   : > { %3387 = vperm.xlu0 %9324, %v8521_v46  }
 0x186   : > { %1596 = vperm.xlu2 %9307, %v9965_v31   ;;  %v10349_v29 = vpop.permute.xlu2 %1331  ;;  %v10351_v32 = vpop.permute.xlu0 %2314 }
 0x187   : > { %15615 = vst [vmem:[#allocation53_spill] sm:$0xff] %v10351_v32  ;;  %v10353_v18 = vpop.permute.xlu1 %1261 }
 0x188   : > { %15616 = vst [vmem:[#allocation54_spill] sm:$0xff] %v10353_v18  ;;  %1592 = vperm.xlu1 %9306, %v10020_v52   ;;  %751 = vmatmul.bf16.gmra.mxu0 %v9088_v54 }
 0x189   : > { %800 = vmatmul.bf16.gmra.mxu1 %v9088_v54 }
 0x18d   : > { %3399 = vperm.xlu0 %9324, %v8524_v59  }
 0x18e   : > { %1608 = vperm.xlu2 %9307, %v9978_v36   ;;  %v10358_v39 = vpop.permute.xlu2 %1346  ;;  %v10360_v56 = vpop.permute.xlu0 %2329 }
 0x18f   : > { %15617 = vst [vmem:[#allocation55_spill] sm:$0xff] %v10360_v56 }
 0x190   : > { %1604 = vperm.xlu1 %9306, %v15601_v13   ;;  %v10363_v46 = vpop.permute.xlu1 %1296 }
 0x195   : > { %9327 = vset.pattern.permute.xlu0 %v15610_v21  ;;  %v10366_v50 = vpop.f32.mrf.mxu0 }
 0x196   : > { %15618 = vst [vmem:[#allocation56_spill] sm:$0xff] %v10366_v50  ;;  %v10368_v18 = vpop.f32.mrf.mxu1  ;;  %1568 = vperm.xlu0 %9327, %v10171_v27   ;;  %1620 = vperm.xlu2 %9307, %v9991_v40   ;;  %v10372_v54 = vpop.permute.xlu2 %1361 }
 0x197   : > { %15619 = vst [vmem:[#allocation57_spill] sm:$0xff] %v10368_v18  ;;  %v10374_v59 = vpop.permute.xlu0 %3237 }
 0x198   : > { %15620 = vst [vmem:[#allocation58_spill] sm:$0xff] %v10374_v59  ;;  %1616 = vperm.xlu1 %9306, %v15605_v10   ;;  %v10377_v38 = vpop.permute.xlu1 %1311 }
 0x19d   : > { %v10379_v55 = vpop.f32.mrf.mxu0 }
 0x19e   : > { %15621 = vst [vmem:[#allocation59_spill] sm:$0xff] %v10379_v55  ;;  %v10381_v19 = vpop.f32.mrf.mxu1  ;;  %1588 = vperm.xlu0 %9327, %v10199_v58   ;;  %9308 = vset.pattern.permute.xlu2 %v15623_v63 }
 0x19f   : > { %15622 = vst [vmem:[#allocation60_spill] sm:$0xff] %v10381_v19  ;;  %1843 = vperm.xlu2 %9308, %v10171_v27   ;;  %v10386_v34 = vpop.permute.xlu2 %1411  ;;  %v10388_v32 = vpop.permute.xlu0 %3262 }
 0x1a0   : > { %15624 = vst [vmem:[#allocation61_spill] sm:$0xff] %v10388_v32  ;;  %1628 = vperm.xlu1 %9306, %v10065_v33   ;;  %v10391_v59 = vpop.permute.xlu1 %1326 }
 0x1a5   : > { %v10393_v56 = vpop.f32.mrf.mxu0 }
 0x1a6   : > { %15625 = vst [vmem:[#allocation62_spill] sm:$0xff] %v10393_v56  ;;  %v10395_v21 = vpop.f32.mrf.mxu1  ;;  %1600 = vperm.xlu0 %9327, %v10215_v2  }
 0x1a7   : > { %15626 = vst [vmem:[#allocation63_spill] sm:$0xff] %v10395_v21  ;;  %1855 = vperm.xlu2 %9308, %v10010_v48   ;;  %v10399_v15 = vpop.permute.xlu2 %1423  ;;  %v10401_v5 = vpop.permute.xlu0 %3277 }
 0x1a8   : > { %15627 = vst [vmem:[#allocation64_spill] sm:$0xff] %v10401_v5  ;;  %9309 = vset.pattern.permute.xlu1 %v15623_v63  ;;  %v10404_v19 = vpop.permute.xlu1 %1341 }
 0x1a9   : > { %1851 = vperm.xlu1 %9309, %v9954_v28  }
 0x1ad   : > { %v10407_v33 = vpop.f32.mrf.mxu0 }
 0x1ae   : > { %15628 = vst [vmem:[#allocation65_spill] sm:$0xff] %v10407_v33  ;;  %v10409_v32 = vpop.f32.mrf.mxu1  ;;  %1612 = vperm.xlu0 %9327, %v10227_v61  }
 0x1af   : > { %15629 = vst [vmem:[#allocation66_spill] sm:$0xff] %v10409_v32  ;;  %1863 = vperm.xlu2 %9308, %v10199_v58   ;;  %v10413_v18 = vpop.permute.xlu2 %1431  ;;  %v10415_v55 = vpop.permute.xlu0 %3292 }
 0x1b0   : > { %15630 = vst [vmem:[#allocation67_spill] sm:$0xff] %v10415_v55  ;;  %v1357_v5 = vpop.permute.xlu1 %1356  ;;  %v10432_v55 = vld [vmem:[%s9831_s9 + $0x110] sm:$0xff] }
 0x1b1   : > { %1859 = vperm.xlu1 %9309, %v10204_v11  }
 0x1b5   : > { %v10418_v63 = vpop.f32.mrf.mxu0 }
 0x1b6   : > { %15631 = vst [vmem:[#allocation68_spill] sm:$0xff] %v10418_v63  ;;  %v10420_v23 = vpop.f32.mrf.mxu1  ;;  %1624 = vperm.xlu0 %9327, %v10240_v26  }
 0x1b7   : > { %15632 = vst [vmem:[#allocation69_spill] sm:$0xff] %v10420_v23  ;;  %1875 = vperm.xlu2 %9308, %v10215_v2   ;;  %v10424_v28 = vpop.permute.xlu2 %1443  ;;  %v10426_v50 = vpop.permute.xlu0 %2379 }
 0x1b8   : > { %15633 = vst [vmem:[#allocation70_spill] sm:$0xff] %v10426_v50 }
 0x1b9   : > { %1871 = vperm.xlu1 %9309, %v9965_v31   ;;  %v10429_v53 = vpop.permute.xlu1 %1407  ;;  %v10446_v31 = vld [vmem:[%s9831_s9 + $0x138] sm:$0xff] }
 0x1ba   : > { %15637 = vst [vmem:[#allocation74_spill] sm:$0xff] %v10446_v31 }
 0x1bd   : > { %v10434_v21 = vpop.f32.mrf.mxu0 }
 0x1be   : > { %15634 = vst [vmem:[#allocation71_spill] sm:$0xff] %v10434_v21  ;;  %v10436_v56 = vpop.f32.mrf.mxu1  ;;  %2544 = vperm.xlu0 %9327, %v10432_v55  }
 0x1bf   : > { %15635 = vst [vmem:[#allocation72_spill] sm:$0xff] %v10436_v56  ;;  %1887 = vperm.xlu2 %9308, %v10227_v61   ;;  %v1456_v0 = vpop.permute.xlu2 %1455  ;;  %v10440_v32 = vpop.permute.xlu0 %2399 }
 0x1c0   : > { %15636 = vst [vmem:[#allocation73_spill] sm:$0xff] %v10440_v32 }
 0x1c1   : > { %1883 = vperm.xlu1 %9309, %v9978_v36   ;;  %v10443_v50 = vpop.permute.xlu1 %1419  ;;  %v10460_v36 = vld [vmem:[%s9831_s9 + $0x150] sm:$0xff] }
 0x1c2   : > { %15641 = vst [vmem:[#allocation78_spill] sm:$0xff] %v10460_v36 }
 0x1c5   : > { %v10448_v33 = vpop.f32.mrf.mxu0 }
 0x1c6   : > { %15638 = vst [vmem:[#allocation75_spill] sm:$0xff] %v10448_v33  ;;  %v10450_v43 = vpop.f32.mrf.mxu1  ;;  %2564 = vperm.xlu0 %9327, %v10446_v31   ;;  %v10478_v33 = vld [vmem:[%s9831_s9 + $0x168] sm:$0xff] }
 0x1c7   : > { %15639 = vst [vmem:[#allocation76_spill] sm:$0xff] %v10450_v43  ;;  %1899 = vperm.xlu2 %9308, %v10240_v26   ;;  %v1468_v23 = vpop.permute.xlu2 %1467  ;;  %v10454_v63 = vpop.permute.xlu0 %2411 }
 0x1c8   : > { %15640 = vst [vmem:[#allocation77_spill] sm:$0xff] %v10454_v63 }
 0x1c9   : > { %1895 = vperm.xlu1 %9309, %v9991_v40   ;;  %v10457_v32 = vpop.permute.xlu1 %1427  ;;  %15647 = vst [vmem:[#allocation83_spill] sm:$0xff] %v10478_v33 }
 0x1cd   : > { %v10462_v56 = vpop.f32.mrf.mxu0 }
 0x1ce   : > { %15642 = vst [vmem:[#allocation79_spill] sm:$0xff] %v10462_v56  ;;  %v10464_v21 = vpop.f32.mrf.mxu1  ;;  %2576 = vperm.xlu0 %9327, %v10460_v36  }
 0x1cf   : > { %15643 = vst [vmem:[#allocation80_spill] sm:$0xff] %v10464_v21  ;;  %9311 = vset.pattern.permute.xlu2 %v15644_v9  ;;  %v10468_v43 = vpop.permute.xlu0 %2423 }
 0x1d0   : > { %15645 = vst [vmem:[#allocation81_spill] sm:$0xff] %v10468_v43  ;;  %2089 = vperm.xlu2 %9311, %v10188_v16   ;;  %v10471_v63 = vpop.permute.xlu2 %1576  ;;  %v8300_v43 = vld [vmem:[%s9816_s30 + $0x1] ss:$8 sm:$0x3] }
 0x1d1   : > { %15646 = vst [vmem:[#allocation82_spill] sm:$0xff] %v10471_v63  ;;  %9310 = vset.pattern.permute.xlu1 %v15644_v9  ;;  %v10474_v40 = vpop.permute.xlu1 %1439  ;;  %v10491_v9 = vperm.slane %v8300_v43, 0  ;;  %v10493_v36 = vperm.slane %v8300_v43, 1 }
 0x1d2   : > { %2085 = vperm.xlu1 %9310, %v10171_v27   ;;  %v8511_v27 = vld [vmem:[%s9831_s9 + $0x188] sm:$0xff] }
 0x1d3   : > { %v1404_v56 = vmul.f32 %v10491_v9, %v10313_v24  ;;  %v1401_v43 = vmul.f32 %v10493_v36, %v1357_v5  ;;  %v1403_v60 = vmul.f32 %v10493_v36, %v10372_v54 }
 0x1d5   : > { %v10480_v44 = vpop.f32.mrf.mxu0 }
 0x1d6   : > { %15648 = vst [vmem:[#allocation84_spill] sm:$0xff] %v10480_v44  ;;  %v10482_v41 = vpop.f32.mrf.mxu1  ;;  %2588 = vperm.xlu0 %9327, %v10478_v33   ;;  %v1405_v33 = vmul.f32 %v10493_v36, %v10313_v24  ;;  %v1402_v24 = vmul.f32 %v10491_v9, %v10372_v54  ;;  %v1500_v44 = vadd.f32 %v1468_v23, %v1404_v56  ;;  %v8516_v56 = vld [vmem:[%s9831_s9 + $0x1b0] sm:$0xff] }
 0x1d7   : > { %15649 = vst [vmem:[#allocation85_spill] sm:$0xff] %v10482_v41  ;;  %v10486_v21 = vpop.permute.xlu0 %2435 }
 0x1d8   : > { %15650 = vst [vmem:[#allocation86_spill] sm:$0xff] %v10486_v21  ;;  %2101 = vperm.xlu2 %9311, %v10204_v11   ;;  %v10489_v16 = vpop.permute.xlu2 %1584  ;;  %v1398_v21 = vmul.f32 %v10491_v9, %v10300_v57  ;;  %v1399_v11 = vmul.f32 %v10493_v36, %v10300_v57  ;;  %v1501_v57 = vadd.f32 %v1468_v23, %v1405_v33  ;;  %v1532_v33 = vmax.f32 %v1500_v44, 0.0 }
 0x1d9   : > { %15651 = vst [vmem:[#allocation87_spill] sm:$0xff] %v10489_v16  ;;  %v1452_v63 = vpop.permute.xlu1 %1451  ;;  %v1394_v23 = vmul.f32 %v10491_v9, %v10404_v19  ;;  %v1390_v44 = vmul.f32 %v10491_v9, %v10349_v29 }
 0x1da   : > { %2097 = vperm.xlu1 %9310, %v10010_v48   ;;  %v1400_v48 = vmul.f32 %v10491_v9, %v1357_v5  ;;  %v1396_v5 = vmul.f32 %v10491_v9, %v10358_v39 }
 0x1dd   : > { %v10505_v16 = vpop.f32.mrf.mxu0 }
 0x1de   : > { %15652 = vst [vmem:[#allocation88_spill] sm:$0xff] %v10505_v16  ;;  %v10507_v3 = vpop.f32.mrf.mxu1  ;;  %3508 = vperm.xlu0 %9327, %v8511_v27   ;;  %v1494_v27 = vadd.f32 %v1456_v0, %v1398_v21  ;;  %v1496_v21 = vadd.f32 %v10235_v51, %v1400_v48 }
 0x1df   : > { %15653 = vst [vmem:[#allocation89_spill] sm:$0xff] %v10507_v3  ;;  %v10511_v41 = vpop.permute.xlu0 %3343  ;;  %v1495_v3 = vadd.f32 %v1456_v0, %v1399_v11  ;;  %v1497_v0 = vadd.f32 %v10235_v51, %v1401_v43 }
 0x1e0   : > { %15654 = vst [vmem:[#allocation90_spill] sm:$0xff] %v10511_v41  ;;  %2109 = vperm.xlu2 %9311, %v10020_v52   ;;  %v10518_v16 = vpop.permute.xlu2 %1596  ;;  %v1397_v41 = vmul.f32 %v10493_v36, %v10358_v39  ;;  %v1395_v52 = vmul.f32 %v10493_v36, %v10404_v19  ;;  %v1528_v51 = vmax.f32 %v1496_v21, 0.0 }
 0x1e1   : > { %15655 = vst [vmem:[#allocation91_spill] sm:$0xff] %v10518_v16  ;;  %v1464_v12 = vpop.permute.xlu1 %1463  ;;  %v1533_v16 = vmax.f32 %v1501_v57, 0.0  ;;  %v1527_v39 = vmax.f32 %v1495_v3, 0.0  ;;  %v1391_v3 = vmul.f32 %v10493_v36, %v10349_v29  ;;  %v1387_v57 = vmul.f32 %v10493_v36, %v10275_v35 }
 0x1e2   : > { %v1498_v8 = vadd.f32 %v1464_v12, %v1402_v24  ;;  %v1499_v37 = vadd.f32 %v1464_v12, %v1403_v60  ;;  %2105 = vperm.xlu1 %9310, %v10199_v58   ;;  %v1392_v12 = vmul.f32 %v10491_v9, %v10288_v4  ;;  %v1526_v58 = vmax.f32 %v1494_v27, 0.0 }
 0x1e3   : > { %v1492_v24 = vadd.f32 %v1452_v63, %v1396_v5  ;;  %v1493_v31 = vadd.f32 %v1452_v63, %v1397_v41  ;;  %v1490_v41 = vadd.f32 %v10222_v7, %v1394_v23  ;;  %v1486_v29 = vadd.f32 %v10474_v40, %v1390_v44 }
 0x1e4   : > { %v1530_v54 = vmax.f32 %v1498_v8, 0.0  ;;  %v1531_v11 = vmax.f32 %v1499_v37, 0.0  ;;  %v1393_v8 = vmul.f32 %v10493_v36, %v10288_v4  ;;  %v1529_v37 = vmax.f32 %v1497_v0, 0.0  ;;  %v8519_v0 = vld [vmem:[%s9831_s9 + $0x1c8] sm:$0xff] }
 0x1e5   : > { %v10534_v60 = vpop.f32.mrf.mxu0  ;;  %v1386_v4 = vmul.f32 %v10491_v9, %v10275_v35  ;;  %v1563_v27 = vpack.c.bf16 %v1528_v51, %v1526_v58  ;;  %v1524_v23 = vmax.f32 %v1492_v24, 0.0  ;;  %v1389_v35 = vmul.f32 %v10493_v36, %v10391_v59 }
 0x1e6   : > { %v10536_v62 = vpop.f32.mrf.mxu1  ;;  %3528 = vperm.xlu0 %9327, %v8516_v56   ;;  %v1565_v19 = vpack.c.bf16 %v1532_v33, %v1530_v54  ;;  %v1566_v48 = vpack.c.bf16 %v1533_v16, %v1531_v11  ;;  %v1491_v16 = vadd.f32 %v10222_v7, %v1395_v52  ;;  %v1564_v5 = vpack.c.bf16 %v1529_v37, %v1527_v39 }
 0x1e7   : > { %v10542_v43 = vpop.permute.xlu0 %3363  ;;  %v1487_v56 = vadd.f32 %v10474_v40, %v1391_v3  ;;  %v1525_v7 = vmax.f32 %v1493_v31, 0.0  ;;  %v1388_v52 = vmul.f32 %v10491_v9, %v10391_v59  ;;  %v1489_v54 = vadd.f32 %v10424_v28, %v1393_v8 }
 0x1e8   : > { %15656 = vst [vmem:[#allocation92_spill] sm:$0xff] %v10542_v43  ;;  %1679 = vmatpush.bf16.msrb.mxu0 %v1565_v19  ;;  %1728 = vmatpush.bf16.msrb.mxu1 %v1566_v48  ;;  %v10546_v63 = vpop.permute.xlu2 %1608  ;;  %v1522_v40 = vmax.f32 %v1490_v41, 0.0  ;;  %v1523_v33 = vmax.f32 %v1491_v16, 0.0  ;;  %v1483_v11 = vadd.f32 %v10413_v18, %v1387_v57  ;;  %v1518_v24 = vmax.f32 %v1486_v29, 0.0 }
 0x1e9   : > { %2121 = vperm.xlu2 %9311, %v15601_v13   ;;  %v1488_v13 = vadd.f32 %v10424_v28, %v1392_v12  ;;  %v1519_v19 = vmax.f32 %v1487_v56, 0.0  ;;  %v1380_v28 = vmul.f32 %v10491_v9, %v10263_v42  ;;  %v1381_v12 = vmul.f32 %v10493_v36, %v10263_v42 }
 0x1ea   : > { %2117 = vperm.xlu1 %9310, %v10215_v2   ;;  %v10558_v21 = vpop.permute.xlu1 %1572  ;;  %v1482_v2 = vadd.f32 %v10413_v18, %v1386_v4  ;;  %v1561_v39 = vpack.c.bf16 %v1524_v23, %v1522_v40  ;;  %v1562_v59 = vpack.c.bf16 %v1525_v7, %v1523_v33  ;;  %v1484_v8 = vadd.f32 %v10210_v6, %v1388_v52  ;;  %v8522_v23 = vld [vmem:[%s9831_s9 + $0x1e0] sm:$0xff] }
 0x1eb   : > { %15657 = vst [vmem:[#allocation93_spill] sm:$0xff] %v10558_v21  ;;  %v1485_v18 = vadd.f32 %v10210_v6, %v1389_v35  ;;  %v1384_v44 = vmul.f32 %v10491_v9, %v10341_v1  ;;  %v1385_v51 = vmul.f32 %v10493_v36, %v10341_v1  ;;  %v1520_v3 = vmax.f32 %v1488_v13, 0.0 }
 0x1ec   : > { %1680 = vmatpush.bf16.msrb.mxu0 %v1563_v27  ;;  %1729 = vmatpush.bf16.msrb.mxu1 %v1564_v5  ;;  %v1521_v41 = vmax.f32 %v1489_v54, 0.0  ;;  %v1382_v42 = vmul.f32 %v10491_v9, %v10377_v38  ;;  %v1383_v16 = vmul.f32 %v10493_v36, %v10377_v38  ;;  %v1514_v6 = vmax.f32 %v1482_v2, 0.0 }
 0x1ed   : > { %v10569_v31 = vpop.f32.mrf.mxu0  ;;  %v1515_v4 = vmax.f32 %v1483_v11, 0.0  ;;  %v1480_v57 = vadd.f32 %v10457_v32, %v1384_v44  ;;  %v1481_v1 = vadd.f32 %v10457_v32, %v1385_v51  ;;  %v1559_v5 = vpack.c.bf16 %v1520_v3, %v1518_v24 }
 0x1ee   : > { %v10571_v58 = vpop.f32.mrf.mxu1  ;;  %3540 = vperm.xlu0 %9327, %v8519_v0   ;;  %v1560_v29 = vpack.c.bf16 %v1521_v41, %v1519_v19  ;;  %v1378_v56 = vmul.f32 %v10491_v9, %v10331_v30  ;;  %v1516_v7 = vmax.f32 %v1484_v8, 0.0  ;;  %v1517_v38 = vmax.f32 %v1485_v18, 0.0  ;;  %v9431_v8 = vld [vmem:[%s9831_s9 + $0xf8] sm:$0xff] }
 0x1ef   : > { %v10577_v48 = vpop.permute.xlu0 %3375  ;;  %v1478_v52 = vadd.f32 %v10399_v15, %v1382_v42  ;;  %v1479_v35 = vadd.f32 %v10399_v15, %v1383_v16  ;;  %v1476_v13 = vadd.f32 %v10443_v50, %v1380_v28  ;;  %v1477_v54 = vadd.f32 %v10443_v50, %v1381_v12 }
 0x1f0   : > { %15658 = vst [vmem:[#allocation94_spill] sm:$0xff] %v10577_v48  ;;  %1681 = vmatpush.bf16.msrb.mxu0 %v1561_v39  ;;  %1730 = vmatpush.bf16.msrb.mxu1 %v1562_v59  ;;  %v10585_v37 = vpop.permute.xlu2 %1620  ;;  %v1557_v32 = vpack.c.bf16 %v1516_v7, %v1514_v6  ;;  %v1558_v0 = vpack.c.bf16 %v1517_v38, %v1515_v4  ;;  %v1512_v33 = vmax.f32 %v1480_v57, 0.0 }
 0x1f1   : > { %2133 = vperm.xlu2 %9311, %v15605_v10   ;;  %v1379_v10 = vmul.f32 %v10493_v36, %v10331_v30  ;;  %v1513_v30 = vmax.f32 %v1481_v1, 0.0  ;;  %v1374_v2 = vmul.f32 %v10491_v9, %v10320_v49  ;;  %v1375_v15 = vmul.f32 %v10493_v36, %v10320_v49 }
 0x1f2   : > { %2129 = vperm.xlu1 %9310, %v10227_v61   ;;  %v10595_v27 = vpop.permute.xlu1 %1580  ;;  %v1510_v39 = vmax.f32 %v1478_v52, 0.0  ;;  %v1511_v59 = vmax.f32 %v1479_v35, 0.0  ;;  %v1474_v50 = vadd.f32 %v10194_v45, %v1378_v56  ;;  %v1376_v19 = vmul.f32 %v10491_v9, %v10363_v46  ;;  %v8525_v9 = vld [vmem:[%s9831_s9 + $0x1f8] sm:$0xff]  ;;  %v8624_v52 = vld [vmem:[%s9831_s9 + $0x208] sm:$0xff] }
 0x1f3   : > { %15659 = vst [vmem:[#allocation95_spill] sm:$0xff] %v10595_v27  ;;  %v1475_v24 = vadd.f32 %v10194_v45, %v1379_v10  ;;  %v1377_v28 = vmul.f32 %v10493_v36, %v10363_v46  ;;  %v1470_v12 = vadd.f32 %v10429_v53, %v1374_v2  ;;  %v1471_v49 = vadd.f32 %v10429_v53, %v1375_v15  ;;  %v9097_v10 = vld [vmem:[%s9826_s5 + $0x80] sm:$0xff]  ;;  %v8629_v15 = vld [vmem:[%s9831_s9 + $0x230] sm:$0xff] }
 0x1f4   : > { %1682 = vmatpush.bf16.msrb.mxu0 %v1559_v5  ;;  %1731 = vmatpush.bf16.msrb.mxu1 %v1560_v29  ;;  %v1555_v51 = vpack.c.bf16 %v1512_v33, %v1510_v39  ;;  %v1556_v45 = vpack.c.bf16 %v1513_v30, %v1511_v59  ;;  %v1508_v3 = vmax.f32 %v1476_v13, 0.0  ;;  %v1509_v41 = vmax.f32 %v1477_v54, 0.0  ;;  %v10650_v13 = vld [vmem:[%s9831_s9 + $0x118] sm:$0xff] }
 0x1f5   : > { %v10604_v61 = vpop.f32.mrf.mxu0  ;;  %v1472_v42 = vadd.f32 %v10386_v34, %v1376_v19  ;;  %v1473_v46 = vadd.f32 %v10386_v34, %v1377_v28  ;;  %v1506_v53 = vmax.f32 %v1474_v50, 0.0  ;;  %v1507_v36 = vmax.f32 %v1475_v24, 0.0 }
 0x1f6   : > { %v10608_v40 = vpop.f32.mrf.mxu1  ;;  %3552 = vperm.xlu0 %9327, %v8522_v23   ;;  %v1502_v57 = vmax.f32 %v1470_v12, 0.0  ;;  %v1503_v1 = vmax.f32 %v1471_v49, 0.0 }
 0x1f7   : > { %v10614_v11 = vpop.permute.xlu0 %3387  ;;  %v1553_v4 = vpack.c.bf16 %v1508_v3, %v1506_v53  ;;  %v1504_v29 = vmax.f32 %v1472_v42, 0.0  ;;  %v1505_v56 = vmax.f32 %v1473_v46, 0.0 }
 0x1f8   : > { %15660 = vst [vmem:[#allocation96_spill] sm:$0xff] %v10614_v11  ;;  %1683 = vmatpush.bf16.msrb.mxu0 %v1557_v32  ;;  %1732 = vmatpush.bf16.msrb.mxu1 %v1558_v0  ;;  %v10647_v0 = vld [vmem:[%s9831_s9 + $0x120] sm:$0xff]  ;;  %v15753_v11 = vld [vmem:[#allocation55_spill] sm:$0xff] }
 0x1f9   : > { %2145 = vperm.xlu2 %9311, %v9431_v8   ;;  %v10625_v18 = vpop.permute.xlu2 %1843  ;;  %v1551_v7 = vpack.c.bf16 %v1504_v29, %v1502_v57  ;;  %v1552_v38 = vpack.c.bf16 %v1505_v56, %v1503_v1  ;;  %v15671_v29 = vld [vmem:[#allocation20_spill] sm:$0xff] }
 0x1fa   : > { %15661 = vst [vmem:[#allocation97_spill] sm:$0xff] %v10625_v18  ;;  %2141 = vperm.xlu1 %9310, %v10240_v26   ;;  %v10628_v44 = vpop.permute.xlu1 %1592  ;;  %v1554_v26 = vpack.c.bf16 %v1509_v41, %v1507_v36  ;;  %v15672_v56 = vld [vmem:[#allocation84_spill] sm:$0xff] }
 0x1fc   : > { %1684 = vmatpush.bf16.msrb.mxu0 %v1555_v51  ;;  %1733 = vmatpush.bf16.msrb.mxu1 %v1556_v45  ;;  %v797_v45 = vadd.f32 %v10608_v40, %v10185_v17  ;;  %v9098_v40 = vld [vmem:[%s9826_s5 + $0x88] sm:$0xff] }
 0x1fd   : > { %v749_v16 = vpop.f32.mrf.mxu0 }
 0x1fe   : > { %v798_v6 = vpop.f32.mrf.mxu1  ;;  %3564 = vperm.xlu0 %9327, %v8525_v9   ;;  %v750_v59 = vadd.f32 %v749_v16, %v10130_v22  ;;  %v15667_v9 = vld [vmem:[#allocation23_spill] sm:$0xff]  ;;  %v15669_v16 = vld [vmem:[#allocation37_spill] sm:$0xff]  ;;  %v831_v1 = vmax.f32 %v797_v45, 0.0 }
 0x1ff   : > { %v10633_v5 = vpop.permute.xlu0 %3399  ;;  %v799_v28 = vadd.f32 %v798_v6, %v10130_v22  ;;  %v745_v22 = vadd.f32 %v10569_v31, %v15667_v9  ;;  %v15670_v6 = vld [vmem:[#allocation16_spill] sm:$0xff]  ;;  %v8632_v31 = vld [vmem:[%s9831_s9 + $0x248] sm:$0xff] }
 0x200   : > { %15662 = vst [vmem:[#allocation98_spill] sm:$0xff] %v10633_v5  ;;  %1685 = vmatpush.bf16.msrb.mxu0 %v1553_v4  ;;  %1734 = vmatpush.bf16.msrb.mxu1 %v1554_v26  ;;  %v832_v42 = vmax.f32 %v750_v59, 0.0  ;;  %v743_v4 = vadd.f32 %v10534_v60, %v15670_v6  ;;  %v792_v57 = vadd.f32 %v10536_v62, %v15670_v6  ;;  %v15676_v60 = vld [vmem:[#allocation89_spill] sm:$0xff] }
 0x201   : > { %9313 = vset.pattern.permute.xlu2 %v15579_v47  ;;  %v10636_v34 = vpop.permute.xlu2 %1855  ;;  %v833_v36 = vmax.f32 %v799_v28, 0.0  ;;  %v15679_v28 = vld [vmem:[#allocation79_spill] sm:$0xff]  ;;  %v8635_v6 = vld [vmem:[%s9831_s9 + $0x260] sm:$0xff] }
 0x202   : > { %15663 = vst [vmem:[#allocation99_spill] sm:$0xff] %v10636_v34  ;;  %2269 = vperm.xlu2 %9313, %v10432_v55   ;;  %9312 = vset.pattern.permute.xlu1 %v15579_v47  ;;  %v10640_v23 = vpop.permute.xlu1 %1604 }
 0x203   : > { %2264 = vperm.xlu1 %9312, %v10251_v20   ;;  %v868_v62 = vpack.c.bf16 %v833_v36, %v831_v1 }
 0x204   : > { %1686 = vmatpush.bf16.msrb.mxu0 %v1551_v7  ;;  %1735 = vmatpush.bf16.msrb.mxu1 %v1552_v38  ;;  %v738_v7 = vadd.f32 %v15672_v56, %v15671_v29  ;;  %v15674_v38 = vld [vmem:[#allocation88_spill] sm:$0xff] }
 0x205   : > { %v752_v35 = vpop.f32.mrf.mxu0 }
 0x206   : > { %v801_v32 = vpop.f32.mrf.mxu1  ;;  %9335 = vset.pattern.permute.xlu0 %v15579_v47  ;;  %v753_v20 = vadd.f32 %v752_v35, %v10181_v25 }
 0x207   : > { %4200 = vperm.xlu0 %9335, %v8624_v52   ;;  %1687 = vmatmul.bf16.vlgmr.msrb.gmra.mxu0 %v9097_v10  ;;  %v802_v2 = vadd.f32 %v801_v32, %v10181_v25  ;;  %v748_v25 = vadd.f32 %v10604_v61, %v10185_v17  ;;  %v794_v61 = vadd.f32 %v10571_v58, %v15667_v9  ;;  %v15673_v58 = vld [vmem:[#allocation24_spill] sm:$0xff]  ;;  %v828_v52 = vmax.f32 %v745_v22, 0.0  ;;  %v15675_v32 = vld [vmem:[#allocation85_spill] sm:$0xff] }
 0x208   : > { %1736 = vmatmul.bf16.vlgmr.msrb.gmra.mxu1 %v9097_v10  ;;  %v10652_v54 = vpop.permute.xlu0 %1568  ;;  %v834_v50 = vmax.f32 %v753_v20, 0.0  ;;  %v740_v10 = vadd.f32 %v15674_v38, %v15673_v58  ;;  %v787_v20 = vadd.f32 %v15675_v32, %v15671_v29 }
 0x209   : > { %15664 = vst [vmem:[#allocation100_spill] sm:$0xff] %v10652_v54  ;;  %v10654_v33 = vpop.permute.xlu2 %1863  ;;  %v835_v12 = vmax.f32 %v802_v2, 0.0  ;;  %v830_v26 = vmax.f32 %v748_v25, 0.0  ;;  %v789_v2 = vadd.f32 %v15676_v60, %v15673_v58 }
 0x20a   : > { %15665 = vst [vmem:[#allocation101_spill] sm:$0xff] %v10654_v33  ;;  %2279 = vperm.xlu2 %9313, %v10647_v0   ;;  %v10658_v30 = vpop.permute.xlu1 %1616  ;;  %v824_v25 = vmax.f32 %v740_v10, 0.0  ;;  %v823_v22 = vmax.f32 %v787_v20, 0.0 }
 0x20b   : > { %2274 = vperm.xlu1 %9312, %v10650_v13   ;;  %v867_v35 = vpack.c.bf16 %v832_v42, %v830_v26  ;;  %v825_v42 = vmax.f32 %v789_v2, 0.0  ;;  %v15692_v2 = vld [vmem:[#allocation69_spill] sm:$0xff] }
 0x20d   : > { %v754_v39 = vpop.f32.mrf.mxu0  ;;  %v864_v10 = vpack.c.bf16 %v825_v42, %v823_v22  ;;  %v15698_v22 = vld [vmem:[#allocation43_spill] sm:$0xff] }
 0x20e   : > { %v755_v24 = vadd.f32 %v754_v39, %v10201_v14  ;;  %v803_v19 = vpop.f32.mrf.mxu1  ;;  %v826_v39 = vmax.f32 %v743_v4, 0.0  ;;  %v15686_v4 = vld [vmem:[#allocation76_spill] sm:$0xff] }
 0x20f   : > { %v804_v49 = vadd.f32 %v803_v19, %v10201_v14  ;;  %4225 = vperm.xlu0 %9335, %v8629_v15   ;;  %v15668_v14 = vld [vmem:[#allocation74_spill] sm:$0xff]  ;;  %v829_v15 = vmax.f32 %v794_v61, 0.0 }
 0x210   : > { %v836_v8 = vmax.f32 %v755_v24, 0.0  ;;  %v10669_v51 = vpop.permute.xlu0 %1588  ;;  %v15678_v19 = vld [vmem:[#allocation14_spill] sm:$0xff]  ;;  %v865_v45 = vpack.c.bf16 %v828_v52, %v826_v39  ;;  %v15690_v52 = vld [vmem:[#allocation13_spill] sm:$0xff] }
 0x211   : > { %v10673_v3 = vpop.permute.xlu2 %1875  ;;  %v837_v41 = vmax.f32 %v804_v49, 0.0  ;;  %v822_v49 = vmax.f32 %v738_v7, 0.0  ;;  %v15689_v7 = vld [vmem:[#allocation72_spill] sm:$0xff] }
 0x212   : > { %15666 = vst [vmem:[#allocation102_spill] sm:$0xff] %v10673_v3  ;;  %2294 = vperm.xlu2 %9313, %v15668_v14   ;;  %v10678_v46 = vpop.permute.xlu1 %1628  ;;  %v869_v53 = vpack.c.bf16 %v836_v8, %v834_v50  ;;  %v827_v50 = vmax.f32 %v792_v57, 0.0  ;;  %v15680_v8 = vld [vmem:[#allocation78_spill] sm:$0xff]  ;;  %v15688_v57 = vld [vmem:[#allocation71_spill] sm:$0xff] }
 0x213   : > { %2289 = vperm.xlu1 %9312, %v15669_v16   ;;  %v870_v17 = vpack.c.bf16 %v837_v41, %v835_v12  ;;  %v735_v12 = vadd.f32 %v15679_v28, %v15678_v19  ;;  %v15681_v41 = vld [vmem:[#allocation80_spill] sm:$0xff]  ;;  %v15684_v16 = vld [vmem:[#allocation21_spill] sm:$0xff]  ;;  %v863_v56 = vpack.c.bf16 %v824_v25, %v822_v49  ;;  %v15696_v49 = vld [vmem:[#allocation83_spill] sm:$0xff] }
 0x214   : > { %983 = vmatpush.bf16.msra.mxu2 %v869_v53  ;;  %v784_v9 = vadd.f32 %v15681_v41, %v15678_v19  ;;  %v15682_v53 = vld [vmem:[#allocation40_spill] sm:$0xff]  ;;  %v866_v36 = vpack.c.bf16 %v829_v15, %v827_v50  ;;  %v782_v26 = vadd.f32 %v15686_v4, %v15684_v16  ;;  %v777_v15 = vadd.f32 %v15692_v2, %v15690_v52  ;;  %v15694_v50 = vld [vmem:[#allocation19_spill] sm:$0xff]  ;;  %v15695_v19 = vld [vmem:[#allocation65_spill] sm:$0xff] }
 0x215   : > { %1032 = vmatpush.bf16.msra.mxu3 %v870_v17  ;;  %v15685_v17 = vld [vmem:[#allocation75_spill] sm:$0xff]  ;;  %v820_v29 = vmax.f32 %v735_v12, 0.0  ;;  %v725_v28 = vadd.f32 %v15695_v19, %v15694_v50  ;;  %v8638_v4 = vld [vmem:[%s9831_s9 + $0x278] sm:$0xff] }
 0x216   : > { %v821_v38 = vmax.f32 %v784_v9, 0.0 }
 0x217   : > { %4240 = vperm.xlu0 %9335, %v8632_v31   ;;  %1692 = vmatmul.bf16.gmra.mxu0 %v9098_v40  ;;  %v15687_v31 = vld [vmem:[#allocation18_spill] sm:$0xff] }
 0x218   : > { %1741 = vmatmul.bf16.gmra.mxu1 %v9098_v40  ;;  %984 = vmatpush.bf16.msra.mxu2 %v867_v35  ;;  %v10697_v59 = vpop.permute.xlu0 %1600  ;;  %v733_v40 = vadd.f32 %v15685_v17, %v15684_v16  ;;  %v730_v1 = vadd.f32 %v15688_v57, %v15687_v31  ;;  %v779_v58 = vadd.f32 %v15689_v7, %v15687_v31  ;;  %v15691_v35 = vld [vmem:[#allocation68_spill] sm:$0xff]  ;;  %v15700_v16 = vld [vmem:[#allocation11_spill] sm:$0xff]  ;;  %v15701_v17 = vld [vmem:[#allocation62_spill] sm:$0xff]  ;;  %v815_v57 = vmax.f32 %v777_v15, 0.0 }
 0x219   : > { %1033 = vmatpush.bf16.msra.mxu3 %v868_v62  ;;  %v10699_v24 = vpop.permute.xlu2 %1887  ;;  %v728_v32 = vadd.f32 %v15691_v35, %v15690_v52  ;;  %v819_v62 = vmax.f32 %v782_v26, 0.0  ;;  %v15702_v26 = vld [vmem:[#allocation63_spill] sm:$0xff]  ;;  %v15705_v7 = vld [vmem:[#allocation17_spill] sm:$0xff]  ;;  %v812_v52 = vmax.f32 %v725_v28, 0.0 }
 0x21a   : > { %15677 = vst [vmem:[#allocation23_spill] sm:$0xff] %v10699_v24  ;;  %2309 = vperm.xlu2 %9313, %v15680_v8   ;;  %v818_v20 = vmax.f32 %v733_v40, 0.0  ;;  %v816_v12 = vmax.f32 %v730_v1, 0.0  ;;  %v817_v9 = vmax.f32 %v779_v58, 0.0  ;;  %v723_v40 = vadd.f32 %v15701_v17, %v15700_v16  ;;  %v15703_v1 = vld [vmem:[#allocation15_spill] sm:$0xff]  ;;  %v15707_v35 = vld [vmem:[#allocation57_spill] sm:$0xff] }
 0x21b   : > { %2304 = vperm.xlu1 %9312, %v15682_v53   ;;  %v10707_v61 = vpop.permute.xlu1 %1851  ;;  %v862_v53 = vpack.c.bf16 %v821_v38, %v819_v62  ;;  %v772_v31 = vadd.f32 %v15702_v26, %v15700_v16  ;;  %v15706_v58 = vld [vmem:[#allocation59_spill] sm:$0xff]  ;;  %v10754_v17 = vld [vmem:[%s9831_s9 + $0x100] sm:$0xff] }
 0x21c   : > { %15683 = vst [vmem:[#allocation74_spill] sm:$0xff] %v10707_v61  ;;  %985 = vmatpush.bf16.msra.mxu2 %v865_v45  ;;  %v861_v25 = vpack.c.bf16 %v820_v29, %v818_v20  ;;  %v15697_v45 = vld [vmem:[#allocation66_spill] sm:$0xff]  ;;  %v15704_v29 = vld [vmem:[#allocation56_spill] sm:$0xff]  ;;  %v767_v20 = vadd.f32 %v15707_v35, %v15703_v1  ;;  %v860_v15 = vpack.c.bf16 %v817_v9, %v815_v57  ;;  %v15711_v9 = vld [vmem:[#allocation45_spill] sm:$0xff]  ;;  %v15741_v61 = vmov 4  }
 0x21d   : > { %1034 = vmatpush.bf16.msra.mxu3 %v866_v36  ;;  %v774_v41 = vadd.f32 %v15697_v45, %v15694_v50  ;;  %v9099_v36 = vld [vmem:[%s9826_s5 + $0x90] sm:$0xff]  ;;  %v810_v50 = vmax.f32 %v723_v40, 0.0  ;;  %v15709_v45 = vmov 1   ;;  %v9094_v24 = vld [vmem:[%s9826_s5 + $0x68] sm:$0xff] }
 0x21e   : > { %v8633_v35 = vld [vmem:[%s9831_s9 + $0x250] sm:$0xff] }
 0x21f   : > { %4255 = vperm.xlu0 %9335, %v8635_v6   ;;  %v814_v6 = vmax.f32 %v728_v32, 0.0  ;;  %v15708_v32 = vld [vmem:[#allocation60_spill] sm:$0xff]  ;;  %v813_v62 = vmax.f32 %v774_v41, 0.0  ;;  %v807_v41 = vmax.f32 %v767_v20, 0.0  ;;  %v9090_v20 = vld [vmem:[%s9826_s5 + $0x48] sm:$0xff] }
 0x220   : > { %986 = vmatpush.bf16.msra.mxu2 %v863_v56  ;;  %v10720_v60 = vpop.permute.xlu0 %1612  ;;  %v718_v56 = vadd.f32 %v15704_v29, %v15703_v1  ;;  %v769_v2 = vadd.f32 %v15708_v32, %v15705_v7 }
 0x221   : > { %1035 = vmatpush.bf16.msra.mxu3 %v864_v10  ;;  %v10724_v39 = vpop.permute.xlu2 %1899  ;;  %v720_v10 = vadd.f32 %v15706_v58, %v15705_v7  ;;  %v859_v38 = vpack.c.bf16 %v816_v12, %v814_v6  ;;  %v8625_v6 = vld [vmem:[%s9831_s9 + $0x210] sm:$0xff]  ;;  %v8630_v7 = vld [vmem:[%s9831_s9 + $0x238] sm:$0xff] }
 0x222   : > { %15693 = vst [vmem:[#allocation37_spill] sm:$0xff] %v10724_v39  ;;  %2324 = vperm.xlu2 %9313, %v15696_v49   ;;  %v806_v28 = vmax.f32 %v718_v56, 0.0  ;;  %v809_v16 = vmax.f32 %v769_v2, 0.0  ;;  %v9100_v56 = vld [vmem:[%s9826_s5 + $0x98] sm:$0xff]  ;;  %v10790_v2 = vld [vmem:[%s9831_s9 + $0x140] sm:$0xff]  ;;  %v8741_v39 = vld [vmem:[%s9831_s9 + $0x2a8] sm:$0xff] }
 0x223   : > { %2319 = vperm.xlu1 %9312, %v15698_v22   ;;  %v10732_v42 = vpop.permute.xlu1 %1859  ;;  %v808_v12 = vmax.f32 %v720_v10, 0.0 }
 0x224   : > { %15699 = vst [vmem:[#allocation16_spill] sm:$0xff] %v10732_v42  ;;  %987 = vmatpush.bf16.msra.mxu2 %v861_v25  ;;  %v811_v25 = vmax.f32 %v772_v31, 0.0  ;;  %v856_v26 = vpack.c.bf16 %v809_v16, %v807_v41  ;;  %v9089_v31 = vld [vmem:[%s9826_s5 + $0x40] sm:$0xff]  ;;  %v8737_v16 = vld [vmem:[%s9831_s9 + $0x288] sm:$0xff] }
 0x225   : > { %1036 = vmatpush.bf16.msra.mxu3 %v862_v53  ;;  %v857_v53 = vpack.c.bf16 %v812_v52, %v810_v50  ;;  %v10779_v52 = vld [vmem:[%s9831_s9 + $0x128] sm:$0xff] }
 0x226   : > { %v858_v40 = vpack.c.bf16 %v813_v62, %v811_v25  ;;  %v8636_v25 = vld [vmem:[%s9831_s9 + $0x268] sm:$0xff] }
 0x227   : > { %4270 = vperm.xlu0 %9335, %v8638_v4   ;;  %1697 = vmatmul.bf16.gmra.mxu0 %v9099_v36  ;;  %v855_v4 = vpack.c.bf16 %v808_v12, %v806_v28  ;;  %v10803_v12 = vld [vmem:[%s9831_s9 + $0x158] sm:$0xff] }
 0x228   : > { %1746 = vmatmul.bf16.gmra.mxu1 %v9099_v36  ;;  %988 = vmatpush.bf16.msra.mxu2 %v859_v38  ;;  %v10748_v19 = vpop.permute.xlu0 %1624 }
 0x229   : > { %1037 = vmatpush.bf16.msra.mxu3 %v860_v15  ;;  %v9101_v15 = vld [vmem:[%s9826_s5 + $0xa0] sm:$0xff] }
 0x22a   : > { %9314 = vset.pattern.permute.xlu2 %v15709_v45  ;;  %v10751_v22 = vpop.permute.xlu2 %2089 }
 0x22b   : > { %15710 = vst [vmem:[#allocation20_spill] sm:$0xff] %v10751_v22  ;;  %2375 = vperm.xlu2 %9314, %v10754_v17   ;;  %2334 = vperm.xlu1 %9312, %v15711_v9   ;;  %v10758_v36 = vpop.permute.xlu1 %1871  ;;  %v9091_v9 = vld [vmem:[%s9826_s5 + $0x50] sm:$0xff] }
 0x22c   : > { %15712 = vst [vmem:[#allocation84_spill] sm:$0xff] %v10758_v36  ;;  %989 = vmatpush.bf16.msra.mxu2 %v857_v53 }
 0x22d   : > { %1038 = vmatpush.bf16.msra.mxu3 %v858_v40 }
 0x22f   : > { %9339 = vset.pattern.permute.xlu0 %v15709_v45 }
 0x230   : > { %4319 = vperm.xlu0 %9339, %v8625_v6   ;;  %990 = vmatpush.bf16.msra.mxu2 %v855_v4  ;;  %v10763_v57 = vpop.permute.xlu0 %2544  ;;  %v10816_v6 = vld [vmem:[%s9831_s9 + $0x170] sm:$0xff] }
 0x231   : > { %15713 = vst [vmem:[#allocation24_spill] sm:$0xff] %v10763_v57  ;;  %1039 = vmatpush.bf16.msra.mxu3 %v856_v26  ;;  %v9102_v26 = vld [vmem:[%s9826_s5 + $0xa8] sm:$0xff]  ;;  %v8851_v57 = vld [vmem:[%s9831_s9 + $0x310] sm:$0xff] }
 0x232   : > { %v10765_v1 = vpop.permute.xlu2 %2101 }
 0x233   : > { %15714 = vst [vmem:[#allocation88_spill] sm:$0xff] %v10765_v1  ;;  %2387 = vperm.xlu2 %9314, %v10650_v13   ;;  %9315 = vset.pattern.permute.xlu1 %v15709_v45  ;;  %v10769_v29 = vpop.permute.xlu1 %1883  ;;  %v10881_v1 = vld [vmem:[%s9831_s9 + $0x160] sm:$0xff] }
 0x234   : > { %15715 = vst [vmem:[#allocation85_spill] sm:$0xff] %v10769_v29  ;;  %991 = vmatmul.bf16.vlgmr.msra.gmra.mxu2 %v9089_v31  ;;  %1040 = vmatmul.bf16.vlgmr.msra.gmra.mxu3 %v9089_v31 }
 0x235   : > { %2383 = vperm.xlu1 %9315, %v10432_v55  }
 0x237   : > { %1702 = vmatmul.bf16.gmra.mxu0 %v9100_v56 }
 0x238   : > { %1751 = vmatmul.bf16.gmra.mxu1 %v9100_v56  ;;  %4339 = vperm.xlu0 %9339, %v8630_v7   ;;  %v10774_v58 = vpop.permute.xlu0 %2564  ;;  %v8742_v56 = vld [vmem:[%s9831_s9 + $0x2b0] sm:$0xff] }
 0x239   : > { %15716 = vst [vmem:[#allocation89_spill] sm:$0xff] %v10774_v58  ;;  %v9096_v58 = vld [vmem:[%s9826_s5 + $0x78] sm:$0xff] }
 0x23a   : > { %v10776_v10 = vpop.permute.xlu2 %2109 }
 0x23b   : > { %15717 = vst [vmem:[#allocation14_spill] sm:$0xff] %v10776_v10  ;;  %2395 = vperm.xlu2 %9314, %v10779_v52   ;;  %v10782_v38 = vpop.permute.xlu1 %1895  ;;  %v10854_v10 = vld [vmem:[%s9831_s9 + $0x130] sm:$0xff] }
 0x23c   : > { %15718 = vst [vmem:[#allocation79_spill] sm:$0xff] %v10782_v38 }
 0x23d   : > { %2391 = vperm.xlu1 %9315, %v10647_v0  }
 0x240   : > { %4351 = vperm.xlu0 %9339, %v8633_v35   ;;  %v10787_v32 = vpop.permute.xlu0 %2576  ;;  %v15729_v35 = vmov 3  }
 0x241   : > { %15719 = vst [vmem:[#allocation78_spill] sm:$0xff] %v10787_v32 }
 0x243   : > { %2407 = vperm.xlu2 %9314, %v10790_v2   ;;  %v10793_v62 = vpop.permute.xlu2 %2121 }
 0x244   : > { %15720 = vst [vmem:[#allocation80_spill] sm:$0xff] %v10793_v62  ;;  %996 = vmatmul.bf16.gmra.mxu2 %v9090_v20  ;;  %1045 = vmatmul.bf16.gmra.mxu3 %v9090_v20  ;;  %v10796_v50 = vpop.permute.xlu1 %2085  ;;  %v10830_v20 = vld [vmem:[%s9831_s9 + $0x108] sm:$0xff]  ;;  %v8748_v62 = vld [vmem:[%s9831_s9 + $0x2e0] sm:$0xff] }
 0x245   : > { %15721 = vst [vmem:[#allocation40_spill] sm:$0xff] %v10796_v50  ;;  %2403 = vperm.xlu1 %9315, %v15668_v14  }
 0x247   : > { %1707 = vmatmul.bf16.gmra.mxu0 %v9101_v15 }
 0x248   : > { %1756 = vmatmul.bf16.gmra.mxu1 %v9101_v15  ;;  %4363 = vperm.xlu0 %9339, %v8636_v25   ;;  %v10800_v28 = vpop.permute.xlu0 %2588 }
 0x249   : > { %15722 = vst [vmem:[#allocation21_spill] sm:$0xff] %v10800_v28 }
 0x24b   : > { %2419 = vperm.xlu2 %9314, %v10803_v12   ;;  %v10806_v53 = vpop.permute.xlu2 %2133 }
 0x24c   : > { %15723 = vst [vmem:[#allocation75_spill] sm:$0xff] %v10806_v53  ;;  %v10808_v41 = vpop.permute.xlu1 %2097 }
 0x24d   : > { %15724 = vst [vmem:[#allocation76_spill] sm:$0xff] %v10808_v41  ;;  %2415 = vperm.xlu1 %9315, %v15680_v8   ;;  %v10894_v41 = vld [vmem:[%s9831_s9 + $0x178] sm:$0xff] }
 0x250   : > { %5283 = vperm.xlu0 %9339, %v8737_v16   ;;  %v10813_v40 = vpop.permute.xlu0 %3508  ;;  %v8745_v16 = vld [vmem:[%s9831_s9 + $0x2c8] sm:$0xff] }
 0x251   : > { %15725 = vst [vmem:[#allocation18_spill] sm:$0xff] %v10813_v40 }
 0x253   : > { %2431 = vperm.xlu2 %9314, %v10816_v6   ;;  %v10819_v4 = vpop.permute.xlu2 %2145 }
 0x254   : > { %15726 = vst [vmem:[#allocation71_spill] sm:$0xff] %v10819_v4  ;;  %1001 = vmatmul.bf16.gmra.mxu2 %v9091_v9  ;;  %1050 = vmatmul.bf16.gmra.mxu3 %v9091_v9  ;;  %v10822_v31 = vpop.permute.xlu1 %2105  ;;  %v9092_v9 = vld [vmem:[%s9826_s5 + $0x58] sm:$0xff] }
 0x255   : > { %15727 = vst [vmem:[#allocation72_spill] sm:$0xff] %v10822_v31  ;;  %2427 = vperm.xlu1 %9315, %v15696_v49  }
 0x257   : > { %1712 = vmatmul.bf16.gmra.mxu0 %v9102_v26 }
 0x258   : > { %1761 = vmatmul.bf16.gmra.mxu1 %v9102_v26  ;;  %5303 = vperm.xlu0 %9339, %v8742_v56   ;;  %v10826_v7 = vpop.permute.xlu0 %3528  ;;  %v9103_v56 = vld [vmem:[%s9826_s5 + $0xb0] sm:$0xff] }
 0x259   : > { %15728 = vst [vmem:[#allocation13_spill] sm:$0xff] %v10826_v7  ;;  %v8747_v7 = vld [vmem:[%s9831_s9 + $0x2d8] sm:$0xff] }
 0x25b   : > { %9317 = vset.pattern.permute.xlu2 %v15729_v35 }
 0x25c   : > { %2540 = vperm.xlu2 %9317, %v10830_v20   ;;  %v10833_v15 = vpop.permute.xlu2 %2269  ;;  %v10835_v25 = vpop.permute.xlu1 %2117 }
 0x25d   : > { %15730 = vst [vmem:[#allocation68_spill] sm:$0xff] %v10835_v25  ;;  %9316 = vset.pattern.permute.xlu1 %v15729_v35 }
 0x25e   : > { %2536 = vperm.xlu1 %9316, %v10754_v17  }
 0x260   : > { %5315 = vperm.xlu0 %9339, %v8745_v16   ;;  %v10841_v26 = vpop.permute.xlu0 %3540 }
 0x261   : > { %15731 = vst [vmem:[#allocation69_spill] sm:$0xff] %v10841_v26 }
 0x264   : > { %2552 = vperm.xlu2 %9317, %v10647_v0   ;;  %v10845_v4 = vpop.permute.xlu2 %2279  ;;  %1006 = vmatmul.bf16.gmra.mxu2 %v9092_v9  ;;  %v10847_v53 = vpop.permute.xlu1 %2129 }
 0x265   : > { %15732 = vst [vmem:[#allocation19_spill] sm:$0xff] %v10847_v53  ;;  %1055 = vmatmul.bf16.gmra.mxu3 %v9092_v9  ;;  %v8751_v9 = vld [vmem:[%s9831_s9 + $0x2f8] sm:$0xff]  ;;  %v9093_v53 = vld [vmem:[%s9826_s5 + $0x60] sm:$0xff] }
 0x266   : > { %2548 = vperm.xlu1 %9316, %v10650_v13  }
 0x267   : > { %1717 = vmatmul.bf16.gmra.mxu0 %v9103_v56 }
 0x268   : > { %1766 = vmatmul.bf16.gmra.mxu1 %v9103_v56  ;;  %5327 = vperm.xlu0 %9339, %v8748_v62   ;;  %v10851_v16 = vpop.permute.xlu0 %3552  ;;  %v9104_v62 = vld [vmem:[%s9826_s5 + $0xb8] sm:$0xff]  ;;  %v10868_v56 = vld [vmem:[%s9831_s9 + $0x148] sm:$0xff] }
 0x269   : > { %15733 = vst [vmem:[#allocation65_spill] sm:$0xff] %v10851_v16 }
 0x26c   : > { %2560 = vperm.xlu2 %9317, %v10854_v10   ;;  %v10857_v22 = vpop.permute.xlu2 %2294  ;;  %v10859_v25 = vpop.permute.xlu1 %2141 }
 0x26d   : > { %15734 = vst [vmem:[#allocation83_spill] sm:$0xff] %v10859_v25 }
 0x26e   : > { %2556 = vperm.xlu1 %9316, %v10779_v52  }
 0x270   : > { %5339 = vperm.xlu0 %9339, %v8751_v9   ;;  %v10864_v31 = vpop.permute.xlu0 %3564  ;;  %v8736_v9 = vld [vmem:[%s9831_s9 + $0x280] sm:$0xff] }
 0x271   : > { %15735 = vst [vmem:[#allocation66_spill] sm:$0xff] %v10864_v31 }
 0x274   : > { %2572 = vperm.xlu2 %9317, %v10868_v56   ;;  %v10871_v38 = vpop.permute.xlu2 %2309  ;;  %1011 = vmatmul.bf16.gmra.mxu2 %v9093_v53 }
 0x275   : > { %1060 = vmatmul.bf16.gmra.mxu3 %v9093_v53  ;;  %v10873_v25 = vpop.permute.xlu1 %2264 }
 0x276   : > { %2568 = vperm.xlu1 %9316, %v10790_v2  }
 0x277   : > { %1722 = vmatmul.bf16.gmra.mxu0 %v9104_v62 }
 0x278   : > { %1771 = vmatmul.bf16.gmra.mxu1 %v9104_v62  ;;  %9350 = vset.pattern.permute.xlu0 %v15579_v47 }
 0x279   : > { %5163 = vperm.xlu0 %9350, %v8736_v9   ;;  %v10878_v29 = vpop.permute.xlu0 %4200 }
 0x27a   : > { %15736 = vst [vmem:[#allocation43_spill] sm:$0xff] %v10878_v29 }
 0x27c   : > { %2584 = vperm.xlu2 %9317, %v10881_v1   ;;  %v10884_v36 = vpop.permute.xlu2 %2324 }
 0x27d   : > { %v10886_v53 = vpop.permute.xlu1 %2274 }
 0x27e   : > { %2580 = vperm.xlu1 %9316, %v10803_v12  }
 0x281   : > { %5188 = vperm.xlu0 %9350, %v8741_v39   ;;  %v10891_v62 = vpop.permute.xlu0 %4225  ;;  %v8744_v39 = vld [vmem:[%s9831_s9 + $0x2c0] sm:$0xff] }
 0x282   : > { %15737 = vst [vmem:[#allocation11_spill] sm:$0xff] %v10891_v62 }
 0x284   : > { %2596 = vperm.xlu2 %9317, %v10894_v41   ;;  %1016 = vmatmul.bf16.gmra.mxu2 %v9094_v24  ;;  %v10897_v9 = vpop.f32.mrf.mxu0 }
 0x285   : > { %15738 = vst [vmem:[#allocation62_spill] sm:$0xff] %v10897_v9  ;;  %1065 = vmatmul.bf16.gmra.mxu3 %v9094_v24  ;;  %v10899_v3 = vpop.f32.mrf.mxu1  ;;  %v10901_v33 = vpop.permute.xlu2 %2375 }
 0x286   : > { %15739 = vst [vmem:[#allocation63_spill] sm:$0xff] %v10899_v3  ;;  %2592 = vperm.xlu1 %9316, %v10816_v6   ;;  %v10904_v50 = vpop.permute.xlu1 %2289  ;;  %v8859_v3 = vld [vmem:[%s9831_s9 + $0x350] sm:$0xff] }
 0x289   : > { %5203 = vperm.xlu0 %9350, %v8744_v39   ;;  %v10907_v42 = vpop.permute.xlu0 %4240  ;;  %v9095_v39 = vld [vmem:[%s9826_s5 + $0x70] sm:$0xff] }
 0x28a   : > { %15740 = vst [vmem:[#allocation15_spill] sm:$0xff] %v10907_v42 }
 0x28c   : > { %9319 = vset.pattern.permute.xlu2 %v15741_v61  ;;  %v10910_v34 = vpop.f32.mrf.mxu0 }
 0x28d   : > { %15742 = vst [vmem:[#allocation56_spill] sm:$0xff] %v10910_v34  ;;  %v10912_v18 = vpop.f32.mrf.mxu1  ;;  %2819 = vperm.xlu2 %9319, %v10432_v55   ;;  %v10915_v24 = vpop.permute.xlu2 %2387 }
 0x28e   : > { %15743 = vst [vmem:[#allocation17_spill] sm:$0xff] %v10912_v18  ;;  %9318 = vset.pattern.permute.xlu1 %v15741_v61  ;;  %v10918_v40 = vpop.permute.xlu1 %2304 }
 0x28f   : > { %2815 = vperm.xlu1 %9318, %v10830_v20   ;;  %v8750_v20 = vld [vmem:[%s9831_s9 + $0x2f0] sm:$0xff] }
 0x291   : > { %5218 = vperm.xlu0 %9350, %v8747_v7   ;;  %v10923_v26 = vpop.permute.xlu0 %4255 }
 0x292   : > { %15744 = vst [vmem:[#allocation59_spill] sm:$0xff] %v10923_v26 }
 0x294   : > { %1021 = vmatmul.bf16.gmra.mxu2 %v9095_v39  ;;  %v10925_v31 = vpop.f32.mrf.mxu0 }
 0x295   : > { %15745 = vst [vmem:[#allocation57_spill] sm:$0xff] %v10925_v31  ;;  %1070 = vmatmul.bf16.gmra.mxu3 %v9095_v39  ;;  %v10927_v55 = vpop.f32.mrf.mxu1  ;;  %2827 = vperm.xlu2 %9319, %v10647_v0   ;;  %v10930_v16 = vpop.permute.xlu2 %2395 }
 0x296   : > { %15746 = vst [vmem:[#allocation60_spill] sm:$0xff] %v10927_v55  ;;  %v10932_v29 = vpop.permute.xlu1 %2319 }
 0x297   : > { %2823 = vperm.xlu1 %9318, %v10650_v13  }
 0x299   : > { %5233 = vperm.xlu0 %9350, %v8750_v20   ;;  %v10936_v7 = vpop.permute.xlu0 %4270  ;;  %v8413_v20 = vld [vmem:[%s9816_s30 + $0x2] ss:$8 sm:$0x3] }
 0x29a   : > { %15747 = vst [vmem:[#allocation45_spill] sm:$0xff] %v10936_v7  ;;  %v10958_v43 = vperm.slane %v8413_v20, 0  ;;  %v10960_v48 = vperm.slane %v8413_v20, 1  ;;  %v15755_v20 = vld [vmem:[#allocation86_spill] sm:$0xff] }
 0x29c   : > { %v10938_v62 = vpop.f32.mrf.mxu0  ;;  %v2371_v5 = vmul.f32 %v10960_v48, %v15753_v11 }
 0x29d   : > { %15748 = vst [vmem:[#allocation103_spill] sm:$0xff] %v10938_v62  ;;  %v10940_v42 = vpop.f32.mrf.mxu1  ;;  %2839 = vperm.xlu2 %9319, %v15668_v14   ;;  %v10943_v39 = vpop.permute.xlu2 %2407 }
 0x29e   : > { %15749 = vst [vmem:[#allocation104_spill] sm:$0xff] %v10940_v42  ;;  %v2335_v26 = vpop.permute.xlu1 %2334 }
 0x29f   : > { %2835 = vperm.xlu1 %9318, %v10854_v10   ;;  %v8856_v10 = vld [vmem:[%s9831_s9 + $0x338] sm:$0xff] }
 0x2a1   : > { %6141 = vperm.xlu0 %9350, %v8851_v57  }
 0x2a2   : > { %v10948_v32 = vpop.permute.xlu0 %4319 }
 0x2a3   : > { %15750 = vst [vmem:[#allocation105_spill] sm:$0xff] %v10948_v32  ;;  %v2372_v32 = vmul.f32 %v10958_v43, %v2335_v26 }
 0x2a4   : > { %1026 = vmatmul.bf16.gmra.mxu2 %v9096_v58  ;;  %v10951_v7 = vpop.f32.mrf.mxu0 }
 0x2a5   : > { %15751 = vst [vmem:[#allocation106_spill] sm:$0xff] %v10951_v7  ;;  %1075 = vmatmul.bf16.gmra.mxu3 %v9096_v58  ;;  %v10953_v28 = vpop.f32.mrf.mxu1  ;;  %2851 = vperm.xlu2 %9319, %v15680_v8   ;;  %v10956_v14 = vpop.permute.xlu2 %2419  ;;  %v2373_v58 = vmul.f32 %v10960_v48, %v2335_v26  ;;  %v2370_v8 = vmul.f32 %v10958_v43, %v15753_v11 }
 0x2a6   : > { %15752 = vst [vmem:[#allocation107_spill] sm:$0xff] %v10953_v28  ;;  %v2468_v35 = vadd.f32 %v15755_v20, %v2372_v32 }
 0x2a7   : > { %2847 = vperm.xlu1 %9318, %v10868_v56   ;;  %v10964_v57 = vpop.permute.xlu1 %2383  ;;  %v2469_v56 = vadd.f32 %v15755_v20, %v2373_v58 }
 0x2a8   : > { %v2500_v11 = vmax.f32 %v2468_v35, 0.0 }
 0x2a9   : > { %6166 = vperm.xlu0 %9350, %v8856_v10  }
 0x2aa   : > { %v10972_v61 = vpop.permute.xlu0 %4339 }
 0x2ab   : > { %15754 = vst [vmem:[#allocation55_spill] sm:$0xff] %v10972_v61  ;;  %v2501_v61 = vmax.f32 %v2469_v56, 0.0  ;;  %v8974_v56 = vld [vmem:[%s9831_s9 + $0x3e0] sm:$0xff] }
 0x2ac   : > { %v10976_v18 = vpop.f32.mrf.mxu0 }
 0x2ad   : > { %v10978_v34 = vpop.f32.mrf.mxu1  ;;  %2863 = vperm.xlu2 %9319, %v15696_v49   ;;  %v2432_v26 = vpop.permute.xlu2 %2431  ;;  %v15758_v49 = vmov 2  }
 0x2ae   : > { %15756 = vst [vmem:[#allocation86_spill] sm:$0xff] %v10978_v34  ;;  %v2466_v10 = vadd.f32 %v2432_v26, %v2370_v8  ;;  %v2467_v21 = vadd.f32 %v2432_v26, %v2371_v5  ;;  %v9442_v26 = vld [vmem:[%s9831_s9 + $0x110] sm:$0xff] }
 0x2af   : > { %2859 = vperm.xlu1 %9318, %v10881_v1   ;;  %v10983_v9 = vpop.permute.xlu1 %2391 }
 0x2b0   : > { %v2498_v32 = vmax.f32 %v2466_v10, 0.0  ;;  %v2499_v54 = vmax.f32 %v2467_v21, 0.0  ;;  %v8862_v21 = vld [vmem:[%s9831_s9 + $0x368] sm:$0xff]  ;;  %v2367_v10 = vmul.f32 %v10960_v48, %v10932_v29 }
 0x2b1   : > { %6181 = vperm.xlu0 %9350, %v8859_v3  }
 0x2b2   : > { %v2533_v58 = vpack.c.bf16 %v2500_v11, %v2498_v32  ;;  %v2534_v20 = vpack.c.bf16 %v2501_v61, %v2499_v54  ;;  %v10985_v55 = vpop.permute.xlu0 %4351 }
 0x2b3   : > { %15757 = vst [vmem:[#allocation108_spill] sm:$0xff] %v10985_v55 }
 0x2b4   : > { %v10987_v31 = vpop.f32.mrf.mxu0  ;;  %2647 = vmatpush.bf16.msra.mxu0 %v2533_v58  ;;  %2696 = vmatpush.bf16.msra.mxu1 %v2534_v20 }
 0x2b5   : > { %v10989_v5 = vpop.f32.mrf.mxu1  ;;  %9320 = vset.pattern.permute.xlu2 %v15758_v49 }
 0x2b6   : > { %3053 = vperm.xlu2 %9320, %v10754_v17   ;;  %v10993_v1 = vpop.permute.xlu2 %2540 }
 0x2b7   : > { %15759 = vst [vmem:[#allocation109_spill] sm:$0xff] %v10993_v1  ;;  %2871 = vperm.xlu1 %9318, %v10894_v41   ;;  %v10997_v54 = vpop.permute.xlu1 %2403  ;;  %v2366_v41 = vmul.f32 %v10958_v43, %v10932_v29  ;;  %v2362_v29 = vmul.f32 %v10958_v43, %v10871_v38  ;;  %v2369_v1 = vmul.f32 %v10960_v48, %v10884_v36 }
 0x2b9   : > { %6196 = vperm.xlu0 %9350, %v8862_v21   ;;  %v15764_v21 = vld [vmem:[#allocation81_spill] sm:$0xff] }
 0x2ba   : > { %v10999_v3 = vpop.permute.xlu0 %4363  ;;  %v2463_v55 = vadd.f32 %v15764_v21, %v2367_v10  ;;  %v15766_v10 = vld [vmem:[#allocation52_spill] sm:$0xff] }
 0x2bb   : > { %15760 = vst [vmem:[#allocation110_spill] sm:$0xff] %v10999_v3 }
 0x2bc   : > { %v11001_v61 = vpop.f32.mrf.mxu0  ;;  %v2495_v28 = vmax.f32 %v2463_v55, 0.0  ;;  %v2356_v55 = vmul.f32 %v10958_v43, %v10857_v22 }
 0x2bd   : > { %v11003_v35 = vpop.f32.mrf.mxu1 }
 0x2be   : > { %3065 = vperm.xlu2 %9320, %v10650_v13   ;;  %v11006_v8 = vpop.permute.xlu2 %2552  ;;  %v15763_v13 = vld [vmem:[#allocation53_spill] sm:$0xff] }
 0x2bf   : > { %15761 = vst [vmem:[#allocation111_spill] sm:$0xff] %v11006_v8  ;;  %9321 = vset.pattern.permute.xlu1 %v15758_v49  ;;  %v2416_v17 = vpop.permute.xlu1 %2415  ;;  %v2364_v58 = vmul.f32 %v10958_v43, %v15763_v13  ;;  %v2365_v20 = vmul.f32 %v10960_v48, %v15763_v13  ;;  %v2359_v8 = vmul.f32 %v10960_v48, %v15766_v10 }
 0x2c0   : > { %3061 = vperm.xlu1 %9321, %v9442_v26   ;;  %v2462_v26 = vadd.f32 %v15764_v21, %v2366_v41  ;;  %v8973_v41 = vld [vmem:[%s9831_s9 + $0x3d8] sm:$0xff]  ;;  %v2358_v21 = vmul.f32 %v10958_v43, %v15766_v10  ;;  %v2458_v42 = vadd.f32 %v2416_v17, %v2362_v29 }
 0x2c1   : > { %7159 = vperm.xlu0 %9350, %v8974_v56   ;;  %v2363_v56 = vmul.f32 %v10960_v48, %v10871_v38  ;;  %v2460_v7 = vadd.f32 %v10956_v14, %v2364_v58  ;;  %v2461_v10 = vadd.f32 %v10956_v14, %v2365_v20 }
 0x2c2   : > { %v11015_v11 = vpop.permute.xlu0 %5283 }
 0x2c3   : > { %15762 = vst [vmem:[#allocation112_spill] sm:$0xff] %v11015_v11  ;;  %v2368_v11 = vmul.f32 %v10958_v43, %v10884_v36  ;;  %v2459_v38 = vadd.f32 %v2416_v17, %v2363_v56  ;;  %v2360_v36 = vmul.f32 %v10958_v43, %v10918_v40 }
 0x2c4   : > { %v11017_v32 = vpop.f32.mrf.mxu0 }
 0x2c5   : > { %v11025_v3 = vpop.f32.mrf.mxu1 }
 0x2c6   : > { %3073 = vperm.xlu2 %9320, %v10779_v52   ;;  %v11036_v13 = vpop.permute.xlu2 %2560  ;;  %v2361_v52 = vmul.f32 %v10960_v48, %v10918_v40 }
 0x2c7   : > { %15765 = vst [vmem:[#allocation53_spill] sm:$0xff] %v11036_v13  ;;  %v2428_v49 = vpop.permute.xlu1 %2427  ;;  %v2494_v13 = vmax.f32 %v2462_v26, 0.0 }
 0x2c8   : > { %v2464_v62 = vadd.f32 %v2428_v49, %v2368_v11  ;;  %v2465_v27 = vadd.f32 %v2428_v49, %v2369_v1  ;;  %3069 = vperm.xlu1 %9321, %v10647_v0   ;;  %v2454_v49 = vadd.f32 %v10943_v39, %v2358_v21  ;;  %v2455_v0 = vadd.f32 %v10943_v39, %v2359_v8 }
 0x2c9   : > { %7154 = vperm.xlu0 %9350, %v8973_v41   ;;  %v2490_v1 = vmax.f32 %v2458_v42, 0.0  ;;  %v2491_v11 = vmax.f32 %v2459_v38, 0.0  ;;  %v2354_v42 = vmul.f32 %v10958_v43, %v10904_v50  ;;  %v2493_v39 = vmax.f32 %v2461_v10, 0.0 }
 0x2ca   : > { %v2496_v34 = vmax.f32 %v2464_v62, 0.0  ;;  %v2497_v29 = vmax.f32 %v2465_v27, 0.0  ;;  %v11050_v17 = vpop.permute.xlu0 %5303  ;;  %v2357_v62 = vmul.f32 %v10960_v48, %v10857_v22  ;;  %v15768_v27 = vld [vmem:[#allocation77_spill] sm:$0xff]  ;;  %v2486_v21 = vmax.f32 %v2454_v49, 0.0 }
 0x2cb   : > { %15767 = vst [vmem:[#allocation81_spill] sm:$0xff] %v11050_v17  ;;  %v2456_v14 = vadd.f32 %v15768_v27, %v2360_v36  ;;  %v2457_v58 = vadd.f32 %v15768_v27, %v2361_v52  ;;  %v8970_v22 = vld [vmem:[%s9831_s9 + $0x3c0] sm:$0xff]  ;;  %v2487_v38 = vmax.f32 %v2455_v0, 0.0  ;;  %v2452_v36 = vadd.f32 %v10997_v54, %v2356_v55 }
 0x2cc   : > { %v11054_v56 = vpop.f32.mrf.mxu0  ;;  %v2531_v40 = vpack.c.bf16 %v2496_v34, %v2494_v13  ;;  %v2532_v26 = vpack.c.bf16 %v2497_v29, %v2495_v28  ;;  %v2355_v34 = vmul.f32 %v10960_v48, %v10904_v50  ;;  %v2492_v28 = vmax.f32 %v2460_v7, 0.0  ;;  %v15769_v13 = vld [vmem:[#allocation50_spill] sm:$0xff]  ;;  %v9443_v29 = vld [vmem:[%s9831_s9 + $0x138] sm:$0xff] }
 0x2cd   : > { %v11062_v20 = vpop.f32.mrf.mxu1  ;;  %v2352_v41 = vmul.f32 %v10958_v43, %v15769_v13  ;;  %v2453_v52 = vadd.f32 %v10997_v54, %v2357_v62  ;;  %v2530_v10 = vpack.c.bf16 %v2493_v39, %v2491_v11  ;;  %v2488_v49 = vmax.f32 %v2456_v14, 0.0  ;;  %v15771_v55 = vld [vmem:[#allocation73_spill] sm:$0xff] }
 0x2ce   : > { %2648 = vmatpush.bf16.msra.mxu0 %v2531_v40  ;;  %2697 = vmatpush.bf16.msra.mxu1 %v2532_v26  ;;  %v11068_v8 = vpop.permute.xlu2 %2572  ;;  %v2529_v7 = vpack.c.bf16 %v2492_v28, %v2490_v1  ;;  %v2353_v40 = vmul.f32 %v10960_v48, %v15769_v13  ;;  %v2350_v26 = vmul.f32 %v10958_v43, %v10845_v4  ;;  %v2489_v0 = vmax.f32 %v2457_v58, 0.0 }
 0x2cf   : > { %3085 = vperm.xlu2 %9320, %v10790_v2   ;;  %v2351_v2 = vmul.f32 %v10960_v48, %v10845_v4  ;;  %v2450_v54 = vadd.f32 %v15771_v55, %v2354_v42  ;;  %v2451_v62 = vadd.f32 %v15771_v55, %v2355_v34  ;;  %v2527_v11 = vpack.c.bf16 %v2488_v49, %v2486_v21  ;;  %v15773_v4 = vld [vmem:[#allocation48_spill] sm:$0xff] }
 0x2d0   : > { %3081 = vperm.xlu1 %9321, %v9443_v29   ;;  %v11077_v50 = vpop.permute.xlu1 %2536  ;;  %v2528_v27 = vpack.c.bf16 %v2489_v0, %v2487_v38  ;;  %v2446_v28 = vadd.f32 %v10983_v9, %v2350_v26  ;;  %v2484_v14 = vmax.f32 %v2452_v36, 0.0  ;;  %v2485_v58 = vmax.f32 %v2453_v52, 0.0  ;;  %v8966_v29 = vld [vmem:[%s9831_s9 + $0x3a0] sm:$0xff] }
 0x2d1   : > { %15770 = vst [vmem:[#allocation52_spill] sm:$0xff] %v11077_v50  ;;  %7139 = vperm.xlu0 %9350, %v8970_v22   ;;  %v2447_v39 = vadd.f32 %v10983_v9, %v2351_v2  ;;  %v2342_v42 = vmul.f32 %v10958_v43, %v15773_v4  ;;  %v2343_v34 = vmul.f32 %v10960_v48, %v15773_v4 }
 0x2d2   : > { %2649 = vmatpush.bf16.msra.mxu0 %v2529_v7  ;;  %2698 = vmatpush.bf16.msra.mxu1 %v2530_v10  ;;  %v11087_v1 = vpop.permute.xlu0 %5315  ;;  %v2346_v13 = vmul.f32 %v10958_v43, %v10833_v15  ;;  %v2347_v21 = vmul.f32 %v10960_v48, %v10833_v15  ;;  %v2448_v9 = vadd.f32 %v10930_v16, %v2352_v41  ;;  %v2482_v7 = vmax.f32 %v2450_v54, 0.0 }
 0x2d3   : > { %15772 = vst [vmem:[#allocation77_spill] sm:$0xff] %v11087_v1  ;;  %v2449_v36 = vadd.f32 %v10930_v16, %v2353_v40  ;;  %v2483_v10 = vmax.f32 %v2451_v62, 0.0  ;;  %v2348_v26 = vmul.f32 %v10958_v43, %v10886_v53  ;;  %v2349_v15 = vmul.f32 %v10960_v48, %v10886_v53  ;;  %v9444_v40 = vld [vmem:[%s9831_s9 + $0x150] sm:$0xff] }
 0x2d4   : > { %v11091_v22 = vpop.f32.mrf.mxu0  ;;  %v2442_v49 = vadd.f32 %v10964_v57, %v2346_v13  ;;  %v2443_v0 = vadd.f32 %v10964_v57, %v2347_v21  ;;  %v2478_v16 = vmax.f32 %v2446_v28, 0.0  ;;  %v2479_v41 = vmax.f32 %v2447_v39, 0.0 }
 0x2d5   : > { %v11101_v38 = vpop.f32.mrf.mxu1  ;;  %v2525_v55 = vpack.c.bf16 %v2484_v14, %v2482_v7  ;;  %v2526_v54 = vpack.c.bf16 %v2485_v58, %v2483_v10  ;;  %v2344_v62 = vmul.f32 %v10958_v43, %v10873_v25  ;;  %v2345_v53 = vmul.f32 %v10960_v48, %v10873_v25  ;;  %v9445_v10 = vld [vmem:[%s9831_s9 + $0x168] sm:$0xff] }
 0x2d6   : > { %2650 = vmatpush.bf16.msra.mxu0 %v2527_v11  ;;  %2699 = vmatpush.bf16.msra.mxu1 %v2528_v27  ;;  %v11105_v52 = vpop.permute.xlu2 %2584  ;;  %v2444_v11 = vadd.f32 %v10915_v24, %v2348_v26  ;;  %v2445_v57 = vadd.f32 %v10915_v24, %v2349_v15  ;;  %v2481_v27 = vmax.f32 %v2449_v36, 0.0  ;;  %v2438_v39 = vadd.f32 %v10901_v33, %v2342_v42  ;;  %v15776_v24 = vld [vmem:[#allocation70_spill] sm:$0xff] }
 0x2d7   : > { %3097 = vperm.xlu2 %9320, %v10803_v12   ;;  %v2480_v12 = vmax.f32 %v2448_v9, 0.0  ;;  %v2439_v14 = vadd.f32 %v10901_v33, %v2343_v34  ;;  %v2474_v43 = vmax.f32 %v2442_v49, 0.0  ;;  %v2475_v58 = vmax.f32 %v2443_v0, 0.0  ;;  %v8965_v33 = vld [vmem:[%s9831_s9 + $0x398] sm:$0xff] }
 0x2d8   : > { %3093 = vperm.xlu1 %9321, %v9444_v40   ;;  %v11116_v2 = vpop.permute.xlu1 %2548  ;;  %v2524_v4 = vpack.c.bf16 %v2481_v27, %v2479_v41  ;;  %v2440_v21 = vadd.f32 %v15776_v24, %v2344_v62  ;;  %v2441_v9 = vadd.f32 %v15776_v24, %v2345_v53  ;;  %v2476_v36 = vmax.f32 %v2444_v11, 0.0  ;;  %v9113_v62 = vld [vmem:[%s9826_s5 + $0x100] sm:$0xff] }
 0x2d9   : > { %15774 = vst [vmem:[#allocation50_spill] sm:$0xff] %v11116_v2  ;;  %7119 = vperm.xlu0 %9350, %v8966_v29   ;;  %v2523_v25 = vpack.c.bf16 %v2480_v12, %v2478_v16  ;;  %v2477_v29 = vmax.f32 %v2445_v57, 0.0  ;;  %v2470_v34 = vmax.f32 %v2438_v39, 0.0  ;;  %v2471_v7 = vmax.f32 %v2439_v14, 0.0  ;;  %v8962_v11 = vld [vmem:[%s9831_s9 + $0x380] sm:$0xff]  ;;  %v11149_v57 = vld [vmem:[%s9831_s9 + $0x188] sm:$0xff] }
 0x2da   : > { %2651 = vmatpush.bf16.msra.mxu0 %v2525_v55  ;;  %2700 = vmatpush.bf16.msra.mxu1 %v2526_v54  ;;  %v11124_v28 = vpop.permute.xlu0 %5327  ;;  %v2521_v15 = vpack.c.bf16 %v2476_v36, %v2474_v43  ;;  %v2472_v0 = vmax.f32 %v2440_v21, 0.0  ;;  %v2473_v16 = vmax.f32 %v2441_v9, 0.0  ;;  %v11156_v27 = vld [vmem:[%s9831_s9 + $0x180] sm:$0xff] }
 0x2db   : > { %15775 = vst [vmem:[#allocation73_spill] sm:$0xff] %v11124_v28  ;;  %v2522_v49 = vpack.c.bf16 %v2477_v29, %v2475_v58  ;;  %v11162_v58 = vld [vmem:[%s9831_s9 + $0x1a0] sm:$0xff] }
 0x2dc   : > { %v11128_v48 = vpop.f32.mrf.mxu0  ;;  %v2519_v40 = vpack.c.bf16 %v2472_v0, %v2470_v34  ;;  %v2520_v55 = vpack.c.bf16 %v2473_v16, %v2471_v7  ;;  %v8849_v21 = vld [vmem:[%s9831_s9 + $0x300] sm:$0xff]  ;;  %v11181_v7 = vld [vmem:[%s9831_s9 + $0x1b0] sm:$0xff]  ;;  %v11189_v0 = vld [vmem:[%s9831_s9 + $0x1a8] sm:$0xff] }
 0x2dd   : > { %v11130_v13 = vpop.f32.mrf.mxu1 }
 0x2de   : > { %2652 = vmatpush.bf16.msra.mxu0 %v2523_v25  ;;  %2701 = vmatpush.bf16.msra.mxu1 %v2524_v4  ;;  %v11134_v42 = vpop.permute.xlu2 %2596  ;;  %v11165_v25 = vld [vmem:[%s9831_s9 + $0x198] sm:$0xff] }
 0x2df   : > { %3109 = vperm.xlu2 %9320, %v10816_v6  }
 0x2e0   : > { %3105 = vperm.xlu1 %9321, %v9445_v10   ;;  %v11139_v26 = vpop.permute.xlu1 %2556 }
 0x2e1   : > { %15777 = vst [vmem:[#allocation48_spill] sm:$0xff] %v11139_v26  ;;  %7114 = vperm.xlu0 %9350, %v8965_v33   ;;  %v9114_v33 = vld [vmem:[%s9826_s5 + $0x108] sm:$0xff]  ;;  %v15886_v26 = vld [vmem:[#allocation64_spill] sm:$0xff] }
 0x2e2   : > { %2653 = vmatpush.bf16.msra.mxu0 %v2521_v15  ;;  %2702 = vmatpush.bf16.msra.mxu1 %v2522_v49  ;;  %v11141_v41 = vpop.permute.xlu0 %5339  ;;  %v8854_v15 = vld [vmem:[%s9831_s9 + $0x328] sm:$0xff] }
 0x2e3   : > { %15778 = vst [vmem:[#allocation70_spill] sm:$0xff] %v11141_v41 }
 0x2e4   : > { %v1718_v6 = vpop.f32.mrf.mxu0 }
 0x2e5   : > { %v1767_v54 = vpop.f32.mrf.mxu1 }
 0x2e6   : > { %2654 = vmatpush.bf16.msra.mxu0 %v2519_v40  ;;  %2703 = vmatpush.bf16.msra.mxu1 %v2520_v55 }
 0x2e7   : > { %9323 = vset.pattern.permute.xlu2 %v15579_v47  ;;  %v11145_v53 = vpop.permute.xlu2 %2819 }
 0x2e8   : > { %15779 = vst [vmem:[#allocation113_spill] sm:$0xff] %v11145_v53  ;;  %3232 = vperm.xlu2 %9323, %v11149_v57   ;;  %9322 = vset.pattern.permute.xlu1 %v15579_v47  ;;  %v11153_v12 = vpop.permute.xlu1 %2568  ;;  %v9110_v53 = vld [vmem:[%s9826_s5 + $0xe8] sm:$0xff] }
 0x2e9   : > { %3227 = vperm.xlu1 %9322, %v11156_v27   ;;  %2655 = vmatmul.bf16.vlgmr.msra.gmra.mxu0 %v9113_v62 }
 0x2ea   : > { %2704 = vmatmul.bf16.vlgmr.msra.gmra.mxu1 %v9113_v62  ;;  %7099 = vperm.xlu0 %9350, %v8962_v11  }
 0x2eb   : > { %v11159_v39 = vpop.permute.xlu0 %5163 }
 0x2ec   : > { %15780 = vst [vmem:[#allocation114_spill] sm:$0xff] %v11159_v39  ;;  %v1720_v14 = vpop.f32.mrf.mxu0 }
 0x2ed   : > { %v1769_v43 = vpop.f32.mrf.mxu1  ;;  %v1721_v62 = vadd.f32 %v1720_v14, %v10585_v37  ;;  %v8857_v14 = vld [vmem:[%s9831_s9 + $0x340] sm:$0xff] }
 0x2ee   : > { %v1770_v28 = vadd.f32 %v1769_v43, %v10585_v37  ;;  %v11211_v43 = vld [vmem:[%s9831_s9 + $0x1c0] sm:$0xff] }
 0x2ef   : > { %v11167_v4 = vpop.permute.xlu2 %2827  ;;  %v1803_v37 = vmax.f32 %v1721_v62, 0.0  ;;  %v1763_v62 = vadd.f32 %v11101_v38, %v10546_v63 }
 0x2f0   : > { %15781 = vst [vmem:[#allocation115_spill] sm:$0xff] %v11167_v4  ;;  %3247 = vperm.xlu2 %9323, %v11162_v58   ;;  %v11170_v24 = vpop.permute.xlu1 %2580 }
 0x2f1   : > { %3242 = vperm.xlu1 %9322, %v11165_v25  }
 0x2f2   : > { %9381 = vset.pattern.permute.xlu0 %v15709_v45 }
 0x2f3   : > { %6247 = vperm.xlu0 %9381, %v8849_v21   ;;  %v11175_v9 = vpop.permute.xlu0 %5188 }
 0x2f4   : > { %15782 = vst [vmem:[#allocation116_spill] sm:$0xff] %v11175_v9  ;;  %v1723_v36 = vpop.f32.mrf.mxu0 }
 0x2f5   : > { %v1772_v29 = vpop.f32.mrf.mxu1  ;;  %v1724_v49 = vadd.f32 %v1723_v36, %v10748_v19 }
 0x2f6   : > { %v1773_v16 = vadd.f32 %v1772_v29, %v10748_v19  ;;  %v1719_v19 = vadd.f32 %v1718_v6, %v10658_v30 }
 0x2f7   : > { %v11178_v34 = vpop.permute.xlu2 %2839  ;;  %v1805_v11 = vmax.f32 %v1724_v49, 0.0  ;;  %v1716_v49 = vadd.f32 %v11128_v48, %v10720_v60 }
 0x2f8   : > { %15783 = vst [vmem:[#allocation117_spill] sm:$0xff] %v11178_v34  ;;  %3257 = vperm.xlu2 %9323, %v11181_v7   ;;  %v11184_v10 = vpop.permute.xlu1 %2592  ;;  %v1806_v1 = vmax.f32 %v1773_v16, 0.0  ;;  %v11204_v34 = vld [vmem:[%s9831_s9 + $0x1c8] sm:$0xff]  ;;  %v1714_v16 = vadd.f32 %v11091_v22, %v10546_v63  ;;  %v1760_v63 = vadd.f32 %v11062_v20, %v10640_v23 }
 0x2f9   : > { %3252 = vperm.xlu1 %9322, %v11189_v0   ;;  %2660 = vmatmul.bf16.gmra.mxu0 %v9114_v33 }
 0x2fa   : > { %2709 = vmatmul.bf16.gmra.mxu1 %v9114_v33 }
 0x2fb   : > { %6267 = vperm.xlu0 %9381, %v8854_v15   ;;  %v11193_v40 = vpop.permute.xlu0 %5203  ;;  %v1768_v15 = vadd.f32 %v1767_v54, %v10658_v30  ;;  %v1765_v30 = vadd.f32 %v11130_v13, %v10720_v60  ;;  %v1711_v60 = vadd.f32 %v11054_v56, %v10640_v23  ;;  %v1758_v13 = vadd.f32 %v11025_v3, %v10697_v59  ;;  %v8860_v56 = vld [vmem:[%s9831_s9 + $0x358] sm:$0xff] }
 0x2fc   : > { %15784 = vst [vmem:[#allocation118_spill] sm:$0xff] %v11193_v40  ;;  %v1725_v55 = vpop.f32.mrf.mxu0 }
 0x2fd   : > { %v1726_v21 = vadd.f32 %v1725_v55, %v10678_v46  ;;  %v1774_v36 = vpop.f32.mrf.mxu1  ;;  %v1801_v55 = vmax.f32 %v1719_v19, 0.0  ;;  %v1800_v38 = vmax.f32 %v1765_v30, 0.0  ;;  %v1795_v3 = vmax.f32 %v1711_v60, 0.0 }
 0x2fe   : > { %v1775_v17 = vadd.f32 %v1774_v36, %v10678_v46  ;;  %v1797_v36 = vmax.f32 %v1714_v16, 0.0  ;;  %v1796_v30 = vmax.f32 %v1760_v63, 0.0  ;;  %v1753_v16 = vadd.f32 %v10989_v5, %v10628_v44 }
 0x2ff   : > { %v1807_v29 = vmax.f32 %v1726_v21, 0.0  ;;  %v11200_v33 = vpop.permute.xlu2 %2851  ;;  %v1802_v21 = vmax.f32 %v1768_v15, 0.0  ;;  %v1838_v22 = vpack.c.bf16 %v1803_v37, %v1801_v55  ;;  %v15789_v15 = vld [vmem:[#allocation91_spill] sm:$0xff] }
 0x300   : > { %15785 = vst [vmem:[#allocation119_spill] sm:$0xff] %v11200_v33  ;;  %v1808_v41 = vmax.f32 %v1775_v17, 0.0  ;;  %3272 = vperm.xlu2 %9323, %v11204_v34   ;;  %v1804_v17 = vmax.f32 %v1770_v28, 0.0  ;;  %v9115_v28 = vld [vmem:[%s9826_s5 + $0x110] sm:$0xff]  ;;  %v1755_v37 = vadd.f32 %v11003_v35, %v15789_v15  ;;  %v1701_v35 = vadd.f32 %v10976_v18, %v10669_v51 }
 0x301   : > { %3267 = vperm.xlu1 %9322, %v11211_v43   ;;  %v11214_v46 = vpop.permute.xlu1 %2815  ;;  %v1840_v6 = vpack.c.bf16 %v1807_v29, %v1805_v11  ;;  %v1709_v11 = vadd.f32 %v11017_v32, %v10697_v59  ;;  %v1798_v32 = vmax.f32 %v1763_v62, 0.0  ;;  %v11236_v29 = vld [vmem:[%s9831_s9 + $0x1e0] sm:$0xff]  ;;  %v1790_v63 = vmax.f32 %v1753_v16, 0.0 }
 0x302   : > { %15786 = vst [vmem:[#allocation120_spill] sm:$0xff] %v11214_v46  ;;  %v1841_v54 = vpack.c.bf16 %v1808_v41, %v1806_v1  ;;  %v1799_v1 = vmax.f32 %v1716_v49, 0.0  ;;  %v1839_v41 = vpack.c.bf16 %v1804_v17, %v1802_v21  ;;  %v11243_v49 = vld [vmem:[%s9831_s9 + $0x1d8] sm:$0xff]  ;;  %v15792_v21 = vld [vmem:[#allocation86_spill] sm:$0xff] }
 0x303   : > { %6279 = vperm.xlu0 %9381, %v8857_v14   ;;  %1954 = vmatpush.bf16.msrb.mxu2 %v1840_v6  ;;  %v11220_v48 = vpop.permute.xlu0 %5218  ;;  %v1706_v14 = vadd.f32 %v11001_v61, %v15789_v15  ;;  %v1793_v59 = vmax.f32 %v1709_v11, 0.0  ;;  %v1794_v6 = vmax.f32 %v1758_v13, 0.0  ;;  %v1837_v17 = vpack.c.bf16 %v1800_v38, %v1798_v32  ;;  %v11265_v38 = vld [vmem:[%s9831_s9 + $0x1f8] sm:$0xff]  ;;  %v15798_v15 = vld [vmem:[#allocation95_spill] sm:$0xff] }
 0x304   : > { %15787 = vst [vmem:[#allocation121_spill] sm:$0xff] %v11220_v48  ;;  %2003 = vmatpush.bf16.msrb.mxu3 %v1841_v54  ;;  %v1836_v20 = vpack.c.bf16 %v1799_v1, %v1797_v36  ;;  %v1704_v61 = vadd.f32 %v10987_v31, %v10628_v44  ;;  %v1750_v11 = vadd.f32 %v15792_v21, %v10669_v51  ;;  %v1792_v31 = vmax.f32 %v1755_v37, 0.0  ;;  %v15793_v1 = vld [vmem:[#allocation87_spill] sm:$0xff]  ;;  %v15803_v16 = vld [vmem:[#allocation57_spill] sm:$0xff] }
 0x305   : > { %v1791_v55 = vmax.f32 %v1706_v14, 0.0  ;;  %v1834_v62 = vpack.c.bf16 %v1795_v3, %v1793_v59  ;;  %v1835_v60 = vpack.c.bf16 %v1796_v30, %v1794_v6  ;;  %v15795_v44 = vld [vmem:[#allocation107_spill] sm:$0xff]  ;;  %v1787_v51 = vmax.f32 %v1701_v35, 0.0  ;;  %v15800_v3 = vld [vmem:[#allocation104_spill] sm:$0xff] }
 0x306   : > { %v1789_v13 = vmax.f32 %v1704_v61, 0.0  ;;  %v1748_v5 = vadd.f32 %v15795_v44, %v15793_v1  ;;  %v11272_v36 = vld [vmem:[%s9831_s9 + $0x1f0] sm:$0xff]  ;;  %v1788_v37 = vmax.f32 %v1750_v11, 0.0  ;;  %v1833_v6 = vpack.c.bf16 %v1792_v31, %v1790_v63  ;;  %v15802_v61 = vld [vmem:[#allocation82_spill] sm:$0xff] }
 0x307   : > { %v11233_v19 = vpop.permute.xlu2 %2863  ;;  %1955 = vmatpush.bf16.msrb.mxu2 %v1838_v22  ;;  %v15794_v22 = vld [vmem:[#allocation106_spill] sm:$0xff]  ;;  %v15799_v14 = vld [vmem:[#allocation103_spill] sm:$0xff]  ;;  %v1694_v35 = vadd.f32 %v15803_v16, %v15802_v61 }
 0x308   : > { %15788 = vst [vmem:[#allocation122_spill] sm:$0xff] %v11233_v19  ;;  %3287 = vperm.xlu2 %9323, %v11236_v29   ;;  %2004 = vmatpush.bf16.msrb.mxu3 %v1839_v41  ;;  %v8863_v41 = vld [vmem:[%s9831_s9 + $0x370] sm:$0xff]  ;;  %v1696_v59 = vadd.f32 %v15799_v14, %v15798_v15  ;;  %v1786_v21 = vmax.f32 %v1748_v5, 0.0  ;;  %v9116_v5 = vld [vmem:[%s9826_s5 + $0x118] sm:$0xff] }
 0x309   : > { %3282 = vperm.xlu1 %9322, %v11243_v49   ;;  %2665 = vmatmul.bf16.gmra.mxu0 %v9115_v28  ;;  %v11246_v23 = vpop.permute.xlu1 %2823  ;;  %v15807_v11 = vld [vmem:[#allocation63_spill] sm:$0xff]  ;;  %v8743_v19 = vld [vmem:[%s9831_s9 + $0x2b8] sm:$0xff] }
 0x30a   : > { %15790 = vst [vmem:[#allocation91_spill] sm:$0xff] %v11246_v23  ;;  %2714 = vmatmul.bf16.gmra.mxu1 %v9115_v28  ;;  %v1699_v28 = vadd.f32 %v15794_v22, %v15793_v1  ;;  %v15806_v1 = vld [vmem:[#allocation62_spill] sm:$0xff] }
 0x30b   : > { %6291 = vperm.xlu0 %9381, %v8860_v56   ;;  %1956 = vmatpush.bf16.msrb.mxu2 %v1836_v20  ;;  %v11252_v54 = vpop.permute.xlu0 %5233  ;;  %v1832_v56 = vpack.c.bf16 %v1791_v55, %v1789_v13  ;;  %v1745_v20 = vadd.f32 %v15800_v3, %v15798_v15  ;;  %v15809_v13 = vld [vmem:[#allocation56_spill] sm:$0xff]  ;;  %v1783_v15 = vmax.f32 %v1696_v59, 0.0  ;;  %v1831_v3 = vpack.c.bf16 %v1788_v37, %v1786_v21 }
 0x30c   : > { %15791 = vst [vmem:[#allocation123_spill] sm:$0xff] %v11252_v54  ;;  %2005 = vmatpush.bf16.msrb.mxu3 %v1837_v17  ;;  %v1785_v30 = vmax.f32 %v1699_v28, 0.0  ;;  %v15808_v28 = vld [vmem:[#allocation93_spill] sm:$0xff]  ;;  %v8850_v54 = vld [vmem:[%s9831_s9 + $0x308] sm:$0xff] }
 0x30d   : > { %v1691_v44 = vadd.f32 %v15809_v13, %v15808_v28  ;;  %v1784_v14 = vmax.f32 %v1745_v20, 0.0 }
 0x30e   : > { %v1830_v63 = vpack.c.bf16 %v1787_v51, %v1785_v30 }
 0x30f   : > { %1957 = vmatpush.bf16.msrb.mxu2 %v1834_v62  ;;  %v15804_v62 = vld [vmem:[#allocation60_spill] sm:$0xff]  ;;  %v1779_v59 = vmax.f32 %v1691_v44, 0.0 }
 0x310   : > { %3302 = vperm.xlu2 %9323, %v11265_v38   ;;  %2006 = vmatpush.bf16.msrb.mxu3 %v1835_v60  ;;  %v11268_v18 = vpop.permute.xlu2 %3053  ;;  %v1743_v55 = vadd.f32 %v15804_v62, %v15802_v61  ;;  %v15805_v60 = vld [vmem:[#allocation100_spill] sm:$0xff]  ;;  %v8971_v62 = vld [vmem:[%s9831_s9 + $0x3c8] sm:$0xff] }
 0x311   : > { %15796 = vst [vmem:[#allocation86_spill] sm:$0xff] %v11268_v18  ;;  %3297 = vperm.xlu1 %9322, %v11272_v36   ;;  %v11275_v32 = vpop.permute.xlu1 %2835  ;;  %v1689_v22 = vadd.f32 %v15806_v1, %v15805_v60  ;;  %v1738_v31 = vadd.f32 %v15807_v11, %v15805_v60  ;;  %v11301_v11 = vld [vmem:[%s9831_s9 + $0x190] sm:$0xff] }
 0x312   : > { %15797 = vst [vmem:[#allocation87_spill] sm:$0xff] %v11275_v32  ;;  %v1782_v61 = vmax.f32 %v1743_v55, 0.0 }
 0x313   : > { %6303 = vperm.xlu0 %9381, %v8863_v41   ;;  %1958 = vmatpush.bf16.msrb.mxu2 %v1832_v56  ;;  %v11281_v17 = vpop.permute.xlu0 %6141  ;;  %v15810_v41 = vld [vmem:[#allocation17_spill] sm:$0xff]  ;;  %v1777_v60 = vmax.f32 %v1689_v22, 0.0  ;;  %v1778_v1 = vmax.f32 %v1738_v31, 0.0  ;;  %v11313_v31 = vld [vmem:[%s9831_s9 + $0x388] sm:$0xff] }
 0x314   : > { %15801 = vst [vmem:[#allocation106_spill] sm:$0xff] %v11281_v17  ;;  %2007 = vmatpush.bf16.msrb.mxu3 %v1833_v6  ;;  %v1740_v56 = vadd.f32 %v15810_v41, %v15808_v28  ;;  %v1781_v6 = vmax.f32 %v1694_v35, 0.0  ;;  %v1829_v30 = vpack.c.bf16 %v1784_v14, %v1782_v61  ;;  %v9105_v28 = vld [vmem:[%s9826_s5 + $0xc0] sm:$0xff]  ;;  %v11325_v41 = vld [vmem:[%s9831_s9 + $0x1b8] sm:$0xff]  ;;  %v11342_v61 = vld [vmem:[%s9831_s9 + $0x1d0] sm:$0xff] }
 0x315   : > { %v1826_v55 = vpack.c.bf16 %v1779_v59, %v1777_v60  ;;  %v11333_v14 = vld [vmem:[%s9831_s9 + $0x200] sm:$0xff]  ;;  %v11392_v17 = vld [vmem:[%s9831_s9 + $0x270] sm:$0xff] }
 0x316   : > { %v1780_v20 = vmax.f32 %v1740_v56, 0.0  ;;  %v1828_v37 = vpack.c.bf16 %v1783_v15, %v1781_v6  ;;  %v9106_v6 = vld [vmem:[%s9826_s5 + $0xc8] sm:$0xff]  ;;  %15831 = vst [vmem:[#allocation130_spill] sm:$0xff] %v11392_v17 }
 0x317   : > { %1959 = vmatpush.bf16.msrb.mxu2 %v1830_v63  ;;  %v9117_v63 = vld [vmem:[%s9826_s5 + $0x120] sm:$0xff] }
 0x318   : > { %9326 = vset.pattern.permute.xlu2 %v15709_v45  ;;  %2008 = vmatpush.bf16.msrb.mxu3 %v1831_v3  ;;  %v11297_v16 = vpop.permute.xlu2 %3065  ;;  %v1827_v21 = vpack.c.bf16 %v1780_v20, %v1778_v1  ;;  %v15819_v3 = vmov 3   ;;  %v11350_v1 = vld [vmem:[%s9831_s9 + $0x228] sm:$0xff] }
 0x319   : > { %15811 = vst [vmem:[#allocation107_spill] sm:$0xff] %v11297_v16  ;;  %3351 = vperm.xlu2 %9326, %v11301_v11   ;;  %9325 = vset.pattern.permute.xlu1 %v15709_v45  ;;  %v11305_v51 = vpop.permute.xlu1 %2847  ;;  %v9118_v20 = vld [vmem:[%s9826_s5 + $0x128] sm:$0xff] }
 0x31a   : > { %15812 = vst [vmem:[#allocation95_spill] sm:$0xff] %v11305_v51  ;;  %2670 = vmatmul.bf16.gmra.mxu0 %v9116_v5  ;;  %2719 = vmatmul.bf16.gmra.mxu1 %v9116_v5 }
 0x31b   : > { %3347 = vperm.xlu1 %9325, %v11149_v57   ;;  %7251 = vperm.xlu0 %9381, %v8971_v62   ;;  %v11308_v35 = vpop.permute.xlu0 %6166 }
 0x31c   : > { %15813 = vst [vmem:[#allocation103_spill] sm:$0xff] %v11308_v35  ;;  %1960 = vmatpush.bf16.msrb.mxu2 %v1828_v37  ;;  %2009 = vmatpush.bf16.msrb.mxu3 %v1829_v30  ;;  %v11358_v37 = vld [vmem:[%s9831_s9 + $0x1e8] sm:$0xff] }
 0x320   : > { %1961 = vmatpush.bf16.msrb.mxu2 %v1826_v55  ;;  %2010 = vmatpush.bf16.msrb.mxu3 %v1827_v21  ;;  %v11310_v22 = vpop.permute.xlu2 %3073  ;;  %v11366_v21 = vld [vmem:[%s9831_s9 + $0x240] sm:$0xff] }
 0x321   : > { %15814 = vst [vmem:[#allocation104_spill] sm:$0xff] %v11310_v22  ;;  %3359 = vperm.xlu2 %9326, %v11162_v58   ;;  %v11317_v13 = vpop.permute.xlu1 %2859  ;;  %v8738_v22 = vld [vmem:[%s9831_s9 + $0x290] sm:$0xff] }
 0x322   : > { %15815 = vst [vmem:[#allocation82_spill] sm:$0xff] %v11317_v13 }
 0x323   : > { %3355 = vperm.xlu1 %9325, %v11165_v25   ;;  %7219 = vperm.xlu0 %9381, %v11313_v31   ;;  %v11321_v44 = vpop.permute.xlu0 %6181 }
 0x324   : > { %15816 = vst [vmem:[#allocation57_spill] sm:$0xff] %v11321_v44  ;;  %1962 = vmatmul.bf16.vlgmr.msrb.gmra.mxu2 %v9105_v28  ;;  %2011 = vmatmul.bf16.vlgmr.msrb.gmra.mxu3 %v9105_v28 }
 0x329   : > { %3371 = vperm.xlu2 %9326, %v11325_v41   ;;  %v11328_v56 = vpop.permute.xlu2 %3085  ;;  %v11330_v15 = vpop.permute.xlu1 %2871 }
 0x32a   : > { %15817 = vst [vmem:[#allocation60_spill] sm:$0xff] %v11328_v56  ;;  %2675 = vmatmul.bf16.gmra.mxu0 %v9117_v63  ;;  %2724 = vmatmul.bf16.gmra.mxu1 %v9117_v63  ;;  %v9107_v63 = vld [vmem:[%s9826_s5 + $0xd0] sm:$0xff] }
 0x32b   : > { %15818 = vst [vmem:[#allocation100_spill] sm:$0xff] %v11330_v15  ;;  %3367 = vperm.xlu1 %9325, %v11181_v7   ;;  %9383 = vset.pattern.permute.xlu0 %v15819_v3  ;;  %v11337_v5 = vpop.permute.xlu0 %6196 }
 0x32c   : > { %15820 = vst [vmem:[#allocation62_spill] sm:$0xff] %v11337_v5  ;;  %4472 = vperm.xlu0 %9383, %v11333_v14  }
 0x331   : > { %3383 = vperm.xlu2 %9326, %v11342_v61   ;;  %v11345_v62 = vpop.permute.xlu2 %3097 }
 0x332   : > { %15821 = vst [vmem:[#allocation63_spill] sm:$0xff] %v11345_v62  ;;  %v11347_v60 = vpop.permute.xlu1 %3061 }
 0x333   : > { %15822 = vst [vmem:[#allocation93_spill] sm:$0xff] %v11347_v60  ;;  %3379 = vperm.xlu1 %9325, %v11204_v34   ;;  %v11353_v59 = vpop.permute.xlu0 %7159  ;;  %v8749_v60 = vld [vmem:[%s9831_s9 + $0x2e8] sm:$0xff] }
 0x334   : > { %15823 = vst [vmem:[#allocation56_spill] sm:$0xff] %v11353_v59  ;;  %1967 = vmatmul.bf16.gmra.mxu2 %v9106_v6  ;;  %2016 = vmatmul.bf16.gmra.mxu3 %v9106_v6  ;;  %v11380_v59 = vld [vmem:[%s9831_s9 + $0x258] sm:$0xff] }
 0x335   : > { %4492 = vperm.xlu0 %9383, %v11350_v1   ;;  %15828 = vst [vmem:[#allocation127_spill] sm:$0xff] %v11380_v59 }
 0x339   : > { %3395 = vperm.xlu2 %9326, %v11358_v37   ;;  %v11361_v30 = vpop.permute.xlu2 %3109 }
 0x33a   : > { %15824 = vst [vmem:[#allocation17_spill] sm:$0xff] %v11361_v30  ;;  %2680 = vmatmul.bf16.gmra.mxu0 %v9118_v20  ;;  %2729 = vmatmul.bf16.gmra.mxu1 %v9118_v20  ;;  %v11363_v55 = vpop.permute.xlu1 %3069  ;;  %v9108_v30 = vld [vmem:[%s9826_s5 + $0xd8] sm:$0xff] }
 0x33b   : > { %15825 = vst [vmem:[#allocation124_spill] sm:$0xff] %v11363_v55  ;;  %3391 = vperm.xlu1 %9325, %v11236_v29   ;;  %v11369_v28 = vpop.permute.xlu0 %7154 }
 0x33c   : > { %15826 = vst [vmem:[#allocation125_spill] sm:$0xff] %v11369_v28  ;;  %v9119_v28 = vld [vmem:[%s9826_s5 + $0x130] sm:$0xff] }
 0x33d   : > { %4504 = vperm.xlu0 %9383, %v11366_v21  }
 0x341   : > { %9328 = vset.pattern.permute.xlu2 %v15819_v3 }
 0x342   : > { %3504 = vperm.xlu2 %9328, %v11156_v27   ;;  %v11375_v6 = vpop.permute.xlu2 %3232  ;;  %v11377_v20 = vpop.permute.xlu1 %3081 }
 0x343   : > { %15827 = vst [vmem:[#allocation126_spill] sm:$0xff] %v11377_v20  ;;  %3403 = vperm.xlu1 %9325, %v11265_v38   ;;  %v11383_v5 = vpop.permute.xlu0 %7139 }
 0x344   : > { %15829 = vst [vmem:[#allocation128_spill] sm:$0xff] %v11383_v5  ;;  %1972 = vmatmul.bf16.gmra.mxu2 %v9107_v63  ;;  %2021 = vmatmul.bf16.gmra.mxu3 %v9107_v63  ;;  %v11399_v63 = vpop.f32.mrf.mxu2 }
 0x345   : > { %4516 = vperm.xlu0 %9383, %v11380_v59   ;;  %15833 = vst [vmem:[#allocation132_spill] sm:$0xff] %v11399_v63 }
 0x34a   : > { %2685 = vmatmul.bf16.gmra.mxu0 %v9119_v28  ;;  %2734 = vmatmul.bf16.gmra.mxu1 %v9119_v28  ;;  %v11387_v44 = vpop.permute.xlu2 %3247  ;;  %v11389_v35 = vpop.permute.xlu1 %3093 }
 0x34b   : > { %15830 = vst [vmem:[#allocation129_spill] sm:$0xff] %v11389_v35  ;;  %3516 = vperm.xlu2 %9328, %v11165_v25   ;;  %9329 = vset.pattern.permute.xlu1 %v15819_v3  ;;  %v11396_v5 = vpop.permute.xlu0 %7119  ;;  %v11402_v28 = vpop.f32.mrf.mxu3  ;;  %v8861_v3 = vld [vmem:[%s9831_s9 + $0x360] sm:$0xff] }
 0x34c   : > { %15832 = vst [vmem:[#allocation131_spill] sm:$0xff] %v11396_v5  ;;  %3512 = vperm.xlu1 %9329, %v11301_v11   ;;  %v9120_v5 = vld [vmem:[%s9826_s5 + $0x138] sm:$0xff]  ;;  %v11415_v35 = vpop.f32.mrf.mxu2 }
 0x34d   : > { %4528 = vperm.xlu0 %9383, %v11392_v17   ;;  %15834 = vst [vmem:[#allocation133_spill] sm:$0xff] %v11402_v28  ;;  %v8858_v28 = vld [vmem:[%s9831_s9 + $0x348] sm:$0xff] }
 0x34e   : > { %15837 = vst [vmem:[#allocation136_spill] sm:$0xff] %v11415_v35 }
 0x352   : > { %v11405_v62 = vpop.permute.xlu2 %3257  ;;  %v11407_v56 = vpop.permute.xlu1 %3105 }
 0x353   : > { %15835 = vst [vmem:[#allocation134_spill] sm:$0xff] %v11407_v56  ;;  %3524 = vperm.xlu2 %9328, %v11189_v0   ;;  %v11411_v18 = vpop.permute.xlu0 %7114  ;;  %v11417_v15 = vpop.f32.mrf.mxu3 }
 0x354   : > { %15836 = vst [vmem:[#allocation135_spill] sm:$0xff] %v11411_v18  ;;  %1977 = vmatmul.bf16.gmra.mxu2 %v9108_v30  ;;  %2026 = vmatmul.bf16.gmra.mxu3 %v9108_v30  ;;  %v11429_v30 = vpop.f32.mrf.mxu2 }
 0x355   : > { %3520 = vperm.xlu1 %9329, %v11162_v58   ;;  %5448 = vperm.xlu0 %9383, %v8738_v22   ;;  %15838 = vst [vmem:[#allocation137_spill] sm:$0xff] %v11417_v15  ;;  %v9109_v22 = vld [vmem:[%s9826_s5 + $0xe0] sm:$0xff]  ;;  %v15850_v15 = vmov 4  }
 0x356   : > { %15840 = vst [vmem:[#allocation139_spill] sm:$0xff] %v11429_v30 }
 0x35a   : > { %2690 = vmatmul.bf16.gmra.mxu0 %v9120_v5  ;;  %2739 = vmatmul.bf16.gmra.mxu1 %v9120_v5  ;;  %v11419_v56 = vpop.permute.xlu2 %3272  ;;  %v8746_v5 = vld [vmem:[%s9831_s9 + $0x2d0] sm:$0xff] }
 0x35b   : > { %3536 = vperm.xlu2 %9328, %v11211_v43   ;;  %v11423_v18 = vpop.permute.xlu1 %3227  ;;  %v11431_v33 = vpop.f32.mrf.mxu3 }
 0x35c   : > { %v11425_v13 = vpop.permute.xlu0 %7099  ;;  %15841 = vst [vmem:[#allocation140_spill] sm:$0xff] %v11431_v33  ;;  %v11449_v32 = vpop.f32.mrf.mxu2 }
 0x35d   : > { %15839 = vst [vmem:[#allocation138_spill] sm:$0xff] %v11425_v13  ;;  %3532 = vperm.xlu1 %9329, %v11325_v41   ;;  %5468 = vperm.xlu0 %9383, %v8743_v19  }
 0x35e   : > { %15845 = vst [vmem:[#allocation144_spill] sm:$0xff] %v11449_v32 }
 0x362   : > { %v11433_v51 = vpop.permute.xlu2 %3287 }
 0x363   : > { %3548 = vperm.xlu2 %9328, %v11243_v49   ;;  %v11437_v20 = vpop.permute.xlu1 %3242 }
 0x364   : > { %1982 = vmatmul.bf16.gmra.mxu2 %v9109_v22  ;;  %2031 = vmatmul.bf16.gmra.mxu3 %v9109_v22  ;;  %v11454_v22 = vpop.f32.mrf.mxu3  ;;  %v11471_v48 = vpop.f32.mrf.mxu2 }
 0x365   : > { %3544 = vperm.xlu1 %9329, %v11342_v61   ;;  %5480 = vperm.xlu0 %9383, %v8746_v5   ;;  %v11440_v19 = vpop.permute.xlu0 %6247  ;;  %15846 = vst [vmem:[#allocation145_spill] sm:$0xff] %v11454_v22 }
 0x366   : > { %15842 = vst [vmem:[#allocation141_spill] sm:$0xff] %v11440_v19  ;;  %v11442_v13 = vpop.f32.mrf.mxu0 }
 0x367   : > { %15843 = vst [vmem:[#allocation142_spill] sm:$0xff] %v11442_v13  ;;  %v11444_v55 = vpop.f32.mrf.mxu1 }
 0x368   : > { %15844 = vst [vmem:[#allocation143_spill] sm:$0xff] %v11444_v55 }
 0x369   : > { %15851 = vst [vmem:[#allocation149_spill] sm:$0xff] %v11471_v48  ;;  %v9111_v48 = vld [vmem:[%s9826_s5 + $0xf0] sm:$0xff] }
 0x36a   : > { %v11446_v16 = vpop.permute.xlu2 %3302 }
 0x36b   : > { %3560 = vperm.xlu2 %9328, %v11272_v36   ;;  %v11452_v4 = vpop.permute.xlu1 %3252 }
 0x36d   : > { %3556 = vperm.xlu1 %9329, %v11358_v37   ;;  %5492 = vperm.xlu0 %9383, %v8749_v60   ;;  %v11457_v5 = vpop.permute.xlu0 %6267 }
 0x36e   : > { %15847 = vst [vmem:[#allocation146_spill] sm:$0xff] %v11457_v5  ;;  %v11459_v19 = vpop.f32.mrf.mxu0  ;;  %v11476_v5 = vpop.f32.mrf.mxu3 }
 0x36f   : > { %15848 = vst [vmem:[#allocation147_spill] sm:$0xff] %v11459_v19  ;;  %v11461_v23 = vpop.f32.mrf.mxu1  ;;  %v15878_v19 = vmov 2  }
 0x370   : > { %15849 = vst [vmem:[#allocation148_spill] sm:$0xff] %v11461_v23  ;;  %v8972_v23 = vld [vmem:[%s9831_s9 + $0x3d0] sm:$0xff] }
 0x371   : > { %15853 = vst [vmem:[#allocation151_spill] sm:$0xff] %v11476_v5 }
 0x373   : > { %9331 = vset.pattern.permute.xlu2 %v15850_v15  ;;  %v11465_v35 = vpop.permute.xlu2 %3351  ;;  %v11467_v46 = vpop.permute.xlu1 %3267 }
 0x374   : > { %3783 = vperm.xlu2 %9331, %v11149_v57   ;;  %1987 = vmatmul.bf16.gmra.mxu2 %v9110_v53 }
 0x375   : > { %2036 = vmatmul.bf16.gmra.mxu3 %v9110_v53  ;;  %9330 = vset.pattern.permute.xlu1 %v15850_v15  ;;  %v11474_v60 = vpop.permute.xlu0 %6279  ;;  %v8855_v53 = vld [vmem:[%s9831_s9 + $0x330] sm:$0xff] }
 0x376   : > { %15852 = vst [vmem:[#allocation150_spill] sm:$0xff] %v11474_v60  ;;  %6412 = vperm.xlu0 %9383, %v8850_v54   ;;  %3779 = vperm.xlu1 %9330, %v11156_v27   ;;  %v11479_v40 = vpop.f32.mrf.mxu0  ;;  %v11496_v60 = vpop.f32.mrf.mxu2 }
 0x377   : > { %15854 = vst [vmem:[#allocation152_spill] sm:$0xff] %v11479_v40  ;;  %v11481_v9 = vpop.f32.mrf.mxu1  ;;  %v11498_v5 = vpop.f32.mrf.mxu3 }
 0x378   : > { %15855 = vst [vmem:[#allocation153_spill] sm:$0xff] %v11481_v9  ;;  %v8964_v9 = vld [vmem:[%s9831_s9 + $0x390] sm:$0xff] }
 0x379   : > { %15859 = vst [vmem:[#allocation157_spill] sm:$0xff] %v11496_v60 }
 0x37a   : > { %15860 = vst [vmem:[#allocation158_spill] sm:$0xff] %v11498_v5 }
 0x37b   : > { %v11483_v39 = vpop.permute.xlu2 %3359  ;;  %v11485_v33 = vpop.permute.xlu1 %3282 }
 0x37c   : > { %3795 = vperm.xlu2 %9331, %v11162_v58  }
 0x37d   : > { %v11489_v30 = vpop.permute.xlu0 %6291 }
 0x37e   : > { %15856 = vst [vmem:[#allocation154_spill] sm:$0xff] %v11489_v30  ;;  %6432 = vperm.xlu0 %9383, %v8855_v53   ;;  %3791 = vperm.xlu1 %9330, %v11165_v25   ;;  %v11492_v54 = vpop.f32.mrf.mxu0  ;;  %v11514_v60 = vpop.f32.mrf.mxu2 }
 0x37f   : > { %15857 = vst [vmem:[#allocation155_spill] sm:$0xff] %v11492_v54  ;;  %v11494_v27 = vpop.f32.mrf.mxu1  ;;  %v11516_v63 = vpop.f32.mrf.mxu3 }
 0x380   : > { %15858 = vst [vmem:[#allocation156_spill] sm:$0xff] %v11494_v27  ;;  %v8526_v27 = vld [vmem:[%s9816_s30 + $0x3] ss:$8 sm:$0x3] }
 0x381   : > { %15864 = vst [vmem:[#allocation162_spill] sm:$0xff] %v11514_v60  ;;  %v9112_v60 = vld [vmem:[%s9826_s5 + $0xf8] sm:$0xff]  ;;  %v11579_v54 = vperm.slane %v8526_v27, 0 }
 0x382   : > { %15865 = vst [vmem:[#allocation163_spill] sm:$0xff] %v11516_v63  ;;  %v8864_v63 = vld [vmem:[%s9831_s9 + $0x378] sm:$0xff] }
 0x383   : > { %v11501_v22 = vpop.permute.xlu2 %3371  ;;  %v11503_v32 = vpop.permute.xlu1 %3297 }
 0x384   : > { %3803 = vperm.xlu2 %9331, %v11181_v7   ;;  %1992 = vmatmul.bf16.gmra.mxu2 %v9111_v48 }
 0x385   : > { %2041 = vmatmul.bf16.gmra.mxu3 %v9111_v48  ;;  %v11507_v53 = vpop.permute.xlu0 %6303 }
 0x386   : > { %15861 = vst [vmem:[#allocation159_spill] sm:$0xff] %v11507_v53  ;;  %6444 = vperm.xlu0 %9383, %v8858_v28   ;;  %3799 = vperm.xlu1 %9330, %v11189_v0   ;;  %v11510_v30 = vpop.f32.mrf.mxu0  ;;  %v11535_v55 = vpop.f32.mrf.mxu2 }
 0x387   : > { %15862 = vst [vmem:[#allocation160_spill] sm:$0xff] %v11510_v30  ;;  %v11512_v5 = vpop.f32.mrf.mxu1  ;;  %v11537_v13 = vpop.f32.mrf.mxu3 }
 0x388   : > { %15863 = vst [vmem:[#allocation161_spill] sm:$0xff] %v11512_v5  ;;  %v15884_v5 = vld [vmem:[#allocation67_spill] sm:$0xff] }
 0x389   : > { %15869 = vst [vmem:[#allocation167_spill] sm:$0xff] %v11535_v55 }
 0x38a   : > { %15870 = vst [vmem:[#allocation168_spill] sm:$0xff] %v11537_v13 }
 0x38b   : > { %v11518_v15 = vpop.permute.xlu2 %3383 }
 0x38c   : > { %3815 = vperm.xlu2 %9331, %v11204_v34  }
 0x38d   : > { %v11522_v48 = vpop.permute.xlu1 %3347  ;;  %v11524_v53 = vpop.permute.xlu0 %7251 }
 0x38e   : > { %15866 = vst [vmem:[#allocation164_spill] sm:$0xff] %v11524_v53  ;;  %6456 = vperm.xlu0 %9383, %v8861_v3   ;;  %3811 = vperm.xlu1 %9330, %v11211_v43   ;;  %v11527_v0 = vpop.f32.mrf.mxu0 }
 0x38f   : > { %15867 = vst [vmem:[#allocation165_spill] sm:$0xff] %v11527_v0  ;;  %v11529_v28 = vpop.f32.mrf.mxu1  ;;  %v3340_v0 = vmul.f32 %v11579_v54, %v11446_v16 }
 0x390   : > { %15868 = vst [vmem:[#allocation166_spill] sm:$0xff] %v11529_v28 }
 0x393   : > { %v11532_v45 = vpop.permute.xlu2 %3395 }
 0x394   : > { %3827 = vperm.xlu2 %9331, %v11236_v29   ;;  %1997 = vmatmul.bf16.gmra.mxu2 %v9112_v60 }
 0x395   : > { %2046 = vmatmul.bf16.gmra.mxu3 %v9112_v60  ;;  %v11540_v3 = vpop.permute.xlu1 %3355  ;;  %v11542_v43 = vpop.permute.xlu0 %7219 }
 0x396   : > { %15871 = vst [vmem:[#allocation169_spill] sm:$0xff] %v11542_v43  ;;  %6468 = vperm.xlu0 %9383, %v8864_v63   ;;  %3823 = vperm.xlu1 %9330, %v11243_v49   ;;  %v8969_v43 = vld [vmem:[%s9831_s9 + $0x3b8] sm:$0xff] }
 0x397   : > { %v11545_v53 = vpop.f32.mrf.mxu0  ;;  %v11547_v50 = vpop.f32.mrf.mxu1 }
 0x398   : > { %15872 = vst [vmem:[#allocation170_spill] sm:$0xff] %v11545_v53 }
 0x399   : > { %15873 = vst [vmem:[#allocation171_spill] sm:$0xff] %v11547_v50  ;;  %v3330_v50 = vmul.f32 %v11579_v54, %v15886_v26 }
 0x39c   : > { %3839 = vperm.xlu2 %9331, %v11265_v38   ;;  %v11551_v13 = vpop.permute.xlu2 %3504 }
 0x39d   : > { %15874 = vst [vmem:[#allocation172_spill] sm:$0xff] %v11551_v13  ;;  %v11553_v55 = vpop.permute.xlu1 %3367 }
 0x39e   : > { %7416 = vperm.xlu0 %9383, %v8972_v23   ;;  %3835 = vperm.xlu1 %9330, %v11272_v36   ;;  %v11556_v60 = vpop.permute.xlu0 %4472 }
 0x39f   : > { %15875 = vst [vmem:[#allocation173_spill] sm:$0xff] %v11556_v60  ;;  %v11558_v63 = vpop.f32.mrf.mxu0  ;;  %v11560_v49 = vpop.f32.mrf.mxu1 }
 0x3a0   : > { %15876 = vst [vmem:[#allocation174_spill] sm:$0xff] %v11558_v63 }
 0x3a1   : > { %15877 = vst [vmem:[#allocation175_spill] sm:$0xff] %v11560_v49 }
 0x3a4   : > { %9333 = vset.pattern.permute.xlu2 %v15878_v19 }
 0x3a5   : > { %4029 = vperm.xlu2 %9333, %v11301_v11   ;;  %v11565_v17 = vpop.permute.xlu2 %3516  ;;  %v11567_v13 = vpop.permute.xlu1 %3379  ;;  %v11581_v11 = vperm.slane %v8526_v27, 1 }
 0x3a6   : > { %15879 = vst [vmem:[#allocation176_spill] sm:$0xff] %v11565_v17  ;;  %7404 = vperm.xlu0 %9383, %v8969_v43   ;;  %9332 = vset.pattern.permute.xlu1 %v15878_v19 }
 0x3a7   : > { %4025 = vperm.xlu1 %9332, %v11149_v57   ;;  %v11571_v23 = vpop.f32.mrf.mxu0  ;;  %v11573_v36 = vpop.f32.mrf.mxu1  ;;  %v3338_v57 = vmul.f32 %v11579_v54, %v11503_v32  ;;  %v3339_v2 = vmul.f32 %v11581_v11, %v11503_v32  ;;  %v3334_v32 = vmul.f32 %v11579_v54, %v11433_v51  ;;  %v3333_v49 = vmul.f32 %v11581_v11, %v11485_v33 }
 0x3a8   : > { %15880 = vst [vmem:[#allocation177_spill] sm:$0xff] %v11573_v36  ;;  %v11575_v60 = vpop.permute.xlu0 %4492 }
 0x3a9   : > { %15881 = vst [vmem:[#allocation178_spill] sm:$0xff] %v11575_v60 }
 0x3ad   : > { %4037 = vperm.xlu2 %9333, %v11162_v58   ;;  %v11584_v17 = vpop.permute.xlu2 %3524  ;;  %v3392_v43 = vpop.permute.xlu1 %3391  ;;  %v3336_v58 = vmul.f32 %v11579_v54, %v15884_v5 }
 0x3ae   : > { %15882 = vst [vmem:[#allocation179_spill] sm:$0xff] %v11584_v17  ;;  %7384 = vperm.xlu0 %9383, %v8964_v9   ;;  %v3337_v9 = vmul.f32 %v11581_v11, %v15884_v5  ;;  %v15885_v17 = vld [vmem:[#allocation98_spill] sm:$0xff]  ;;  %v3331_v5 = vmul.f32 %v11581_v11, %v15886_v26 }
 0x3af   : > { %4033 = vperm.xlu1 %9332, %v11165_v25   ;;  %v11591_v60 = vpop.f32.mrf.mxu0  ;;  %v11593_v40 = vpop.f32.mrf.mxu1  ;;  %v3434_v30 = vadd.f32 %v15885_v17, %v3338_v57  ;;  %v3435_v28 = vadd.f32 %v15885_v17, %v3339_v2  ;;  %v3335_v25 = vmul.f32 %v11581_v11, %v11433_v51  ;;  %v3430_v57 = vadd.f32 %v3392_v43, %v3334_v32 }
 0x3b0   : > { %v11595_v27 = vpop.permute.xlu0 %4504  ;;  %v3432_v26 = vadd.f32 %v11532_v45, %v3336_v58  ;;  %v3328_v58 = vmul.f32 %v11579_v54, %v11419_v56 }
 0x3b1   : > { %15883 = vst [vmem:[#allocation180_spill] sm:$0xff] %v11595_v27  ;;  %v3341_v27 = vmul.f32 %v11581_v11, %v11446_v16  ;;  %v3431_v53 = vadd.f32 %v3392_v43, %v3335_v25  ;;  %v3332_v16 = vmul.f32 %v11579_v54, %v11485_v33  ;;  %v3466_v63 = vmax.f32 %v3434_v30, 0.0 }
 0x3b2   : > { %v3467_v36 = vmax.f32 %v3435_v28, 0.0  ;;  %v3462_v33 = vmax.f32 %v3430_v57, 0.0 }
 0x3b3   : > { %v3463_v30 = vmax.f32 %v3431_v53, 0.0 }
 0x3b5   : > { %4049 = vperm.xlu2 %9333, %v11325_v41   ;;  %v11616_v2 = vpop.permute.xlu2 %3536  ;;  %v3404_v17 = vpop.permute.xlu1 %3403  ;;  %v3433_v41 = vadd.f32 %v11532_v45, %v3337_v9  ;;  %v3329_v45 = vmul.f32 %v11581_v11, %v11419_v56 }
 0x3b6   : > { %7380 = vperm.xlu0 %9383, %v11313_v31   ;;  %v3436_v51 = vadd.f32 %v3404_v17, %v3340_v0  ;;  %v3437_v59 = vadd.f32 %v3404_v17, %v3341_v27  ;;  %v3426_v0 = vadd.f32 %v11518_v15, %v3330_v50  ;;  %v3427_v27 = vadd.f32 %v11518_v15, %v3331_v5 }
 0x3b7   : > { %4045 = vperm.xlu1 %9332, %v11181_v7   ;;  %v11626_v25 = vpop.f32.mrf.mxu0  ;;  %v11628_v31 = vpop.f32.mrf.mxu1  ;;  %v3326_v50 = vmul.f32 %v11579_v54, %v11467_v46  ;;  %v3327_v15 = vmul.f32 %v11581_v11, %v11467_v46  ;;  %v3464_v5 = vmax.f32 %v3432_v26, 0.0  ;;  %v3465_v53 = vmax.f32 %v3433_v41, 0.0 }
 0x3b8   : > { %v3468_v32 = vmax.f32 %v3436_v51, 0.0  ;;  %v3469_v43 = vmax.f32 %v3437_v59, 0.0  ;;  %v11632_v17 = vpop.permute.xlu0 %4516  ;;  %v15888_v59 = vld [vmem:[#allocation96_spill] sm:$0xff]  ;;  %v3458_v57 = vmax.f32 %v3426_v0, 0.0  ;;  %v3459_v56 = vmax.f32 %v3427_v27, 0.0 }
 0x3b9   : > { %15887 = vst [vmem:[#allocation67_spill] sm:$0xff] %v11632_v17  ;;  %v3428_v9 = vadd.f32 %v15888_v59, %v3332_v16  ;;  %v3429_v51 = vadd.f32 %v15888_v59, %v3333_v49  ;;  %v3424_v49 = vadd.f32 %v11567_v13, %v3328_v58  ;;  %v3499_v26 = vpack.c.bf16 %v3464_v5, %v3462_v33  ;;  %v9460_v27 = vld [vmem:[%s9831_s9 + $0x10] sm:$0xff] }
 0x3ba   : > { %v3501_v28 = vpack.c.bf16 %v3468_v32, %v3466_v63  ;;  %v3502_v7 = vpack.c.bf16 %v3469_v43, %v3467_v36  ;;  %v15889_v63 = vld [vmem:[#allocation61_spill] sm:$0xff]  ;;  %v3425_v32 = vadd.f32 %v11567_v13, %v3329_v45  ;;  %v3500_v41 = vpack.c.bf16 %v3465_v53, %v3463_v30 }
 0x3bb   : > { %v3324_v36 = vmul.f32 %v11579_v54, %v15889_v63  ;;  %v3325_v43 = vmul.f32 %v11581_v11, %v15889_v63  ;;  %v3322_v0 = vmul.f32 %v11579_v54, %v11405_v62  ;;  %v3323_v13 = vmul.f32 %v11581_v11, %v11405_v62 }
 0x3bc   : > { %3615 = vmatpush.bf16.msrb.mxu0 %v3501_v28  ;;  %3664 = vmatpush.bf16.msrb.mxu1 %v3502_v7  ;;  %v3461_v28 = vmax.f32 %v3429_v51, 0.0  ;;  %v15891_v7 = vld [vmem:[#allocation94_spill] sm:$0xff]  ;;  %v3456_v51 = vmax.f32 %v3424_v49, 0.0  ;;  %v3457_v62 = vmax.f32 %v3425_v32, 0.0  ;;  %v3320_v63 = vmul.f32 %v11579_v54, %v11452_v4 }
 0x3bd   : > { %4061 = vperm.xlu2 %9333, %v11342_v61   ;;  %v11647_v16 = vpop.permute.xlu2 %3548  ;;  %v3460_v61 = vmax.f32 %v3428_v9, 0.0  ;;  %v3422_v58 = vadd.f32 %v15891_v7, %v3326_v50  ;;  %v3423_v33 = vadd.f32 %v15891_v7, %v3327_v15  ;;  %v3419_v9 = vadd.f32 %v11553_v55, %v3323_v13  ;;  %v15893_v32 = vld [vmem:[#allocation58_spill] sm:$0xff]  ;;  %v15894_v13 = vld [vmem:[#allocation92_spill] sm:$0xff] }
 0x3be   : > { %9390 = vset.pattern.permute.xlu0 %v15878_v19  ;;  %v11652_v46 = vpop.permute.xlu1 %3512  ;;  %v3498_v53 = vpack.c.bf16 %v3461_v28, %v3459_v56  ;;  %v3318_v50 = vmul.f32 %v11579_v54, %v11387_v44  ;;  %v3319_v15 = vmul.f32 %v11581_v11, %v11387_v44  ;;  %v3421_v56 = vadd.f32 %v11501_v22, %v3325_v43 }
 0x3bf   : > { %15890 = vst [vmem:[#allocation98_spill] sm:$0xff] %v11652_v46  ;;  %1122 = vperm.xlu0 %9390, %v9460_v27   ;;  %4057 = vperm.xlu1 %9332, %v11204_v34   ;;  %v11664_v30 = vpop.f32.mrf.mxu0  ;;  %v11666_v45 = vpop.f32.mrf.mxu1  ;;  %v3497_v5 = vpack.c.bf16 %v3460_v61, %v3458_v57  ;;  %v3418_v34 = vadd.f32 %v11553_v55, %v3322_v0  ;;  %v3454_v55 = vmax.f32 %v3422_v58, 0.0  ;;  %v3455_v49 = vmax.f32 %v3423_v33, 0.0  ;;  %v9461_v58 = vld [vmem:[%s9831_s9 + $0x38] sm:$0xff] }
 0x3c0   : > { %3616 = vmatpush.bf16.msrb.mxu0 %v3499_v26  ;;  %3665 = vmatpush.bf16.msrb.mxu1 %v3500_v41  ;;  %v11668_v59 = vpop.permute.xlu0 %4528  ;;  %v3321_v26 = vmul.f32 %v11581_v11, %v11452_v4  ;;  %v3420_v57 = vadd.f32 %v11501_v22, %v3324_v36  ;;  %v3314_v41 = vmul.f32 %v11579_v54, %v15893_v32  ;;  %v3451_v36 = vmax.f32 %v3419_v9, 0.0 }
 0x3c1   : > { %15892 = vst [vmem:[#allocation64_spill] sm:$0xff] %v11668_v59  ;;  %v3414_v44 = vadd.f32 %v11483_v39, %v3318_v50  ;;  %v3415_v0 = vadd.f32 %v11483_v39, %v3319_v15  ;;  %v3450_v4 = vmax.f32 %v3418_v34, 0.0  ;;  %v3495_v61 = vpack.c.bf16 %v3456_v51, %v3454_v55  ;;  %v9135_v59 = vld [vmem:[%s9826_s5 + $0x1b0] sm:$0xff] }
 0x3c2   : > { %v3496_v22 = vpack.c.bf16 %v3457_v62, %v3455_v49  ;;  %v3315_v43 = vmul.f32 %v11581_v11, %v15893_v32  ;;  %v3316_v28 = vmul.f32 %v11579_v54, %v11437_v20  ;;  %v3416_v7 = vadd.f32 %v15894_v13, %v3320_v63 }
 0x3c3   : > { %v3417_v33 = vadd.f32 %v15894_v13, %v3321_v26  ;;  %v3446_v9 = vmax.f32 %v3414_v44, 0.0  ;;  %v3447_v51 = vmax.f32 %v3415_v0, 0.0  ;;  %v3312_v26 = vmul.f32 %v11579_v54, %v11375_v6 }
 0x3c4   : > { %3617 = vmatpush.bf16.msrb.mxu0 %v3497_v5  ;;  %3666 = vmatpush.bf16.msrb.mxu1 %v3498_v53  ;;  %v3452_v5 = vmax.f32 %v3420_v57, 0.0  ;;  %v3453_v53 = vmax.f32 %v3421_v56, 0.0  ;;  %v3448_v57 = vmax.f32 %v3416_v7, 0.0  ;;  %v3310_v56 = vmul.f32 %v11579_v54, %v11423_v18 }
 0x3c5   : > { %4073 = vperm.xlu2 %9333, %v11358_v37   ;;  %v11687_v27 = vpop.permute.xlu2 %3560  ;;  %v3317_v37 = vmul.f32 %v11581_v11, %v11437_v20  ;;  %v3410_v55 = vadd.f32 %v11465_v35, %v3314_v41  ;;  %v3411_v49 = vadd.f32 %v11465_v35, %v3315_v43  ;;  %v3449_v32 = vmax.f32 %v3417_v33, 0.0 }
 0x3c6   : > { %v3493_v63 = vpack.c.bf16 %v3452_v5, %v3450_v4  ;;  %v3494_v20 = vpack.c.bf16 %v3453_v53, %v3451_v36  ;;  %v3311_v44 = vmul.f32 %v11581_v11, %v11423_v18  ;;  %v3491_v0 = vpack.c.bf16 %v3448_v57, %v3446_v9  ;;  %v11736_v53 = vld [vmem:[%s9831_s9 + $0x218] sm:$0xff]  ;;  %v11738_v9 = vpop.f32.mrf.mxu3 }
 0x3c7   : > { %1142 = vperm.xlu0 %9390, %v9461_v58   ;;  %4069 = vperm.xlu1 %9332, %v11236_v29   ;;  %v11696_v39 = vpop.permute.xlu1 %3520  ;;  %v11701_v34 = vpop.f32.mrf.mxu0  ;;  %v3412_v29 = vadd.f32 %v11540_v3, %v3316_v28  ;;  %v3413_v15 = vadd.f32 %v11540_v3, %v3317_v37  ;;  %v3313_v3 = vmul.f32 %v11581_v11, %v11375_v6  ;;  %v15899_v6 = vld [vmem:[#allocation90_spill] sm:$0xff]  ;;  %v3442_v43 = vmax.f32 %v3410_v55, 0.0  ;;  %v11749_v55 = vld [vmem:[%s9831_s9 + $0x210] sm:$0xff] }
 0x3c8   : > { %15895 = vst [vmem:[#allocation96_spill] sm:$0xff] %v11696_v39  ;;  %3618 = vmatpush.bf16.msrb.mxu0 %v3495_v61  ;;  %3667 = vmatpush.bf16.msrb.mxu1 %v3496_v22  ;;  %v11703_v62 = vpop.f32.mrf.mxu1  ;;  %v11705_v50 = vpop.permute.xlu0 %5448  ;;  %v3408_v4 = vadd.f32 %v11522_v48, %v3312_v26  ;;  %v3492_v35 = vpack.c.bf16 %v3449_v32, %v3447_v51  ;;  %v9462_v22 = vld [vmem:[%s9831_s9 + $0x50] sm:$0xff]  ;;  %v3443_v28 = vmax.f32 %v3411_v49, 0.0 }
 0x3c9   : > { %15896 = vst [vmem:[#allocation61_spill] sm:$0xff] %v11705_v50  ;;  %v3444_v54 = vmax.f32 %v3412_v29, 0.0  ;;  %v3445_v36 = vmax.f32 %v3413_v15, 0.0  ;;  %v3409_v61 = vadd.f32 %v11522_v48, %v3313_v3  ;;  %v3406_v11 = vadd.f32 %v15899_v6, %v3310_v56  ;;  %v11733_v48 = vpop.f32.mrf.mxu2  ;;  %v9129_v56 = vld [vmem:[%s9826_s5 + $0x180] sm:$0xff] }
 0x3ca   : > { %15901 = vst [vmem:[#allocation90_spill] sm:$0xff] %v11733_v48  ;;  %v3440_v37 = vmax.f32 %v3408_v4, 0.0 }
 0x3cb   : > { %v3490_v33 = vpack.c.bf16 %v3445_v36, %v3443_v28  ;;  %v3441_v5 = vmax.f32 %v3409_v61, 0.0  ;;  %15902 = vst [vmem:[#allocation181_spill] sm:$0xff] %v11738_v9  ;;  %v3438_v51 = vmax.f32 %v3406_v11, 0.0  ;;  %v15908_v11 = vld [vmem:[#allocation21_spill] sm:$0xff] }
 0x3cc   : > { %3619 = vmatpush.bf16.msrb.mxu0 %v3493_v63  ;;  %3668 = vmatpush.bf16.msrb.mxu1 %v3494_v20  ;;  %v9463_v20 = vld [vmem:[%s9831_s9 + $0x68] sm:$0xff] }
 0x3cd   : > { %9334 = vset.pattern.permute.xlu2 %v15579_v47  ;;  %v3487_v63 = vpack.c.bf16 %v3440_v37, %v3438_v51 }
 0x3ce   : > { %4195 = vperm.xlu2 %9334, %v11333_v14   ;;  %v11722_v41 = vpop.permute.xlu2 %3783  ;;  %v3407_v14 = vadd.f32 %v15899_v6, %v3311_v44  ;;  %v11759_v4 = vpop.f32.mrf.mxu3 }
 0x3cf   : > { %15897 = vst [vmem:[#allocation94_spill] sm:$0xff] %v11722_v41  ;;  %1154 = vperm.xlu0 %9390, %v9462_v22   ;;  %4081 = vperm.xlu1 %9332, %v11265_v38   ;;  %v11727_v18 = vpop.permute.xlu1 %3532  ;;  %v2688_v13 = vpop.f32.mrf.mxu0  ;;  %v3489_v38 = vpack.c.bf16 %v3444_v54, %v3442_v43 }
 0x3d0   : > { %15898 = vst [vmem:[#allocation58_spill] sm:$0xff] %v11727_v18  ;;  %3620 = vmatpush.bf16.msrb.mxu0 %v3491_v0  ;;  %3669 = vmatpush.bf16.msrb.mxu1 %v3492_v35  ;;  %v2737_v7 = vpop.f32.mrf.mxu1  ;;  %v11731_v58 = vpop.permute.xlu0 %5468  ;;  %v3439_v29 = vmax.f32 %v3407_v14, 0.0  ;;  %v11757_v0 = vld [vmem:[%s9831_s9 + $0x220] sm:$0xff]  ;;  %v9465_v35 = vld [vmem:[%s9831_s9 + $0x90] sm:$0xff]  ;;  %v2689_v43 = vadd.f32 %v2688_v13, %v15908_v11 }
 0x3d1   : > { %15900 = vst [vmem:[#allocation92_spill] sm:$0xff] %v11731_v58  ;;  %v11754_v44 = vpop.f32.mrf.mxu2 }
 0x3d2   : > { %v3488_v57 = vpack.c.bf16 %v3441_v5, %v3439_v29  ;;  %15905 = vst [vmem:[#allocation184_spill] sm:$0xff] %v11754_v44  ;;  %v15999_v44 = vmov 4  }
 0x3d3   : > { %15906 = vst [vmem:[#allocation185_spill] sm:$0xff] %v11759_v4 }
 0x3d4   : > { %3621 = vmatpush.bf16.msrb.mxu0 %v3489_v38  ;;  %3670 = vmatpush.bf16.msrb.mxu1 %v3490_v33  ;;  %v2687_v33 = vadd.f32 %v11701_v34, %v11105_v52 }
 0x3d6   : > { %4210 = vperm.xlu2 %9334, %v11736_v53   ;;  %v11741_v15 = vpop.permute.xlu2 %3795 }
 0x3d7   : > { %15903 = vst [vmem:[#allocation182_spill] sm:$0xff] %v11741_v15  ;;  %1166 = vperm.xlu0 %9390, %v9463_v20   ;;  %9336 = vset.pattern.permute.xlu1 %v15579_v47  ;;  %v11745_v26 = vpop.permute.xlu1 %3544  ;;  %v2691_v49 = vpop.f32.mrf.mxu0 }
 0x3d8   : > { %4205 = vperm.xlu1 %9336, %v11749_v55   ;;  %3622 = vmatpush.bf16.msrb.mxu0 %v3487_v63  ;;  %v2740_v32 = vpop.f32.mrf.mxu1  ;;  %v11752_v3 = vpop.permute.xlu0 %5480  ;;  %v2692_v36 = vadd.f32 %v2691_v49, %v11184_v10  ;;  %v15910_v63 = vld [vmem:[#allocation78_spill] sm:$0xff] }
 0x3d9   : > { %15904 = vst [vmem:[#allocation183_spill] sm:$0xff] %v11752_v3  ;;  %3671 = vmatpush.bf16.msrb.mxu1 %v3488_v57  ;;  %v2741_v22 = vadd.f32 %v2740_v32, %v11184_v10  ;;  %v2736_v10 = vadd.f32 %v11703_v62, %v11105_v52  ;;  %v2682_v20 = vadd.f32 %v11626_v25, %v15910_v63  ;;  %v2771_v57 = vmax.f32 %v2689_v43, 0.0  ;;  %v11947_v3 = vld [vmem:[%s9831_s9 + $0x240] sm:$0xff] }
 0x3da   : > { %v2773_v5 = vmax.f32 %v2692_v36, 0.0  ;;  %v2731_v34 = vadd.f32 %v11628_v31, %v15910_v63  ;;  %v2733_v52 = vadd.f32 %v11666_v45, %v11170_v24  ;;  %v2769_v25 = vmax.f32 %v2687_v33, 0.0  ;;  %v9466_v36 = vld [vmem:[%s9831_s9 + $0xb8] sm:$0xff] }
 0x3db   : > { %3623 = vmatmul.bf16.vlgmr.msrb.gmra.mxu0 %v9129_v56  ;;  %v2774_v29 = vmax.f32 %v2741_v22, 0.0  ;;  %v2770_v22 = vmax.f32 %v2736_v10, 0.0  ;;  %v2765_v31 = vmax.f32 %v2682_v20, 0.0  ;;  %v2677_v33 = vadd.f32 %v11571_v23, %v11153_v12  ;;  %v15918_v10 = vld [vmem:[#allocation174_spill] sm:$0xff] }
 0x3dc   : > { %3672 = vmatmul.bf16.vlgmr.msrb.gmra.mxu1 %v9129_v56  ;;  %v11784_v56 = vpop.f32.mrf.mxu2  ;;  %v2806_v43 = vpack.c.bf16 %v2771_v57, %v2769_v25  ;;  %v15925_v25 = vld [vmem:[#allocation171_spill] sm:$0xff] }
 0x3dd   : > { %15911 = vst [vmem:[#allocation78_spill] sm:$0xff] %v11784_v56 }
 0x3de   : > { %4220 = vperm.xlu2 %9334, %v11350_v1   ;;  %v11762_v54 = vpop.permute.xlu2 %3803  ;;  %v2738_v1 = vadd.f32 %v2737_v7, %v15908_v11  ;;  %v2684_v7 = vadd.f32 %v11664_v30, %v11170_v24  ;;  %v9130_v30 = vld [vmem:[%s9826_s5 + $0x188] sm:$0xff] }
 0x3df   : > { %15907 = vst [vmem:[#allocation186_spill] sm:$0xff] %v11762_v54  ;;  %2093 = vperm.xlu0 %9390, %v9465_v35   ;;  %v11766_v61 = vpop.permute.xlu1 %3556  ;;  %v2693_v6 = vpop.f32.mrf.mxu0 }
 0x3e0   : > { %4215 = vperm.xlu1 %9336, %v11757_v0   ;;  %v2694_v28 = vadd.f32 %v2693_v6, %v11134_v42  ;;  %v2742_v14 = vpop.f32.mrf.mxu1  ;;  %v11772_v37 = vpop.permute.xlu0 %5492  ;;  %v2772_v62 = vmax.f32 %v2738_v1, 0.0  ;;  %v11798_v6 = vld [vmem:[%s9831_s9 + $0x238] sm:$0xff]  ;;  %v2767_v45 = vmax.f32 %v2684_v7, 0.0  ;;  %v2768_v1 = vmax.f32 %v2733_v52, 0.0  ;;  %v15920_v7 = vld [vmem:[#allocation127_spill] sm:$0xff] }
 0x3e1   : > { %15909 = vst [vmem:[#allocation21_spill] sm:$0xff] %v11772_v37  ;;  %v2743_v38 = vadd.f32 %v2742_v14, %v11134_v42  ;;  %v11795_v35 = vpop.f32.mrf.mxu3  ;;  %v2766_v14 = vmax.f32 %v2731_v34, 0.0  ;;  %v15923_v34 = vld [vmem:[#allocation170_spill] sm:$0xff]  ;;  %v2761_v52 = vmax.f32 %v2677_v33, 0.0 }
 0x3e2   : > { %v2775_v51 = vmax.f32 %v2694_v28, 0.0  ;;  %15913 = vst [vmem:[#allocation188_spill] sm:$0xff] %v11795_v35  ;;  %v2728_v28 = vadd.f32 %v11593_v40, %v11068_v8  ;;  %v15919_v40 = vld [vmem:[#allocation175_spill] sm:$0xff]  ;;  %v15931_v33 = vld [vmem:[#allocation166_spill] sm:$0xff] }
 0x3e3   : > { %v2776_v13 = vmax.f32 %v2743_v38, 0.0  ;;  %v2807_v38 = vpack.c.bf16 %v2772_v62, %v2770_v22  ;;  %v2805_v57 = vpack.c.bf16 %v2768_v1, %v2766_v14  ;;  %v9468_v62 = vld [vmem:[%s9831_s9 + $0xd0] sm:$0xff]  ;;  %v11956_v37 = vld [vmem:[%s9831_s9 + $0x260] sm:$0xff] }
 0x3e4   : > { %v2808_v42 = vpack.c.bf16 %v2775_v51, %v2773_v5  ;;  %v15916_v5 = vld [vmem:[#allocation177_spill] sm:$0xff]  ;;  %v2764_v20 = vmax.f32 %v2728_v28, 0.0  ;;  %v11828_v22 = vld [vmem:[%s9831_s9 + $0x250] sm:$0xff] }
 0x3e5   : > { %v2809_v49 = vpack.c.bf16 %v2776_v13, %v2774_v29  ;;  %v15917_v51 = vld [vmem:[#allocation89_spill] sm:$0xff] }
 0x3e6   : > { %4235 = vperm.xlu2 %9334, %v11366_v21   ;;  %v11791_v32 = vpop.permute.xlu2 %3815  ;;  %2922 = vmatpush.bf16.msra.mxu2 %v2808_v42  ;;  %v2679_v21 = vadd.f32 %v11591_v60, %v11068_v8  ;;  %v2726_v60 = vadd.f32 %v15916_v5, %v11153_v12  ;;  %v2674_v29 = vadd.f32 %v15918_v10, %v15917_v51  ;;  %v15922_v42 = vld [vmem:[#allocation53_spill] sm:$0xff]  ;;  %v15932_v10 = vld [vmem:[#allocation111_spill] sm:$0xff] }
 0x3e7   : > { %15912 = vst [vmem:[#allocation187_spill] sm:$0xff] %v11791_v32  ;;  %2113 = vperm.xlu0 %9390, %v9466_v36   ;;  %2971 = vmatpush.bf16.msra.mxu3 %v2809_v49  ;;  %v2804_v8 = vpack.c.bf16 %v2767_v45, %v2765_v31  ;;  %v2723_v63 = vadd.f32 %v15919_v40, %v15917_v51  ;;  %v11823_v49 = vpop.f32.mrf.mxu2  ;;  %v15927_v31 = vld [vmem:[#allocation48_spill] sm:$0xff]  ;;  %v15928_v45 = vld [vmem:[#allocation165_spill] sm:$0xff] }
 0x3e8   : > { %4230 = vperm.xlu1 %9336, %v11798_v6   ;;  %v11801_v24 = vpop.permute.xlu1 %3779  ;;  %v11805_v11 = vpop.permute.xlu0 %6412  ;;  %v2763_v13 = vmax.f32 %v2679_v21, 0.0  ;;  %v2672_v12 = vadd.f32 %v15923_v34, %v15922_v42  ;;  %15924 = vst [vmem:[#allocation89_spill] sm:$0xff] %v11823_v49  ;;  %v2721_v36 = vadd.f32 %v15925_v25, %v15922_v42  ;;  %v2759_v28 = vmax.f32 %v2674_v29, 0.0  ;;  %v15936_v34 = vld [vmem:[#allocation152_spill] sm:$0xff]  ;;  %v15938_v25 = vld [vmem:[#allocation155_spill] sm:$0xff] }
 0x3e9   : > { %15914 = vst [vmem:[#allocation189_spill] sm:$0xff] %v11801_v24  ;;  %v2718_v5 = vadd.f32 %v15931_v33, %v15927_v31  ;;  %v11983_v32 = vld [vmem:[%s9831_s9 + $0x270] sm:$0xff]  ;;  %v9136_v24 = vld [vmem:[%s9826_s5 + $0x1b8] sm:$0xff] }
 0x3ea   : > { %15915 = vst [vmem:[#allocation190_spill] sm:$0xff] %v11805_v11  ;;  %2923 = vmatpush.bf16.msra.mxu2 %v2806_v43  ;;  %v2669_v43 = vadd.f32 %v15928_v45, %v15927_v31  ;;  %v2802_v1 = vpack.c.bf16 %v2763_v13, %v2761_v52  ;;  %v2758_v29 = vmax.f32 %v2721_v36, 0.0  ;;  %v15935_v13 = vld [vmem:[#allocation24_spill] sm:$0xff] }
 0x3eb   : > { %3628 = vmatmul.bf16.gmra.mxu0 %v9130_v30  ;;  %2972 = vmatpush.bf16.msra.mxu3 %v2807_v38  ;;  %v11837_v38 = vpop.f32.mrf.mxu3  ;;  %v2662_v52 = vadd.f32 %v15936_v34, %v15935_v13  ;;  %v15940_v45 = vld [vmem:[#allocation156_spill] sm:$0xff]  ;;  %v2756_v33 = vmax.f32 %v2718_v5, 0.0  ;;  %v15945_v5 = vld [vmem:[#allocation147_spill] sm:$0xff] }
 0x3ec   : > { %3677 = vmatmul.bf16.gmra.mxu1 %v9130_v30  ;;  %v2762_v30 = vmax.f32 %v2726_v60, 0.0  ;;  %15930 = vst [vmem:[#allocation127_spill] sm:$0xff] %v11837_v38  ;;  %v2760_v60 = vmax.f32 %v2723_v63, 0.0  ;;  %v2755_v63 = vmax.f32 %v2669_v43, 0.0  ;;  %v9131_v34 = vld [vmem:[%s9826_s5 + $0x190] sm:$0xff]  ;;  %v11859_v43 = vld [vmem:[%s9831_s9 + $0x268] sm:$0xff] }
 0x3ed   : > { %v12148_v38 = vld [vmem:[%s9831_s9 + $0x2c8] sm:$0xff] }
 0x3ee   : > { %4250 = vperm.xlu2 %9334, %v15920_v7   ;;  %v11818_v23 = vpop.permute.xlu2 %3827  ;;  %2924 = vmatpush.bf16.msra.mxu2 %v2804_v8  ;;  %v2803_v51 = vpack.c.bf16 %v2764_v20, %v2762_v30  ;;  %v15933_v8 = vld [vmem:[#allocation160_spill] sm:$0xff]  ;;  %v2757_v7 = vmax.f32 %v2672_v12, 0.0  ;;  %v15939_v30 = vld [vmem:[#allocation153_spill] sm:$0xff] }
 0x3ef   : > { %15921 = vst [vmem:[#allocation177_spill] sm:$0xff] %v11818_v23  ;;  %2125 = vperm.xlu0 %9390, %v9468_v62   ;;  %2973 = vmatpush.bf16.msra.mxu3 %v2805_v57  ;;  %v2667_v40 = vadd.f32 %v15933_v8, %v15932_v10  ;;  %v15934_v57 = vld [vmem:[#allocation161_spill] sm:$0xff]  ;;  %v15937_v62 = vld [vmem:[#allocation50_spill] sm:$0xff]  ;;  %v2711_v12 = vadd.f32 %v15939_v30, %v15935_v13 }
 0x3f0   : > { %4245 = vperm.xlu1 %9336, %v11828_v22   ;;  %v11831_v21 = vpop.permute.xlu1 %3791  ;;  %v11835_v14 = vpop.permute.xlu0 %6432  ;;  %v2716_v42 = vadd.f32 %v15934_v57, %v15932_v10  ;;  %v2664_v31 = vadd.f32 %v15938_v25, %v15937_v62  ;;  %v2800_v20 = vpack.c.bf16 %v2759_v28, %v2757_v7  ;;  %v15941_v10 = vld [vmem:[#allocation130_spill] sm:$0xff]  ;;  %v15944_v7 = vld [vmem:[#allocation109_spill] sm:$0xff] }
 0x3f1   : > { %15926 = vst [vmem:[#allocation174_spill] sm:$0xff] %v11831_v21  ;;  %v2753_v8 = vmax.f32 %v2667_v40, 0.0  ;;  %v9470_v57 = vld [vmem:[%s9831_s9 + $0xe8] sm:$0xff]  ;;  %v2659_v13 = vadd.f32 %v15945_v5, %v15944_v7  ;;  %v11868_v40 = vpop.f32.mrf.mxu2 }
 0x3f2   : > { %15929 = vst [vmem:[#allocation175_spill] sm:$0xff] %v11835_v14  ;;  %2925 = vmatpush.bf16.msra.mxu2 %v2802_v1  ;;  %v2713_v1 = vadd.f32 %v15940_v45, %v15937_v62  ;;  %v2754_v25 = vmax.f32 %v2716_v42, 0.0  ;;  %v2749_v62 = vmax.f32 %v2662_v52, 0.0  ;;  %v2751_v30 = vmax.f32 %v2664_v31, 0.0  ;;  %v15950_v14 = vld [vmem:[#allocation142_spill] sm:$0xff]  ;;  %v15952_v52 = vld [vmem:[#allocation143_spill] sm:$0xff] }
 0x3f3   : > { %2974 = vmatpush.bf16.msra.mxu3 %v2803_v51  ;;  %v2801_v51 = vpack.c.bf16 %v2760_v60, %v2758_v29  ;;  %v2798_v60 = vpack.c.bf16 %v2755_v63, %v2753_v8  ;;  %15947 = vst [vmem:[#allocation48_spill] sm:$0xff] %v11868_v40  ;;  %v15948_v29 = vld [vmem:[#allocation148_spill] sm:$0xff]  ;;  %v11874_v5 = vpop.f32.mrf.mxu3  ;;  %v2747_v63 = vmax.f32 %v2659_v13, 0.0  ;;  %v9134_v23 = vld [vmem:[%s9826_s5 + $0x1a8] sm:$0xff] }
 0x3f4   : > { %v2708_v42 = vadd.f32 %v15948_v29, %v15944_v7  ;;  %15951 = vst [vmem:[#allocation165_spill] sm:$0xff] %v11874_v5  ;;  %v2796_v8 = vpack.c.bf16 %v2751_v30, %v2749_v62  ;;  %v11883_v29 = vld [vmem:[%s9831_s9 + $0x208] sm:$0xff]  ;;  %v11892_v62 = vld [vmem:[%s9831_s9 + $0x200] sm:$0xff] }
 0x3f5   : > { %v9126_v5 = vld [vmem:[%s9826_s5 + $0x168] sm:$0xff] }
 0x3f6   : > { %4265 = vperm.xlu2 %9334, %v15941_v10   ;;  %v11854_v36 = vpop.permute.xlu2 %3839  ;;  %2926 = vmatpush.bf16.msra.mxu2 %v2800_v20  ;;  %v2750_v20 = vmax.f32 %v2711_v12, 0.0  ;;  %v2752_v10 = vmax.f32 %v2713_v1, 0.0  ;;  %v2748_v7 = vmax.f32 %v2708_v42, 0.0  ;;  %v15953_v12 = vmov 1   ;;  %v9121_v42 = vld [vmem:[%s9826_s5 + $0x140] sm:$0xff] }
 0x3f7   : > { %15942 = vst [vmem:[#allocation53_spill] sm:$0xff] %v11854_v36  ;;  %2137 = vperm.xlu0 %9390, %v9470_v57   ;;  %2975 = vmatpush.bf16.msra.mxu3 %v2801_v51  ;;  %v2799_v51 = vpack.c.bf16 %v2756_v33, %v2754_v25  ;;  %v15949_v57 = vld [vmem:[#allocation52_spill] sm:$0xff] }
 0x3f8   : > { %4260 = vperm.xlu1 %9336, %v11859_v43   ;;  %v11862_v28 = vpop.permute.xlu1 %3799  ;;  %v11866_v45 = vpop.permute.xlu0 %6444  ;;  %v2657_v11 = vadd.f32 %v15950_v14, %v15949_v57  ;;  %v2706_v31 = vadd.f32 %v15952_v52, %v15949_v57  ;;  %v2797_v1 = vpack.c.bf16 %v2752_v10, %v2750_v20  ;;  %v9472_v14 = vld [vmem:[%s9831_s9 + $0x108] sm:$0xff]  ;;  %v9132_v52 = vld [vmem:[%s9826_s5 + $0x198] sm:$0xff] }
 0x3f9   : > { %15943 = vst [vmem:[#allocation170_spill] sm:$0xff] %v11862_v28  ;;  %v11896_v20 = vpop.f32.mrf.mxu2 }
 0x3fa   : > { %15946 = vst [vmem:[#allocation171_spill] sm:$0xff] %v11866_v45  ;;  %2927 = vmatpush.bf16.msra.mxu2 %v2798_v60  ;;  %v2745_v33 = vmax.f32 %v2657_v11, 0.0  ;;  %v2746_v60 = vmax.f32 %v2706_v31, 0.0  ;;  %v9133_v45 = vld [vmem:[%s9826_s5 + $0x1a0] sm:$0xff] }
 0x3fb   : > { %3633 = vmatmul.bf16.gmra.mxu0 %v9131_v34  ;;  %2976 = vmatpush.bf16.msra.mxu3 %v2799_v51  ;;  %15957 = vst [vmem:[#allocation161_spill] sm:$0xff] %v11896_v20  ;;  %v11898_v10 = vpop.f32.mrf.mxu3  ;;  %v9475_v51 = vld [vmem:[%s9831_s9 + $0x130] sm:$0xff] }
 0x3fc   : > { %3682 = vmatmul.bf16.gmra.mxu1 %v9131_v34  ;;  %v2794_v11 = vpack.c.bf16 %v2747_v63, %v2745_v33  ;;  %v2795_v30 = vpack.c.bf16 %v2748_v7, %v2746_v60  ;;  %15958 = vst [vmem:[#allocation24_spill] sm:$0xff] %v11898_v10  ;;  %v9476_v7 = vld [vmem:[%s9831_s9 + $0x148] sm:$0xff] }
 0x3fe   : > { %9338 = vset.pattern.permute.xlu2 %v15953_v12  ;;  %2928 = vmatpush.bf16.msra.mxu2 %v2796_v8 }
 0x3ff   : > { %3057 = vperm.xlu0 %9390, %v9472_v14   ;;  %v11880_v25 = vpop.permute.xlu2 %4029  ;;  %2977 = vmatpush.bf16.msra.mxu3 %v2797_v1  ;;  %v11918_v14 = vld [vmem:[%s9831_s9 + $0x230] sm:$0xff] }
 0x400   : > { %15954 = vst [vmem:[#allocation166_spill] sm:$0xff] %v11880_v25  ;;  %4315 = vperm.xlu2 %9338, %v11883_v29   ;;  %v11886_v34 = vpop.permute.xlu1 %3811  ;;  %9337 = vset.pattern.permute.xlu1 %v15953_v12  ;;  %v11889_v13 = vpop.permute.xlu0 %6456  ;;  %v15981_v25 = vmov 3  }
 0x401   : > { %15955 = vst [vmem:[#allocation111_spill] sm:$0xff] %v11886_v34  ;;  %4311 = vperm.xlu1 %9337, %v11892_v62   ;;  %v11910_v8 = vpop.f32.mrf.mxu2 }
 0x402   : > { %15956 = vst [vmem:[#allocation160_spill] sm:$0xff] %v11889_v13  ;;  %2929 = vmatpush.bf16.msra.mxu2 %v2794_v11 }
 0x403   : > { %2978 = vmatpush.bf16.msra.mxu3 %v2795_v30  ;;  %15962 = vst [vmem:[#allocation153_spill] sm:$0xff] %v11910_v8  ;;  %v11915_v33 = vpop.f32.mrf.mxu3  ;;  %v11926_v30 = vld [vmem:[%s9831_s9 + $0x228] sm:$0xff]  ;;  %v12130_v8 = vld [vmem:[%s9831_s9 + $0x2b0] sm:$0xff] }
 0x404   : > { %15964 = vst [vmem:[#allocation130_spill] sm:$0xff] %v11915_v33 }
 0x405   : > { %2930 = vmatmul.bf16.vlgmr.msra.gmra.mxu2 %v9121_v42 }
 0x406   : > { %2979 = vmatmul.bf16.vlgmr.msra.gmra.mxu3 %v9121_v42  ;;  %v9122_v42 = vld [vmem:[%s9826_s5 + $0x148] sm:$0xff] }
 0x407   : > { %3077 = vperm.xlu0 %9390, %v9475_v51   ;;  %v11901_v57 = vpop.permute.xlu2 %4037 }
 0x408   : > { %15959 = vst [vmem:[#allocation152_spill] sm:$0xff] %v11901_v57  ;;  %4327 = vperm.xlu2 %9338, %v11757_v0   ;;  %v11905_v31 = vpop.permute.xlu1 %3823  ;;  %v11907_v63 = vpop.permute.xlu0 %6468  ;;  %v9124_v57 = vld [vmem:[%s9826_s5 + $0x158] sm:$0xff] }
 0x409   : > { %15960 = vst [vmem:[#allocation50_spill] sm:$0xff] %v11905_v31  ;;  %4323 = vperm.xlu1 %9337, %v11736_v53   ;;  %v11930_v51 = vpop.f32.mrf.mxu2  ;;  %v11973_v31 = vld [vmem:[%s9831_s9 + $0x278] sm:$0xff] }
 0x40a   : > { %15961 = vst [vmem:[#allocation155_spill] sm:$0xff] %v11907_v63 }
 0x40b   : > { %3638 = vmatmul.bf16.gmra.mxu0 %v9132_v52  ;;  %15967 = vst [vmem:[#allocation148_spill] sm:$0xff] %v11930_v51  ;;  %v11936_v13 = vpop.f32.mrf.mxu3 }
 0x40c   : > { %3687 = vmatmul.bf16.gmra.mxu1 %v9132_v52  ;;  %v9479_v52 = vld [vmem:[%s9831_s9 + $0x160] sm:$0xff]  ;;  %15969 = vst [vmem:[#allocation142_spill] sm:$0xff] %v11936_v13 }
 0x40f   : > { %3089 = vperm.xlu0 %9390, %v9476_v7   ;;  %v11913_v1 = vpop.permute.xlu2 %4049 }
 0x410   : > { %15963 = vst [vmem:[#allocation156_spill] sm:$0xff] %v11913_v1  ;;  %4335 = vperm.xlu2 %9338, %v11918_v14   ;;  %v11921_v60 = vpop.permute.xlu1 %3835  ;;  %v11923_v11 = vpop.permute.xlu0 %7416 }
 0x411   : > { %15965 = vst [vmem:[#allocation109_spill] sm:$0xff] %v11921_v60  ;;  %4331 = vperm.xlu1 %9337, %v11926_v30   ;;  %v11953_v50 = vpop.f32.mrf.mxu2 }
 0x412   : > { %15966 = vst [vmem:[#allocation147_spill] sm:$0xff] %v11923_v11  ;;  %v11939_v11 = vld [vmem:[%s9831_s9 + $0x248] sm:$0xff] }
 0x413   : > { %15973 = vst [vmem:[#allocation193_spill] sm:$0xff] %v11953_v50  ;;  %v11963_v60 = vpop.f32.mrf.mxu3 }
 0x414   : > { %15976 = vst [vmem:[#allocation196_spill] sm:$0xff] %v11963_v60  ;;  %v9128_v60 = vld [vmem:[%s9826_s5 + $0x178] sm:$0xff] }
 0x415   : > { %2935 = vmatmul.bf16.gmra.mxu2 %v9122_v42 }
 0x416   : > { %2984 = vmatmul.bf16.gmra.mxu3 %v9122_v42  ;;  %v9482_v42 = vld [vmem:[%s9831_s9 + $0x178] sm:$0xff] }
 0x417   : > { %3101 = vperm.xlu0 %9390, %v9479_v52   ;;  %v11933_v7 = vpop.permute.xlu2 %4061 }
 0x418   : > { %15968 = vst [vmem:[#allocation52_spill] sm:$0xff] %v11933_v7  ;;  %4347 = vperm.xlu2 %9338, %v11939_v11   ;;  %v11942_v63 = vpop.permute.xlu0 %7404 }
 0x419   : > { %15970 = vst [vmem:[#allocation143_spill] sm:$0xff] %v11942_v63  ;;  %v11944_v58 = vpop.permute.xlu1 %4025  ;;  %4343 = vperm.xlu1 %9337, %v11947_v3   ;;  %v11986_v34 = vpop.f32.mrf.mxu2 }
 0x41a   : > { %15971 = vst [vmem:[#allocation191_spill] sm:$0xff] %v11944_v58 }
 0x41b   : > { %3643 = vmatmul.bf16.gmra.mxu0 %v9133_v45  ;;  %15979 = vst [vmem:[#allocation199_spill] sm:$0xff] %v11986_v34 }
 0x41c   : > { %3692 = vmatmul.bf16.gmra.mxu1 %v9133_v45  ;;  %v11966_v45 = vld [vmem:[%s9831_s9 + $0x258] sm:$0xff] }
 0x41f   : > { %3113 = vperm.xlu0 %9390, %v9482_v42   ;;  %v11951_v52 = vpop.permute.xlu2 %4073  ;;  %v9123_v42 = vld [vmem:[%s9826_s5 + $0x150] sm:$0xff] }
 0x420   : > { %15972 = vst [vmem:[#allocation192_spill] sm:$0xff] %v11951_v52  ;;  %4359 = vperm.xlu2 %9338, %v11956_v37   ;;  %v11959_v63 = vpop.permute.xlu0 %7384  ;;  %v9485_v52 = vld [vmem:[%s9831_s9 + $0x180] sm:$0xff] }
 0x421   : > { %15974 = vst [vmem:[#allocation194_spill] sm:$0xff] %v11959_v63  ;;  %v11961_v36 = vpop.permute.xlu1 %4033  ;;  %4355 = vperm.xlu1 %9337, %v11966_v45  }
 0x422   : > { %15975 = vst [vmem:[#allocation195_spill] sm:$0xff] %v11961_v36 }
 0x425   : > { %2940 = vmatmul.bf16.gmra.mxu2 %v9123_v42 }
 0x426   : > { %2989 = vmatmul.bf16.gmra.mxu3 %v9123_v42  ;;  %v9488_v42 = vld [vmem:[%s9831_s9 + $0x1a8] sm:$0xff] }
 0x427   : > { %4021 = vperm.xlu0 %9390, %v9485_v52   ;;  %v11988_v52 = vpop.f32.mrf.mxu3 }
 0x428   : > { %4371 = vperm.xlu2 %9338, %v11973_v31   ;;  %v11976_v63 = vpop.permute.xlu2 %4195  ;;  %v11978_v7 = vpop.permute.xlu0 %7380  ;;  %15980 = vst [vmem:[#allocation200_spill] sm:$0xff] %v11988_v52 }
 0x429   : > { %15977 = vst [vmem:[#allocation197_spill] sm:$0xff] %v11978_v7  ;;  %v11980_v1 = vpop.permute.xlu1 %4045  ;;  %4367 = vperm.xlu1 %9337, %v11983_v32  }
 0x42a   : > { %15978 = vst [vmem:[#allocation198_spill] sm:$0xff] %v11980_v1 }
 0x42b   : > { %3648 = vmatmul.bf16.gmra.mxu0 %v9134_v23 }
 0x42c   : > { %3697 = vmatmul.bf16.gmra.mxu1 %v9134_v23  ;;  %v12002_v23 = vpop.f32.mrf.mxu2 }
 0x42d   : > { %15984 = vst [vmem:[#allocation203_spill] sm:$0xff] %v12002_v23 }
 0x42f   : > { %4041 = vperm.xlu0 %9390, %v9488_v42   ;;  %v12004_v28 = vpop.f32.mrf.mxu3  ;;  %v9489_v42 = vld [vmem:[%s9831_s9 + $0x1c0] sm:$0xff] }
 0x430   : > { %9341 = vset.pattern.permute.xlu2 %v15981_v25  ;;  %v11992_v7 = vpop.permute.xlu2 %4210  ;;  %15985 = vst [vmem:[#allocation204_spill] sm:$0xff] %v12004_v28 }
 0x431   : > { %4480 = vperm.xlu2 %9341, %v11749_v55   ;;  %v11995_v1 = vpop.permute.xlu0 %1122  ;;  %v11997_v54 = vpop.permute.xlu1 %4057  ;;  %9340 = vset.pattern.permute.xlu1 %v15981_v25 }
 0x432   : > { %15982 = vst [vmem:[#allocation201_spill] sm:$0xff] %v11995_v1  ;;  %4476 = vperm.xlu1 %9340, %v11883_v29  }
 0x433   : > { %15983 = vst [vmem:[#allocation202_spill] sm:$0xff] %v11997_v54 }
 0x434   : > { %v12016_v17 = vpop.f32.mrf.mxu2 }
 0x435   : > { %2945 = vmatmul.bf16.gmra.mxu2 %v9124_v57  ;;  %15988 = vst [vmem:[#allocation207_spill] sm:$0xff] %v12016_v17 }
 0x436   : > { %2994 = vmatmul.bf16.gmra.mxu3 %v9124_v57  ;;  %v9490_v57 = vld [vmem:[%s9831_s9 + $0x1d8] sm:$0xff] }
 0x437   : > { %4053 = vperm.xlu0 %9390, %v9489_v42   ;;  %v12019_v42 = vpop.f32.mrf.mxu3 }
 0x438   : > { %v12008_v36 = vpop.permute.xlu2 %4220  ;;  %15989 = vst [vmem:[#allocation208_spill] sm:$0xff] %v12019_v42 }
 0x439   : > { %4488 = vperm.xlu2 %9341, %v11757_v0   ;;  %v12011_v54 = vpop.permute.xlu0 %1142  ;;  %v12013_v15 = vpop.permute.xlu1 %4069 }
 0x43a   : > { %15986 = vst [vmem:[#allocation205_spill] sm:$0xff] %v12011_v54  ;;  %4484 = vperm.xlu1 %9340, %v11736_v53  }
 0x43b   : > { %15987 = vst [vmem:[#allocation206_spill] sm:$0xff] %v12013_v15  ;;  %3653 = vmatmul.bf16.gmra.mxu0 %v9135_v59  ;;  %v9125_v15 = vld [vmem:[%s9826_s5 + $0x160] sm:$0xff] }
 0x43c   : > { %3702 = vmatmul.bf16.gmra.mxu1 %v9135_v59  ;;  %v9491_v59 = vld [vmem:[%s9831_s9 + $0x1f0] sm:$0xff]  ;;  %v12034_v52 = vpop.f32.mrf.mxu2 }
 0x43d   : > { %15992 = vst [vmem:[#allocation211_spill] sm:$0xff] %v12034_v52  ;;  %v9127_v52 = vld [vmem:[%s9826_s5 + $0x170] sm:$0xff] }
 0x43f   : > { %4065 = vperm.xlu0 %9390, %v9490_v57   ;;  %v12039_v13 = vpop.f32.mrf.mxu3 }
 0x440   : > { %v12021_v21 = vpop.permute.xlu2 %4235  ;;  %15994 = vst [vmem:[#allocation213_spill] sm:$0xff] %v12039_v13 }
 0x441   : > { %4500 = vperm.xlu2 %9341, %v11798_v6   ;;  %v12024_v58 = vpop.permute.xlu0 %1154  ;;  %v12026_v41 = vpop.permute.xlu1 %4081 }
 0x442   : > { %15990 = vst [vmem:[#allocation209_spill] sm:$0xff] %v12024_v58  ;;  %4496 = vperm.xlu1 %9340, %v11918_v14  }
 0x443   : > { %15991 = vst [vmem:[#allocation210_spill] sm:$0xff] %v12026_v41 }
 0x444   : > { %v12053_v40 = vpop.f32.mrf.mxu2 }
 0x445   : > { %2950 = vmatmul.bf16.gmra.mxu2 %v9125_v15  ;;  %15996 = vst [vmem:[#allocation215_spill] sm:$0xff] %v12053_v40 }
 0x446   : > { %2999 = vmatmul.bf16.gmra.mxu3 %v9125_v15 }
 0x447   : > { %4077 = vperm.xlu0 %9390, %v9491_v59   ;;  %v12056_v4 = vpop.f32.mrf.mxu3 }
 0x448   : > { %v12032_v57 = vpop.permute.xlu2 %4250  ;;  %15997 = vst [vmem:[#allocation216_spill] sm:$0xff] %v12056_v4 }
 0x449   : > { %4512 = vperm.xlu2 %9341, %v11828_v22   ;;  %v12037_v34 = vpop.permute.xlu0 %1166 }
 0x44a   : > { %15993 = vst [vmem:[#allocation212_spill] sm:$0xff] %v12037_v34  ;;  %v12041_v41 = vpop.permute.xlu1 %4205  ;;  %4508 = vperm.xlu1 %9340, %v11939_v11  }
 0x44b   : > { %3658 = vmatmul.bf16.gmra.mxu0 %v9136_v24 }
 0x44c   : > { %3707 = vmatmul.bf16.gmra.mxu1 %v9136_v24 }
 0x44f   : > { %4997 = vperm.xlu0 %9390, %v11749_v55   ;;  %v12074_v1 = vpop.f32.mrf.mxu3 }
 0x450   : > { %v12045_v15 = vpop.permute.xlu2 %4265  ;;  %16003 = vst [vmem:[#allocation221_spill] sm:$0xff] %v12074_v1 }
 0x451   : > { %4524 = vperm.xlu2 %9341, %v11859_v43   ;;  %v12048_v59 = vpop.permute.xlu0 %2093 }
 0x452   : > { %15995 = vst [vmem:[#allocation214_spill] sm:$0xff] %v12048_v59  ;;  %v12050_v51 = vpop.permute.xlu1 %4215  ;;  %4520 = vperm.xlu1 %9340, %v11956_v37  }
 0x455   : > { %2955 = vmatmul.bf16.gmra.mxu2 %v9126_v5 }
 0x456   : > { %3004 = vmatmul.bf16.gmra.mxu3 %v9126_v5  ;;  %v12072_v5 = vpop.f32.mrf.mxu2 }
 0x457   : > { %5017 = vperm.xlu0 %9390, %v11798_v6   ;;  %16002 = vst [vmem:[#allocation220_spill] sm:$0xff] %v12072_v5  ;;  %v12094_v5 = vpop.f32.mrf.mxu3 }
 0x458   : > { %v12059_v24 = vpop.f32.mrf.mxu0  ;;  %16008 = vst [vmem:[#allocation226_spill] sm:$0xff] %v12094_v5 }
 0x459   : > { %15998 = vst [vmem:[#allocation217_spill] sm:$0xff] %v12059_v24  ;;  %9342 = vset.pattern.permute.xlu2 %v15999_v44  ;;  %v12062_v34 = vpop.permute.xlu0 %2113  ;;  %v12064_v59 = vpop.f32.mrf.mxu1 }
 0x45a   : > { %16000 = vst [vmem:[#allocation218_spill] sm:$0xff] %v12062_v34  ;;  %4747 = vperm.xlu2 %9342, %v11892_v62   ;;  %v12067_v58 = vpop.permute.xlu2 %4315  ;;  %v12069_v54 = vpop.permute.xlu1 %4230  ;;  %4532 = vperm.xlu1 %9340, %v11973_v31  }
 0x45b   : > { %16001 = vst [vmem:[#allocation219_spill] sm:$0xff] %v12064_v59 }
 0x45e   : > { %v12091_v1 = vpop.f32.mrf.mxu2 }
 0x45f   : > { %5029 = vperm.xlu0 %9390, %v11828_v22   ;;  %16007 = vst [vmem:[#allocation225_spill] sm:$0xff] %v12091_v1  ;;  %v12124_v50 = vpop.f32.mrf.mxu3 }
 0x460   : > { %v12077_v4 = vpop.f32.mrf.mxu0  ;;  %16016 = vst [vmem:[#allocation234_spill] sm:$0xff] %v12124_v50 }
 0x461   : > { %16004 = vst [vmem:[#allocation222_spill] sm:$0xff] %v12077_v4  ;;  %v12079_v40 = vpop.permute.xlu0 %2125  ;;  %v12081_v34 = vpop.f32.mrf.mxu1 }
 0x462   : > { %16005 = vst [vmem:[#allocation223_spill] sm:$0xff] %v12079_v40  ;;  %4759 = vperm.xlu2 %9342, %v11736_v53   ;;  %v12084_v13 = vpop.permute.xlu2 %4327  ;;  %v12086_v28 = vpop.permute.xlu1 %4245  ;;  %9343 = vset.pattern.permute.xlu1 %v15999_v44 }
 0x463   : > { %16006 = vst [vmem:[#allocation224_spill] sm:$0xff] %v12081_v34  ;;  %4755 = vperm.xlu1 %9343, %v11749_v55   ;;  %v12184_v34 = vld [vmem:[%s9831_s9 + $0x2f8] sm:$0xff] }
 0x464   : > { %16032 = vst [vmem:[#allocation250_spill] sm:$0xff] %v12184_v34 }
 0x465   : > { %2960 = vmatmul.bf16.gmra.mxu2 %v9127_v52 }
 0x466   : > { %3009 = vmatmul.bf16.gmra.mxu3 %v9127_v52  ;;  %v12109_v52 = vld [vmem:[%s9831_s9 + $0x288] sm:$0xff]  ;;  %v12118_v10 = vpop.f32.mrf.mxu2 }
 0x467   : > { %5041 = vperm.xlu0 %9390, %v11859_v43   ;;  %16015 = vst [vmem:[#allocation233_spill] sm:$0xff] %v12118_v10 }
 0x468   : > { %v12096_v40 = vpop.f32.mrf.mxu0 }
 0x469   : > { %16009 = vst [vmem:[#allocation227_spill] sm:$0xff] %v12096_v40  ;;  %v12098_v23 = vpop.permute.xlu0 %2137  ;;  %v12100_v42 = vpop.f32.mrf.mxu1 }
 0x46a   : > { %16010 = vst [vmem:[#allocation228_spill] sm:$0xff] %v12098_v23  ;;  %4767 = vperm.xlu2 %9342, %v11926_v30   ;;  %v12103_v17 = vpop.permute.xlu2 %4335  ;;  %v12105_v55 = vpop.permute.xlu1 %4260 }
 0x46b   : > { %16011 = vst [vmem:[#allocation229_spill] sm:$0xff] %v12100_v42  ;;  %4763 = vperm.xlu1 %9343, %v11757_v0  }
 0x46e   : > { %v12140_v56 = vpop.f32.mrf.mxu2 }
 0x46f   : > { %5961 = vperm.xlu0 %9390, %v12109_v52   ;;  %16020 = vst [vmem:[#allocation238_spill] sm:$0xff] %v12140_v56 }
 0x470   : > { %v12112_v5 = vpop.f32.mrf.mxu0 }
 0x471   : > { %16012 = vst [vmem:[#allocation230_spill] sm:$0xff] %v12112_v5  ;;  %v12114_v1 = vpop.f32.mrf.mxu1  ;;  %v12116_v23 = vpop.permute.xlu0 %3057 }
 0x472   : > { %16013 = vst [vmem:[#allocation231_spill] sm:$0xff] %v12114_v1  ;;  %4779 = vperm.xlu2 %9342, %v11947_v3   ;;  %v12121_v20 = vpop.permute.xlu2 %4347 }
 0x473   : > { %16014 = vst [vmem:[#allocation232_spill] sm:$0xff] %v12116_v23  ;;  %4775 = vperm.xlu1 %9343, %v11798_v6   ;;  %v12127_v33 = vpop.permute.xlu1 %4311 }
 0x475   : > { %2965 = vmatmul.bf16.gmra.mxu2 %v9128_v60 }
 0x476   : > { %3014 = vmatmul.bf16.gmra.mxu3 %v9128_v60  ;;  %v12145_v60 = vpop.f32.mrf.mxu3  ;;  %v12161_v56 = vpop.f32.mrf.mxu2 }
 0x477   : > { %5981 = vperm.xlu0 %9390, %v12130_v8   ;;  %16021 = vst [vmem:[#allocation239_spill] sm:$0xff] %v12145_v60  ;;  %v12164_v60 = vld [vmem:[%s9831_s9 + $0x2e0] sm:$0xff] }
 0x478   : > { %v12133_v23 = vpop.f32.mrf.mxu0  ;;  %16025 = vst [vmem:[#allocation243_spill] sm:$0xff] %v12161_v56 }
 0x479   : > { %16017 = vst [vmem:[#allocation235_spill] sm:$0xff] %v12133_v23  ;;  %v12135_v10 = vpop.f32.mrf.mxu1  ;;  %v12137_v35 = vpop.permute.xlu0 %3077 }
 0x47a   : > { %16018 = vst [vmem:[#allocation236_spill] sm:$0xff] %v12135_v10  ;;  %4791 = vperm.xlu2 %9342, %v11966_v45   ;;  %v4360_v50 = vpop.permute.xlu2 %4359 }
 0x47b   : > { %16019 = vst [vmem:[#allocation237_spill] sm:$0xff] %v12137_v35  ;;  %4787 = vperm.xlu1 %9343, %v11828_v22   ;;  %v12143_v6 = vpop.permute.xlu1 %4323 }
 0x47c   : > { %16026 = vst [vmem:[#allocation244_spill] sm:$0xff] %v12164_v60 }
 0x47e   : > { %v12167_v25 = vpop.f32.mrf.mxu3 }
 0x47f   : > { %5993 = vperm.xlu0 %9390, %v12148_v38   ;;  %16027 = vst [vmem:[#allocation245_spill] sm:$0xff] %v12167_v25  ;;  %v12187_v25 = vpop.f32.mrf.mxu2 }
 0x480   : > { %v12151_v49 = vpop.f32.mrf.mxu0  ;;  %16033 = vst [vmem:[#allocation251_spill] sm:$0xff] %v12187_v25  ;;  %v16039_v25 = vld [vmem:[#allocation45_spill] sm:$0xff] }
 0x481   : > { %16022 = vst [vmem:[#allocation240_spill] sm:$0xff] %v12151_v49  ;;  %v12153_v9 = vpop.f32.mrf.mxu1  ;;  %v12155_v35 = vpop.permute.xlu0 %3089 }
 0x482   : > { %16023 = vst [vmem:[#allocation241_spill] sm:$0xff] %v12153_v9  ;;  %4803 = vperm.xlu2 %9342, %v11983_v32   ;;  %v4372_v48 = vpop.permute.xlu2 %4371 }
 0x483   : > { %16024 = vst [vmem:[#allocation242_spill] sm:$0xff] %v12155_v35  ;;  %4799 = vperm.xlu1 %9343, %v11859_v43   ;;  %v12159_v22 = vpop.permute.xlu1 %4331 }
 0x486   : > { %v12194_v42 = vpop.f32.mrf.mxu3 }
 0x487   : > { %6005 = vperm.xlu0 %9390, %v12164_v60   ;;  %16036 = vst [vmem:[#allocation254_spill] sm:$0xff] %v12194_v42  ;;  %v9497_v42 = vld [vmem:[%s9831_s9 + $0x310] sm:$0xff]  ;;  %v12219_v5 = vpop.f32.mrf.mxu2 }
 0x488   : > { %v12169_v59 = vpop.f32.mrf.mxu0 }
 0x489   : > { %16028 = vst [vmem:[#allocation246_spill] sm:$0xff] %v12169_v59  ;;  %v12171_v35 = vpop.f32.mrf.mxu1  ;;  %v12174_v24 = vpop.permute.xlu0 %3101 }
 0x48a   : > { %16029 = vst [vmem:[#allocation247_spill] sm:$0xff] %v12171_v35  ;;  %9345 = vset.pattern.permute.xlu2 %v15878_v19 }
 0x48b   : > { %16030 = vst [vmem:[#allocation248_spill] sm:$0xff] %v12174_v24  ;;  %4993 = vperm.xlu2 %9345, %v11883_v29   ;;  %v12177_v43 = vpop.permute.xlu2 %4480  ;;  %9344 = vset.pattern.permute.xlu1 %v15878_v19  ;;  %v12180_v56 = vpop.permute.xlu1 %4343  ;;  %v8639_v29 = vld [vmem:[%s9816_s30 + $0x4] ss:$8 sm:$0x3] }
 0x48c   : > { %16031 = vst [vmem:[#allocation249_spill] sm:$0xff] %v12177_v43  ;;  %4989 = vperm.xlu1 %9344, %v11892_v62   ;;  %v12201_v40 = vperm.slane %v8639_v29, 0  ;;  %v12203_v46 = vperm.slane %v8639_v29, 1 }
 0x48e   : > { %v4309_v1 = vmul.f32 %v12203_v46, %v16039_v25 }
 0x48f   : > { %6017 = vperm.xlu0 %9390, %v12184_v34   ;;  %v4308_v34 = vmul.f32 %v12201_v40, %v16039_v25  ;;  %v4305_v25 = vmul.f32 %v12203_v46, %v12105_v55 }
 0x490   : > { %v12189_v4 = vpop.f32.mrf.mxu0  ;;  %v4405_v39 = vadd.f32 %v4372_v48, %v4309_v1  ;;  %v16046_v1 = vld [vmem:[#allocation110_spill] sm:$0xff] }
 0x491   : > { %16034 = vst [vmem:[#allocation252_spill] sm:$0xff] %v12189_v4  ;;  %v12191_v24 = vpop.f32.mrf.mxu1  ;;  %v12196_v43 = vpop.permute.xlu0 %3113  ;;  %v4404_v23 = vadd.f32 %v4372_v48, %v4308_v34  ;;  %v4298_v48 = vmul.f32 %v12201_v40, %v12086_v28  ;;  %v4299_v34 = vmul.f32 %v12203_v46, %v12086_v28  ;;  %v9498_v4 = vld [vmem:[%s9831_s9 + $0x328] sm:$0xff] }
 0x492   : > { %16035 = vst [vmem:[#allocation253_spill] sm:$0xff] %v12191_v24  ;;  %v4301_v24 = vmul.f32 %v12203_v46, %v12032_v57 }
 0x493   : > { %16037 = vst [vmem:[#allocation255_spill] sm:$0xff] %v12196_v43  ;;  %5005 = vperm.xlu2 %9345, %v11757_v0   ;;  %v12199_v19 = vpop.permute.xlu2 %4488  ;;  %v4356_v62 = vpop.permute.xlu1 %4355  ;;  %v16040_v43 = vld [vmem:[#allocation59_spill] sm:$0xff] }
 0x494   : > { %16038 = vst [vmem:[#allocation256_spill] sm:$0xff] %v12199_v19  ;;  %5001 = vperm.xlu1 %9344, %v11736_v53   ;;  %v4302_v0 = vmul.f32 %v12201_v40, %v16040_v43  ;;  %v4303_v19 = vmul.f32 %v12203_v46, %v16040_v43  ;;  %v4304_v53 = vmul.f32 %v12201_v40, %v12105_v55 }
 0x495   : > { %16042 = vst [vmem:[#allocation59_spill] sm:$0xff] %v12219_v5  ;;  %v4307_v43 = vmul.f32 %v12203_v46, %v12045_v15  ;;  %v12234_v5 = vpop.f32.mrf.mxu3  ;;  %v4397_v59 = vadd.f32 %v4356_v62, %v4301_v24 }
 0x496   : > { %16045 = vst [vmem:[#allocation259_spill] sm:$0xff] %v12234_v5  ;;  %v4398_v49 = vadd.f32 %v4360_v50, %v4302_v0  ;;  %v4399_v60 = vadd.f32 %v4360_v50, %v4303_v19  ;;  %v4401_v19 = vadd.f32 %v16046_v1, %v4305_v25  ;;  %v4436_v50 = vmax.f32 %v4404_v23, 0.0 }
 0x497   : > { %6933 = vperm.xlu0 %9390, %v9497_v42   ;;  %v4306_v42 = vmul.f32 %v12201_v40, %v12045_v15  ;;  %v4437_v0 = vmax.f32 %v4405_v39, 0.0 }
 0x498   : > { %v12215_v12 = vpop.f32.mrf.mxu0  ;;  %v4433_v25 = vmax.f32 %v4401_v19, 0.0  ;;  %v4429_v19 = vmax.f32 %v4397_v59, 0.0 }
 0x499   : > { %v12217_v29 = vpop.f32.mrf.mxu1  ;;  %v12225_v10 = vpop.permute.xlu0 %4021 }
 0x49a   : > { %16041 = vst [vmem:[#allocation45_spill] sm:$0xff] %v12217_v29 }
 0x49b   : > { %16043 = vst [vmem:[#allocation257_spill] sm:$0xff] %v12225_v10  ;;  %5013 = vperm.xlu2 %9345, %v11918_v14   ;;  %v12232_v9 = vpop.permute.xlu2 %4500  ;;  %v4368_v55 = vpop.permute.xlu1 %4367  ;;  %v4300_v10 = vmul.f32 %v12201_v40, %v12032_v57  ;;  %v4400_v14 = vadd.f32 %v16046_v1, %v4304_v53  ;;  %v16047_v57 = vld [vmem:[#allocation15_spill] sm:$0xff] }
 0x49c   : > { %16044 = vst [vmem:[#allocation258_spill] sm:$0xff] %v12232_v9  ;;  %v4402_v35 = vadd.f32 %v4368_v55, %v4306_v42  ;;  %v4403_v15 = vadd.f32 %v4368_v55, %v4307_v43  ;;  %5009 = vperm.xlu1 %9344, %v11926_v30   ;;  %v4296_v42 = vmul.f32 %v12201_v40, %v16047_v57  ;;  %v4430_v30 = vmax.f32 %v4398_v49, 0.0  ;;  %v12270_v1 = vpop.f32.mrf.mxu2 }
 0x49d   : > { %v4431_v43 = vmax.f32 %v4399_v60, 0.0  ;;  %v4396_v18 = vadd.f32 %v4356_v62, %v4300_v10  ;;  %v4297_v39 = vmul.f32 %v12203_v46, %v16047_v57  ;;  %v4432_v23 = vmax.f32 %v4400_v14, 0.0  ;;  %v16049_v60 = vld [vmem:[#allocation108_spill] sm:$0xff] }
 0x49e   : > { %v4434_v9 = vmax.f32 %v4402_v35, 0.0  ;;  %v4435_v5 = vmax.f32 %v4403_v15, 0.0  ;;  %v4294_v35 = vmul.f32 %v12201_v40, %v12021_v21  ;;  %v4295_v49 = vmul.f32 %v12203_v46, %v12021_v21 }
 0x49f   : > { %6945 = vperm.xlu0 %9390, %v9498_v4   ;;  %v4394_v10 = vadd.f32 %v16049_v60, %v4298_v48  ;;  %v4467_v14 = vpack.c.bf16 %v4432_v23, %v4430_v30  ;;  %v4468_v21 = vpack.c.bf16 %v4433_v25, %v4431_v43  ;;  %v4292_v57 = vmul.f32 %v12201_v40, %v12069_v54 }
 0x4a0   : > { %v12250_v55 = vpop.f32.mrf.mxu0  ;;  %v4469_v28 = vpack.c.bf16 %v4436_v50, %v4434_v9  ;;  %v4470_v29 = vpack.c.bf16 %v4437_v0, %v4435_v5  ;;  %v4395_v9 = vadd.f32 %v16049_v60, %v4299_v34  ;;  %v16051_v5 = vld [vmem:[#allocation11_spill] sm:$0xff]  ;;  %v4390_v48 = vadd.f32 %v12180_v56, %v4294_v35  ;;  %v12278_v0 = vpop.f32.mrf.mxu3 }
 0x4a1   : > { %v12252_v53 = vpop.f32.mrf.mxu1  ;;  %v12258_v4 = vpop.permute.xlu0 %4041  ;;  %v4290_v62 = vmul.f32 %v12201_v40, %v16051_v5  ;;  %v4291_v15 = vmul.f32 %v12203_v46, %v16051_v5  ;;  %v4391_v34 = vadd.f32 %v12180_v56, %v4295_v49  ;;  %v4392_v30 = vadd.f32 %v12121_v20, %v4296_v42 }
 0x4a2   : > { %16048 = vst [vmem:[#allocation110_spill] sm:$0xff] %v12258_v4  ;;  %4583 = vmatpush.bf16.msra.mxu0 %v4469_v28  ;;  %4632 = vmatpush.bf16.msra.mxu1 %v4470_v29  ;;  %v4428_v29 = vmax.f32 %v4396_v18, 0.0  ;;  %v4393_v43 = vadd.f32 %v12121_v20, %v4297_v39  ;;  %v4426_v18 = vmax.f32 %v4394_v10, 0.0  ;;  %v4427_v56 = vmax.f32 %v4395_v9, 0.0  ;;  %v9499_v28 = vld [vmem:[%s9831_s9 + $0x350] sm:$0xff]  ;;  %v16155_v4 = vld [vmem:[#allocation157_spill] sm:$0xff] }
 0x4a3   : > { %v12264_v24 = vpop.permute.xlu2 %4512  ;;  %5025 = vperm.xlu2 %9345, %v11939_v11   ;;  %v4293_v11 = vmul.f32 %v12203_v46, %v12069_v54  ;;  %v4387_v59 = vadd.f32 %v12103_v17, %v4291_v15  ;;  %v4422_v23 = vmax.f32 %v4390_v48, 0.0  ;;  %v4423_v25 = vmax.f32 %v4391_v34, 0.0  ;;  %v16053_v39 = vld [vmem:[#allocation55_spill] sm:$0xff] }
 0x4a4   : > { %16050 = vst [vmem:[#allocation15_spill] sm:$0xff] %v12264_v24  ;;  %5021 = vperm.xlu1 %9344, %v11947_v3   ;;  %v12276_v50 = vpop.permute.xlu1 %4476  ;;  %v4386_v3 = vadd.f32 %v12103_v17, %v4290_v62  ;;  %v4465_v54 = vpack.c.bf16 %v4428_v29, %v4426_v18  ;;  %v4466_v42 = vpack.c.bf16 %v4429_v19, %v4427_v56  ;;  %v4424_v62 = vmax.f32 %v4392_v30, 0.0  ;;  %v16159_v24 = vld [vmem:[#allocation139_spill] sm:$0xff] }
 0x4a5   : > { %16052 = vst [vmem:[#allocation108_spill] sm:$0xff] %v12276_v50  ;;  %v4284_v20 = vmul.f32 %v12201_v40, %v11992_v7  ;;  %v4388_v60 = vadd.f32 %v16053_v39, %v4292_v57  ;;  %v4389_v10 = vadd.f32 %v16053_v39, %v4293_v11  ;;  %v4288_v17 = vmul.f32 %v12201_v40, %v12008_v36  ;;  %v16195_v50 = vld [vmem:[#allocation153_spill] sm:$0xff] }
 0x4a6   : > { %4584 = vmatpush.bf16.msra.mxu0 %v4467_v14  ;;  %4633 = vmatpush.bf16.msra.mxu1 %v4468_v21  ;;  %v4289_v5 = vmul.f32 %v12203_v46, %v12008_v36  ;;  %v4425_v15 = vmax.f32 %v4393_v43, 0.0  ;;  %v4286_v21 = vmul.f32 %v12201_v40, %v12050_v51  ;;  %v4287_v48 = vmul.f32 %v12203_v46, %v12050_v51  ;;  %v12315_v43 = vpop.f32.mrf.mxu2 }
 0x4a7   : > { %6965 = vperm.xlu0 %9390, %v9499_v28   ;;  %v4418_v34 = vmax.f32 %v4386_v3, 0.0  ;;  %v4419_v29 = vmax.f32 %v4387_v59, 0.0  ;;  %v4384_v19 = vadd.f32 %v12159_v22, %v4288_v17  ;;  %v4463_v11 = vpack.c.bf16 %v4424_v62, %v4422_v23  ;;  %v16057_v59 = vld [vmem:[#allocation43_spill] sm:$0xff] }
 0x4a8   : > { %v12289_v35 = vpop.f32.mrf.mxu0  ;;  %v4385_v36 = vadd.f32 %v12159_v22, %v4289_v5  ;;  %v4464_v30 = vpack.c.bf16 %v4425_v15, %v4423_v25  ;;  %v4285_v51 = vmul.f32 %v12203_v46, %v11992_v7  ;;  %v4282_v18 = vmul.f32 %v12201_v40, %v12041_v41  ;;  %v12329_v23 = vpop.f32.mrf.mxu3  ;;  %v9500_v25 = vld [vmem:[%s9831_s9 + $0x368] sm:$0xff] }
 0x4a9   : > { %v12291_v49 = vpop.f32.mrf.mxu1  ;;  %v12297_v9 = vpop.permute.xlu0 %4053  ;;  %v4421_v56 = vmax.f32 %v4389_v10, 0.0  ;;  %v4283_v22 = vmul.f32 %v12203_v46, %v12041_v41  ;;  %v4383_v3 = vadd.f32 %v12084_v13, %v4287_v48  ;;  %v4280_v28 = vmul.f32 %v12201_v40, %v16057_v59 }
 0x4aa   : > { %16054 = vst [vmem:[#allocation11_spill] sm:$0xff] %v12297_v9  ;;  %4585 = vmatpush.bf16.msra.mxu0 %v4465_v54  ;;  %4634 = vmatpush.bf16.msra.mxu1 %v4466_v42  ;;  %v4281_v7 = vmul.f32 %v12203_v46, %v16057_v59  ;;  %v4380_v39 = vadd.f32 %v12143_v6, %v4284_v20  ;;  %v4417_v10 = vmax.f32 %v4385_v36, 0.0  ;;  %v16154_v9 = vld [vmem:[#allocation26_spill] sm:$0xff] }
 0x4ab   : > { %v12303_v14 = vpop.permute.xlu2 %4524  ;;  %5037 = vperm.xlu2 %9345, %v11956_v37   ;;  %v4420_v37 = vmax.f32 %v4388_v60, 0.0  ;;  %v4462_v41 = vpack.c.bf16 %v4421_v56, %v4419_v29  ;;  %v4416_v60 = vmax.f32 %v4384_v19, 0.0  ;;  %v4278_v5 = vmul.f32 %v12201_v40, %v11976_v63 }
 0x4ac   : > { %16055 = vst [vmem:[#allocation55_spill] sm:$0xff] %v12303_v14  ;;  %5033 = vperm.xlu1 %9344, %v11966_v45   ;;  %v12313_v57 = vpop.permute.xlu1 %4484  ;;  %v4382_v45 = vadd.f32 %v12084_v13, %v4286_v21  ;;  %v4381_v13 = vadd.f32 %v12143_v6, %v4285_v51  ;;  %v4279_v62 = vmul.f32 %v12203_v46, %v11976_v63  ;;  %v16059_v21 = vld [vmem:[#allocation105_spill] sm:$0xff]  ;;  %v4415_v20 = vmax.f32 %v4383_v3, 0.0 }
 0x4ad   : > { %16056 = vst [vmem:[#allocation260_spill] sm:$0xff] %v12313_v57  ;;  %v4461_v42 = vpack.c.bf16 %v4420_v37, %v4418_v34  ;;  %v4378_v48 = vadd.f32 %v16059_v21, %v4282_v18  ;;  %v4379_v34 = vadd.f32 %v16059_v21, %v4283_v22  ;;  %v4376_v6 = vadd.f32 %v12067_v58, %v4280_v28  ;;  %v9503_v21 = vld [vmem:[%s9831_s9 + $0x3b8] sm:$0xff] }
 0x4ae   : > { %4586 = vmatpush.bf16.msra.mxu0 %v4463_v11  ;;  %4635 = vmatpush.bf16.msra.mxu1 %v4464_v30  ;;  %v4414_v29 = vmax.f32 %v4382_v45, 0.0  ;;  %v4377_v19 = vadd.f32 %v12067_v58, %v4281_v7  ;;  %v4374_v36 = vadd.f32 %v12127_v33, %v4278_v5  ;;  %v4375_v40 = vadd.f32 %v12127_v33, %v4279_v62  ;;  %v12356_v37 = vpop.f32.mrf.mxu2  ;;  %v9501_v45 = vld [vmem:[%s9831_s9 + $0x390] sm:$0xff]  ;;  %v9145_v5 = vld [vmem:[%s9826_s5 + $0x200] sm:$0xff] }
 0x4af   : > { %6977 = vperm.xlu0 %9390, %v9500_v25   ;;  %v4412_v63 = vmax.f32 %v4380_v39, 0.0  ;;  %v4413_v11 = vmax.f32 %v4381_v13, 0.0  ;;  %v4460_v18 = vpack.c.bf16 %v4417_v10, %v4415_v20  ;;  %16062 = vst [vmem:[#allocation262_spill] sm:$0xff] %v12356_v37  ;;  %v4410_v58 = vmax.f32 %v4378_v48, 0.0  ;;  %v12367_v39 = vld [vmem:[%s9831_s9 + $0x290] sm:$0xff] }
 0x4b0   : > { %v12332_v54 = vpop.f32.mrf.mxu0  ;;  %v4459_v51 = vpack.c.bf16 %v4416_v60, %v4414_v29  ;;  %v4411_v56 = vmax.f32 %v4379_v34, 0.0  ;;  %v4408_v33 = vmax.f32 %v4376_v6, 0.0  ;;  %v12358_v22 = vpop.f32.mrf.mxu3  ;;  %v4406_v59 = vmax.f32 %v4374_v36, 0.0  ;;  %v12383_v6 = vld [vmem:[%s9831_s9 + $0x2a0] sm:$0xff] }
 0x4b1   : > { %v12336_v17 = vpop.f32.mrf.mxu1  ;;  %v12342_v15 = vpop.permute.xlu0 %4065  ;;  %16063 = vst [vmem:[#allocation263_spill] sm:$0xff] %v12358_v22  ;;  %v4457_v7 = vpack.c.bf16 %v4412_v63, %v4410_v58  ;;  %v9504_v63 = vld [vmem:[%s9831_s9 + $0x3d0] sm:$0xff] }
 0x4b2   : > { %16058 = vst [vmem:[#allocation43_spill] sm:$0xff] %v12342_v15  ;;  %4587 = vmatpush.bf16.msra.mxu0 %v4461_v42  ;;  %4636 = vmatpush.bf16.msra.mxu1 %v4462_v41  ;;  %v4458_v25 = vpack.c.bf16 %v4413_v11, %v4411_v56  ;;  %v4455_v60 = vpack.c.bf16 %v4408_v33, %v4406_v59  ;;  %v9146_v59 = vld [vmem:[%s9826_s5 + $0x208] sm:$0xff]  ;;  %v16152_v15 = vld [vmem:[#allocation149_spill] sm:$0xff] }
 0x4b3   : > { %5049 = vperm.xlu2 %9345, %v11973_v31   ;;  %v4409_v31 = vmax.f32 %v4377_v19, 0.0  ;;  %v12386_v19 = vld [vmem:[%s9831_s9 + $0x298] sm:$0xff] }
 0x4b4   : > { %v12351_v46 = vpop.permute.xlu2 %4747  ;;  %5045 = vperm.xlu1 %9344, %v11983_v32   ;;  %v12354_v30 = vpop.permute.xlu1 %4496  ;;  %v4407_v32 = vmax.f32 %v4375_v40, 0.0  ;;  %16070 = vst [vmem:[#allocation270_spill] sm:$0xff] %v12386_v19 }
 0x4b5   : > { %16060 = vst [vmem:[#allocation105_spill] sm:$0xff] %v12351_v46 }
 0x4b6   : > { %16061 = vst [vmem:[#allocation261_spill] sm:$0xff] %v12354_v30  ;;  %4588 = vmatpush.bf16.msra.mxu0 %v4459_v51  ;;  %4637 = vmatpush.bf16.msra.mxu1 %v4460_v18  ;;  %v4456_v10 = vpack.c.bf16 %v4409_v31, %v4407_v32  ;;  %v12375_v62 = vpop.f32.mrf.mxu2  ;;  %v12404_v31 = vld [vmem:[%s9831_s9 + $0x2b8] sm:$0xff] }
 0x4b7   : > { %7901 = vperm.xlu0 %9390, %v9501_v45   ;;  %16067 = vst [vmem:[#allocation267_spill] sm:$0xff] %v12375_v62 }
 0x4b8   : > { %v3654_v3 = vpop.f32.mrf.mxu0  ;;  %v12378_v29 = vpop.f32.mrf.mxu3  ;;  %16075 = vst [vmem:[#allocation275_spill] sm:$0xff] %v12404_v31 }
 0x4b9   : > { %v3703_v28 = vpop.f32.mrf.mxu1  ;;  %v12361_v42 = vpop.permute.xlu0 %4077  ;;  %16068 = vst [vmem:[#allocation268_spill] sm:$0xff] %v12378_v29 }
 0x4ba   : > { %16064 = vst [vmem:[#allocation264_spill] sm:$0xff] %v12361_v42  ;;  %4589 = vmatpush.bf16.msra.mxu0 %v4457_v7  ;;  %4638 = vmatpush.bf16.msra.mxu1 %v4458_v25  ;;  %v9523_v42 = vld [vmem:[%s9831_s9 + $0x100] sm:$0xff] }
 0x4bb   : > { %9347 = vset.pattern.permute.xlu2 %v15579_v47 }
 0x4bc   : > { %v12364_v41 = vpop.permute.xlu2 %4759  ;;  %5173 = vperm.xlu2 %9347, %v12367_v39   ;;  %9346 = vset.pattern.permute.xlu1 %v15579_v47  ;;  %v12371_v13 = vpop.permute.xlu1 %4508 }
 0x4bd   : > { %16065 = vst [vmem:[#allocation265_spill] sm:$0xff] %v12364_v41  ;;  %5168 = vperm.xlu1 %9346, %v12109_v52  }
 0x4be   : > { %16066 = vst [vmem:[#allocation266_spill] sm:$0xff] %v12371_v13  ;;  %4590 = vmatpush.bf16.msra.mxu0 %v4455_v60  ;;  %4639 = vmatpush.bf16.msra.mxu1 %v4456_v10  ;;  %v12395_v18 = vpop.f32.mrf.mxu2  ;;  %v16077_v60 = vld [vmem:[#allocation65_spill] sm:$0xff] }
 0x4bf   : > { %7921 = vperm.xlu0 %9390, %v9503_v21   ;;  %v3655_v10 = vadd.f32 %v3654_v3, %v16077_v60  ;;  %v9506_v21 = vld [vmem:[%s9831_s9 + $0x8] sm:$0xff] }
 0x4c0   : > { %v3656_v48 = vpop.f32.mrf.mxu0  ;;  %v12399_v56 = vpop.f32.mrf.mxu3 }
 0x4c1   : > { %v3705_v34 = vpop.f32.mrf.mxu1  ;;  %4591 = vmatmul.bf16.vlgmr.msra.gmra.mxu0 %v9145_v5  ;;  %4640 = vmatmul.bf16.vlgmr.msra.gmra.mxu1 %v9145_v5  ;;  %v12380_v20 = vpop.permute.xlu0 %4997  ;;  %v3657_v5 = vadd.f32 %v3656_v48, %v11766_v61 }
 0x4c2   : > { %16069 = vst [vmem:[#allocation269_spill] sm:$0xff] %v12380_v20  ;;  %v3706_v41 = vadd.f32 %v3705_v34, %v11766_v61  ;;  %v12430_v34 = vld [vmem:[%s9831_s9 + $0x2d0] sm:$0xff] }
 0x4c4   : > { %v12388_v36 = vpop.permute.xlu2 %4767  ;;  %5183 = vperm.xlu2 %9347, %v12383_v6   ;;  %v12391_v40 = vpop.permute.xlu1 %4520 }
 0x4c5   : > { %16071 = vst [vmem:[#allocation271_spill] sm:$0xff] %v12388_v36  ;;  %5178 = vperm.xlu1 %9346, %v12386_v19   ;;  %v3704_v36 = vadd.f32 %v3703_v28, %v16077_v60  ;;  %v3652_v28 = vadd.f32 %v12332_v54, %v11647_v16  ;;  %v3739_v60 = vmax.f32 %v3657_v5, 0.0  ;;  %v3650_v54 = vadd.f32 %v12289_v35, %v11745_v26  ;;  %v16082_v5 = vld [vmem:[#allocation69_spill] sm:$0xff] }
 0x4c6   : > { %16072 = vst [vmem:[#allocation272_spill] sm:$0xff] %v12391_v40  ;;  %v12423_v20 = vpop.f32.mrf.mxu2 }
 0x4c7   : > { %7933 = vperm.xlu0 %9390, %v9504_v63   ;;  %v16078_v63 = vld [vmem:[#allocation66_spill] sm:$0xff] }
 0x4c8   : > { %v3659_v11 = vpop.f32.mrf.mxu0 }
 0x4c9   : > { %v3708_v51 = vpop.f32.mrf.mxu1  ;;  %v12397_v58 = vpop.permute.xlu0 %5017  ;;  %v3660_v32 = vadd.f32 %v3659_v11, %v11687_v27 }
 0x4ca   : > { %16073 = vst [vmem:[#allocation273_spill] sm:$0xff] %v12397_v58  ;;  %v3709_v7 = vadd.f32 %v3708_v51, %v11687_v27 }
 0x4cb   : > { %v3741_v51 = vmax.f32 %v3660_v32, 0.0  ;;  %v3740_v32 = vmax.f32 %v3706_v41, 0.0 }
 0x4cc   : > { %v12401_v33 = vpop.permute.xlu2 %4779  ;;  %5198 = vperm.xlu2 %9347, %v12404_v31   ;;  %v12407_v45 = vpop.permute.xlu1 %4532  ;;  %v3742_v48 = vmax.f32 %v3709_v7, 0.0 }
 0x4cd   : > { %16074 = vst [vmem:[#allocation274_spill] sm:$0xff] %v12401_v33  ;;  %5193 = vperm.xlu1 %9346, %v12130_v8  }
 0x4ce   : > { %16076 = vst [vmem:[#allocation276_spill] sm:$0xff] %v12407_v45 }
 0x4cf   : > { %9397 = vset.pattern.permute.xlu0 %v15999_v44 }
 0x4d0   : > { %v3661_v25 = vpop.f32.mrf.mxu0  ;;  %876 = vperm.xlu0 %9397, %v9506_v21  }
 0x4d1   : > { %v3662_v33 = vadd.f32 %v3661_v25, %v16078_v63  ;;  %v3710_v58 = vpop.f32.mrf.mxu1  ;;  %4596 = vmatmul.bf16.gmra.mxu0 %v9146_v59  ;;  %4645 = vmatmul.bf16.gmra.mxu1 %v9146_v59  ;;  %v12421_v27 = vpop.permute.xlu0 %5029  ;;  %v3737_v25 = vmax.f32 %v3655_v10, 0.0  ;;  %v3738_v59 = vmax.f32 %v3704_v36, 0.0  ;;  %v3699_v10 = vadd.f32 %v12291_v49, %v11745_v26  ;;  %v16084_v49 = vld [vmem:[#allocation45_spill] sm:$0xff] }
 0x4d2   : > { %v3711_v11 = vadd.f32 %v3710_v58, %v16078_v63  ;;  %16079 = vst [vmem:[#allocation65_spill] sm:$0xff] %v12421_v27  ;;  %v12433_v58 = vpop.f32.mrf.mxu3  ;;  %v3733_v26 = vmax.f32 %v3650_v54, 0.0  ;;  %v16091_v54 = vld [vmem:[#allocation253_spill] sm:$0xff] }
 0x4d3   : > { %v3743_v3 = vmax.f32 %v3662_v33, 0.0  ;;  %v3701_v33 = vadd.f32 %v12336_v17, %v11647_v16  ;;  %v9508_v16 = vld [vmem:[%s9831_s9 + $0x30] sm:$0xff]  ;;  %v3774_v17 = vpack.c.bf16 %v3739_v60, %v3737_v25  ;;  %v3775_v35 = vpack.c.bf16 %v3740_v32, %v3738_v59  ;;  %v16087_v25 = vld [vmem:[#allocation246_spill] sm:$0xff] }
 0x4d4   : > { %v3744_v21 = vmax.f32 %v3711_v11, 0.0  ;;  %v12425_v46 = vpop.permute.xlu2 %4791  ;;  %5213 = vperm.xlu2 %9347, %v12430_v34   ;;  %v3647_v11 = vadd.f32 %v12250_v55, %v16082_v5  ;;  %v3694_v55 = vadd.f32 %v16084_v49, %v11616_v2  ;;  %v16088_v60 = vld [vmem:[#allocation58_spill] sm:$0xff]  ;;  %v9147_v49 = vld [vmem:[%s9826_s5 + $0x210] sm:$0xff] }
 0x4d5   : > { %16080 = vst [vmem:[#allocation66_spill] sm:$0xff] %v12425_v46  ;;  %v3776_v61 = vpack.c.bf16 %v3743_v3, %v3741_v51  ;;  %5208 = vperm.xlu1 %9346, %v12148_v38   ;;  %v12438_v63 = vpop.permute.xlu1 %4755  ;;  %v3735_v51 = vmax.f32 %v3652_v28, 0.0  ;;  %v3696_v38 = vadd.f32 %v12252_v53, %v16082_v5  ;;  %v3736_v41 = vmax.f32 %v3701_v33, 0.0  ;;  %v16086_v28 = vld [vmem:[#allocation13_spill] sm:$0xff]  ;;  %v12462_v32 = vld [vmem:[%s9831_s9 + $0x2e8] sm:$0xff]  ;;  %v12469_v5 = vpop.f32.mrf.mxu2 }
 0x4d6   : > { %v3777_v7 = vpack.c.bf16 %v3744_v21, %v3742_v48  ;;  %16081 = vst [vmem:[#allocation277_spill] sm:$0xff] %v12438_v63  ;;  %v3645_v3 = vadd.f32 %v12215_v12, %v11616_v2  ;;  %v3734_v48 = vmax.f32 %v3699_v10, 0.0  ;;  %v3640_v53 = vadd.f32 %v16087_v25, %v16086_v28 }
 0x4d7   : > { %3890 = vmatpush.bf16.msrb.mxu2 %v3776_v61  ;;  %v16089_v61 = vld [vmem:[#allocation252_spill] sm:$0xff]  ;;  %v3731_v59 = vmax.f32 %v3647_v11, 0.0  ;;  %v3772_v12 = vpack.c.bf16 %v3735_v51, %v3733_v26  ;;  %v3691_v10 = vadd.f32 %v16091_v54, %v16088_v60  ;;  %v16094_v26 = vld [vmem:[#allocation179_spill] sm:$0xff] }
 0x4d8   : > { %3939 = vmatpush.bf16.msrb.mxu3 %v3777_v7  ;;  %896 = vperm.xlu0 %9397, %v9508_v16   ;;  %v3642_v33 = vadd.f32 %v16089_v61, %v16088_v60  ;;  %v16090_v7 = vld [vmem:[#allocation247_spill] sm:$0xff]  ;;  %v3732_v16 = vmax.f32 %v3696_v38, 0.0  ;;  %v3773_v11 = vpack.c.bf16 %v3736_v41, %v3734_v48  ;;  %v3729_v25 = vmax.f32 %v3645_v3, 0.0  ;;  %v16098_v48 = vld [vmem:[#allocation96_spill] sm:$0xff] }
 0x4d9   : > { %v12449_v36 = vpop.permute.xlu0 %5041  ;;  %v3689_v2 = vadd.f32 %v16090_v7, %v16086_v28  ;;  %v3730_v61 = vmax.f32 %v3694_v55, 0.0  ;;  %v16095_v28 = vld [vmem:[#allocation240_spill] sm:$0xff]  ;;  %v9510_v54 = vld [vmem:[%s9831_s9 + $0x48] sm:$0xff]  ;;  %v3728_v41 = vmax.f32 %v3691_v10, 0.0 }
 0x4da   : > { %16083 = vst [vmem:[#allocation69_spill] sm:$0xff] %v12449_v36  ;;  %v12475_v51 = vpop.f32.mrf.mxu3  ;;  %v3637_v7 = vadd.f32 %v16095_v28, %v16094_v26  ;;  %v3727_v60 = vmax.f32 %v3642_v33, 0.0  ;;  %v3770_v38 = vpack.c.bf16 %v3731_v59, %v3729_v25  ;;  %v16101_v59 = vld [vmem:[#allocation176_spill] sm:$0xff]  ;;  %v16102_v25 = vld [vmem:[#allocation230_spill] sm:$0xff] }
 0x4db   : > { %3891 = vmatpush.bf16.msrb.mxu2 %v3774_v17  ;;  %v16092_v17 = vld [vmem:[#allocation244_spill] sm:$0xff]  ;;  %v3726_v46 = vmax.f32 %v3689_v2, 0.0  ;;  %v3771_v55 = vpack.c.bf16 %v3732_v16, %v3730_v61  ;;  %v3632_v28 = vadd.f32 %v16102_v25, %v16101_v59  ;;  %v16103_v2 = vmov 1  }
 0x4dc   : > { %v12455_v21 = vpop.permute.xlu2 %4803  ;;  %3940 = vmatpush.bf16.msrb.mxu3 %v3775_v35  ;;  %5228 = vperm.xlu2 %9347, %v12462_v32  }
 0x4dd   : > { %16085 = vst [vmem:[#allocation45_spill] sm:$0xff] %v12455_v21  ;;  %5223 = vperm.xlu1 %9346, %v16092_v17   ;;  %v12472_v35 = vpop.permute.xlu1 %4763  ;;  %v3725_v21 = vmax.f32 %v3640_v53, 0.0  ;;  %v16096_v17 = vld [vmem:[#allocation241_spill] sm:$0xff]  ;;  %v16100_v53 = vld [vmem:[#allocation236_spill] sm:$0xff] }
 0x4de   : > { %16093 = vst [vmem:[#allocation13_spill] sm:$0xff] %v12472_v35  ;;  %v3686_v36 = vadd.f32 %v16096_v17, %v16094_v26  ;;  %v3684_v33 = vadd.f32 %v16100_v53, %v16098_v48  ;;  %v3723_v26 = vmax.f32 %v3637_v7, 0.0  ;;  %v12496_v17 = vld [vmem:[%s9831_s9 + $0x280] sm:$0xff]  ;;  %v3719_v35 = vmax.f32 %v3632_v28, 0.0 }
 0x4df   : > { %3892 = vmatpush.bf16.msrb.mxu2 %v3772_v12  ;;  %v16099_v12 = vld [vmem:[#allocation235_spill] sm:$0xff]  ;;  %v16108_v7 = vld [vmem:[#allocation98_spill] sm:$0xff] }
 0x4e0   : > { %3941 = vmatpush.bf16.msrb.mxu3 %v3773_v11  ;;  %908 = vperm.xlu0 %9397, %v9510_v54   ;;  %v3635_v11 = vadd.f32 %v16099_v12, %v16098_v48  ;;  %v16105_v54 = vld [vmem:[#allocation231_spill] sm:$0xff]  ;;  %v3724_v61 = vmax.f32 %v3686_v36, 0.0  ;;  %v3769_v48 = vpack.c.bf16 %v3728_v41, %v3726_v46  ;;  %v16111_v36 = vld [vmem:[#allocation18_spill] sm:$0xff]  ;;  %v16113_v46 = vld [vmem:[#allocation224_spill] sm:$0xff] }
 0x4e1   : > { %4601 = vmatmul.bf16.gmra.mxu0 %v9147_v49  ;;  %4650 = vmatmul.bf16.gmra.mxu1 %v9147_v49  ;;  %v12482_v3 = vpop.permute.xlu0 %5961  ;;  %v3768_v49 = vpack.c.bf16 %v3727_v60, %v3725_v21  ;;  %v3681_v16 = vadd.f32 %v16105_v54, %v16101_v59  ;;  %v16109_v12 = vld [vmem:[#allocation227_spill] sm:$0xff]  ;;  %v16110_v21 = vld [vmem:[#allocation229_spill] sm:$0xff]  ;;  %v3722_v59 = vmax.f32 %v3684_v33, 0.0  ;;  %v12506_v54 = vpop.f32.mrf.mxu2  ;;  %v3676_v41 = vadd.f32 %v16113_v46, %v16111_v36 }
 0x4e2   : > { %16097 = vst [vmem:[#allocation246_spill] sm:$0xff] %v12482_v3  ;;  %v3630_v53 = vadd.f32 %v16109_v12, %v16108_v7  ;;  %v3721_v25 = vmax.f32 %v3635_v11, 0.0  ;;  %v3679_v60 = vadd.f32 %v16110_v21, %v16108_v7  ;;  %v16112_v3 = vld [vmem:[#allocation222_spill] sm:$0xff]  ;;  %v12513_v11 = vpop.f32.mrf.mxu3  ;;  %v16115_v7 = vld [vmem:[#allocation172_spill] sm:$0xff]  ;;  %v16116_v21 = vld [vmem:[#allocation217_spill] sm:$0xff] }
 0x4e3   : > { %3893 = vmatpush.bf16.msrb.mxu2 %v3770_v38  ;;  %v16106_v38 = vld [vmem:[#allocation250_spill] sm:$0xff]  ;;  %v3627_v27 = vadd.f32 %v16112_v3, %v16111_v36  ;;  %v3720_v12 = vmax.f32 %v3681_v16, 0.0  ;;  %v3767_v33 = vpack.c.bf16 %v3724_v61, %v3722_v59  ;;  %v16117_v3 = vld [vmem:[#allocation219_spill] sm:$0xff]  ;;  %v3716_v36 = vmax.f32 %v3676_v41, 0.0 }
 0x4e4   : > { %3942 = vmatpush.bf16.msrb.mxu3 %v3771_v55  ;;  %9348 = vset.pattern.permute.xlu2 %v16103_v2  ;;  %v3717_v63 = vmax.f32 %v3630_v53, 0.0  ;;  %v3674_v28 = vadd.f32 %v16117_v3, %v16115_v7  ;;  %v9515_v3 = vld [vmem:[%s9831_s9 + $0x88] sm:$0xff] }
 0x4e5   : > { %v12491_v10 = vpop.permute.xlu2 %4993  ;;  %5279 = vperm.xlu2 %9348, %v12496_v17   ;;  %5238 = vperm.xlu1 %9346, %v16106_v38   ;;  %v12500_v55 = vpop.permute.xlu1 %4775  ;;  %v9512_v38 = vld [vmem:[%s9831_s9 + $0x60] sm:$0xff] }
 0x4e6   : > { %16104 = vst [vmem:[#allocation58_spill] sm:$0xff] %v12491_v10  ;;  %v3764_v16 = vpack.c.bf16 %v3719_v35, %v3717_v63 }
 0x4e7   : > { %16107 = vst [vmem:[#allocation252_spill] sm:$0xff] %v12500_v55  ;;  %3894 = vmatpush.bf16.msrb.mxu2 %v3768_v49  ;;  %v3766_v55 = vpack.c.bf16 %v3723_v26, %v3721_v25  ;;  %v3715_v26 = vmax.f32 %v3627_v27, 0.0  ;;  %v9513_v27 = vld [vmem:[%s9831_s9 + $0x78] sm:$0xff] }
 0x4e8   : > { %3943 = vmatpush.bf16.msrb.mxu3 %v3769_v48  ;;  %920 = vperm.xlu0 %9397, %v9512_v38   ;;  %v3625_v48 = vadd.f32 %v16116_v21, %v16115_v7  ;;  %v3718_v38 = vmax.f32 %v3679_v60, 0.0  ;;  %v3714_v60 = vmax.f32 %v3674_v28, 0.0  ;;  %v12540_v21 = vld [vmem:[%s9831_s9 + $0x2a8] sm:$0xff] }
 0x4e9   : > { %v12515_v49 = vpop.permute.xlu0 %5981  ;;  %v12530_v35 = vpop.f32.mrf.mxu2 }
 0x4ea   : > { %16114 = vst [vmem:[#allocation247_spill] sm:$0xff] %v12515_v49  ;;  %v3765_v53 = vpack.c.bf16 %v3720_v12, %v3718_v38  ;;  %v3713_v59 = vmax.f32 %v3625_v48, 0.0  ;;  %v3763_v41 = vpack.c.bf16 %v3716_v36, %v3714_v60  ;;  %v9137_v12 = vld [vmem:[%s9826_s5 + $0x1c0] sm:$0xff]  ;;  %v9150_v49 = vld [vmem:[%s9826_s5 + $0x228] sm:$0xff] }
 0x4eb   : > { %3895 = vmatpush.bf16.msrb.mxu2 %v3766_v55  ;;  %v9148_v55 = vld [vmem:[%s9826_s5 + $0x218] sm:$0xff]  ;;  %16120 = vst [vmem:[#allocation179_spill] sm:$0xff] %v12530_v35 }
 0x4ec   : > { %3944 = vmatpush.bf16.msrb.mxu3 %v3767_v33  ;;  %v3762_v63 = vpack.c.bf16 %v3715_v26, %v3713_v59  ;;  %v12535_v33 = vpop.f32.mrf.mxu3  ;;  %v9517_v59 = vld [vmem:[%s9831_s9 + $0xb0] sm:$0xff] }
 0x4ed   : > { %v12521_v25 = vpop.permute.xlu2 %5005  ;;  %5291 = vperm.xlu2 %9348, %v12386_v19   ;;  %9349 = vset.pattern.permute.xlu1 %v16103_v2  ;;  %v12525_v61 = vpop.permute.xlu1 %4787  ;;  %16122 = vst [vmem:[#allocation241_spill] sm:$0xff] %v12535_v33 }
 0x4ee   : > { %16118 = vst [vmem:[#allocation253_spill] sm:$0xff] %v12521_v25  ;;  %5287 = vperm.xlu1 %9349, %v12367_v39  }
 0x4ef   : > { %16119 = vst [vmem:[#allocation244_spill] sm:$0xff] %v12525_v61  ;;  %3896 = vmatpush.bf16.msrb.mxu2 %v3764_v16  ;;  %v12554_v16 = vld [vmem:[%s9831_s9 + $0x2c0] sm:$0xff]  ;;  %v16137_v61 = vmov 3  }
 0x4f0   : > { %3945 = vmatpush.bf16.msrb.mxu3 %v3765_v53  ;;  %932 = vperm.xlu0 %9397, %v9513_v27   ;;  %v9149_v53 = vld [vmem:[%s9826_s5 + $0x220] sm:$0xff]  ;;  %v9138_v27 = vld [vmem:[%s9826_s5 + $0x1c8] sm:$0xff] }
 0x4f1   : > { %4606 = vmatmul.bf16.gmra.mxu0 %v9148_v55  ;;  %4655 = vmatmul.bf16.gmra.mxu1 %v9148_v55  ;;  %v12532_v46 = vpop.permute.xlu0 %5993  ;;  %v12549_v38 = vpop.f32.mrf.mxu2 }
 0x4f2   : > { %16121 = vst [vmem:[#allocation240_spill] sm:$0xff] %v12532_v46 }
 0x4f3   : > { %3897 = vmatpush.bf16.msrb.mxu2 %v3762_v63 }
 0x4f4   : > { %3946 = vmatpush.bf16.msrb.mxu3 %v3763_v41  ;;  %v12551_v26 = vpop.f32.mrf.mxu3  ;;  %v12570_v41 = vld [vmem:[%s9831_s9 + $0x2d8] sm:$0xff] }
 0x4f5   : > { %v12537_v7 = vpop.permute.xlu2 %5013  ;;  %5299 = vperm.xlu2 %9348, %v12540_v21   ;;  %v12543_v48 = vpop.permute.xlu1 %4799 }
 0x4f6   : > { %16123 = vst [vmem:[#allocation96_spill] sm:$0xff] %v12537_v7  ;;  %3898 = vmatmul.bf16.vlgmr.msrb.gmra.mxu2 %v9137_v12  ;;  %5295 = vperm.xlu1 %9349, %v12383_v6   ;;  %v9151_v7 = vld [vmem:[%s9826_s5 + $0x230] sm:$0xff] }
 0x4f7   : > { %16124 = vst [vmem:[#allocation235_spill] sm:$0xff] %v12543_v48  ;;  %3947 = vmatmul.bf16.vlgmr.msrb.gmra.mxu3 %v9137_v12 }
 0x4f8   : > { %1847 = vperm.xlu0 %9397, %v9515_v3  }
 0x4f9   : > { %v12547_v28 = vpop.permute.xlu0 %6005  ;;  %v12567_v63 = vpop.f32.mrf.mxu2 }
 0x4fa   : > { %16125 = vst [vmem:[#allocation236_spill] sm:$0xff] %v12547_v28  ;;  %v12584_v28 = vld [vmem:[%s9831_s9 + $0x2f0] sm:$0xff] }
 0x4fd   : > { %5311 = vperm.xlu2 %9348, %v12554_v16   ;;  %v12557_v36 = vpop.permute.xlu2 %5025 }
 0x4fe   : > { %16126 = vst [vmem:[#allocation176_spill] sm:$0xff] %v12557_v36  ;;  %5307 = vperm.xlu1 %9349, %v12404_v31   ;;  %v12561_v55 = vpop.permute.xlu1 %4989 }
 0x4ff   : > { %16127 = vst [vmem:[#allocation230_spill] sm:$0xff] %v12561_v55  ;;  %v16150_v55 = vld [vmem:[#allocation145_spill] sm:$0xff] }
 0x500   : > { %1867 = vperm.xlu0 %9397, %v9517_v59   ;;  %v9519_v59 = vld [vmem:[%s9831_s9 + $0xc8] sm:$0xff] }
 0x501   : > { %4611 = vmatmul.bf16.gmra.mxu0 %v9149_v53  ;;  %4660 = vmatmul.bf16.gmra.mxu1 %v9149_v53  ;;  %v12564_v60 = vpop.permute.xlu0 %6017  ;;  %v12578_v53 = vpop.f32.mrf.mxu3 }
 0x502   : > { %16128 = vst [vmem:[#allocation231_spill] sm:$0xff] %v12564_v60  ;;  %v12593_v48 = vpop.f32.mrf.mxu2 }
 0x503   : > { %16134 = vst [vmem:[#allocation222_spill] sm:$0xff] %v12593_v48 }
 0x505   : > { %5323 = vperm.xlu2 %9348, %v12570_v41   ;;  %v12573_v12 = vpop.permute.xlu2 %5037 }
 0x506   : > { %16129 = vst [vmem:[#allocation250_spill] sm:$0xff] %v12573_v12  ;;  %3903 = vmatmul.bf16.gmra.mxu2 %v9138_v27  ;;  %5319 = vperm.xlu1 %9349, %v12430_v34   ;;  %v12576_v3 = vpop.permute.xlu1 %5001 }
 0x507   : > { %16130 = vst [vmem:[#allocation98_spill] sm:$0xff] %v12576_v3  ;;  %3952 = vmatmul.bf16.gmra.mxu3 %v9138_v27  ;;  %v9521_v27 = vld [vmem:[%s9831_s9 + $0xe0] sm:$0xff] }
 0x508   : > { %1879 = vperm.xlu0 %9397, %v9519_v59   ;;  %v16145_v3 = vld [vmem:[#allocation133_spill] sm:$0xff] }
 0x509   : > { %v12581_v60 = vpop.permute.xlu0 %6933  ;;  %v12596_v12 = vpop.f32.mrf.mxu3 }
 0x50a   : > { %16131 = vst [vmem:[#allocation227_spill] sm:$0xff] %v12581_v60  ;;  %v9139_v60 = vld [vmem:[%s9826_s5 + $0x1d0] sm:$0xff] }
 0x50b   : > { %16135 = vst [vmem:[#allocation224_spill] sm:$0xff] %v12596_v12  ;;  %v16162_v12 = vld [vmem:[#allocation27_spill] sm:$0xff] }
 0x50d   : > { %5335 = vperm.xlu2 %9348, %v12584_v28   ;;  %v12587_v46 = vpop.permute.xlu2 %5049 }
 0x50e   : > { %16132 = vst [vmem:[#allocation229_spill] sm:$0xff] %v12587_v46  ;;  %5331 = vperm.xlu1 %9349, %v12462_v32   ;;  %v12591_v34 = vpop.permute.xlu1 %5009 }
 0x50f   : > { %16133 = vst [vmem:[#allocation18_spill] sm:$0xff] %v12591_v34  ;;  %v16144_v34 = vld [vmem:[#allocation132_spill] sm:$0xff] }
 0x510   : > { %1891 = vperm.xlu0 %9397, %v9521_v27   ;;  %v12610_v27 = vpop.f32.mrf.mxu2 }
 0x511   : > { %4616 = vmatmul.bf16.gmra.mxu0 %v9150_v49  ;;  %4665 = vmatmul.bf16.gmra.mxu1 %v9150_v49  ;;  %v12598_v59 = vpop.permute.xlu0 %6945  ;;  %v9522_v49 = vld [vmem:[%s9831_s9 + $0xf8] sm:$0xff]  ;;  %16140 = vst [vmem:[#allocation278_spill] sm:$0xff] %v12610_v27  ;;  %v12614_v36 = vpop.f32.mrf.mxu3  ;;  %v16261_v27 = vld [vmem:[#allocation79_spill] sm:$0xff] }
 0x512   : > { %16136 = vst [vmem:[#allocation172_spill] sm:$0xff] %v12598_v59 }
 0x513   : > { %16142 = vst [vmem:[#allocation280_spill] sm:$0xff] %v12614_v36  ;;  %v16258_v36 = vld [vmem:[#allocation85_spill] sm:$0xff] }
 0x515   : > { %9352 = vset.pattern.permute.xlu2 %v16137_v61 }
 0x516   : > { %3908 = vmatmul.bf16.gmra.mxu2 %v9139_v60  ;;  %5444 = vperm.xlu2 %9352, %v12109_v52   ;;  %v12603_v32 = vpop.permute.xlu2 %5173  ;;  %v12606_v46 = vpop.permute.xlu1 %5021  ;;  %v16143_v52 = vld [vmem:[#allocation22_spill] sm:$0xff] }
 0x517   : > { %16138 = vst [vmem:[#allocation217_spill] sm:$0xff] %v12603_v32  ;;  %9351 = vset.pattern.permute.xlu1 %v16137_v61  ;;  %3957 = vmatmul.bf16.gmra.mxu3 %v9139_v60  ;;  %v993_v25 = vadd.f32 %v16144_v34, %v16143_v52  ;;  %v16151_v34 = vld [vmem:[#allocation31_spill] sm:$0xff] }
 0x518   : > { %16139 = vst [vmem:[#allocation219_spill] sm:$0xff] %v12606_v46  ;;  %5440 = vperm.xlu1 %9351, %v12496_v17   ;;  %1903 = vperm.xlu0 %9397, %v9522_v49   ;;  %v1042_v46 = vadd.f32 %v16145_v3, %v16143_v52  ;;  %v16148_v49 = vld [vmem:[#allocation25_spill] sm:$0xff]  ;;  %v1003_v3 = vadd.f32 %v16152_v15, %v16151_v34  ;;  %v16153_v52 = vld [vmem:[#allocation151_spill] sm:$0xff]  ;;  %v16160_v15 = vld [vmem:[#allocation140_spill] sm:$0xff] }
 0x519   : > { %v12612_v59 = vpop.permute.xlu0 %6965  ;;  %v1049_v61 = vadd.f32 %v16150_v55, %v16148_v49  ;;  %v1052_v2 = vadd.f32 %v16153_v52, %v16151_v34  ;;  %v1081_v45 = vmax.f32 %v993_v25, 0.0  ;;  %v16157_v55 = vld [vmem:[#allocation158_spill] sm:$0xff]  ;;  %v12651_v52 = vpop.f32.mrf.mxu2 }
 0x51a   : > { %16141 = vst [vmem:[#allocation279_spill] sm:$0xff] %v12612_v59  ;;  %v16149_v59 = vld [vmem:[#allocation144_spill] sm:$0xff]  ;;  %v1082_v14 = vmax.f32 %v1042_v46, 0.0  ;;  %v1089_v46 = vmax.f32 %v1003_v3, 0.0  ;;  %v16170_v3 = vld [vmem:[#allocation167_spill] sm:$0xff] }
 0x51b   : > { %v1000_v10 = vadd.f32 %v16149_v59, %v16148_v49  ;;  %v9140_v59 = vld [vmem:[%s9826_s5 + $0x1d8] sm:$0xff]  ;;  %v1054_v49 = vadd.f32 %v16157_v55, %v16154_v9  ;;  %16161 = vst [vmem:[#allocation25_spill] sm:$0xff] %v12651_v52  ;;  %v1088_v25 = vmax.f32 %v1049_v61, 0.0  ;;  %v1090_v47 = vmax.f32 %v1052_v2, 0.0  ;;  %v12763_v32 = vld [vmem:[%s9831_s9 + $0x2c8] sm:$0xff] }
 0x51e   : > { %5456 = vperm.xlu2 %9352, %v12383_v6   ;;  %v12622_v60 = vpop.permute.xlu2 %5183  ;;  %v12624_v17 = vpop.permute.xlu1 %5033 }
 0x51f   : > { %16146 = vst [vmem:[#allocation22_spill] sm:$0xff] %v12622_v60  ;;  %v16201_v60 = vld [vmem:[#allocation193_spill] sm:$0xff] }
 0x520   : > { %16147 = vst [vmem:[#allocation132_spill] sm:$0xff] %v12624_v17  ;;  %5452 = vperm.xlu1 %9351, %v12386_v19   ;;  %2811 = vperm.xlu0 %9397, %v9523_v42   ;;  %v1005_v17 = vadd.f32 %v16155_v4, %v16154_v9  ;;  %v16158_v42 = vld [vmem:[#allocation29_spill] sm:$0xff]  ;;  %v1087_v4 = vmax.f32 %v1000_v10, 0.0  ;;  %v12656_v9 = vpop.f32.mrf.mxu3 }
 0x521   : > { %4621 = vmatmul.bf16.gmra.mxu0 %v9151_v7  ;;  %4670 = vmatmul.bf16.gmra.mxu1 %v9151_v7  ;;  %v12638_v40 = vpop.permute.xlu0 %6977  ;;  %v12645_v13 = vadd.f32 %v16159_v24, %v16158_v42  ;;  %v12649_v34 = vadd.f32 %v16160_v15, %v16158_v42  ;;  %v8752_v7 = vld [vmem:[%s9816_s30 + $0x5] ss:$8 sm:$0x3]  ;;  %16164 = vst [vmem:[#allocation144_spill] sm:$0xff] %v12656_v9  ;;  %v1092_v15 = vmax.f32 %v1054_v49, 0.0  ;;  %v16166_v10 = vld [vmem:[#allocation181_spill] sm:$0xff] }
 0x522   : > { %16156 = vst [vmem:[#allocation133_spill] sm:$0xff] %v12638_v40  ;;  %v16163_v40 = vld [vmem:[#allocation90_spill] sm:$0xff]  ;;  %v1091_v33 = vmax.f32 %v1005_v17, 0.0  ;;  %v1062_v35 = vadd.f32 %v16166_v10, %v16162_v12  ;;  %v12687_v10 = vperm.slane %v8752_v7, 1  ;;  %v16217_v9 = vld [vmem:[#allocation123_spill] sm:$0xff] }
 0x523   : > { %v1013_v48 = vadd.f32 %v16163_v40, %v16162_v12  ;;  %v16165_v24 = vld [vmem:[#allocation42_spill] sm:$0xff] }
 0x524   : > { %v12659_v55 = vmul.f32 %v16165_v24, %v1081_v45  ;;  %v12662_v42 = vmul.f32 %v16165_v24, %v1082_v14  ;;  %v16169_v45 = vld [vmem:[#allocation32_spill] sm:$0xff]  ;;  %v12685_v24 = vperm.slane %v8752_v7, 0  ;;  %16174 = vst [vmem:[#allocation151_spill] sm:$0xff] %v12687_v10  ;;  %v9524_v17 = vld [vmem:[%s9831_s9 + $0x128] sm:$0xff] }
 0x525   : > { %v12675_v30 = vadd.f32 %v16170_v3, %v16169_v45  ;;  %v16171_v14 = vld [vmem:[#allocation168_spill] sm:$0xff]  ;;  %v1097_v61 = vmax.f32 %v1013_v48, 0.0  ;;  %v16178_v48 = vld [vmem:[#allocation114_spill] sm:$0xff]  ;;  %16203 = vst [vmem:[#allocation32_spill] sm:$0xff] %v12763_v32 }
 0x526   : > { %3913 = vmatmul.bf16.gmra.mxu2 %v9140_v59  ;;  %5464 = vperm.xlu2 %9352, %v12130_v8   ;;  %v12667_v40 = vpop.permute.xlu2 %5198  ;;  %v12669_v2 = vpop.permute.xlu1 %5045  ;;  %v12679_v49 = vadd.f32 %v16171_v14, %v16169_v45  ;;  %v16172_v8 = vld [vmem:[#allocation44_spill] sm:$0xff]  ;;  %16173 = vst [vmem:[#allocation149_spill] sm:$0xff] %v12685_v24  ;;  %v16182_v14 = vld [vmem:[#allocation89_spill] sm:$0xff] }
 0x527   : > { %16167 = vst [vmem:[#allocation145_spill] sm:$0xff] %v12667_v40  ;;  %3962 = vmatmul.bf16.gmra.mxu3 %v9140_v59  ;;  %v12683_v12 = vmul.f32 %v16172_v8, %v1087_v4  ;;  %v12691_v3 = vmul.f32 %v16172_v8, %v1088_v25  ;;  %v12713_v25 = vmul.f32 %v12687_v10, %v16178_v48 }
 0x528   : > { %16168 = vst [vmem:[#allocation31_spill] sm:$0xff] %v12669_v2  ;;  %5460 = vperm.xlu1 %9351, %v12540_v21   ;;  %2831 = vperm.xlu0 %9397, %v9524_v17   ;;  %v16175_v2 = vld [vmem:[#allocation36_spill] sm:$0xff]  ;;  %v16176_v21 = vld [vmem:[#allocation46_spill] sm:$0xff]  ;;  %v12709_v17 = vmul.f32 %v12685_v24, %v16178_v48 }
 0x529   : > { %v12694_v29 = vmul.f32 %v16175_v2, %v1089_v46  ;;  %v12697_v59 = vmul.f32 %v16175_v2, %v1090_v47  ;;  %v12700_v45 = vmul.f32 %v16176_v21, %v1091_v33  ;;  %v12702_v4 = vpop.permute.xlu0 %7901  ;;  %v12705_v7 = vmul.f32 %v16176_v21, %v1092_v15  ;;  %16180 = vst [vmem:[#allocation158_spill] sm:$0xff] %v12713_v25  ;;  %v16181_v2 = vld [vmem:[#allocation28_spill] sm:$0xff]  ;;  %v16183_v15 = vld [vmem:[#allocation127_spill] sm:$0xff]  ;;  %v16190_v33 = vld [vmem:[#allocation78_spill] sm:$0xff] }
 0x52a   : > { %16177 = vst [vmem:[#allocation26_spill] sm:$0xff] %v12702_v4  ;;  %v1098_v46 = vmax.f32 %v1062_v35, 0.0  ;;  %v1020_v8 = vadd.f32 %v16182_v14, %v16181_v2  ;;  %v1069_v21 = vadd.f32 %v16183_v15, %v16181_v2  ;;  %v16184_v4 = vld [vmem:[#allocation116_spill] sm:$0xff]  ;;  %v16187_v35 = vld [vmem:[#allocation47_spill] sm:$0xff]  ;;  %v16191_v14 = vld [vmem:[#allocation118_spill] sm:$0xff] }
 0x52b   : > { %16179 = vst [vmem:[#allocation157_spill] sm:$0xff] %v12709_v17  ;;  %v12723_v62 = vmul.f32 %v12685_v24, %v16184_v4  ;;  %v12727_v48 = vmul.f32 %v12687_v10, %v16184_v4  ;;  %v12730_v22 = vmul.f32 %v16187_v35, %v1097_v61  ;;  %v16189_v47 = vld [vmem:[#allocation35_spill] sm:$0xff]  ;;  %v12738_v57 = vmul.f32 %v12685_v24, %v16191_v14  ;;  %v16193_v2 = vld [vmem:[#allocation188_spill] sm:$0xff]  ;;  %v16196_v4 = vld [vmem:[#allocation130_spill] sm:$0xff]  ;;  %v12748_v61 = vpop.f32.mrf.mxu2 }
 0x52c   : > { %v12734_v37 = vadd.f32 %v16190_v33, %v16189_v47  ;;  %v12742_v15 = vadd.f32 %v16193_v2, %v16189_v47  ;;  %16197 = vst [vmem:[#allocation90_spill] sm:$0xff] %v12748_v61  ;;  %v9152_v17 = vld [vmem:[%s9826_s5 + $0x238] sm:$0xff]  ;;  %v12752_v33 = vmul.f32 %v16187_v35, %v1098_v46  ;;  %v12756_v40 = vmul.f32 %v12687_v10, %v16191_v14  ;;  %v12776_v61 = vpop.f32.mrf.mxu3 }
 0x52d   : > { %16185 = vst [vmem:[#allocation29_spill] sm:$0xff] %v12723_v62  ;;  %v16194_v62 = vld [vmem:[#allocation30_spill] sm:$0xff]  ;;  %v16202_v2 = vld [vmem:[#allocation196_spill] sm:$0xff]  ;;  %v1103_v14 = vmax.f32 %v1020_v8, 0.0  ;;  %v16214_v8 = vld [vmem:[#allocation207_spill] sm:$0xff] }
 0x52e   : > { %16186 = vst [vmem:[#allocation139_spill] sm:$0xff] %v12727_v48  ;;  %v1028_v25 = vadd.f32 %v16195_v50, %v16194_v62  ;;  %v1077_v48 = vadd.f32 %v16196_v4, %v16194_v62  ;;  %5476 = vperm.xlu2 %9352, %v12763_v32   ;;  %v12766_v62 = vpop.permute.xlu2 %5213  ;;  %v16205_v4 = vld [vmem:[#allocation121_spill] sm:$0xff] }
 0x52f   : > { %16188 = vst [vmem:[#allocation140_spill] sm:$0xff] %v12730_v22  ;;  %v12770_v46 = vmul.f32 %v12685_v24, %v16205_v4  ;;  %v12774_v35 = vmul.f32 %v12687_v10, %v16205_v4  ;;  %v16213_v4 = vld [vmem:[#allocation99_spill] sm:$0xff]  ;;  %v9141_v22 = vld [vmem:[%s9826_s5 + $0x1e0] sm:$0xff] }
 0x530   : > { %16192 = vst [vmem:[#allocation27_spill] sm:$0xff] %v12738_v57  ;;  %v16200_v57 = vld [vmem:[#allocation97_spill] sm:$0xff]  ;;  %5472 = vperm.xlu1 %9351, %v12554_v16   ;;  %v1109_v16 = vmax.f32 %v1028_v25, 0.0 }
 0x531   : > { %16198 = vst [vmem:[#allocation42_spill] sm:$0xff] %v12752_v33  ;;  %v1964_v47 = vadd.f32 %v16201_v60, %v16200_v57  ;;  %v2013_v50 = vadd.f32 %v16202_v2, %v16200_v57  ;;  %v1104_v60 = vmax.f32 %v1069_v21, 0.0  ;;  %v12779_v57 = vpop.permute.xlu1 %5168  ;;  %v1971_v21 = vadd.f32 %v16214_v8, %v16213_v4  ;;  %4626 = vmatmul.bf16.gmra.mxu0 %v9152_v17  ;;  %v16220_v25 = vld [vmem:[#allocation49_spill] sm:$0xff] }
 0x532   : > { %16199 = vst [vmem:[#allocation181_spill] sm:$0xff] %v12756_v40  ;;  %v16210_v40 = vld [vmem:[#allocation38_spill] sm:$0xff]  ;;  %v1110_v33 = vmax.f32 %v1077_v48, 0.0  ;;  %4675 = vmatmul.bf16.gmra.mxu1 %v9152_v17  ;;  %v12808_v48 = vmul.f32 %v16220_v25, %v1103_v14 }
 0x533   : > { %16204 = vst [vmem:[#allocation167_spill] sm:$0xff] %v12766_v62  ;;  %v16211_v62 = vld [vmem:[#allocation161_spill] sm:$0xff]  ;;  %v2053_v8 = vmax.f32 %v2013_v50, 0.0  ;;  %v16223_v17 = vld [vmem:[#allocation74_spill] sm:$0xff]  ;;  %v2058_v14 = vmax.f32 %v1971_v21, 0.0 }
 0x534   : > { %16206 = vst [vmem:[#allocation168_spill] sm:$0xff] %v12770_v46  ;;  %v12784_v32 = vadd.f32 %v16211_v62, %v16210_v40  ;;  %v16212_v46 = vld [vmem:[#allocation24_spill] sm:$0xff]  ;;  %v12796_v62 = vpop.permute.xlu0 %7921 }
 0x535   : > { %16207 = vst [vmem:[#allocation44_spill] sm:$0xff] %v12774_v35  ;;  %v12788_v31 = vadd.f32 %v16212_v46, %v16210_v40  ;;  %v9526_v35 = vld [vmem:[%s9831_s9 + $0x140] sm:$0xff]  ;;  %v12801_v40 = vmul.f32 %v12685_v24, %v16217_v9  ;;  %v12805_v46 = vmul.f32 %v12687_v10, %v16217_v9  ;;  %v16226_v24 = vld [vmem:[#allocation211_spill] sm:$0xff] }
 0x536   : > { %16208 = vst [vmem:[#allocation36_spill] sm:$0xff] %v12776_v61  ;;  %2843 = vperm.xlu0 %9397, %v9526_v35   ;;  %v2052_v35 = vmax.f32 %v1964_v47, 0.0  ;;  %v16227_v47 = vld [vmem:[#allocation204_spill] sm:$0xff]  ;;  %v16231_v10 = vld [vmem:[#allocation213_spill] sm:$0xff]  ;;  %3918 = vmatmul.bf16.gmra.mxu2 %v9141_v22 }
 0x537   : > { %16209 = vst [vmem:[#allocation46_spill] sm:$0xff] %v12779_v57  ;;  %v16215_v57 = vld [vmem:[#allocation208_spill] sm:$0xff]  ;;  %v12823_v50 = vadd.f32 %v16227_v47, %v16223_v17  ;;  %v16236_v47 = vld [vmem:[#allocation215_spill] sm:$0xff]  ;;  %3967 = vmatmul.bf16.gmra.mxu3 %v9141_v22 }
 0x538   : > { %v2020_v2 = vadd.f32 %v16215_v57, %v16213_v4  ;;  %16216 = vst [vmem:[#allocation114_spill] sm:$0xff] %v12796_v62  ;;  %v12811_v57 = vmul.f32 %v16220_v25, %v1104_v60  ;;  %v16224_v4 = vld [vmem:[#allocation203_spill] sm:$0xff]  ;;  %v16225_v62 = vld [vmem:[#allocation16_spill] sm:$0xff]  ;;  %5484 = vperm.xlu1 %9351, %v12570_v41   ;;  %v16251_v41 = vld [vmem:[#allocation37_spill] sm:$0xff] }
 0x539   : > { %16218 = vst [vmem:[#allocation28_spill] sm:$0xff] %v12801_v40  ;;  %v12815_v61 = vadd.f32 %v16224_v4, %v16223_v17  ;;  %v1974_v40 = vadd.f32 %v16226_v24, %v16225_v62  ;;  %v16232_v24 = vld [vmem:[#allocation40_spill] sm:$0xff]  ;;  %v16235_v17 = vld [vmem:[#allocation101_spill] sm:$0xff] }
 0x53a   : > { %16219 = vst [vmem:[#allocation89_spill] sm:$0xff] %v12805_v46  ;;  %v16228_v46 = vld [vmem:[#allocation51_spill] sm:$0xff]  ;;  %v2059_v4 = vmax.f32 %v2020_v2, 0.0  ;;  %v12834_v52 = vmul.f32 %v16232_v24, %v2052_v35  ;;  %v12837_v9 = vmul.f32 %v16232_v24, %v2053_v8  ;;  %v1976_v21 = vadd.f32 %v16236_v47, %v16235_v17  ;;  %v12847_v2 = vpop.permute.xlu2 %5228  ;;  %v16241_v35 = vld [vmem:[#allocation233_spill] sm:$0xff]  ;;  %v16242_v24 = vld [vmem:[#allocation234_spill] sm:$0xff]  ;;  %v12854_v47 = vpop.f32.mrf.mxu2 }
 0x53b   : > { %16221 = vst [vmem:[#allocation127_spill] sm:$0xff] %v12808_v48  ;;  %v12826_v60 = vmul.f32 %v16228_v46, %v1109_v16  ;;  %v12829_v25 = vmul.f32 %v16228_v46, %v1110_v33  ;;  %v16237_v16 = vld [vmem:[#allocation216_spill] sm:$0xff]  ;;  %v12844_v33 = vld [vmem:[%s9831_s9 + $0x2e0] sm:$0xff] }
 0x53c   : > { %16222 = vst [vmem:[#allocation116_spill] sm:$0xff] %v12811_v57  ;;  %v2023_v57 = vadd.f32 %v16231_v10, %v16225_v62  ;;  %5488 = vperm.xlu2 %9352, %v12844_v33   ;;  %v2060_v62 = vmax.f32 %v1974_v40, 0.0  ;;  %v16240_v46 = vld [vmem:[#allocation102_spill] sm:$0xff]  ;;  %v16247_v10 = vld [vmem:[#allocation23_spill] sm:$0xff]  ;;  %v9528_v48 = vld [vmem:[%s9831_s9 + $0x158] sm:$0xff] }
 0x53d   : > { %16229 = vst [vmem:[#allocation47_spill] sm:$0xff] %v12826_v60  ;;  %v2025_v60 = vadd.f32 %v16237_v16, %v16235_v17  ;;  %v1984_v8 = vadd.f32 %v16241_v35, %v16240_v46  ;;  %v12857_v17 = vpop.permute.xlu1 %5178  ;;  %v16248_v40 = vld [vmem:[#allocation251_spill] sm:$0xff]  ;;  %v16249_v35 = vld [vmem:[#allocation254_spill] sm:$0xff]  ;;  %v2048_v16 = vadd.f32 %v12329_v23, %v16251_v41 }
 0x53e   : > { %16230 = vst [vmem:[#allocation35_spill] sm:$0xff] %v12829_v25  ;;  %v2040_v25 = vadd.f32 %v16249_v35, %v16247_v10  ;;  %2855 = vperm.xlu0 %9397, %v9528_v48   ;;  %v2061_v22 = vmax.f32 %v2023_v57, 0.0  ;;  %v16256_v48 = vld [vmem:[#allocation226_spill] sm:$0xff]  ;;  %v16259_v23 = vld [vmem:[#allocation243_spill] sm:$0xff] }
 0x53f   : > { %16233 = vst [vmem:[#allocation78_spill] sm:$0xff] %v12834_v52  ;;  %v16245_v52 = vld [vmem:[#allocation76_spill] sm:$0xff] }
 0x540   : > { %16234 = vst [vmem:[#allocation118_spill] sm:$0xff] %v12837_v9  ;;  %v2033_v9 = vadd.f32 %v16242_v24, %v16240_v46  ;;  %v12869_v46 = vmul.f32 %v16245_v52, %v2059_v4  ;;  %v1999_v24 = vadd.f32 %v12315_v43, %v16251_v41  ;;  %v16257_v4 = vld [vmem:[#allocation88_spill] sm:$0xff]  ;;  %v2068_v43 = vmax.f32 %v1984_v8, 0.0  ;;  %5496 = vperm.xlu1 %9351, %v12584_v28  }
 0x541   : > { %16238 = vst [vmem:[#allocation188_spill] sm:$0xff] %v12844_v33  ;;  %v1991_v33 = vadd.f32 %v16248_v40, %v16247_v10  ;;  %v2062_v40 = vmax.f32 %v1976_v21, 0.0  ;;  %v16255_v10 = vld [vmem:[#allocation225_spill] sm:$0xff]  ;;  %v12884_v57 = vmul.f32 %v16257_v4, %v2060_v62  ;;  %v1989_v41 = vadd.f32 %v16259_v23, %v16258_v36 }
 0x542   : > { %16239 = vst [vmem:[#allocation30_spill] sm:$0xff] %v12847_v2  ;;  %v12861_v2 = vmul.f32 %v16245_v52, %v2058_v14  ;;  %v12875_v14 = vpop.f32.mrf.mxu3  ;;  %v12893_v19 = vmul.f32 %v16257_v4, %v2061_v22  ;;  %v2045_v62 = vadd.f32 %v12278_v0, %v16261_v27  ;;  %v2081_v8 = vmax.f32 %v2048_v16, 0.0  ;;  %v12909_v22 = vpop.f32.mrf.mxu1  ;;  %v16265_v0 = vld [vmem:[#allocation68_spill] sm:$0xff]  ;;  %v16269_v4 = vld [vmem:[#allocation19_spill] sm:$0xff] }
 0x543   : > { %16243 = vst [vmem:[#allocation153_spill] sm:$0xff] %v12854_v47  ;;  %v16254_v47 = vld [vmem:[#allocation84_spill] sm:$0xff]  ;;  %v2074_v21 = vmax.f32 %v1991_v33, 0.0  ;;  %v16275_v28 = vmax.f32 %v12645_v13, 0.0  ;;  %v16281_v13 = vmax.f32 %v12734_v37, 0.0 }
 0x544   : > { %16244 = vst [vmem:[#allocation130_spill] sm:$0xff] %v12857_v17  ;;  %v2063_v17 = vmax.f32 %v2025_v60, 0.0  ;;  %v1981_v35 = vadd.f32 %v16255_v10, %v16254_v47  ;;  %v2030_v52 = vadd.f32 %v16256_v48, %v16254_v47  ;;  %v2075_v60 = vmax.f32 %v2040_v25, 0.0  ;;  %v12904_v25 = vld [vmem:[%s9831_s9 + $0x2f8] sm:$0xff] }
 0x545   : > { %16246 = vst [vmem:[#allocation97_spill] sm:$0xff] %v12861_v2  ;;  %v12877_v2 = vpop.permute.xlu0 %7933  ;;  %v1996_v10 = vadd.f32 %v12270_v1, %v16261_v27  ;;  %v2080_v47 = vmax.f32 %v1999_v24, 0.0  ;;  %5500 = vperm.xlu2 %9352, %v12904_v25   ;;  %v12907_v1 = vpop.f32.mrf.mxu0  ;;  %v12912_v27 = vmul.f32 %v16265_v0, %v2068_v43  ;;  %v2072_v24 = vmax.f32 %v1989_v41, 0.0 }
 0x546   : > { %16250 = vst [vmem:[#allocation193_spill] sm:$0xff] %v12869_v46  ;;  %v2069_v46 = vmax.f32 %v2033_v9, 0.0  ;;  %v16262_v9 = vld [vmem:[#allocation72_spill] sm:$0xff]  ;;  %v2067_v33 = vmax.f32 %v2030_v52, 0.0  ;;  %v12928_v43 = vmul.f32 %v16269_v4, %v2075_v60  ;;  %v2079_v41 = vmax.f32 %v2045_v62, 0.0  ;;  %v16279_v62 = vld [vmem:[#allocation205_spill] sm:$0xff] }
 0x547   : > { %16252 = vst [vmem:[#allocation196_spill] sm:$0xff] %v12875_v14  ;;  %v16260_v14 = vld [vmem:[#allocation245_spill] sm:$0xff]  ;;  %v12898_v48 = vmul.f32 %v16262_v9, %v2062_v40  ;;  %v12901_v23 = vmul.f32 %v16262_v9, %v2063_v17  ;;  %v16268_v17 = vld [vmem:[#allocation120_spill] sm:$0xff]  ;;  %v12919_v40 = vpop.permute.xlu2 %5279  ;;  %v12925_v9 = vmul.f32 %v16269_v4, %v2074_v21  ;;  %v9142_v21 = vld [vmem:[%s9826_s5 + $0x1e8] sm:$0xff]  ;;  %v16277_v60 = vmax.f32 %v12649_v34, 0.0 }
 0x548   : > { %16253 = vst [vmem:[#allocation121_spill] sm:$0xff] %v12877_v2  ;;  %v2038_v2 = vadd.f32 %v16260_v14, %v16258_v36  ;;  %v2066_v36 = vmax.f32 %v1981_v35, 0.0  ;;  %v12915_v16 = vmul.f32 %v16265_v0, %v2069_v46  ;;  %v2934_v14 = vadd.f32 %v12395_v18, %v16268_v17  ;;  %v12922_v35 = vpop.permute.xlu1 %5193  ;;  %v9530_v0 = vld [vmem:[%s9831_s9 + $0x170] sm:$0xff]  ;;  %3923 = vmatmul.bf16.gmra.mxu2 %v9142_v21 }
 0x549   : > { %16263 = vst [vmem:[#allocation38_spill] sm:$0xff] %v12898_v48  ;;  %v2078_v46 = vmax.f32 %v1996_v10, 0.0  ;;  %2867 = vperm.xlu0 %9397, %v9530_v0   ;;  %v12940_v48 = vpop.f32.mrf.mxu2  ;;  %v16278_v4 = vmax.f32 %v12675_v30, 0.0  ;;  %v16283_v34 = vmax.f32 %v12742_v15, 0.0  ;;  %v16289_v15 = vmax.f32 %v12815_v61, 0.0  ;;  %v16293_v61 = vld [vmem:[#allocation223_spill] sm:$0xff]  ;;  %3972 = vmatmul.bf16.gmra.mxu3 %v9142_v21 }
 0x54a   : > { %16264 = vst [vmem:[#allocation161_spill] sm:$0xff] %v12901_v23  ;;  %v2073_v52 = vmax.f32 %v2038_v2, 0.0  ;;  %v16276_v23 = vld [vmem:[#allocation201_spill] sm:$0xff]  ;;  %v3022_v30 = vmax.f32 %v2934_v14, 0.0  ;;  %9353 = vset.pattern.permute.xlu1 %v15999_v44  ;;  %v16303_v21 = vld [vmem:[#allocation87_spill] sm:$0xff] }
 0x54b   : > { %16266 = vst [vmem:[#allocation24_spill] sm:$0xff] %v12912_v27  ;;  %v1181_v2 = vmul.f32 %v16276_v23, %v16275_v28  ;;  %v1182_v10 = vmul.f32 %v16276_v23, %v16277_v60  ;;  %v12949_v0 = vmul.f32 %v16279_v62, %v16278_v4  ;;  %v12966_v60 = vpop.f32.mrf.mxu3  ;;  %v16284_v4 = vld [vmem:[#allocation136_spill] sm:$0xff] }
 0x54c   : > { %16267 = vst [vmem:[#allocation99_spill] sm:$0xff] %v12915_v16  ;;  %v16272_v16 = vld [vmem:[#allocation83_spill] sm:$0xff] }
 0x54d   : > { %16270 = vst [vmem:[#allocation207_spill] sm:$0xff] %v12925_v9  ;;  %v12932_v27 = vmul.f32 %v16272_v16, %v2080_v47  ;;  %v12935_v18 = vmul.f32 %v16272_v16, %v2081_v8  ;;  %v16280_v47 = vmax.f32 %v12679_v49, 0.0  ;;  %v16282_v16 = vld [vmem:[#allocation209_spill] sm:$0xff]  ;;  %9354 = vset.pattern.permute.xlu2 %v15999_v44 }
 0x54e   : > { %16271 = vst [vmem:[#allocation208_spill] sm:$0xff] %v12928_v43  ;;  %v12959_v28 = vmul.f32 %v16282_v16, %v16281_v13  ;;  %v12964_v23 = vmul.f32 %v16282_v16, %v16283_v34  ;;  %v16285_v49 = vld [vmem:[#allocation137_spill] sm:$0xff]  ;;  %v16288_v13 = vmax.f32 %v12788_v31, 0.0  ;;  %v16290_v16 = vld [vmem:[#allocation214_spill] sm:$0xff]  ;;  %v2983_v34 = vadd.f32 %v12399_v56, %v16268_v17  ;;  %v16294_v56 = vld [vmem:[#allocation228_spill] sm:$0xff]  ;;  %v13008_v17 = vpop.f32.mrf.mxu0  ;;  %5723 = vperm.xlu2 %9354, %v12367_v39  }
 0x54f   : > { %16273 = vst [vmem:[#allocation123_spill] sm:$0xff] %v12932_v27  ;;  %v12954_v8 = vmul.f32 %v16279_v62, %v16280_v47  ;;  %v16286_v62 = vmax.f32 %v12784_v32, 0.0  ;;  %v16287_v47 = vld [vmem:[#allocation212_spill] sm:$0xff]  ;;  %v12983_v14 = vmul.f32 %v16290_v16, %v16289_v15  ;;  %v13002_v15 = vmul.f32 %v16293_v61, %v2073_v52 }
 0x550   : > { %16274 = vst [vmem:[#allocation49_spill] sm:$0xff] %v12935_v18  ;;  %v877_v18 = vpop.permute.xlu0 %876  ;;  %v12978_v9 = vmul.f32 %v16287_v47, %v16288_v13  ;;  %v12999_v13 = vmul.f32 %v16293_v61, %v2072_v24  ;;  %v16299_v24 = vld [vmem:[#allocation33_spill] sm:$0xff] }
 0x551   : > { %v995_v27 = vadd.f32 %v16284_v4, %v877_v18  ;;  %v1044_v43 = vadd.f32 %v16285_v49, %v877_v18  ;;  %v12973_v37 = vmul.f32 %v16287_v47, %v16286_v62  ;;  %v16291_v18 = vmax.f32 %v12823_v50, 0.0  ;;  %v16292_v4 = vld [vmem:[#allocation218_spill] sm:$0xff]  ;;  %v16300_v61 = vld [vmem:[#allocation113_spill] sm:$0xff] }
 0x552   : > { %v12993_v49 = vmul.f32 %v16292_v4, %v2066_v36  ;;  %v12996_v47 = vmul.f32 %v16292_v4, %v2067_v33  ;;  %v13005_v50 = vmul.f32 %v16294_v56, %v2078_v46  ;;  %v13010_v36 = vpop.f32.mrf.mxu1  ;;  %v16297_v33 = vld [vmem:[#allocation232_spill] sm:$0xff]  ;;  %v13021_v46 = vpop.permute.xlu2 %5291  ;;  %v3023_v4 = vmax.f32 %v2983_v34, 0.0 }
 0x553   : > { %v12990_v32 = vmul.f32 %v16290_v16, %v16291_v18  ;;  %v1083_v31 = vmax.f32 %v995_v27, 0.0  ;;  %v1084_v62 = vmax.f32 %v1044_v43, 0.0  ;;  %v13013_v27 = vmul.f32 %v16294_v56, %v2079_v41  ;;  %v13023_v18 = vpop.permute.xlu1 %5208  ;;  %v9531_v34 = vld [vmem:[%s9831_s9 + $0x190] sm:$0xff] }
 0x554   : > { %16295 = vst [vmem:[#allocation74_spill] sm:$0xff] %v13005_v50  ;;  %v13016_v43 = vmul.f32 %v16297_v33, %v3022_v30  ;;  %v2937_v41 = vadd.f32 %v12423_v20, %v16300_v61  ;;  %v2986_v56 = vadd.f32 %v12433_v58, %v16300_v61  ;;  %v16301_v30 = vld [vmem:[#allocation91_spill] sm:$0xff]  ;;  %3787 = vperm.xlu0 %9397, %v9531_v34   ;;  %v13055_v50 = vpop.f32.mrf.mxu3 }
 0x555   : > { %16296 = vst [vmem:[#allocation203_spill] sm:$0xff] %v13013_v27  ;;  %v1179_v16 = vmul.f32 %v16299_v24, %v1083_v31  ;;  %v1180_v52 = vmul.f32 %v16299_v24, %v1084_v62  ;;  %v2988_v39 = vadd.f32 %v12475_v51, %v16301_v30  ;;  %v9532_v24 = vld [vmem:[%s9831_s9 + $0x288] sm:$0xff]  ;;  %v2947_v61 = vadd.f32 %v12549_v38, %v16303_v21 }
 0x556   : > { %16298 = vst [vmem:[#allocation16_spill] sm:$0xff] %v13016_v43  ;;  %v2939_v43 = vadd.f32 %v12469_v5, %v16301_v30  ;;  %5719 = vperm.xlu1 %9353, %v9532_v24   ;;  %v16302_v20 = vld [vmem:[#allocation115_spill] sm:$0xff]  ;;  %v2996_v51 = vadd.f32 %v12551_v26, %v16303_v21  ;;  %v3024_v27 = vmax.f32 %v2937_v41, 0.0  ;;  %5731 = vperm.xlu2 %9354, %v12383_v6  }
 0x557   : > { %v1209_v31 = vadd.f32 %v1179_v16, %v12659_v55  ;;  %v1230_v62 = vadd.f32 %v1180_v52, %v12662_v42  ;;  %v2942_v58 = vadd.f32 %v12506_v54, %v16302_v20  ;;  %v2991_v5 = vadd.f32 %v12513_v11, %v16302_v20  ;;  %v13046_v55 = vpop.f32.mrf.mxu2  ;;  %v16305_v52 = vld [vmem:[#allocation162_spill] sm:$0xff]  ;;  %v16306_v24 = vld [vmem:[#allocation163_spill] sm:$0xff]  ;;  %v16308_v20 = vld [vmem:[#allocation117_spill] sm:$0xff]  ;;  %16309 = vst [vmem:[#allocation51_spill] sm:$0xff] %v13055_v50 }
 0x558   : > { %v897_v30 = vpop.permute.xlu0 %896  ;;  %16304 = vst [vmem:[#allocation211_spill] sm:$0xff] %v13046_v55  ;;  %v13051_v54 = vmul.f32 %v16297_v33, %v3023_v4  ;;  %v3025_v11 = vmax.f32 %v2986_v56, 0.0  ;;  %v2949_v38 = vadd.f32 %v12567_v63, %v16308_v20  ;;  %v3032_v4 = vmax.f32 %v2947_v61, 0.0  ;;  %v16313_v61 = vld [vmem:[#allocation39_spill] sm:$0xff]  ;;  %v16338_v55 = vld [vmem:[#allocation42_spill] sm:$0xff] }
 0x559   : > { %v1210_v42 = vadd.f32 %v1209_v31, %v1181_v2  ;;  %v1231_v16 = vadd.f32 %v1230_v62, %v1182_v10  ;;  %v1008_v34 = vadd.f32 %v16305_v52, %v897_v30  ;;  %v1057_v44 = vadd.f32 %v16306_v24, %v897_v30  ;;  %v13059_v24 = vpop.f32.mrf.mxu0 }
 0x55a   : > { %16307 = vst [vmem:[#allocation204_spill] sm:$0xff] %v13051_v54  ;;  %v3026_v31 = vmax.f32 %v2939_v43, 0.0  ;;  %v3027_v62 = vmax.f32 %v2988_v39, 0.0  ;;  %v3028_v52 = vmax.f32 %v2942_v58, 0.0  ;;  %v3029_v30 = vmax.f32 %v2991_v5, 0.0  ;;  %v13061_v33 = vpop.f32.mrf.mxu1  ;;  %v16310_v43 = vld [vmem:[#allocation93_spill] sm:$0xff] }
 0x55b   : > { %v1211_v26 = vadd.f32 %v1210_v42, %v12683_v12  ;;  %v1232_v21 = vadd.f32 %v1231_v16, %v12691_v3  ;;  %v1093_v2 = vmax.f32 %v1008_v34, 0.0  ;;  %v1094_v10 = vmax.f32 %v1057_v44, 0.0  ;;  %v13066_v3 = vpop.permute.xlu2 %5299  ;;  %v13068_v44 = vpop.permute.xlu1 %5223  ;;  %v9533_v42 = vld [vmem:[%s9831_s9 + $0x1b8] sm:$0xff]  ;;  %v9143_v16 = vld [vmem:[%s9826_s5 + $0x1f0] sm:$0xff] }
 0x55c   : > { %v3033_v41 = vmax.f32 %v2996_v51, 0.0  ;;  %v13071_v56 = vmul.f32 %v16310_v43, %v3024_v27  ;;  %v13074_v39 = vmul.f32 %v16310_v43, %v3025_v11  ;;  %v3034_v58 = vmax.f32 %v2949_v38, 0.0  ;;  %3807 = vperm.xlu0 %9397, %v9533_v42   ;;  %v16314_v27 = vld [vmem:[#allocation107_spill] sm:$0xff]  ;;  %v16317_v38 = vld [vmem:[#allocation124_spill] sm:$0xff]  ;;  %3928 = vmatmul.bf16.gmra.mxu2 %v9143_v16 }
 0x55d   : > { %v1212_v63 = vadd.f32 %v1211_v26, %v12694_v29  ;;  %v1233_v12 = vadd.f32 %v1232_v21, %v12697_v59  ;;  %v2998_v5 = vadd.f32 %v12578_v53, %v16308_v20  ;;  %v1189_v6 = vmul.f32 %v16313_v61, %v1093_v2  ;;  %v16321_v20 = vld [vmem:[#allocation237_spill] sm:$0xff]  ;;  %v16328_v42 = vld [vmem:[#allocation95_spill] sm:$0xff]  ;;  %3977 = vmatmul.bf16.gmra.mxu3 %v9143_v16  ;;  %v16344_v16 = vld [vmem:[#allocation48_spill] sm:$0xff] }
 0x55e   : > { %16311 = vst [vmem:[#allocation213_spill] sm:$0xff] %v13071_v56  ;;  %v1190_v51 = vmul.f32 %v16313_v61, %v1094_v10  ;;  %v13085_v34 = vmul.f32 %v16314_v27, %v3026_v31  ;;  %v13088_v11 = vmul.f32 %v16314_v27, %v3027_v62  ;;  %v13091_v26 = vmul.f32 %v16317_v38, %v3028_v52  ;;  %v16326_v52 = vld [vmem:[#allocation184_spill] sm:$0xff]  ;;  %v16327_v61 = vld [vmem:[#allocation185_spill] sm:$0xff]  ;;  %v16329_v27 = vld [vmem:[#allocation278_spill] sm:$0xff] }
 0x55f   : > { %16312 = vst [vmem:[#allocation40_spill] sm:$0xff] %v13074_v39  ;;  %v1213_v29 = vadd.f32 %v1212_v63, %v12700_v45  ;;  %v1234_v59 = vadd.f32 %v1233_v12, %v12705_v7  ;;  %v13094_v53 = vmul.f32 %v16317_v38, %v3029_v30  ;;  %v16320_v45 = vld [vmem:[#allocation270_spill] sm:$0xff]  ;;  %v13098_v21 = vmul.f32 %v16321_v20, %v3032_v4  ;;  %v2968_v50 = vpop.f32.mrf.mxu2  ;;  %v16385_v39 = vld [vmem:[#allocation28_spill] sm:$0xff]  ;;  %v16388_v54 = vld [vmem:[#allocation167_spill] sm:$0xff] }
 0x560   : > { %16315 = vst [vmem:[#allocation101_spill] sm:$0xff] %v13085_v34  ;;  %5727 = vperm.xlu1 %9353, %v16320_v45   ;;  %v909_v7 = vpop.permute.xlu0 %908  ;;  %v13101_v2 = vmul.f32 %v16321_v20, %v3033_v41  ;;  %v16324_v63 = vld [vmem:[#allocation126_spill] sm:$0xff]  ;;  %v3035_v12 = vmax.f32 %v2998_v5, 0.0  ;;  %v2954_v38 = vadd.f32 %v16329_v27, %v16328_v42  ;;  %v16330_v45 = vld [vmem:[#allocation280_spill] sm:$0xff] }
 0x561   : > { %16316 = vst [vmem:[#allocation215_spill] sm:$0xff] %v13088_v11  ;;  %v1214_v10 = vadd.f32 %v1213_v29, %v1189_v6  ;;  %v1235_v31 = vadd.f32 %v1234_v59, %v1190_v51  ;;  %v13104_v62 = vmul.f32 %v16324_v63, %v3034_v58  ;;  %v1015_v43 = vadd.f32 %v16326_v52, %v909_v7  ;;  %v16331_v59 = vld [vmem:[#allocation119_spill] sm:$0xff]  ;;  %v16332_v58 = vld [vmem:[#allocation25_spill] sm:$0xff]  ;;  %v16333_v5 = vld [vmem:[#allocation144_spill] sm:$0xff]  ;;  %v13118_v52 = vpop.f32.mrf.mxu0 }
 0x562   : > { %16318 = vst [vmem:[#allocation216_spill] sm:$0xff] %v13091_v26  ;;  %v1064_v30 = vadd.f32 %v16327_v61, %v909_v7  ;;  %v3003_v4 = vadd.f32 %v16330_v45, %v16328_v42  ;;  %v2957_v6 = vadd.f32 %v16332_v58, %v16331_v59  ;;  %v3006_v51 = vadd.f32 %v16333_v5, %v16331_v59  ;;  %v13120_v61 = vpop.f32.mrf.mxu1  ;;  %v16334_v27 = vld [vmem:[#allocation82_spill] sm:$0xff]  ;;  %v16335_v42 = vld [vmem:[#allocation153_spill] sm:$0xff] }
 0x563   : > { %16319 = vst [vmem:[#allocation102_spill] sm:$0xff] %v13094_v53  ;;  %v1215_v41 = vadd.f32 %v1214_v10, %v12949_v0  ;;  %v1236_v29 = vadd.f32 %v1235_v31, %v12954_v8  ;;  %v1099_v20 = vmax.f32 %v1015_v43, 0.0  ;;  %v2962_v45 = vadd.f32 %v16335_v42, %v16334_v27  ;;  %v16336_v0 = vld [vmem:[#allocation196_spill] sm:$0xff]  ;;  %v13129_v59 = vpop.permute.xlu2 %5311  ;;  %v5239_v43 = vpop.permute.xlu1 %5238  ;;  %v16341_v5 = vld [vmem:[#allocation122_spill] sm:$0xff] }
 0x564   : > { %16322 = vst [vmem:[#allocation233_spill] sm:$0xff] %v13098_v21  ;;  %v1100_v7 = vmax.f32 %v1064_v30, 0.0  ;;  %v3011_v10 = vadd.f32 %v16336_v0, %v16334_v27  ;;  %v16337_v8 = vld [vmem:[#allocation140_spill] sm:$0xff]  ;;  %v13132_v30 = vmul.f32 %v16324_v63, %v3035_v12  ;;  %v2964_v42 = vadd.f32 %v12940_v48, %v16341_v5 }
 0x565   : > { %16323 = vst [vmem:[#allocation234_spill] sm:$0xff] %v13101_v2  ;;  %v1216_v31 = vadd.f32 %v1215_v41, %v16337_v8  ;;  %v1237_v58 = vadd.f32 %v1236_v29, %v16338_v55  ;;  %v16342_v2 = vld [vmem:[#allocation41_spill] sm:$0xff]  ;;  %v3038_v41 = vmax.f32 %v2954_v38, 0.0  ;;  %v3039_v0 = vmax.f32 %v3003_v4, 0.0  ;;  %v3017_v8 = vpop.f32.mrf.mxu3  ;;  %v9534_v53 = vld [vmem:[%s9831_s9 + $0x1d0] sm:$0xff] }
 0x566   : > { %16325 = vst [vmem:[#allocation76_spill] sm:$0xff] %v13104_v62  ;;  %v16339_v62 = vld [vmem:[#allocation275_spill] sm:$0xff]  ;;  %v1195_v21 = vmul.f32 %v16342_v2, %v1099_v20  ;;  %v1196_v27 = vmul.f32 %v16342_v2, %v1100_v7  ;;  %v3013_v55 = vadd.f32 %v12966_v60, %v16341_v5  ;;  %3819 = vperm.xlu0 %9397, %v9534_v53   ;;  %v3040_v63 = vmax.f32 %v2957_v6, 0.0  ;;  %v16345_v4 = vld [vmem:[#allocation165_spill] sm:$0xff] }
 0x567   : > { %5743 = vperm.xlu2 %9354, %v16339_v62   ;;  %16340 = vst [vmem:[#allocation23_spill] sm:$0xff] %v13132_v30  ;;  %v16343_v62 = vld [vmem:[#allocation100_spill] sm:$0xff]  ;;  %v3041_v12 = vmax.f32 %v3006_v51, 0.0  ;;  %v3044_v11 = vmax.f32 %v2962_v45, 0.0  ;;  %v3045_v2 = vmax.f32 %v3011_v10, 0.0  ;;  %v3046_v34 = vmax.f32 %v2964_v42, 0.0 }
 0x568   : > { %v2969_v29 = vadd.f32 %v2968_v50, %v16343_v62  ;;  %v1217_v30 = vadd.f32 %v1216_v31, %v1195_v21  ;;  %v1238_v26 = vadd.f32 %v1237_v58, %v1196_v27  ;;  %v9535_v48 = vld [vmem:[%s9831_s9 + $0x2b0] sm:$0xff]  ;;  %v921_v20 = vpop.permute.xlu0 %920  ;;  %v3018_v60 = vadd.f32 %v3017_v8, %v16343_v62  ;;  %v16346_v58 = vld [vmem:[#allocation242_spill] sm:$0xff]  ;;  %v16349_v10 = vld [vmem:[#allocation129_spill] sm:$0xff] }
 0x569   : > { %5739 = vperm.xlu1 %9353, %v9535_v48   ;;  %v1023_v38 = vadd.f32 %v16344_v16, %v921_v20  ;;  %v1072_v7 = vadd.f32 %v16345_v4, %v921_v20  ;;  %v3047_v6 = vmax.f32 %v3013_v55, 0.0  ;;  %v13149_v5 = vmul.f32 %v16346_v58, %v3038_v41  ;;  %v16353_v55 = vld [vmem:[#allocation116_spill] sm:$0xff]  ;;  %v16354_v41 = vld [vmem:[#allocation10_spill] sm:$0xff] }
 0x56a   : > { %v1218_v50 = vadd.f32 %v1217_v30, %v12959_v28  ;;  %v1239_v53 = vadd.f32 %v1238_v26, %v12964_v23  ;;  %v3050_v21 = vmax.f32 %v2969_v29, 0.0  ;;  %v13152_v45 = vmul.f32 %v16346_v58, %v3039_v0  ;;  %v13160_v28 = vpop.f32.mrf.mxu0  ;;  %v13162_v30 = vpop.f32.mrf.mxu1  ;;  %v16352_v23 = vld [vmem:[#allocation127_spill] sm:$0xff]  ;;  %v16359_v16 = vld [vmem:[#allocation134_spill] sm:$0xff] }
 0x56b   : > { %v1105_v51 = vmax.f32 %v1023_v38, 0.0  ;;  %v1106_v31 = vmax.f32 %v1072_v7, 0.0  ;;  %16347 = vst [vmem:[#allocation251_spill] sm:$0xff] %v13149_v5  ;;  %v13155_v27 = vmul.f32 %v16349_v10, %v3040_v63  ;;  %v13158_v42 = vmul.f32 %v16349_v10, %v3041_v12  ;;  %v13169_v8 = vld [vmem:[%s9831_s9 + $0x2d0] sm:$0xff]  ;;  %v13172_v63 = vpop.permute.xlu2 %5323  ;;  %v13183_v7 = vpop.permute.xlu1 %5287  ;;  %v9144_v10 = vld [vmem:[%s9826_s5 + $0x1f8] sm:$0xff]  ;;  %v13244_v5 = vld [vmem:[%s9831_s9 + $0x2e8] sm:$0xff] }
 0x56c   : > { %16348 = vst [vmem:[#allocation254_spill] sm:$0xff] %v13152_v45  ;;  %v1219_v26 = vadd.f32 %v1218_v50, %v16352_v23  ;;  %v1240_v62 = vadd.f32 %v1239_v53, %v16353_v55  ;;  %v16356_v12 = vld [vmem:[#allocation248_spill] sm:$0xff]  ;;  %v13181_v38 = vmul.f32 %v16359_v16, %v3046_v34  ;;  %v3051_v4 = vmax.f32 %v3018_v60, 0.0  ;;  %v16362_v53 = vld [vmem:[#allocation255_spill] sm:$0xff]  ;;  %v16364_v23 = vld [vmem:[#allocation46_spill] sm:$0xff]  ;;  %3933 = vmatmul.bf16.gmra.mxu2 %v9144_v10 }
 0x56d   : > { %16350 = vst [vmem:[#allocation37_spill] sm:$0xff] %v13155_v27  ;;  %v1201_v29 = vmul.f32 %v16354_v41, %v1105_v51  ;;  %v1202_v0 = vmul.f32 %v16354_v41, %v1106_v31  ;;  %v13175_v48 = vmul.f32 %v16356_v12, %v3044_v11  ;;  %v13178_v20 = vmul.f32 %v16356_v12, %v3045_v2  ;;  %v9537_v11 = vld [vmem:[%s9831_s9 + $0x1e8] sm:$0xff]  ;;  %v16365_v2 = vld [vmem:[#allocation149_spill] sm:$0xff] }
 0x56e   : > { %16351 = vst [vmem:[#allocation84_spill] sm:$0xff] %v13158_v42  ;;  %v13186_v50 = vmul.f32 %v16359_v16, %v3047_v6  ;;  %v13189_v51 = vmul.f32 %v16362_v53, %v3050_v21  ;;  %3831 = vperm.xlu0 %9397, %v9537_v11   ;;  %v5248_v55 = vmul.f32 %v16365_v2, %v16364_v23  ;;  %v16366_v34 = vld [vmem:[#allocation151_spill] sm:$0xff]  ;;  %v16367_v6 = vld [vmem:[#allocation32_spill] sm:$0xff] }
 0x56f   : > { %16355 = vst [vmem:[#allocation225_spill] sm:$0xff] %v13169_v8  ;;  %5755 = vperm.xlu2 %9354, %v13169_v8   ;;  %v1220_v31 = vadd.f32 %v1219_v26, %v1201_v29  ;;  %v1241_v58 = vadd.f32 %v1240_v62, %v1202_v0  ;;  %v5249_v41 = vmul.f32 %v16366_v34, %v16364_v23  ;;  %v16368_v62 = vld [vmem:[#allocation148_spill] sm:$0xff]  ;;  %v16369_v0 = vld [vmem:[#allocation142_spill] sm:$0xff]  ;;  %v16380_v27 = vld [vmem:[#allocation35_spill] sm:$0xff] }
 0x570   : > { %16357 = vst [vmem:[#allocation226_spill] sm:$0xff] %v13175_v48  ;;  %v5276_v60 = vmul.f32 %v16365_v2, %v5239_v43  ;;  %v5277_v12 = vmul.f32 %v16366_v34, %v5239_v43  ;;  %v933_v16 = vpop.permute.xlu0 %932  ;;  %v16379_v48 = vld [vmem:[#allocation47_spill] sm:$0xff]  ;;  %3982 = vmatmul.bf16.gmra.mxu3 %v9144_v10 }
 0x571   : > { %16358 = vst [vmem:[#allocation88_spill] sm:$0xff] %v13178_v20  ;;  %5751 = vperm.xlu1 %9353, %v16367_v6   ;;  %v1221_v21 = vadd.f32 %v1220_v31, %v12973_v37  ;;  %v1242_v26 = vadd.f32 %v1241_v58, %v12978_v9  ;;  %v1030_v29 = vadd.f32 %v16368_v62, %v933_v16  ;;  %v16372_v6 = vld [vmem:[#allocation22_spill] sm:$0xff]  ;;  %v16374_v31 = vld [vmem:[#allocation145_spill] sm:$0xff] }
 0x572   : > { %16360 = vst [vmem:[#allocation85_spill] sm:$0xff] %v13181_v38  ;;  %v1079_v11 = vadd.f32 %v16369_v0, %v933_v16  ;;  %v13217_v37 = vmul.f32 %v16365_v2, %v16372_v6  ;;  %v13221_v9 = vmul.f32 %v16366_v34, %v16372_v6  ;;  %v16375_v16 = vld [vmem:[#allocation112_spill] sm:$0xff]  ;;  %v16376_v0 = vld [vmem:[#allocation70_spill] sm:$0xff]  ;;  %v13235_v20 = vpop.f32.mrf.mxu0  ;;  %v13237_v6 = vpop.f32.mrf.mxu1 }
 0x573   : > { %16361 = vst [vmem:[#allocation243_spill] sm:$0xff] %v13186_v50  ;;  %v16371_v50 = vld [vmem:[#allocation217_spill] sm:$0xff]  ;;  %v13228_v62 = vadd.f32 %v16375_v16, %v5248_v55  ;;  %v5373_v38 = vadd.f32 %v16376_v0, %v5277_v12  ;;  %v1222_v42 = vadd.f32 %v1221_v21, %v16379_v48 }
 0x574   : > { %16363 = vst [vmem:[#allocation245_spill] sm:$0xff] %v13189_v51  ;;  %v13205_v51 = vmul.f32 %v16362_v53, %v3051_v4  ;;  %v13209_v23 = vmul.f32 %v16365_v2, %v16371_v50  ;;  %v13213_v43 = vmul.f32 %v16366_v34, %v16371_v50  ;;  %v13225_v4 = vmul.f32 %v16365_v2, %v16374_v31  ;;  %v16386_v21 = vld [vmem:[#allocation89_spill] sm:$0xff] }
 0x575   : > { %16373 = vst [vmem:[#allocation72_spill] sm:$0xff] %v13221_v9  ;;  %v1111_v53 = vmax.f32 %v1030_v29, 0.0  ;;  %v1112_v58 = vmax.f32 %v1079_v11, 0.0  ;;  %v13231_v50 = vadd.f32 %v16375_v16, %v5249_v41  ;;  %v1243_v29 = vadd.f32 %v1242_v26, %v16380_v27  ;;  %v16381_v11 = vld [vmem:[#allocation12_spill] sm:$0xff]  ;;  %v5336_v41 = vpop.permute.xlu2 %5335  ;;  %v16384_v16 = vld [vmem:[#allocation158_spill] sm:$0xff]  ;;  %v13253_v26 = vpop.permute.xlu1 %5295  ;;  %v16392_v9 = vld [vmem:[#allocation81_spill] sm:$0xff] }
 0x576   : > { %16370 = vst [vmem:[#allocation79_spill] sm:$0xff] %v13205_v51  ;;  %v5372_v51 = vadd.f32 %v16376_v0, %v5276_v60  ;;  %v16383_v60 = vld [vmem:[#allocation157_spill] sm:$0xff]  ;;  %v5343_v0 = vadd.f32 %v12919_v40, %v16384_v16  ;;  %v5370_v48 = vadd.f32 %v5336_v41, %v16385_v39  ;;  %v5371_v27 = vadd.f32 %v5336_v41, %v16386_v21  ;;  %v16387_v41 = vld [vmem:[#allocation188_spill] sm:$0xff] }
 0x577   : > { %16377 = vst [vmem:[#allocation68_spill] sm:$0xff] %v13235_v20  ;;  %v1207_v45 = vmul.f32 %v16381_v11, %v1111_v53  ;;  %v1208_v55 = vmul.f32 %v16381_v11, %v1112_v58  ;;  %5767 = vperm.xlu2 %9354, %v13244_v5   ;;  %v5342_v12 = vadd.f32 %v12919_v40, %v16383_v60  ;;  %v9539_v60 = vld [vmem:[%s9831_s9 + $0x208] sm:$0xff]  ;;  %v5405_v16 = vmax.f32 %v5373_v38, 0.0 }
 0x578   : > { %16378 = vst [vmem:[#allocation120_spill] sm:$0xff] %v13237_v6  ;;  %v5258_v53 = vmul.f32 %v16365_v2, %v12922_v35  ;;  %v5259_v58 = vmul.f32 %v16366_v34, %v12922_v35  ;;  %4751 = vperm.xlu0 %9397, %v9539_v60   ;;  %v5404_v40 = vmax.f32 %v5372_v51, 0.0  ;;  %v5402_v39 = vmax.f32 %v5370_v48, 0.0  ;;  %v1848_v10 = vpop.permute.xlu0 %1847  ;;  %v16391_v60 = vld [vmem:[#allocation30_spill] sm:$0xff] }
 0x579   : > { %16382 = vst [vmem:[#allocation19_spill] sm:$0xff] %v13244_v5  ;;  %v13259_v11 = vadd.f32 %v1222_v42, %v1207_v45  ;;  %v13261_v5 = vadd.f32 %v1243_v29, %v1208_v55  ;;  %v5403_v56 = vmax.f32 %v5371_v27, 0.0  ;;  %5763 = vperm.xlu1 %9353, %v16387_v41   ;;  %v13267_v21 = vmul.f32 %v16366_v34, %v16374_v31  ;;  %v16389_v45 = vld [vmem:[#allocation199_spill] sm:$0xff]  ;;  %v16390_v29 = vld [vmem:[#allocation200_spill] sm:$0xff] }
 0x57a   : > { %v13271_v35 = vmul.f32 %v16365_v2, %v16388_v54  ;;  %v1966_v42 = vadd.f32 %v16389_v45, %v1848_v10  ;;  %v2015_v55 = vadd.f32 %v16390_v29, %v1848_v10  ;;  %v13277_v38 = vmul.f32 %v16366_v34, %v16388_v54 }
 0x57b   : > { %v5437_v51 = vpack.c.bf16 %v5404_v40, %v5402_v39  ;;  %v5438_v48 = vpack.c.bf16 %v5405_v16, %v5403_v56  ;;  %v5376_v27 = vmax.f32 %v13228_v62, 0.0  ;;  %v13282_v31 = vmul.f32 %v16365_v2, %v16391_v60  ;;  %v13291_v56 = vpop.f32.mrf.mxu0  ;;  %v13293_v62 = vpop.f32.mrf.mxu1  ;;  %v16395_v40 = vld [vmem:[#allocation130_spill] sm:$0xff] }
 0x57c   : > { %v2054_v41 = vmax.f32 %v1966_v42, 0.0  ;;  %v2055_v8 = vmax.f32 %v2015_v55, 0.0  ;;  %v5377_v6 = vmax.f32 %v13231_v50, 0.0  ;;  %v5374_v20 = vmax.f32 %v5342_v12, 0.0  ;;  %16393 = vst [vmem:[#allocation83_spill] sm:$0xff] %v13291_v56  ;;  %v16396_v12 = vld [vmem:[#allocation20_spill] sm:$0xff] }
 0x57d   : > { %v5375_v45 = vmax.f32 %v5343_v0, 0.0  ;;  %v13286_v10 = vadd.f32 %v16392_v9, %v5258_v53  ;;  %v13289_v54 = vadd.f32 %v16392_v9, %v5259_v58  ;;  %16394 = vst [vmem:[#allocation201_spill] sm:$0xff] %v13293_v62  ;;  %5551 = vmatpush.bf16.msrb.mxu0 %v5437_v51  ;;  %5600 = vmatpush.bf16.msrb.mxu1 %v5438_v48  ;;  %v16397_v39 = vmov 2   ;;  %v16398_v42 = vld [vmem:[#allocation173_spill] sm:$0xff]  ;;  %v13320_v48 = vpop.permute.xlu1 %5307  ;;  %v16417_v56 = vld [vmem:[#allocation38_spill] sm:$0xff] }
 0x57e   : > { %v5252_v16 = vmul.f32 %v16365_v2, %v16395_v40  ;;  %v5264_v50 = vmul.f32 %v16365_v2, %v13023_v18  ;;  %v2150_v0 = vmul.f32 %v16396_v12, %v2054_v41  ;;  %v2151_v53 = vmul.f32 %v16396_v12, %v2055_v8  ;;  %v13315_v51 = vld [vmem:[%s9831_s9 + $0x280] sm:$0xff]  ;;  %v13318_v8 = vpop.permute.xlu2 %5444 }
 0x57f   : > { %9355 = vset.pattern.permute.xlu2 %v16397_v39  ;;  %v13304_v9 = vmul.f32 %v16366_v34, %v16391_v60  ;;  %v5253_v58 = vmul.f32 %v16366_v34, %v16395_v40  ;;  %v13310_v29 = vadd.f32 %v12907_v1, %v16398_v42  ;;  %v5265_v55 = vmul.f32 %v16366_v34, %v13023_v18  ;;  %v16402_v1 = vld [vmem:[#allocation78_spill] sm:$0xff]  ;;  %v9541_v18 = vld [vmem:[%s9831_s9 + $0x230] sm:$0xff] }
 0x580   : > { %16400 = vst [vmem:[#allocation209_spill] sm:$0xff] %v13315_v51  ;;  %5957 = vperm.xlu2 %9355, %v13315_v51   ;;  %v13324_v60 = vadd.f32 %v12909_v22, %v16398_v42  ;;  %v13327_v41 = vadd.f32 %v13021_v46, %v5252_v16  ;;  %v2180_v40 = vadd.f32 %v2150_v0, %v16402_v1  ;;  %v16403_v12 = vld [vmem:[#allocation118_spill] sm:$0xff]  ;;  %v1868_v62 = vpop.permute.xlu0 %1867  ;;  %v16404_v42 = vld [vmem:[#allocation77_spill] sm:$0xff] }
 0x581   : > { %16399 = vst [vmem:[#allocation205_spill] sm:$0xff] %v13310_v29  ;;  %v2201_v29 = vadd.f32 %v2151_v53, %v16403_v12  ;;  %4771 = vperm.xlu0 %9397, %v9541_v18   ;;  %5775 = vperm.xlu1 %9353, %v12904_v25   ;;  %v13335_v51 = vpack.c.bf16 %v5376_v27, %v5374_v20  ;;  %v16405_v25 = vld [vmem:[#allocation108_spill] sm:$0xff]  ;;  %v16407_v27 = vld [vmem:[#allocation221_spill] sm:$0xff] }
 0x582   : > { %16401 = vst [vmem:[#allocation136_spill] sm:$0xff] %v13318_v8  ;;  %v13337_v22 = vpack.c.bf16 %v5377_v6, %v5375_v45  ;;  %v13340_v16 = vadd.f32 %v13021_v46, %v5253_v58  ;;  %v13343_v0 = vadd.f32 %v16404_v42, %v5264_v50  ;;  %v2181_v53 = vadd.f32 %v2180_v40, %v12983_v14  ;;  %v16406_v20 = vld [vmem:[#allocation220_spill] sm:$0xff]  ;;  %v16409_v14 = vld [vmem:[#allocation97_spill] sm:$0xff]  ;;  %v13393_v50 = vpop.f32.mrf.mxu3 }
 0x583   : > { %v2202_v1 = vadd.f32 %v2201_v29, %v12990_v32  ;;  %v13349_v12 = vadd.f32 %v13008_v17, %v16405_v25  ;;  %v13352_v18 = vadd.f32 %v16404_v42, %v5265_v55  ;;  %v1979_v6 = vadd.f32 %v16406_v20, %v1868_v62  ;;  %v16410_v58 = vld [vmem:[#allocation193_spill] sm:$0xff]  ;;  %v13369_v20 = vpop.f32.mrf.mxu1 }
 0x584   : > { %v2028_v45 = vadd.f32 %v16407_v27, %v1868_v62  ;;  %v13358_v46 = vadd.f32 %v13010_v36, %v16405_v25  ;;  %v2182_v32 = vadd.f32 %v2181_v53, %v16409_v14  ;;  %v5270_v17 = vmul.f32 %v16365_v2, %v13068_v44  ;;  %v13367_v62 = vpop.f32.mrf.mxu0  ;;  %v16411_v27 = vld [vmem:[#allocation249_spill] sm:$0xff] }
 0x585   : > { %v2203_v29 = vadd.f32 %v2202_v1, %v16410_v58  ;;  %v5271_v55 = vmul.f32 %v16366_v34, %v13068_v44  ;;  %v2064_v40 = vmax.f32 %v1979_v6, 0.0  ;;  %v5392_v1 = vmax.f32 %v13343_v0, 0.0  ;;  %v16413_v44 = vld [vmem:[#allocation27_spill] sm:$0xff]  ;;  %v16414_v6 = vld [vmem:[#allocation181_spill] sm:$0xff] }
 0x586   : > { %16408 = vst [vmem:[#allocation137_spill] sm:$0xff] %v13358_v46  ;;  %v2065_v42 = vmax.f32 %v2028_v45, 0.0  ;;  %v2183_v25 = vadd.f32 %v2182_v32, %v12884_v57  ;;  %v13377_v2 = vadd.f32 %v13059_v24, %v16411_v27  ;;  %v5358_v34 = vadd.f32 %v13129_v59, %v16413_v44  ;;  %v9542_v14 = vld [vmem:[%s9831_s9 + $0x298] sm:$0xff]  ;;  %v13384_v58 = vpop.permute.xlu2 %5456  ;;  %v5320_v57 = vpop.permute.xlu1 %5319  ;;  %v16416_v32 = vld [vmem:[#allocation14_spill] sm:$0xff] }
 0x587   : > { %v2204_v53 = vadd.f32 %v2203_v29, %v12893_v19  ;;  %v5359_v45 = vadd.f32 %v13129_v59, %v16414_v6  ;;  %16415 = vst [vmem:[#allocation214_spill] sm:$0xff] %v13384_v58  ;;  %v5393_v19 = vmax.f32 %v13352_v18, 0.0  ;;  %v2160_v29 = vmul.f32 %v16416_v32, %v2064_v40  ;;  %v16418_v8 = vld [vmem:[#allocation161_spill] sm:$0xff]  ;;  %v13391_v44 = vpop.f32.mrf.mxu2  ;;  %v9543_v59 = vld [vmem:[%s9831_s9 + $0x248] sm:$0xff] }
 0x588   : > { %16412 = vst [vmem:[#allocation212_spill] sm:$0xff] %v13377_v2  ;;  %5969 = vperm.xlu2 %9355, %v9542_v14   ;;  %v2161_v0 = vmul.f32 %v16416_v32, %v2065_v42  ;;  %v2184_v24 = vadd.f32 %v2183_v25, %v16417_v56  ;;  %v13398_v6 = vadd.f32 %v13061_v33, %v16411_v27  ;;  %v16420_v18 = vld [vmem:[#allocation29_spill] sm:$0xff]  ;;  %v16422_v25 = vld [vmem:[#allocation139_spill] sm:$0xff]  ;;  %v5390_v58 = vmax.f32 %v5358_v34, 0.0 }
 0x589   : > { %v2205_v36 = vadd.f32 %v2204_v53, %v16418_v8  ;;  %4783 = vperm.xlu0 %9397, %v9543_v59   ;;  %v13402_v40 = vadd.f32 %v13066_v3, %v16420_v18  ;;  %v16421_v42 = vld [vmem:[#allocation73_spill] sm:$0xff]  ;;  %9356 = vset.pattern.permute.xlu1 %v16397_v39  ;;  %v1880_v8 = vpop.permute.xlu0 %1879  ;;  %v13413_v53 = vadd.f32 %v13066_v3, %v16422_v25  ;;  %v9544_v27 = vld [vmem:[%s9831_s9 + $0x290] sm:$0xff]  ;;  %v16423_v59 = vld [vmem:[#allocation238_spill] sm:$0xff]  ;;  %v5391_v46 = vmax.f32 %v5359_v45, 0.0 }
 0x58a   : > { %16419 = vst [vmem:[#allocation218_spill] sm:$0xff] %v13398_v6  ;;  %v13405_v14 = vadd.f32 %v16421_v42, %v5270_v17  ;;  %v13408_v56 = vadd.f32 %v16421_v42, %v5271_v55  ;;  %v2185_v32 = vadd.f32 %v2184_v24, %v2160_v29  ;;  %5965 = vperm.xlu1 %9356, %v9544_v27   ;;  %v1224_v17 = vrot.slane %v13259_v11, 4  ;;  %v16424_v6 = vld [vmem:[#allocation239_spill] sm:$0xff]  ;;  %v16425_v29 = vld [vmem:[#allocation260_spill] sm:$0xff] }
 0x58b   : > { %v2206_v33 = vadd.f32 %v2205_v36, %v2161_v0  ;;  %v1986_v18 = vadd.f32 %v16423_v59, %v1880_v8  ;;  %v2035_v55 = vadd.f32 %v16424_v6, %v1880_v8  ;;  %v1245_v42 = vrot.slane %v13261_v5, 4  ;;  %v13428_v34 = vpop.f32.mrf.mxu1  ;;  %v16428_v27 = vld [vmem:[#allocation99_spill] sm:$0xff] }
 0x58c   : > { %v2186_v39 = vadd.f32 %v2185_v32, %v12993_v49  ;;  %v13424_v36 = vadd.f32 %v13118_v52, %v16425_v29  ;;  %v13426_v24 = vpop.f32.mrf.mxu0  ;;  %v5398_v45 = vmax.f32 %v13405_v14, 0.0  ;;  %v5399_v6 = vmax.f32 %v13408_v56, 0.0  ;;  %v16426_v49 = vld [vmem:[#allocation80_spill] sm:$0xff] }
 0x58d   : > { %v2207_v3 = vadd.f32 %v2206_v33, %v12996_v47  ;;  %v2070_v25 = vmax.f32 %v1986_v18, 0.0  ;;  %v2071_v0 = vmax.f32 %v2035_v55, 0.0  ;;  %v13434_v8 = vadd.f32 %v13120_v61, %v16425_v29  ;;  %v16427_v32 = vld [vmem:[#allocation24_spill] sm:$0xff]  ;;  %v13442_v55 = vld [vmem:[%s9831_s9 + $0x2a8] sm:$0xff] }
 0x58e   : > { %v2187_v33 = vadd.f32 %v2186_v39, %v16427_v32  ;;  %v1225_v59 = vadd.f32 %v1224_v17, %v13259_v11  ;;  %v13445_v14 = vpop.permute.xlu2 %5464  ;;  %v5332_v56 = vpop.permute.xlu1 %5331  ;;  %v13447_v61 = vpack.c.bf16 %v5392_v1, %v5390_v58  ;;  %v13449_v29 = vpack.c.bf16 %v5393_v19, %v5391_v46  ;;  %v9546_v32 = vld [vmem:[%s9831_s9 + $0x260] sm:$0xff] }
 0x58f   : > { %v2166_v47 = vmul.f32 %v16426_v49, %v2070_v25  ;;  %v2208_v52 = vadd.f32 %v2207_v3, %v16428_v27  ;;  %v2167_v18 = vmul.f32 %v16426_v49, %v2071_v0  ;;  %16429 = vst [vmem:[#allocation223_spill] sm:$0xff] %v13445_v14  ;;  %v16430_v25 = vld [vmem:[#allocation168_spill] sm:$0xff]  ;;  %v1246_v3 = vadd.f32 %v1245_v42, %v13261_v5  ;;  %v13455_v0 = vpop.f32.mrf.mxu2  ;;  %v13457_v49 = vpop.f32.mrf.mxu3  ;;  %v9547_v42 = vld [vmem:[%s9831_s9 + $0x2a0] sm:$0xff]  ;;  %v16433_v14 = vld [vmem:[#allocation259_spill] sm:$0xff] }
 0x590   : > { %5977 = vperm.xlu2 %9355, %v13442_v55   ;;  %v5364_v39 = vadd.f32 %v13172_v63, %v16430_v25  ;;  %v5362_v11 = vadd.f32 %v5320_v57, %v13271_v35  ;;  %v5363_v1 = vadd.f32 %v5320_v57, %v13277_v38  ;;  %v5368_v46 = vadd.f32 %v5332_v56, %v13282_v31  ;;  %v16431_v25 = vld [vmem:[#allocation44_spill] sm:$0xff] }
 0x591   : > { %v2188_v17 = vadd.f32 %v2187_v33, %v2166_v47  ;;  %4795 = vperm.xlu0 %9397, %v9546_v32   ;;  %v2209_v58 = vadd.f32 %v2208_v52, %v2167_v18  ;;  %v5369_v19 = vadd.f32 %v5332_v56, %v13304_v9  ;;  %v1892_v27 = vpop.permute.xlu0 %1891  ;;  %v5365_v5 = vadd.f32 %v13172_v63, %v16431_v25  ;;  %v16432_v47 = vld [vmem:[#allocation59_spill] sm:$0xff] }
 0x592   : > { %5973 = vperm.xlu1 %9356, %v9547_v42   ;;  %v1994_v33 = vadd.f32 %v16432_v47, %v1892_v27  ;;  %v2043_v2 = vadd.f32 %v16433_v14, %v1892_v27  ;;  %v1226_v32 = vrot.slane %v1225_v59, 2  ;;  %v5400_v57 = vmax.f32 %v5368_v46, 0.0  ;;  %v16434_v27 = vld [vmem:[#allocation75_spill] sm:$0xff] }
 0x593   : > { %v2189_v35 = vadd.f32 %v2188_v17, %v12999_v13  ;;  %v2210_v38 = vadd.f32 %v2209_v58, %v13002_v15  ;;  %v5401_v52 = vmax.f32 %v5369_v19, 0.0  ;;  %v13472_v31 = vadd.f32 %v13183_v7, %v13209_v23  ;;  %v13476_v25 = vpop.f32.mrf.mxu1  ;;  %v16435_v46 = vld [vmem:[#allocation207_spill] sm:$0xff]  ;;  %v16436_v23 = vld [vmem:[#allocation208_spill] sm:$0xff] }
 0x594   : > { %v1247_v9 = vrot.slane %v1246_v3, 2  ;;  %v2076_v18 = vmax.f32 %v1994_v33, 0.0  ;;  %v2077_v63 = vmax.f32 %v2043_v2, 0.0  ;;  %v5394_v56 = vmax.f32 %v5362_v11, 0.0  ;;  %v13474_v17 = vpop.f32.mrf.mxu0 }
 0x595   : > { %v5395_v13 = vmax.f32 %v5363_v1, 0.0  ;;  %v5435_v42 = vpack.c.bf16 %v5400_v57, %v5398_v45  ;;  %v5436_v14 = vpack.c.bf16 %v5401_v52, %v5399_v6  ;;  %v2190_v19 = vadd.f32 %v2189_v35, %v16435_v46  ;;  %v13488_v35 = vld [vmem:[%s9831_s9 + $0x2c0] sm:$0xff] }
 0x596   : > { %v2172_v15 = vmul.f32 %v16434_v27, %v2076_v18  ;;  %v2173_v58 = vmul.f32 %v16434_v27, %v2077_v63  ;;  %v2211_v47 = vadd.f32 %v2210_v38, %v16436_v23  ;;  %v5396_v33 = vmax.f32 %v5364_v39, 0.0  ;;  %v13484_v45 = vpop.permute.xlu2 %5476  ;;  %v13491_v39 = vpop.permute.xlu1 %5440  ;;  %v16439_v63 = vld [vmem:[#allocation256_spill] sm:$0xff]  ;;  %v16440_v27 = vld [vmem:[#allocation74_spill] sm:$0xff] }
 0x597   : > { %v5397_v2 = vmax.f32 %v5365_v5, 0.0  ;;  %v5347_v11 = vadd.f32 %v13183_v7, %v13213_v43  ;;  %v1227_v1 = vadd.f32 %v1226_v32, %v1225_v59  ;;  %5552 = vmatpush.bf16.msrb.mxu0 %v5435_v42  ;;  %5601 = vmatpush.bf16.msrb.mxu1 %v5436_v14  ;;  %16437 = vst [vmem:[#allocation228_spill] sm:$0xff] %v13484_v45  ;;  %v5384_v6 = vmax.f32 %v13402_v40, 0.0  ;;  %v13493_v5 = vpop.f32.mrf.mxu2  ;;  %v9549_v7 = vld [vmem:[%s9831_s9 + $0x278] sm:$0xff]  ;;  %v13500_v32 = vpop.f32.mrf.mxu3  ;;  %v16441_v46 = vld [vmem:[#allocation262_spill] sm:$0xff] }
 0x598   : > { %v1248_v57 = vadd.f32 %v1247_v9, %v1246_v3  ;;  %v2191_v52 = vadd.f32 %v2190_v19, %v2172_v15  ;;  %v2212_v18 = vadd.f32 %v2211_v47, %v2173_v58  ;;  %5989 = vperm.xlu2 %9355, %v13488_v35   ;;  %16438 = vst [vmem:[#allocation232_spill] sm:$0xff] %v13491_v39  ;;  %v5378_v14 = vmax.f32 %v13472_v31, 0.0  ;;  %v9550_v58 = vld [vmem:[%s9831_s9 + $0x2b8] sm:$0xff]  ;;  %v16442_v19 = vld [vmem:[#allocation203_spill] sm:$0xff] }
 0x599   : > { %4807 = vperm.xlu0 %9397, %v9549_v7   ;;  %v5356_v43 = vadd.f32 %v13320_v48, %v13225_v4  ;;  %v5357_v59 = vadd.f32 %v13320_v48, %v13267_v21  ;;  %v1904_v3 = vpop.permute.xlu0 %1903  ;;  %v5433_v38 = vpack.c.bf16 %v5396_v33, %v5394_v56  ;;  %v5434_v9 = vpack.c.bf16 %v5397_v2, %v5395_v13  ;;  %v16443_v13 = vld [vmem:[#allocation263_spill] sm:$0xff]  ;;  %v16444_v47 = vld [vmem:[#allocation72_spill] sm:$0xff] }
 0x59a   : > { %v13504_v42 = vadd.f32 %v13160_v28, %v16439_v63  ;;  %v2192_v15 = vadd.f32 %v2191_v52, %v16440_v27  ;;  %5985 = vperm.xlu1 %9356, %v9550_v58   ;;  %v2001_v4 = vadd.f32 %v16441_v46, %v1904_v3  ;;  %v13512_v21 = vadd.f32 %v13162_v30, %v16439_v63 }
 0x59b   : > { %v1228_v48 = vrot.slane %v1227_v1, 1  ;;  %v2213_v56 = vadd.f32 %v2212_v18, %v16442_v19  ;;  %v2050_v23 = vadd.f32 %v16443_v13, %v1904_v3  ;;  %5553 = vmatpush.bf16.msrb.mxu0 %v5433_v38  ;;  %5602 = vmatpush.bf16.msrb.mxu1 %v5434_v9  ;;  %v5379_v28 = vmax.f32 %v5347_v11, 0.0  ;;  %v13522_v18 = vpop.f32.mrf.mxu1  ;;  %v16445_v3 = vld [vmem:[#allocation178_spill] sm:$0xff]  ;;  %v16446_v38 = vld [vmem:[#allocation68_spill] sm:$0xff]  ;;  %v16447_v11 = vld [vmem:[#allocation71_spill] sm:$0xff] }
 0x59c   : > { %v5350_v31 = vadd.f32 %v13253_v26, %v13217_v37  ;;  %v5351_v33 = vadd.f32 %v13253_v26, %v16444_v47  ;;  %v2082_v2 = vmax.f32 %v2001_v4, 0.0  ;;  %v1249_v52 = vrot.slane %v1248_v57, 1  ;;  %v13520_v63 = vpop.f32.mrf.mxu0  ;;  %v16448_v37 = vld [vmem:[#allocation123_spill] sm:$0xff]  ;;  %v16450_v13 = vld [vmem:[#allocation49_spill] sm:$0xff] }
 0x59d   : > { %v5388_v7 = vmax.f32 %v5356_v43, 0.0  ;;  %v5389_v27 = vmax.f32 %v5357_v59, 0.0  ;;  %v2083_v30 = vmax.f32 %v2050_v23, 0.0  ;;  %v13526_v9 = vadd.f32 %v16446_v38, %v16445_v3 }
 0x59e   : > { %v2178_v58 = vmul.f32 %v16447_v11, %v2082_v2  ;;  %v2193_v46 = vadd.f32 %v2192_v15, %v16448_v37  ;;  %v16449_v26 = vmax.f32 %v13327_v41, 0.0  ;;  %v5385_v43 = vmax.f32 %v13413_v53, 0.0  ;;  %v13539_v47 = vpop.permute.xlu2 %5488  ;;  %v13542_v37 = vld [vmem:[%s9831_s9 + $0x2d8] sm:$0xff]  ;;  %v13545_v41 = vpop.permute.xlu1 %5452 }
 0x59f   : > { %v1229_v59 = vadd.f32 %v1228_v48, %v1227_v1  ;;  %v2179_v19 = vmul.f32 %v16447_v11, %v2083_v30  ;;  %v2214_v23 = vadd.f32 %v2213_v56, %v16450_v13  ;;  %5554 = vmatpush.bf16.msrb.mxu0 %v13447_v61  ;;  %5603 = vmatpush.bf16.msrb.mxu1 %v13449_v29  ;;  %v5382_v2 = vmax.f32 %v5350_v31, 0.0  ;;  %v13547_v53 = vpop.f32.mrf.mxu2  ;;  %v16454_v61 = vld [vmem:[#allocation209_spill] sm:$0xff]  ;;  %v13554_v31 = vpop.f32.mrf.mxu3  ;;  %v16459_v13 = vld [vmem:[#allocation267_spill] sm:$0xff] }
 0x5a0   : > { %v13532_v4 = vpack.c.bf16 %v16449_v26, %v5378_v14  ;;  %16451 = vst [vmem:[#allocation33_spill] sm:$0xff] %v13539_v47  ;;  %v5383_v38 = vmax.f32 %v5351_v33, 0.0  ;;  %v2194_v15 = vadd.f32 %v2193_v46, %v2178_v58  ;;  %6001 = vperm.xlu2 %9355, %v13542_v37   ;;  %v16453_v1 = vmax.f32 %v13340_v16, 0.0  ;;  %v16457_v46 = vld [vmem:[#allocation120_spill] sm:$0xff]  ;;  %v13700_v47 = vld [vmem:[%s9831_s9 + $0x320] sm:$0xff] }
 0x5a1   : > { %16452 = vst [vmem:[#allocation113_spill] sm:$0xff] %v13545_v41  ;;  %5715 = vperm.xlu0 %9397, %v16454_v61   ;;  %v1250_v29 = vadd.f32 %v1249_v52, %v1248_v57  ;;  %v2215_v48 = vadd.f32 %v2214_v23, %v2179_v19  ;;  %v2812_v56 = vpop.permute.xlu0 %2811  ;;  %v16455_v33 = vmax.f32 %v13286_v10, 0.0  ;;  %v16456_v11 = vmax.f32 %v13289_v54, 0.0  ;;  %v16460_v57 = vld [vmem:[#allocation268_spill] sm:$0xff]  ;;  %v16461_v19 = vld [vmem:[#allocation34_spill] sm:$0xff]  ;;  %v16462_v10 = vld [vmem:[#allocation261_spill] sm:$0xff] }
 0x5a2   : > { %v13551_v14 = vpack.c.bf16 %v16453_v1, %v5379_v28  ;;  %v13562_v26 = vadd.f32 %v16457_v46, %v16445_v3  ;;  %v2195_v16 = vrot.slane %v2194_v15, 4  ;;  %v16458_v28 = vld [vmem:[#allocation225_spill] sm:$0xff]  ;;  %v2932_v1 = vadd.f32 %v16459_v13, %v2812_v56  ;;  %16499 = vst [vmem:[#allocation117_spill] sm:$0xff] %v13700_v47 }
 0x5a3   : > { %v5429_v30 = vpack.c.bf16 %v5388_v7, %v16455_v33  ;;  %v5430_v58 = vpack.c.bf16 %v5389_v27, %v16456_v11  ;;  %5997 = vperm.xlu1 %9356, %v16458_v28   ;;  %v2981_v52 = vadd.f32 %v16460_v57, %v2812_v56  ;;  %v1256_v23 = vadd.f32 %v16461_v19, %v1229_v59  ;;  %v16463_v7 = vld [vmem:[#allocation83_spill] sm:$0xff]  ;;  %v16464_v27 = vld [vmem:[#allocation201_spill] sm:$0xff]  ;;  %v13580_v57 = vpop.f32.mrf.mxu1 }
 0x5a4   : > { %v13571_v33 = vadd.f32 %v16463_v7, %v16462_v10  ;;  %v2216_v54 = vrot.slane %v2215_v48, 4  ;;  %v13575_v3 = vadd.f32 %v16464_v27, %v16462_v10  ;;  %v2196_v11 = vadd.f32 %v2195_v16, %v2194_v15  ;;  %v13578_v59 = vpop.f32.mrf.mxu0  ;;  %v16465_v10 = vld [vmem:[#allocation86_spill] sm:$0xff] }
 0x5a5   : > { %5555 = vmatpush.bf16.msrb.mxu0 %v5429_v30  ;;  %5604 = vmatpush.bf16.msrb.mxu1 %v5430_v58  ;;  %v3020_v46 = vmax.f32 %v2932_v1, 0.0  ;;  %v3021_v28 = vmax.f32 %v2981_v52, 0.0  ;;  %v1257_v56 = vadd.f32 %v16461_v19, %v1250_v29  ;;  %v5427_v7 = vpack.c.bf16 %v5384_v6, %v5382_v2  ;;  %v16468_v2 = vld [vmem:[#allocation16_spill] sm:$0xff]  ;;  %v16474_v6 = vld [vmem:[#allocation19_spill] sm:$0xff] }
 0x5a6   : > { %v2217_v13 = vadd.f32 %v2216_v54, %v2215_v48  ;;  %v5428_v61 = vpack.c.bf16 %v5385_v43, %v5383_v38  ;;  %v2197_v58 = vrot.slane %v2196_v11, 2  ;;  %9399 = vtanh.f32 %v1256_v23  ;;  %v16466_v48 = vld [vmem:[#allocation189_spill] sm:$0xff]  ;;  %v13590_v40 = vpop.permute.xlu2 %5500  ;;  %v16469_v52 = vld [vmem:[#allocation204_spill] sm:$0xff]  ;;  %v13599_v23 = vpop.permute.xlu1 %5460 }
 0x5a7   : > { %v3116_v27 = vmul.f32 %v16465_v10, %v3020_v46  ;;  %v3117_v15 = vmul.f32 %v16465_v10, %v3021_v28  ;;  %v3900_v16 = vadd.f32 %v13391_v44, %v16466_v48  ;;  %16467 = vst [vmem:[#allocation91_spill] sm:$0xff] %v13590_v40  ;;  %v13596_v46 = vld [vmem:[%s9831_s9 + $0x2f0] sm:$0xff]  ;;  %v13601_v28 = vpop.f32.mrf.mxu2  ;;  %9401 = vtanh.f32 %v1257_v56  ;;  %v16471_v44 = vld [vmem:[#allocation258_spill] sm:$0xff]  ;;  %v13612_v10 = vpop.f32.mrf.mxu3 }
 0x5a8   : > { %v2218_v1 = vrot.slane %v2217_v13, 2  ;;  %v2198_v43 = vadd.f32 %v2197_v58, %v2196_v11  ;;  %6013 = vperm.xlu2 %9355, %v13596_v46   ;;  %16470 = vst [vmem:[#allocation115_spill] sm:$0xff] %v13599_v23  ;;  %v13610_v11 = vadd.f32 %v13393_v50, %v16466_v48  ;;  %v16477_v50 = vld [vmem:[#allocation241_spill] sm:$0xff] }
 0x5a9   : > { %5556 = vmatpush.bf16.msrb.mxu0 %v5427_v7  ;;  %5605 = vmatpush.bf16.msrb.mxu1 %v5428_v61  ;;  %v3148_v38 = vadd.f32 %v16468_v2, %v3116_v27  ;;  %v3169_v54 = vadd.f32 %v16469_v52, %v3117_v15  ;;  %v13606_v61 = vadd.f32 %v13367_v62, %v16471_v44  ;;  %v2832_v58 = vpop.permute.xlu0 %2831  ;;  %v16472_v15 = vld [vmem:[#allocation213_spill] sm:$0xff]  ;;  %v16473_v52 = vld [vmem:[#allocation40_spill] sm:$0xff]  ;;  %v3988_v29 = vmax.f32 %v3900_v16, 0.0  ;;  %v16476_v62 = vld [vmem:[#allocation94_spill] sm:$0xff] }
 0x5aa   : > { %5735 = vperm.xlu0 %9397, %v13442_v55   ;;  %v2219_v7 = vadd.f32 %v2218_v1, %v2217_v13  ;;  %v2199_v27 = vrot.slane %v2198_v43, 1  ;;  %v16475_v55 = vld [vmem:[#allocation179_spill] sm:$0xff]  ;;  %v3902_v41 = vadd.f32 %v13455_v0, %v16476_v62  ;;  %v2993_v48 = vadd.f32 %v16477_v50, %v2832_v58 }
 0x5ab   : > { %v3149_v2 = vadd.f32 %v3148_v38, %v16472_v15  ;;  %v3170_v30 = vadd.f32 %v3169_v54, %v16473_v52  ;;  %6009 = vperm.xlu1 %9356, %v16474_v6   ;;  %v2944_v56 = vadd.f32 %v16475_v55, %v2832_v58  ;;  %v16478_v38 = vld [vmem:[#allocation101_spill] sm:$0xff]  ;;  %v16479_v15 = vld [vmem:[#allocation215_spill] sm:$0xff]  ;;  %v13627_v16 = vadd.f32 %v13369_v20, %v16471_v44  ;;  %v16483_v20 = vld [vmem:[#allocation180_spill] sm:$0xff] }
 0x5ac   : > { %v2220_v23 = vrot.slane %v2219_v7, 1  ;;  %v2200_v13 = vadd.f32 %v2199_v27, %v2198_v43  ;;  %v9400_v52 = vpop.eup %9399  ;;  %v3989_v0 = vmax.f32 %v13610_v11, 0.0  ;;  %v3031_v58 = vmax.f32 %v2993_v48, 0.0  ;;  %v13630_v50 = vpop.f32.mrf.mxu0  ;;  %v16480_v43 = vld [vmem:[#allocation104_spill] sm:$0xff]  ;;  %v16484_v48 = vld [vmem:[#allocation54_spill] sm:$0xff] }
 0x5ad   : > { %5557 = vmatpush.bf16.msrb.mxu0 %v13532_v4  ;;  %5606 = vmatpush.bf16.msrb.mxu1 %v13551_v14  ;;  %v3030_v1 = vmax.f32 %v2944_v56, 0.0  ;;  %v3150_v54 = vadd.f32 %v3149_v2, %v16478_v38  ;;  %v3171_v6 = vadd.f32 %v3170_v30, %v16479_v15  ;;  %v13632_v4 = vpop.f32.mrf.mxu1  ;;  %v16481_v2 = vld [vmem:[#allocation216_spill] sm:$0xff]  ;;  %v16482_v30 = vld [vmem:[#allocation102_spill] sm:$0xff]  ;;  %v9402_v45 = vpop.eup %9401  ;;  %v13641_v44 = vadd.f32 %v13426_v24, %v16483_v20 }
 0x5ae   : > { %v2221_v55 = vadd.f32 %v2220_v23, %v2219_v7  ;;  %v2222_v14 = vadd.f32 %v2200_v13, %v16461_v19  ;;  %v9161_v15 = vld [vmem:[%s9826_s5 + $0x280] sm:$0xff]  ;;  %v3990_v23 = vmax.f32 %v3902_v41, 0.0  ;;  %v3127_v7 = vmul.f32 %v16480_v43, %v3031_v58  ;;  %v13652_v24 = vpop.permute.xlu2 %5723  ;;  %v13654_v41 = vpop.permute.xlu1 %5472 }
 0x5af   : > { %v3126_v27 = vmul.f32 %v16480_v43, %v3030_v1  ;;  %v3151_v56 = vadd.f32 %v3150_v54, %v16481_v2  ;;  %v3172_v38 = vadd.f32 %v3171_v6, %v16482_v30  ;;  %v13647_v13 = vmul.f32 %v9400_v52, %v16484_v48  ;;  %v16485_v1 = vld [vmem:[#allocation257_spill] sm:$0xff]  ;;  %16487 = vst [vmem:[#allocation87_spill] sm:$0xff] %v13652_v24  ;;  %v13666_v58 = vpop.f32.mrf.mxu2  ;;  %v13674_v30 = vpop.f32.mrf.mxu3 }
 0x5b0   : > { %v2223_v11 = vadd.f32 %v2221_v55, %v16461_v19  ;;  %v4084_v54 = vmul.f32 %v16485_v1, %v3988_v29  ;;  %9403 = vtanh.f32 %v2222_v14  ;;  %v16486_v2 = vmov 0   ;;  %16488 = vst [vmem:[#allocation162_spill] sm:$0xff] %v13654_v41  ;;  %v13663_v29 = vld [vmem:[%s9831_s9 + $0x308] sm:$0xff]  ;;  %v16489_v43 = vld [vmem:[#allocation233_spill] sm:$0xff]  ;;  %v16496_v41 = vld [vmem:[#allocation60_spill] sm:$0xff] }
 0x5b1   : > { %5558 = vmatpush.bf16.msrb.mxu0 %v13335_v51  ;;  %v3152_v6 = vadd.f32 %v3151_v56, %v3126_v27  ;;  %5607 = vmatpush.bf16.msrb.mxu1 %v13337_v22  ;;  %v13658_v55 = vadd.f32 %v13428_v34, %v16483_v20  ;;  %v3951_v51 = vadd.f32 %v13457_v49, %v16476_v62  ;;  %v2844_v22 = vpop.permute.xlu0 %2843  ;;  %v4695_v14 = vmax.f32 %v13606_v61, 0.0  ;;  %v16490_v27 = vld [vmem:[#allocation222_spill] sm:$0xff]  ;;  %v16491_v62 = vld [vmem:[#allocation224_spill] sm:$0xff] }
 0x5b2   : > { %9358 = vset.pattern.permute.xlu2 %v16486_v2  ;;  %9405 = vtanh.f32 %v2223_v11  ;;  %v3173_v52 = vadd.f32 %v3172_v38, %v3127_v7  ;;  %5747 = vperm.xlu0 %9397, %v13488_v35   ;;  %v2952_v49 = vadd.f32 %v16490_v27, %v2844_v22  ;;  %v3001_v56 = vadd.f32 %v16491_v62, %v2844_v22  ;;  %v16492_v11 = vld [vmem:[#allocation191_spill] sm:$0xff]  ;;  %v16493_v35 = vld [vmem:[#allocation234_spill] sm:$0xff] }
 0x5b3   : > { %6136 = vperm.xlu2 %9358, %v13663_v29   ;;  %v3153_v34 = vadd.f32 %v3152_v6, %v16489_v43  ;;  %9357 = vset.pattern.permute.xlu1 %v16486_v2  ;;  %v4085_v20 = vmul.f32 %v16485_v1, %v3989_v0  ;;  %v4086_v7 = vmul.f32 %v16492_v11, %v3990_v23  ;;  %v13681_v61 = vld [vmem:[%s9831_s9 + $0x300] sm:$0xff]  ;;  %v4697_v22 = vmax.f32 %v13641_v44, 0.0 }
 0x5b4   : > { %5559 = vmatmul.bf16.vlgmr.msrb.gmra.mxu0 %v9161_v15  ;;  %v3174_v24 = vadd.f32 %v3173_v52, %v16493_v35  ;;  %16494 = vst [vmem:[#allocation163_spill] sm:$0xff] %v13681_v61  ;;  %6131 = vperm.xlu1 %9357, %v13681_v61   ;;  %v1265_v6 = vmul.f32 %v9402_v45, %v16484_v48  ;;  %v3036_v43 = vmax.f32 %v2952_v49, 0.0  ;;  %v3037_v27 = vmax.f32 %v3001_v56, 0.0  ;;  %v16495_v0 = vld [vmem:[#allocation266_spill] sm:$0xff]  ;;  %v13691_v52 = vpop.f32.mrf.mxu0  ;;  %v16497_v49 = vld [vmem:[#allocation76_spill] sm:$0xff] }
 0x5b5   : > { %5608 = vmatmul.bf16.vlgmr.msrb.gmra.mxu1 %v9161_v15  ;;  %v4698_v62 = vmax.f32 %v13658_v55, 0.0  ;;  %v3991_v38 = vmax.f32 %v3951_v51, 0.0  ;;  %v4615_v23 = vadd.f32 %v13474_v17, %v16495_v0  ;;  %v4664_v1 = vadd.f32 %v13476_v25, %v16495_v0  ;;  %v13693_v35 = vpop.f32.mrf.mxu1  ;;  %v16498_v55 = vld [vmem:[#allocation23_spill] sm:$0xff]  ;;  %v16500_v0 = vld [vmem:[#allocation174_spill] sm:$0xff] }
 0x5b6   : > { %v9404_v15 = vpop.eup %9403  ;;  %v3132_v45 = vmul.f32 %v16496_v41, %v3036_v43  ;;  %v3133_v44 = vmul.f32 %v16496_v41, %v3037_v27  ;;  %v3154_v56 = vadd.f32 %v3153_v34, %v16497_v49  ;;  %v3175_v51 = vadd.f32 %v3174_v24, %v16498_v55  ;;  %v13710_v34 = vpop.permute.xlu2 %5731  ;;  %v13715_v49 = vld [vmem:[%s9831_s9 + $0x318] sm:$0xff] }
 0x5b7   : > { %v13702_v39 = vadd.f32 %v4086_v7, %v4084_v54  ;;  %v2226_v25 = vmul.f32 %v9404_v15, %v16484_v48  ;;  %v3907_v40 = vadd.f32 %v13547_v53, %v16500_v0  ;;  %v3956_v2 = vadd.f32 %v13554_v31, %v16500_v0  ;;  %16501 = vst [vmem:[#allocation93_spill] sm:$0xff] %v13710_v34  ;;  %v13712_v24 = vpop.permute.xlu1 %5484 }
 0x5b8   : > { %v9406_v17 = vpop.eup %9405  ;;  %v3155_v41 = vadd.f32 %v3154_v56, %v3132_v45  ;;  %v3176_v27 = vadd.f32 %v3175_v51, %v3133_v44  ;;  %16502 = vst [vmem:[#allocation39_spill] sm:$0xff] %v13712_v24  ;;  %v16504_v54 = vmax.f32 %v13571_v33, 0.0  ;;  %v4087_v15 = vmul.f32 %v16492_v11, %v3991_v38  ;;  %v13723_v45 = vpop.f32.mrf.mxu2  ;;  %v16505_v56 = vld [vmem:[#allocation251_spill] sm:$0xff]  ;;  %v16507_v33 = vld [vmem:[#allocation90_spill] sm:$0xff] }
 0x5b9   : > { %v2227_v43 = vmul.f32 %v9406_v17, %v16484_v48  ;;  %16503 = vst [vmem:[#allocation107_spill] sm:$0xff] %v13715_v49  ;;  %v4699_v53 = vmax.f32 %v4615_v23, 0.0  ;;  %v4700_v55 = vmax.f32 %v4664_v1, 0.0  ;;  %v2232_v61 = vrot.slane %v2226_v25, 1  ;;  %v2856_v31 = vpop.permute.xlu0 %2855  ;;  %v16506_v17 = vld [vmem:[#allocation254_spill] sm:$0xff]  ;;  %v16508_v38 = vld [vmem:[#allocation15_spill] sm:$0xff] }
 0x5ba   : > { %v13719_v7 = vpack.c.bf16 %v4695_v14, %v16504_v54  ;;  %5759 = vperm.xlu0 %9397, %v13542_v37   ;;  %v3156_v51 = vadd.f32 %v3155_v41, %v16505_v56  ;;  %v3177_v0 = vadd.f32 %v3176_v27, %v16506_v17  ;;  %v2959_v14 = vadd.f32 %v16507_v33, %v2856_v31  ;;  %v13729_v54 = vpop.f32.mrf.mxu3  ;;  %v16509_v25 = vld [vmem:[#allocation36_spill] sm:$0xff]  ;;  %v16510_v41 = vld [vmem:[#allocation37_spill] sm:$0xff] }
 0x5bb   : > { %6151 = vperm.xlu2 %9358, %v13700_v47   ;;  %v2233_v44 = vrot.slane %v2227_v43, 1  ;;  %v13733_v11 = vadd.f32 %v13520_v63, %v16508_v38  ;;  %v3994_v23 = vmax.f32 %v3907_v40, 0.0  ;;  %v3995_v1 = vmax.f32 %v3956_v2, 0.0  ;;  %v16511_v56 = vld [vmem:[#allocation84_spill] sm:$0xff] }
 0x5bc   : > { %v3008_v34 = vadd.f32 %v16509_v25, %v2856_v31  ;;  %6146 = vperm.xlu1 %9357, %v13715_v49   ;;  %v3042_v43 = vmax.f32 %v2959_v14, 0.0  ;;  %v3157_v27 = vadd.f32 %v3156_v51, %v16510_v41  ;;  %v3178_v17 = vadd.f32 %v3177_v0, %v16511_v56  ;;  %v4627_v24 = vpop.f32.mrf.mxu0  ;;  %v16512_v31 = vld [vmem:[#allocation67_spill] sm:$0xff] }
 0x5bd   : > { %v13737_v37 = vadd.f32 %v2233_v44, %v1265_v6  ;;  %v13741_v33 = vadd.f32 %v4087_v15, %v4085_v20  ;;  %v13745_v63 = vadd.f32 %v13522_v18, %v16508_v38  ;;  %v4676_v2 = vpop.f32.mrf.mxu1  ;;  %v13747_v47 = vpack.c.bf16 %v4699_v53, %v4697_v22  ;;  %v16513_v44 = vld [vmem:[#allocation63_spill] sm:$0xff] }
 0x5be   : > { %v3043_v40 = vmax.f32 %v3008_v34, 0.0  ;;  %v13751_v6 = vadd.f32 %v13578_v59, %v16512_v31  ;;  %v3138_v14 = vmul.f32 %v16513_v44, %v3042_v43  ;;  %v9162_v51 = vld [vmem:[%s9826_s5 + $0x288] sm:$0xff]  ;;  %v13755_v25 = vpack.c.bf16 %v4700_v55, %v4698_v62  ;;  %v16518_v43 = vld [vmem:[#allocation64_spill] sm:$0xff] }
 0x5bf   : > { %v13758_v20 = vadd.f32 %v2232_v61, %v13647_v13  ;;  %v13762_v18 = vadd.f32 %v13580_v57, %v16512_v31  ;;  %v16514_v34 = vld [vmem:[#allocation182_spill] sm:$0xff]  ;;  %v16515_v62 = vld [vmem:[#allocation195_spill] sm:$0xff]  ;;  %v13778_v57 = vpop.permute.xlu1 %5496  ;;  %v4677_v41 = vadd.f32 %v4676_v2, %v16518_v43  ;;  %v16526_v2 = vld [vmem:[#allocation85_spill] sm:$0xff] }
 0x5c0   : > { %v3910_v22 = vadd.f32 %v13601_v28, %v16514_v34  ;;  %v3959_v59 = vadd.f32 %v13612_v10, %v16514_v34  ;;  %v3139_v15 = vmul.f32 %v16513_v44, %v3043_v40  ;;  %v13771_v55 = vmul.f32 %v16515_v62, %v3994_v23  ;;  %16517 = vst [vmem:[#allocation270_spill] sm:$0xff] %v13778_v57  ;;  %v13784_v56 = vld [vmem:[%s9831_s9 + $0x330] sm:$0xff]  ;;  %v16520_v40 = vld [vmem:[#allocation226_spill] sm:$0xff]  ;;  %v16528_v57 = vld [vmem:[#allocation17_spill] sm:$0xff] }
 0x5c1   : > { %v13774_v13 = vmul.f32 %v16515_v62, %v3995_v1  ;;  %v3158_v61 = vadd.f32 %v3157_v27, %v3138_v14  ;;  %v13776_v0 = vpop.permute.xlu2 %5743  ;;  %v4628_v10 = vadd.f32 %v4627_v24, %v16518_v43  ;;  %16519 = vst [vmem:[#allocation237_spill] sm:$0xff] %v13784_v56  ;;  %v2868_v23 = vpop.permute.xlu0 %2867  ;;  %v16521_v44 = vld [vmem:[#allocation211_spill] sm:$0xff]  ;;  %v16523_v43 = vld [vmem:[#allocation88_spill] sm:$0xff]  ;;  %v4710_v27 = vmax.f32 %v4677_v41, 0.0  ;;  %v16531_v41 = vld [vmem:[#allocation170_spill] sm:$0xff] }
 0x5c2   : > { %16516 = vst [vmem:[#allocation124_spill] sm:$0xff] %v13776_v0  ;;  %v3179_v38 = vadd.f32 %v3178_v17, %v3139_v15  ;;  %v13787_v1 = vpop.f32.mrf.mxu2  ;;  %5771 = vperm.xlu0 %9397, %v13596_v46   ;;  %v2967_v17 = vadd.f32 %v16521_v44, %v2868_v23  ;;  %v16522_v14 = vld [vmem:[#allocation51_spill] sm:$0xff]  ;;  %v13794_v34 = vpop.f32.mrf.mxu3  ;;  %v3996_v15 = vmax.f32 %v3910_v22, 0.0  ;;  %v3997_v62 = vmax.f32 %v3959_v59, 0.0 }
 0x5c3   : > { %6161 = vperm.xlu2 %9358, %v13784_v56   ;;  %v3159_v31 = vadd.f32 %v3158_v61, %v16520_v40  ;;  %v3016_v24 = vadd.f32 %v16522_v14, %v2868_v23  ;;  %v13799_v53 = vld [vmem:[%s9831_s9 + $0x328] sm:$0xff]  ;;  %v4709_v14 = vmax.f32 %v4628_v10, 0.0 }
 0x5c4   : > { %5564 = vmatmul.bf16.gmra.mxu0 %v9162_v51  ;;  %v3180_v28 = vadd.f32 %v3179_v38, %v16523_v43  ;;  %16524 = vst [vmem:[#allocation126_spill] sm:$0xff] %v13799_v53  ;;  %6156 = vperm.xlu1 %9357, %v13799_v53   ;;  %v16525_v46 = vld [vmem:[#allocation55_spill] sm:$0xff]  ;;  %v3048_v40 = vmax.f32 %v2967_v17, 0.0  ;;  %v4629_v38 = vpop.f32.mrf.mxu0  ;;  %v16529_v53 = vld [vmem:[#allocation276_spill] sm:$0xff] }
 0x5c5   : > { %5613 = vmatmul.bf16.gmra.mxu1 %v9162_v51  ;;  %v4625_v61 = vadd.f32 %v13691_v52, %v16525_v46  ;;  %v4674_v23 = vadd.f32 %v13693_v35, %v16525_v46  ;;  %v3049_v44 = vmax.f32 %v3016_v24, 0.0  ;;  %v3160_v22 = vadd.f32 %v3159_v31, %v16526_v2  ;;  %v16527_v59 = vld [vmem:[#allocation243_spill] sm:$0xff]  ;;  %v4678_v43 = vpop.f32.mrf.mxu1  ;;  %v16530_v35 = vld [vmem:[#allocation272_spill] sm:$0xff] }
 0x5c6   : > { %v3181_v0 = vadd.f32 %v3180_v28, %v16527_v59  ;;  %v3144_v56 = vmul.f32 %v16528_v57, %v3048_v40  ;;  %v4630_v52 = vadd.f32 %v4629_v38, %v16529_v53  ;;  %v4679_v49 = vadd.f32 %v4678_v43, %v16529_v53  ;;  %v16533_v53 = vld [vmem:[#allocation152_spill] sm:$0xff]  ;;  %v13829_v38 = vld [vmem:[%s9831_s9 + $0x348] sm:$0xff] }
 0x5c7   : > { %v3145_v51 = vmul.f32 %v16528_v57, %v3049_v44  ;;  %v4623_v17 = vadd.f32 %v13630_v50, %v16530_v35  ;;  %v4672_v10 = vadd.f32 %v13632_v4, %v16530_v35  ;;  %v3912_v28 = vadd.f32 %v13666_v58, %v16531_v41 }
 0x5c8   : > { %v3961_v31 = vadd.f32 %v13674_v30, %v16531_v41  ;;  %v3161_v24 = vadd.f32 %v3160_v22, %v3144_v56  ;;  %v4711_v2 = vmax.f32 %v4630_v52, 0.0  ;;  %v4712_v46 = vmax.f32 %v4679_v49, 0.0  ;;  %v13833_v30 = vld [vmem:[%s9831_s9 + $0x310] sm:$0xff]  ;;  %v16534_v49 = vld [vmem:[#allocation245_spill] sm:$0xff] }
 0x5c9   : > { %v3182_v57 = vadd.f32 %v3181_v0, %v3145_v51  ;;  %v13820_v40 = vpop.permute.xlu2 %5755  ;;  %v13823_v44 = vmul.f32 %v16533_v53, %v3996_v15  ;;  %v13826_v50 = vmul.f32 %v16533_v53, %v3997_v62  ;;  %v4707_v59 = vmax.f32 %v4625_v61, 0.0  ;;  %v16535_v56 = vld [vmem:[#allocation79_spill] sm:$0xff]  ;;  %v3788_v62 = vpop.permute.xlu0 %3787  ;;  %v13841_v41 = vld [vmem:[%s9831_s9 + $0x340] sm:$0xff] }
 0x5ca   : > { %16532 = vst [vmem:[#allocation184_spill] sm:$0xff] %v13820_v40  ;;  %v4708_v4 = vmax.f32 %v4674_v23, 0.0  ;;  %v3919_v58 = vpop.f32.mrf.mxu2  ;;  %6691 = vperm.xlu0 %9397, %v13833_v30   ;;  %v3162_v0 = vadd.f32 %v3161_v24, %v16534_v49  ;;  %v4744_v22 = vpack.c.bf16 %v4711_v2, %v4709_v14  ;;  %v4745_v43 = vpack.c.bf16 %v4712_v46, %v4710_v27  ;;  %v3968_v51 = vpop.f32.mrf.mxu3  ;;  %v16538_v27 = vld [vmem:[#allocation186_spill] sm:$0xff]  ;;  %v9163_v40 = vld [vmem:[%s9826_s5 + $0x290] sm:$0xff] }
 0x5cb   : > { %6176 = vperm.xlu2 %9358, %v13829_v38   ;;  %v3183_v15 = vadd.f32 %v3182_v57, %v16535_v56  ;;  %v4705_v61 = vmax.f32 %v4623_v17, 0.0  ;;  %v4706_v23 = vmax.f32 %v4672_v10, 0.0  ;;  %v3905_v52 = vadd.f32 %v13493_v5, %v3788_v62  ;;  %16536 = vst [vmem:[#allocation185_spill] sm:$0xff] %v13841_v41  ;;  %v13844_v53 = vpop.permute.xlu1 %5719 }
 0x5cc   : > { %v3954_v35 = vadd.f32 %v13500_v32, %v3788_v62  ;;  %6171 = vperm.xlu1 %9357, %v13841_v41   ;;  %16537 = vst [vmem:[#allocation95_spill] sm:$0xff] %v13844_v53  ;;  %v3998_v24 = vmax.f32 %v3912_v28, 0.0  ;;  %v3999_v49 = vmax.f32 %v3961_v31, 0.0  ;;  %v3163_v57 = vrot.slane %v3162_v0, 4  ;;  %4858 = vmatpush.bf16.msra.mxu2 %v4744_v22  ;;  %v16539_v53 = vld [vmem:[#allocation166_spill] sm:$0xff] }
 0x5cd   : > { %v3184_v14 = vrot.slane %v3183_v15, 4  ;;  %4907 = vmatpush.bf16.msra.mxu3 %v4745_v43  ;;  %v3915_v17 = vadd.f32 %v13723_v45, %v16538_v27  ;;  %v3964_v5 = vadd.f32 %v13729_v54, %v16538_v27  ;;  %v3992_v32 = vmax.f32 %v3905_v52, 0.0 }
 0x5ce   : > { %v3993_v10 = vmax.f32 %v3954_v35, 0.0  ;;  %v3164_v2 = vadd.f32 %v3163_v57, %v3162_v0  ;;  %v4742_v56 = vpack.c.bf16 %v4707_v59, %v4705_v61  ;;  %v4743_v62 = vpack.c.bf16 %v4708_v4, %v4706_v23  ;;  %v16546_v57 = vld [vmem:[#allocation111_spill] sm:$0xff] }
 0x5cf   : > { %v3185_v46 = vadd.f32 %v3184_v14, %v3183_v15  ;;  %v4088_v28 = vmul.f32 %v16539_v53, %v3992_v32  ;;  %v16540_v22 = vmax.f32 %v13733_v11, 0.0  ;;  %v16541_v43 = vmax.f32 %v13751_v6, 0.0  ;;  %v16544_v15 = vld [vmem:[#allocation110_spill] sm:$0xff] }
 0x5d0   : > { %v4089_v31 = vmul.f32 %v16539_v53, %v3993_v10  ;;  %v16542_v41 = vmax.f32 %v13745_v63, 0.0  ;;  %v16543_v54 = vmax.f32 %v13762_v18, 0.0  ;;  %v4094_v59 = vmul.f32 %v16544_v15, %v3998_v24  ;;  %4859 = vmatpush.bf16.msra.mxu2 %v4742_v56  ;;  %v13868_v53 = vld [vmem:[%s9831_s9 + $0x360] sm:$0xff]  ;;  %v13882_v56 = vld [vmem:[%s9831_s9 + $0x358] sm:$0xff] }
 0x5d1   : > { %v4740_v45 = vpack.c.bf16 %v16541_v43, %v16540_v22  ;;  %v4095_v4 = vmul.f32 %v16544_v15, %v3999_v49  ;;  %v3165_v61 = vrot.slane %v3164_v2, 2  ;;  %v3186_v23 = vrot.slane %v3185_v46, 2  ;;  %v13863_v52 = vpop.permute.xlu2 %5767  ;;  %4908 = vmatpush.bf16.msra.mxu3 %v4743_v62  ;;  %v16549_v15 = vld [vmem:[#allocation198_spill] sm:$0xff] }
 0x5d2   : > { %v4741_v0 = vpack.c.bf16 %v16543_v54, %v16542_v41  ;;  %16545 = vst [vmem:[#allocation278_spill] sm:$0xff] %v13863_v52  ;;  %v4000_v11 = vmax.f32 %v3915_v17, 0.0  ;;  %v4001_v35 = vmax.f32 %v3964_v5, 0.0  ;;  %v4117_v6 = vadd.f32 %v13702_v39, %v4088_v28  ;;  %v3921_v18 = vpop.f32.mrf.mxu2  ;;  %v13872_v41 = vld [vmem:[%s9831_s9 + $0x338] sm:$0xff]  ;;  %v3808_v17 = vpop.permute.xlu0 %3807 }
 0x5d3   : > { %v4138_v63 = vadd.f32 %v13741_v33, %v4089_v31  ;;  %6191 = vperm.xlu2 %9358, %v13868_v53   ;;  %6711 = vperm.xlu0 %9397, %v13872_v41   ;;  %v3166_v24 = vadd.f32 %v3165_v61, %v3164_v2  ;;  %v3187_v49 = vadd.f32 %v3186_v23, %v3185_v46  ;;  %v3970_v39 = vpop.f32.mrf.mxu3  ;;  %v13885_v2 = vpop.permute.xlu1 %5727 }
 0x5d4   : > { %v3920_v14 = vadd.f32 %v3919_v58, %v16546_v57  ;;  %v3969_v27 = vadd.f32 %v3968_v51, %v16546_v57  ;;  %5569 = vmatmul.bf16.gmra.mxu0 %v9163_v40  ;;  %v4118_v33 = vadd.f32 %v4117_v6, %v13771_v55  ;;  %v3917_v32 = vadd.f32 %v13787_v1, %v3808_v17  ;;  %v16548_v51 = vld [vmem:[#allocation187_spill] sm:$0xff] }
 0x5d5   : > { %v4139_v5 = vadd.f32 %v4138_v63, %v13774_v13  ;;  %v3966_v10 = vadd.f32 %v13794_v34, %v3808_v17  ;;  %6186 = vperm.xlu1 %9357, %v13882_v56   ;;  %16547 = vst [vmem:[#allocation280_spill] sm:$0xff] %v13885_v2  ;;  %v3167_v58 = vrot.slane %v3166_v24, 1  ;;  %v3188_v46 = vrot.slane %v3187_v49, 1  ;;  %5618 = vmatmul.bf16.gmra.mxu1 %v9163_v40  ;;  %v16620_v2 = vld [vmem:[#allocation105_spill] sm:$0xff] }
 0x5d6   : > { %v3922_v62 = vadd.f32 %v3921_v18, %v16548_v51  ;;  %v3971_v28 = vadd.f32 %v3970_v39, %v16548_v51  ;;  %4860 = vmatpush.bf16.msra.mxu2 %v4740_v45  ;;  %v4119_v55 = vadd.f32 %v4118_v33, %v13823_v44  ;;  %v4002_v1 = vmax.f32 %v3917_v32, 0.0  ;;  %4909 = vmatpush.bf16.msra.mxu3 %v4741_v0  ;;  %v16550_v45 = vld [vmem:[#allocation156_spill] sm:$0xff] }
 0x5d7   : > { %v4140_v13 = vadd.f32 %v4139_v5, %v13826_v50  ;;  %v4003_v34 = vmax.f32 %v3966_v10, 0.0  ;;  %v3168_v31 = vadd.f32 %v3167_v58, %v3166_v24  ;;  %v3189_v22 = vadd.f32 %v3188_v46, %v3187_v49  ;;  %v13913_v58 = vld [vmem:[%s9831_s9 + $0x370] sm:$0xff] }
 0x5d8   : > { %v4004_v43 = vmax.f32 %v3920_v14, 0.0  ;;  %v4005_v54 = vmax.f32 %v3969_v27, 0.0  ;;  %v4096_v61 = vmul.f32 %v16549_v15, %v4000_v11  ;;  %v4097_v23 = vmul.f32 %v16549_v15, %v4001_v35  ;;  %v13899_v14 = vld [vmem:[%s9831_s9 + $0x378] sm:$0xff]  ;;  %v16552_v11 = vld [vmem:[#allocation11_spill] sm:$0xff] }
 0x5d9   : > { %v4120_v6 = vadd.f32 %v4119_v55, %v4094_v59  ;;  %v4141_v63 = vadd.f32 %v4140_v13, %v4095_v4  ;;  %v3190_v40 = vadd.f32 %v3168_v31, %v16461_v19  ;;  %v3191_v44 = vadd.f32 %v3189_v22, %v16461_v19 }
 0x5da   : > { %v4098_v50 = vmul.f32 %v16550_v45, %v4002_v1  ;;  %v4006_v18 = vmax.f32 %v3922_v62, 0.0  ;;  %4861 = vmatpush.bf16.msra.mxu2 %v13747_v47  ;;  %v4099_v0 = vmul.f32 %v16550_v45, %v4003_v34  ;;  %v4007_v57 = vmax.f32 %v3971_v28, 0.0  ;;  %4910 = vmatpush.bf16.msra.mxu3 %v13755_v25  ;;  %v13903_v59 = vpop.permute.xlu2 %5957  ;;  %v3924_v4 = vpop.f32.mrf.mxu2  ;;  %v16556_v62 = vld [vmem:[#allocation202_spill] sm:$0xff] }
 0x5db   : > { %v4121_v24 = vadd.f32 %v4120_v6, %v4096_v61  ;;  %v4142_v49 = vadd.f32 %v4141_v63, %v4097_v23  ;;  %6206 = vperm.xlu2 %9358, %v13899_v14   ;;  %16551 = vst [vmem:[#allocation119_spill] sm:$0xff] %v13903_v59  ;;  %9407 = vtanh.f32 %v3190_v40  ;;  %v4100_v35 = vmul.f32 %v16552_v11, %v4004_v43  ;;  %v3820_v27 = vpop.permute.xlu0 %3819  ;;  %v3973_v17 = vpop.f32.mrf.mxu3  ;;  %v16558_v23 = vld [vmem:[#allocation52_spill] sm:$0xff] }
 0x5dc   : > { %v4101_v47 = vmul.f32 %v16552_v11, %v4005_v54  ;;  %v16553_v39 = vmax.f32 %v13575_v3, 0.0  ;;  %v16554_v33 = vmax.f32 %v13627_v16, 0.0  ;;  %6731 = vperm.xlu0 %9397, %v13868_v53   ;;  %9409 = vtanh.f32 %v3191_v44  ;;  %v13916_v46 = vpop.permute.xlu1 %5739  ;;  %v16560_v44 = vld [vmem:[#allocation205_spill] sm:$0xff] }
 0x5dd   : > { %v4122_v32 = vadd.f32 %v4121_v24, %v4098_v50  ;;  %v4143_v25 = vadd.f32 %v4142_v49, %v4099_v0  ;;  %v3925_v10 = vadd.f32 %v3924_v4, %v3820_v27  ;;  %6201 = vperm.xlu1 %9357, %v13913_v58   ;;  %16555 = vst [vmem:[#allocation25_spill] sm:$0xff] %v13916_v46  ;;  %v4689_v51 = vmax.f32 %v13504_v42, 0.0  ;;  %v16562_v24 = vld [vmem:[#allocation218_spill] sm:$0xff] }
 0x5de   : > { %v4737_v5 = vpack.c.bf16 %v16554_v33, %v16553_v39  ;;  %v4690_v3 = vmax.f32 %v13512_v21, 0.0  ;;  %v4102_v16 = vmul.f32 %v16556_v62, %v4006_v18  ;;  %v3974_v28 = vadd.f32 %v3973_v17, %v3820_v27  ;;  %4862 = vmatpush.bf16.msra.mxu2 %v13719_v7  ;;  %v9164_v21 = vld [vmem:[%s9826_s5 + $0x298] sm:$0xff]  ;;  %v16566_v17 = vld [vmem:[#allocation50_spill] sm:$0xff] }
 0x5df   : > { %v4123_v55 = vadd.f32 %v4122_v32, %v4100_v35  ;;  %v4103_v13 = vmul.f32 %v16556_v62, %v4007_v57  ;;  %v4144_v1 = vadd.f32 %v4143_v25, %v4101_v47  ;;  %v4008_v34 = vmax.f32 %v3925_v10, 0.0  ;;  %v16561_v18 = vld [vmem:[#allocation212_spill] sm:$0xff] }
 0x5e0   : > { %4911 = vmatpush.bf16.msra.mxu3 %v4737_v5  ;;  %v4687_v31 = vmax.f32 %v13424_v36, 0.0  ;;  %v4688_v22 = vmax.f32 %v13434_v8, 0.0  ;;  %v4009_v43 = vmax.f32 %v3974_v28, 0.0  ;;  %v16557_v42 = vmax.f32 %v13526_v9, 0.0 }
 0x5e1   : > { %v4124_v15 = vadd.f32 %v4123_v55, %v4102_v16  ;;  %v4145_v61 = vadd.f32 %v4144_v1, %v4103_v13  ;;  %v4104_v6 = vmul.f32 %v16558_v23, %v4008_v34  ;;  %v16559_v7 = vmax.f32 %v13562_v26, 0.0  ;;  %v9408_v40 = vpop.eup %9407  ;;  %v9153_v34 = vld [vmem:[%s9826_s5 + $0x240] sm:$0xff] }
 0x5e2   : > { %v4734_v54 = vpack.c.bf16 %v16557_v42, %v4689_v51  ;;  %v4681_v45 = vmax.f32 %v16560_v44, 0.0  ;;  %v4682_v50 = vmax.f32 %v13324_v60, 0.0  ;;  %v4683_v36 = vmax.f32 %v13349_v12, 0.0  ;;  %v9410_v9 = vpop.eup %9409  ;;  %v13939_v11 = vpop.permute.xlu2 %5969  ;;  %v16565_v60 = vld [vmem:[#allocation137_spill] sm:$0xff] }
 0x5e3   : > { %v4735_v63 = vpack.c.bf16 %v16559_v7, %v4690_v3  ;;  %v4105_v8 = vmul.f32 %v16558_v23, %v4009_v43  ;;  %v4685_v0 = vmax.f32 %v16561_v18, 0.0  ;;  %v4686_v49 = vmax.f32 %v16562_v24, 0.0  ;;  %16564 = vst [vmem:[#allocation144_spill] sm:$0xff] %v13939_v11  ;;  %v3926_v35 = vpop.f32.mrf.mxu2  ;;  %v3975_v33 = vpop.f32.mrf.mxu3  ;;  %v16569_v43 = vld [vmem:[#allocation43_spill] sm:$0xff] }
 0x5e4   : > { %4863 = vmatpush.bf16.msra.mxu2 %v4734_v54  ;;  %v3194_v57 = vmul.f32 %v9408_v40, %v16484_v48  ;;  %v4125_v4 = vadd.f32 %v4124_v15, %v4104_v6  ;;  %v16563_v26 = vmov 1   ;;  %v4684_v47 = vmax.f32 %v16565_v60, 0.0  ;;  %5574 = vmatmul.bf16.gmra.mxu0 %v9164_v21  ;;  %v13947_v32 = vpop.permute.xlu1 %5751  ;;  %v16570_v54 = vld [vmem:[#allocation117_spill] sm:$0xff]  ;;  %v3832_v18 = vpop.permute.xlu0 %3831  ;;  %v9572_v11 = vld [vmem:[%s9831_s9 + $0x3c8] sm:$0xff] }
 0x5e5   : > { %9360 = vset.pattern.permute.xlu2 %v16563_v26  ;;  %4912 = vmatpush.bf16.msra.mxu3 %v4735_v63  ;;  %v3195_v12 = vmul.f32 %v9410_v9, %v16484_v48  ;;  %v4146_v27 = vadd.f32 %v4145_v61, %v4105_v8  ;;  %v3927_v39 = vadd.f32 %v3926_v35, %v16566_v17  ;;  %v13968_v6 = vld [vmem:[%s9831_s9 + $0x380] sm:$0xff]  ;;  %v16574_v63 = vld [vmem:[#allocation107_spill] sm:$0xff] }
 0x5e6   : > { %6255 = vperm.xlu2 %9360, %v13833_v30   ;;  %v3976_v5 = vadd.f32 %v3975_v33, %v16566_v17  ;;  %9359 = vset.pattern.permute.xlu1 %v16563_v26  ;;  %16567 = vst [vmem:[#allocation82_spill] sm:$0xff] %v13947_v32  ;;  %v4732_v25 = vpack.c.bf16 %v4687_v31, %v4685_v0  ;;  %v3200_v51 = vrot.slane %v3194_v57, 2  ;;  %v14158_v32 = vld [vmem:[%s9831_s9 + $0x3a8] sm:$0xff] }
 0x5e7   : > { %v4733_v10 = vpack.c.bf16 %v4688_v22, %v4686_v49  ;;  %6743 = vperm.xlu0 %9397, %v13899_v14   ;;  %v3201_v3 = vrot.slane %v3195_v12, 2  ;;  %5623 = vmatmul.bf16.gmra.mxu1 %v9164_v21  ;;  %v4010_v16 = vmax.f32 %v3927_v39, 0.0  ;;  %v4730_v13 = vpack.c.bf16 %v4683_v36, %v4681_v45  ;;  %16573 = vst [vmem:[#allocation140_spill] sm:$0xff] %v13968_v6  ;;  %v16575_v45 = vld [vmem:[#allocation206_spill] sm:$0xff]  ;;  %v16578_v12 = vld [vmem:[#allocation237_spill] sm:$0xff] }
 0x5e8   : > { %6251 = vperm.xlu1 %9359, %v13663_v29   ;;  %4864 = vmatpush.bf16.msra.mxu2 %v4732_v25  ;;  %v13952_v62 = vadd.f32 %v3200_v51, %v13758_v20  ;;  %v4011_v55 = vmax.f32 %v3976_v5, 0.0  ;;  %v4731_v1 = vpack.c.bf16 %v4684_v47, %v4682_v50  ;;  %v16571_v20 = vld [vmem:[#allocation177_spill] sm:$0xff]  ;;  %v9154_v39 = vld [vmem:[%s9826_s5 + $0x248] sm:$0xff]  ;;  %v16579_v5 = vld [vmem:[#allocation192_spill] sm:$0xff] }
 0x5e9   : > { %4913 = vmatpush.bf16.msra.mxu3 %v4733_v10  ;;  %v13955_v28 = vadd.f32 %v3201_v3, %v13737_v37  ;;  %v4106_v42 = vmul.f32 %v16569_v43, %v4010_v16  ;;  %v9165_v36 = vld [vmem:[%s9826_s5 + $0x2a0] sm:$0xff]  ;;  %v13984_v10 = vld [vmem:[%s9831_s9 + $0x350] sm:$0xff] }
 0x5ea   : > { %v13958_v31 = vpop.permute.xlu2 %5977  ;;  %v4107_v37 = vmul.f32 %v16569_v43, %v4011_v55  ;;  %v16581_v3 = vld [vmem:[#allocation109_spill] sm:$0xff] }
 0x5eb   : > { %16568 = vst [vmem:[#allocation153_spill] sm:$0xff] %v13958_v31  ;;  %v3929_v22 = vpop.f32.mrf.mxu2  ;;  %v3978_v15 = vpop.f32.mrf.mxu3  ;;  %v4126_v44 = vadd.f32 %v4125_v4, %v4106_v42 }
 0x5ec   : > { %4865 = vmatpush.bf16.msra.mxu2 %v4730_v13  ;;  %v3930_v21 = vadd.f32 %v3929_v22, %v16571_v20  ;;  %v3979_v61 = vadd.f32 %v3978_v15, %v16571_v20  ;;  %v13965_v23 = vpop.permute.xlu1 %5763  ;;  %v4147_v8 = vadd.f32 %v4146_v27, %v4107_v37  ;;  %v16583_v20 = vld [vmem:[#allocation264_spill] sm:$0xff]  ;;  %v9166_v15 = vld [vmem:[%s9826_s5 + $0x2a8] sm:$0xff] }
 0x5ed   : > { %4914 = vmatpush.bf16.msra.mxu3 %v4731_v1  ;;  %16572 = vst [vmem:[#allocation196_spill] sm:$0xff] %v13965_v23 }
 0x5ee   : > { %6263 = vperm.xlu2 %9360, %v16570_v54   ;;  %v4012_v7 = vmax.f32 %v3930_v21, 0.0  ;;  %v4013_v40 = vmax.f32 %v3979_v61, 0.0 }
 0x5ef   : > { %7651 = vperm.xlu0 %9397, %v13968_v6   ;;  %4866 = vmatmul.bf16.vlgmr.msra.gmra.mxu2 %v9153_v34 }
 0x5f0   : > { %6259 = vperm.xlu1 %9359, %v16574_v63   ;;  %4915 = vmatmul.bf16.vlgmr.msra.gmra.mxu3 %v9153_v34  ;;  %v4108_v50 = vmul.f32 %v16575_v45, %v4012_v7  ;;  %v4109_v9 = vmul.f32 %v16575_v45, %v4013_v40  ;;  %v13999_v45 = vld [vmem:[%s9831_s9 + $0x368] sm:$0xff] }
 0x5f2   : > { %v4127_v0 = vadd.f32 %v4126_v44, %v4108_v50  ;;  %v4148_v24 = vadd.f32 %v4147_v8, %v4109_v9  ;;  %v13976_v57 = vpop.permute.xlu2 %5989  ;;  %v16585_v50 = vld [vmem:[#allocation53_spill] sm:$0xff] }
 0x5f3   : > { %v3931_v49 = vpop.f32.mrf.mxu2  ;;  %16576 = vst [vmem:[#allocation42_spill] sm:$0xff] %v13976_v57  ;;  %v3980_v60 = vpop.f32.mrf.mxu3 }
 0x5f4   : > { %v3932_v35 = vadd.f32 %v3931_v49, %v3832_v18  ;;  %5579 = vmatmul.bf16.gmra.mxu0 %v9165_v36  ;;  %v3981_v4 = vadd.f32 %v3980_v60, %v3832_v18  ;;  %v13978_v47 = vpop.permute.xlu1 %5775  ;;  %v16587_v49 = vld [vmem:[#allocation210_spill] sm:$0xff] }
 0x5f5   : > { %16577 = vst [vmem:[#allocation275_spill] sm:$0xff] %v13978_v47 }
 0x5f6   : > { %6275 = vperm.xlu2 %9360, %v13872_v41   ;;  %v4014_v27 = vmax.f32 %v3932_v35, 0.0  ;;  %v4015_v17 = vmax.f32 %v3981_v4, 0.0 }
 0x5f7   : > { %5628 = vmatmul.bf16.gmra.mxu1 %v9165_v36  ;;  %7671 = vperm.xlu0 %9397, %v14158_v32  }
 0x5f8   : > { %6271 = vperm.xlu1 %9359, %v16578_v12   ;;  %v4110_v25 = vmul.f32 %v16579_v5, %v4014_v27  ;;  %v4111_v13 = vmul.f32 %v16579_v5, %v4015_v17  ;;  %v9155_v12 = vld [vmem:[%s9826_s5 + $0x250] sm:$0xff] }
 0x5f9   : > { %v16589_v5 = vld [vmem:[#allocation163_spill] sm:$0xff] }
 0x5fa   : > { %v13987_v51 = vpop.permute.xlu2 %6001  ;;  %v4128_v42 = vadd.f32 %v4127_v0, %v4110_v25  ;;  %v4149_v37 = vadd.f32 %v4148_v24, %v4111_v13  ;;  %v9167_v13 = vld [vmem:[%s9826_s5 + $0x2b0] sm:$0xff] }
 0x5fb   : > { %v3934_v33 = vpop.f32.mrf.mxu2  ;;  %16580 = vst [vmem:[#allocation122_spill] sm:$0xff] %v13987_v51  ;;  %v3983_v55 = vpop.f32.mrf.mxu3  ;;  %v8865_v51 = vld [vmem:[%s9816_s30 + $0x6] ss:$8 sm:$0x3] }
 0x5fc   : > { %v3935_v16 = vadd.f32 %v3934_v33, %v16581_v3  ;;  %v3984_v1 = vadd.f32 %v3983_v55, %v16581_v3  ;;  %v13993_v22 = vpop.permute.xlu1 %5965  ;;  %v14164_v31 = vperm.slane %v8865_v51, 0 }
 0x5fd   : > { %16582 = vst [vmem:[#allocation41_spill] sm:$0xff] %v13993_v22 }
 0x5fe   : > { %6287 = vperm.xlu2 %9360, %v13984_v10   ;;  %v4016_v34 = vmax.f32 %v3935_v16, 0.0  ;;  %v4017_v43 = vmax.f32 %v3984_v1, 0.0 }
 0x5ff   : > { %4871 = vmatmul.bf16.gmra.mxu2 %v9154_v39 }
 0x600   : > { %6283 = vperm.xlu1 %9359, %v13829_v38   ;;  %4920 = vmatmul.bf16.gmra.mxu3 %v9154_v39  ;;  %v4112_v21 = vmul.f32 %v16583_v20, %v4016_v34  ;;  %v4113_v61 = vmul.f32 %v16583_v20, %v4017_v43  ;;  %v16588_v39 = vmov 3  }
 0x602   : > { %v4129_v7 = vadd.f32 %v4128_v42, %v4112_v21  ;;  %v4150_v40 = vadd.f32 %v4149_v37, %v4113_v61  ;;  %v14002_v38 = vpop.permute.xlu2 %6013 }
 0x603   : > { %v3936_v44 = vpop.f32.mrf.mxu2  ;;  %16584 = vst [vmem:[#allocation100_spill] sm:$0xff] %v14002_v38  ;;  %v3985_v8 = vpop.f32.mrf.mxu3 }
 0x604   : > { %v3937_v36 = vadd.f32 %v3936_v44, %v16585_v50  ;;  %5584 = vmatmul.bf16.gmra.mxu0 %v9166_v15  ;;  %v3986_v9 = vadd.f32 %v3985_v8, %v16585_v50  ;;  %v14007_v0 = vpop.permute.xlu1 %5973 }
 0x605   : > { %16586 = vst [vmem:[#allocation48_spill] sm:$0xff] %v14007_v0 }
 0x606   : > { %6299 = vperm.xlu2 %9360, %v13999_v45   ;;  %v4018_v18 = vmax.f32 %v3937_v36, 0.0  ;;  %v4019_v24 = vmax.f32 %v3986_v9, 0.0 }
 0x607   : > { %5633 = vmatmul.bf16.gmra.mxu1 %v9166_v15 }
 0x608   : > { %6295 = vperm.xlu1 %9359, %v13868_v53   ;;  %v4114_v35 = vmul.f32 %v16587_v49, %v4018_v18  ;;  %v4115_v60 = vmul.f32 %v16587_v49, %v4019_v24 }
 0x60a   : > { %v4130_v4 = vadd.f32 %v4129_v7, %v4114_v35  ;;  %v4151_v27 = vadd.f32 %v4150_v40, %v4115_v60  ;;  %v9156_v40 = vld [vmem:[%s9826_s5 + $0x258] sm:$0xff] }
 0x60b   : > { %v16594_v35 = vld [vmem:[#allocation185_spill] sm:$0xff] }
 0x60c   : > { %v4131_v17 = vrot.slane %v4130_v4, 4  ;;  %v4152_v33 = vrot.slane %v4151_v27, 4  ;;  %v14017_v3 = vpop.permute.xlu1 %5985 }
 0x60d   : > { %v14014_v25 = vpop.permute.xlu2 %6136  ;;  %16590 = vst [vmem:[#allocation165_spill] sm:$0xff] %v14017_v3  ;;  %v9571_v3 = vld [vmem:[%s9831_s9 + $0x3c0] sm:$0xff] }
 0x60e   : > { %9361 = vset.pattern.permute.xlu2 %v16588_v39  ;;  %v4132_v53 = vadd.f32 %v4131_v17, %v4130_v4  ;;  %v4153_v16 = vadd.f32 %v4152_v33, %v4151_v27  ;;  %v9157_v27 = vld [vmem:[%s9826_s5 + $0x260] sm:$0xff]  ;;  %7683 = vperm.xlu0 %9397, %v9571_v3  }
 0x60f   : > { %6408 = vperm.xlu2 %9361, %v16589_v5   ;;  %4876 = vmatmul.bf16.gmra.mxu2 %v9155_v12 }
 0x610   : > { %6307 = vperm.xlu1 %9359, %v13899_v14   ;;  %4925 = vmatmul.bf16.gmra.mxu3 %v9155_v12  ;;  %v4133_v55 = vrot.slane %v4132_v53, 2  ;;  %v4154_v1 = vrot.slane %v4153_v16, 2 }
 0x612   : > { %v4134_v34 = vadd.f32 %v4133_v55, %v4132_v53  ;;  %v4155_v43 = vadd.f32 %v4154_v1, %v4153_v16  ;;  %v16601_v55 = vmov 4  }
 0x614   : > { %v4135_v42 = vrot.slane %v4134_v34, 1  ;;  %5589 = vmatmul.bf16.gmra.mxu0 %v9167_v13  ;;  %v4156_v20 = vrot.slane %v4155_v43, 1 }
 0x615   : > { %v14021_v21 = vpop.permute.xlu2 %6151  ;;  %v14024_v14 = vpop.permute.xlu1 %5997 }
 0x616   : > { %v4136_v15 = vadd.f32 %v4135_v42, %v4134_v34  ;;  %16591 = vst [vmem:[#allocation242_spill] sm:$0xff] %v14024_v14  ;;  %v4157_v37 = vadd.f32 %v4156_v20, %v4155_v43  ;;  %v14086_v34 = vld [vmem:[%s9831_s9 + $0x3f8] sm:$0xff]  ;;  %v16604_v43 = vmov 0   ;;  %v14092_v42 = vld [vmem:[%s9831_s9 + $0x3f0] sm:$0xff] }
 0x617   : > { %6420 = vperm.xlu2 %9361, %v16574_v63   ;;  %5638 = vmatmul.bf16.gmra.mxu1 %v9167_v13  ;;  %v16592_v63 = vld [vmem:[#allocation126_spill] sm:$0xff] }
 0x618   : > { %9362 = vset.pattern.permute.xlu1 %v16588_v39  ;;  %v4158_v61 = vadd.f32 %v4136_v15, %v16461_v19  ;;  %v4159_v7 = vadd.f32 %v4157_v37, %v16461_v19  ;;  %v9159_v37 = vld [vmem:[%s9826_s5 + $0x270] sm:$0xff] }
 0x619   : > { %6416 = vperm.xlu1 %9362, %v13833_v30   ;;  %v9168_v30 = vld [vmem:[%s9826_s5 + $0x2b8] sm:$0xff]  ;;  %v16622_v19 = vld [vmem:[#allocation103_spill] sm:$0xff] }
 0x61a   : > { %9411 = vtanh.f32 %v4158_v61 }
 0x61b   : > { %9413 = vtanh.f32 %v4159_v7 }
 0x61d   : > { %v14031_v44 = vpop.permute.xlu2 %6161  ;;  %v14033_v50 = vpop.permute.xlu1 %6009 }
 0x61e   : > { %16593 = vst [vmem:[#allocation129_spill] sm:$0xff] %v14033_v50  ;;  %v14147_v50 = vld [vmem:[%s9831_s9 + $0x3d8] sm:$0xff] }
 0x61f   : > { %6428 = vperm.xlu2 %9361, %v16592_v63   ;;  %4881 = vmatmul.bf16.gmra.mxu2 %v9156_v40 }
 0x620   : > { %4930 = vmatmul.bf16.gmra.mxu3 %v9156_v40  ;;  %v9412_v36 = vpop.eup %9411  ;;  %7695 = vperm.xlu0 %9397, %v14147_v50  }
 0x621   : > { %6424 = vperm.xlu1 %9362, %v16570_v54   ;;  %v9414_v8 = vpop.eup %9413  ;;  %v4162_v9 = vmul.f32 %v9412_v36, %v16484_v48 }
 0x622   : > { %v4163_v18 = vmul.f32 %v9414_v8, %v16484_v48  ;;  %v9568_v8 = vld [vmem:[%s9831_s9 + $0x3e0] sm:$0xff] }
 0x623   : > { %v4168_v24 = vrot.slane %v4162_v9, 3  ;;  %v8975_v9 = vld [vmem:[%s9831_s9 + $0x3e8] sm:$0xff] }
 0x624   : > { %v4169_v49 = vrot.slane %v4163_v18, 3  ;;  %5594 = vmatmul.bf16.gmra.mxu0 %v9168_v30 }
 0x625   : > { %v14040_v60 = vpop.permute.xlu2 %6176  ;;  %v14043_v4 = vadd.f32 %v4168_v24, %v13952_v62  ;;  %v9160_v24 = vld [vmem:[%s9826_s5 + $0x278] sm:$0xff] }
 0x626   : > { %v14046_v54 = vadd.f32 %v4169_v49, %v13955_v28  ;;  %v14049_v12 = vpop.permute.xlu1 %6131 }
 0x627   : > { %6440 = vperm.xlu2 %9361, %v16594_v35   ;;  %16595 = vst [vmem:[#allocation127_spill] sm:$0xff] %v14043_v4  ;;  %5643 = vmatmul.bf16.gmra.mxu1 %v9168_v30 }
 0x628   : > { %16596 = vst [vmem:[#allocation116_spill] sm:$0xff] %v14046_v54  ;;  %v16621_v54 = vld [vmem:[#allocation106_spill] sm:$0xff]  ;;  %7707 = vperm.xlu0 %9397, %v14092_v42  }
 0x629   : > { %6436 = vperm.xlu1 %9362, %v13872_v41   ;;  %v14176_v4 = vmul.f32 %v14164_v31, %v16621_v54 }
 0x62d   : > { %v14053_v17 = vpop.permute.xlu2 %6191 }
 0x62e   : > { %v14056_v62 = vpop.permute.xlu1 %6146 }
 0x62f   : > { %6452 = vperm.xlu2 %9361, %v13882_v56   ;;  %4886 = vmatmul.bf16.gmra.mxu2 %v9157_v27 }
 0x630   : > { %4935 = vmatmul.bf16.gmra.mxu3 %v9157_v27  ;;  %7711 = vperm.xlu0 %9397, %v14086_v34  }
 0x631   : > { %6448 = vperm.xlu1 %9362, %v13984_v10   ;;  %v14058_v33 = vpop.f32.mrf.mxu0  ;;  %v9158_v10 = vld [vmem:[%s9826_s5 + $0x268] sm:$0xff] }
 0x632   : > { %16597 = vst [vmem:[#allocation10_spill] sm:$0xff] %v14058_v33  ;;  %v14060_v28 = vpop.f32.mrf.mxu1 }
 0x633   : > { %16598 = vst [vmem:[#allocation248_spill] sm:$0xff] %v14060_v28 }
 0x635   : > { %v14063_v41 = vpop.permute.xlu2 %6206 }
 0x636   : > { %v14066_v56 = vpop.permute.xlu1 %6156 }
 0x637   : > { %6464 = vperm.xlu2 %9361, %v13913_v58  }
 0x639   : > { %6460 = vperm.xlu1 %9362, %v13999_v45   ;;  %v14068_v53 = vpop.f32.mrf.mxu0 }
 0x63a   : > { %16599 = vst [vmem:[#allocation134_spill] sm:$0xff] %v14068_v53  ;;  %v14070_v16 = vpop.f32.mrf.mxu1 }
 0x63b   : > { %16600 = vst [vmem:[#allocation255_spill] sm:$0xff] %v14070_v16 }
 0x63e   : > { %v14078_v58 = vpop.permute.xlu1 %6171 }
 0x63f   : > { %9364 = vset.pattern.permute.xlu2 %v16601_v55  ;;  %4891 = vmatmul.bf16.gmra.mxu2 %v9158_v10 }
 0x640   : > { %6687 = vperm.xlu2 %9364, %v13663_v29   ;;  %v14075_v13 = vpop.permute.xlu2 %6255  ;;  %4940 = vmatmul.bf16.gmra.mxu3 %v9158_v10  ;;  %v9569_v10 = vld [vmem:[%s9831_s9 + $0x3d0] sm:$0xff] }
 0x641   : > { %9363 = vset.pattern.permute.xlu1 %v16601_v55  ;;  %v14081_v45 = vpop.f32.mrf.mxu0 }
 0x642   : > { %6683 = vperm.xlu1 %9363, %v16589_v5   ;;  %16602 = vst [vmem:[#allocation46_spill] sm:$0xff] %v14081_v45  ;;  %v14083_v1 = vpop.f32.mrf.mxu1 }
 0x643   : > { %16603 = vst [vmem:[#allocation149_spill] sm:$0xff] %v14083_v1  ;;  %v9573_v1 = vld [vmem:[%s9831_s9 + $0x3b8] sm:$0xff] }
 0x647   : > { %v14094_v20 = vpop.permute.xlu1 %6186 }
 0x648   : > { %9366 = vset.pattern.permute.xlu2 %v16604_v43  ;;  %v14089_v29 = vpop.permute.xlu2 %6263 }
 0x649   : > { %7174 = vperm.xlu2 %9366, %v14086_v34   ;;  %v14099_v5 = vpop.f32.mrf.mxu0 }
 0x64a   : > { %9365 = vset.pattern.permute.xlu1 %v16604_v43  ;;  %16605 = vst [vmem:[#allocation151_spill] sm:$0xff] %v14099_v5  ;;  %v14101_v15 = vpop.f32.mrf.mxu1 }
 0x64b   : > { %7169 = vperm.xlu1 %9365, %v14092_v42   ;;  %16606 = vst [vmem:[#allocation32_spill] sm:$0xff] %v14101_v15 }
 0x64f   : > { %4896 = vmatmul.bf16.gmra.mxu2 %v9159_v37  ;;  %v14106_v7 = vpop.permute.xlu1 %6201 }
 0x650   : > { %v14104_v61 = vpop.permute.xlu2 %6275  ;;  %4945 = vmatmul.bf16.gmra.mxu3 %v9159_v37  ;;  %v6242_v28 = vmul.f32 %v14164_v31, %v14106_v7 }
 0x651   : > { %9368 = vset.pattern.permute.xlu2 %v16563_v26  ;;  %v14111_v40 = vpop.f32.mrf.mxu0 }
 0x652   : > { %7275 = vperm.xlu2 %9368, %v14086_v34   ;;  %16607 = vst [vmem:[#allocation148_spill] sm:$0xff] %v14111_v40  ;;  %v14114_v63 = vpop.f32.mrf.mxu1 }
 0x653   : > { %9367 = vset.pattern.permute.xlu1 %v16563_v26  ;;  %16608 = vst [vmem:[#allocation142_spill] sm:$0xff] %v14114_v63 }
 0x654   : > { %7271 = vperm.xlu1 %9367, %v14092_v42  }
 0x658   : > { %v14116_v36 = vpop.permute.xlu2 %6287 }
 0x659   : > { %v14122_v18 = vpop.f32.mrf.mxu0 }
 0x65a   : > { %v14118_v30 = vpop.permute.xlu1 %6251  ;;  %7263 = vperm.xlu2 %9368, %v9568_v8   ;;  %16610 = vst [vmem:[#allocation22_spill] sm:$0xff] %v14122_v18  ;;  %v14126_v49 = vpop.f32.mrf.mxu1 }
 0x65b   : > { %16609 = vst [vmem:[#allocation217_spill] sm:$0xff] %v14118_v30 }
 0x65c   : > { %9369 = vset.pattern.permute.xlu1 %v16604_v43  ;;  %16611 = vst [vmem:[#allocation145_spill] sm:$0xff] %v14126_v49  ;;  %v16625_v49 = vld [vmem:[#allocation62_spill] sm:$0xff] }
 0x65d   : > { %7164 = vperm.xlu1 %9369, %v8975_v9   ;;  %v6240_v40 = vmul.f32 %v14164_v31, %v16625_v49 }
 0x65f   : > { %4901 = vmatmul.bf16.gmra.mxu2 %v9160_v24 }
 0x660   : > { %4950 = vmatmul.bf16.gmra.mxu3 %v9160_v24  ;;  %v14128_v35 = vpop.permute.xlu2 %6299 }
 0x661   : > { %v14134_v37 = vpop.f32.mrf.mxu0 }
 0x662   : > { %v14130_v27 = vpop.permute.xlu1 %6259  ;;  %9371 = vset.pattern.permute.xlu2 %v16604_v43  ;;  %16612 = vst [vmem:[#allocation112_spill] sm:$0xff] %v14134_v37 }
 0x663   : > { %7149 = vperm.xlu2 %9371, %v9569_v10  }
 0x664   : > { %v14136_v8 = vpop.f32.mrf.mxu1 }
 0x665   : > { %16613 = vst [vmem:[#allocation70_spill] sm:$0xff] %v14136_v8  ;;  %9370 = vset.pattern.permute.xlu1 %v16563_v26 }
 0x666   : > { %7267 = vperm.xlu1 %9370, %v8975_v9  }
 0x669   : > { %v14142_v24 = vpop.f32.mrf.mxu0  ;;  %v14144_v38 = vpop.permute.xlu2 %6408 }
 0x66a   : > { %v14139_v47 = vpop.permute.xlu1 %6271  ;;  %16614 = vst [vmem:[#allocation47_spill] sm:$0xff] %v14142_v24  ;;  %v16631_v24 = vld [vmem:[#allocation58_spill] sm:$0xff] }
 0x66b   : > { %9372 = vset.pattern.permute.xlu2 %v16563_v26  ;;  %16615 = vst [vmem:[#allocation35_spill] sm:$0xff] %v14144_v38  ;;  %v4752_v38 = vpop.permute.xlu0 %4751 }
 0x66c   : > { %7259 = vperm.xlu2 %9372, %v14147_v50   ;;  %v14150_v52 = vpop.f32.mrf.mxu1 }
 0x66d   : > { %16616 = vst [vmem:[#allocation12_spill] sm:$0xff] %v14150_v52 }
 0x66e   : > { %7255 = vperm.xlu1 %9370, %v9569_v10   ;;  %v14169_v10 = vperm.slane %v8865_v51, 1  ;;  %v14184_v51 = vmul.f32 %v14164_v31, %v16622_v19 }
 0x670   : > { %v6245_v45 = vmul.f32 %v14169_v10, %v14063_v41 }
 0x671   : > { %v14155_v14 = vpop.f32.mrf.mxu0  ;;  %v14166_v0 = vpop.permute.xlu2 %6420 }
 0x672   : > { %v14152_v23 = vpop.permute.xlu1 %6283  ;;  %v4867_v9 = vpop.f32.mrf.mxu2  ;;  %16617 = vst [vmem:[#allocation157_spill] sm:$0xff] %v14155_v14 }
 0x673   : > { %v4916_v57 = vpop.f32.mrf.mxu3  ;;  %16619 = vst [vmem:[#allocation28_spill] sm:$0xff] %v14166_v0  ;;  %v4868_v22 = vadd.f32 %v4867_v9, %v16620_v2  ;;  %v14180_v0 = vmul.f32 %v14169_v10, %v16621_v54  ;;  %v6243_v54 = vmul.f32 %v14169_v10, %v14106_v7  ;;  %v14213_v7 = vmul.f32 %v14164_v31, %v14014_v25 }
 0x674   : > { %7247 = vperm.xlu2 %9372, %v9571_v3   ;;  %v14162_v46 = vpop.f32.mrf.mxu1  ;;  %v4917_v59 = vadd.f32 %v4916_v57, %v16620_v2  ;;  %v16623_v2 = vld [vmem:[#allocation57_spill] sm:$0xff]  ;;  %v14217_v3 = vmul.f32 %v14169_v10, %v14014_v25  ;;  %v16629_v25 = vld [vmem:[#allocation230_spill] sm:$0xff] }
 0x675   : > { %16618 = vst [vmem:[#allocation158_spill] sm:$0xff] %v14162_v46  ;;  %v6234_v57 = vmul.f32 %v14164_v31, %v16623_v2  ;;  %v4956_v16 = vmax.f32 %v4868_v22, 0.0  ;;  %v6235_v5 = vmul.f32 %v14169_v10, %v16623_v2  ;;  %v6241_v22 = vmul.f32 %v14169_v10, %v16625_v49 }
 0x676   : > { %9373 = vset.pattern.permute.xlu1 %v16604_v43  ;;  %v4957_v8 = vmax.f32 %v4917_v59, 0.0  ;;  %16627 = vst [vmem:[#allocation167_spill] sm:$0xff] %v14217_v3  ;;  %v14221_v59 = vmul.f32 %v14164_v31, %v14021_v21 }
 0x677   : > { %7144 = vperm.xlu1 %9373, %v9572_v11   ;;  %v14188_v11 = vmul.f32 %v14169_v10, %v16622_v19  ;;  %v14200_v19 = vld [vmem:[%s9831_s9 + $0x3b0] sm:$0xff]  ;;  %v5052_v14 = vmul.f32 %v16629_v25, %v4956_v16  ;;  %v6236_v16 = vmul.f32 %v14164_v31, %v14094_v20 }
 0x679   : > { %v14192_v39 = vpop.f32.mrf.mxu0 }
 0x67a   : > { %v6296_v48 = vpop.permute.xlu1 %6295  ;;  %v4869_v9 = vpop.f32.mrf.mxu2  ;;  %16624 = vst [vmem:[#allocation89_spill] sm:$0xff] %v14192_v39  ;;  %v6244_v39 = vmul.f32 %v14164_v31, %v14063_v41 }
 0x67b   : > { %v4870_v15 = vadd.f32 %v4869_v9, %v4752_v38  ;;  %v4918_v63 = vpop.f32.mrf.mxu3  ;;  %v16628_v9 = vld [vmem:[#allocation159_spill] sm:$0xff] }
 0x67c   : > { %9374 = vset.pattern.permute.xlu2 %v16604_v43  ;;  %v4919_v18 = vadd.f32 %v4918_v63, %v4752_v38  ;;  %v14206_v37 = vpop.f32.mrf.mxu1  ;;  %v6238_v38 = vmul.f32 %v14164_v31, %v14053_v17  ;;  %v6239_v63 = vmul.f32 %v14169_v10, %v14053_v17  ;;  %v6338_v52 = vadd.f32 %v16628_v9, %v6242_v28 }
 0x67d   : > { %16626 = vst [vmem:[#allocation188_spill] sm:$0xff] %v14206_v37  ;;  %7134 = vperm.xlu2 %9374, %v9573_v1   ;;  %v4958_v2 = vmax.f32 %v4870_v15, 0.0  ;;  %v6339_v46 = vadd.f32 %v16628_v9, %v6243_v54  ;;  %v14231_v15 = vpop.permute.xlu2 %6428  ;;  %v5053_v17 = vmul.f32 %v16629_v25, %v4957_v8  ;;  %v6232_v28 = vmul.f32 %v14164_v31, %v14040_v60 }
 0x67e   : > { %v4959_v49 = vmax.f32 %v4919_v18, 0.0  ;;  %16630 = vst [vmem:[#allocation199_spill] sm:$0xff] %v14231_v15  ;;  %v6334_v54 = vadd.f32 %v6296_v48, %v6238_v38  ;;  %v6370_v41 = vmax.f32 %v6338_v52, 0.0  ;;  %v6337_v38 = vadd.f32 %v14128_v35, %v6241_v22 }
 0x67f   : > { %7129 = vperm.xlu1 %9373, %v14200_v19   ;;  %v5054_v37 = vmul.f32 %v16631_v24, %v4958_v2  ;;  %v6335_v2 = vadd.f32 %v6296_v48, %v6239_v63  ;;  %v6371_v8 = vmax.f32 %v6339_v46, 0.0  ;;  %v6237_v52 = vmul.f32 %v14169_v10, %v14094_v20  ;;  %v16633_v20 = vld [vmem:[#allocation269_spill] sm:$0xff] }
 0x680   : > { %v5055_v18 = vmul.f32 %v16631_v24, %v4959_v49  ;;  %v6336_v24 = vadd.f32 %v14128_v35, %v6240_v40  ;;  %v16632_v49 = vld [vmem:[#allocation277_spill] sm:$0xff]  ;;  %v6330_v46 = vadd.f32 %v14116_v36, %v6234_v57  ;;  %v16634_v57 = vld [vmem:[#allocation154_spill] sm:$0xff] }
 0x681   : > { %v5084_v9 = vadd.f32 %v5054_v37, %v5052_v14  ;;  %v14244_v3 = vpop.f32.mrf.mxu0  ;;  %v6367_v40 = vmax.f32 %v6335_v2, 0.0 }
 0x682   : > { %v6308_v15 = vpop.permute.xlu1 %6307  ;;  %v5105_v53 = vadd.f32 %v5055_v18, %v5053_v17  ;;  %v4872_v6 = vpop.f32.mrf.mxu2  ;;  %v6369_v17 = vmax.f32 %v6337_v38, 0.0  ;;  %v6362_v2 = vmax.f32 %v6330_v46, 0.0 }
 0x683   : > { %v6340_v55 = vadd.f32 %v6308_v15, %v6244_v39  ;;  %v6341_v33 = vadd.f32 %v6308_v15, %v6245_v45  ;;  %v4873_v25 = vadd.f32 %v4872_v6, %v16632_v49  ;;  %v4921_v30 = vpop.f32.mrf.mxu3  ;;  %v6366_v45 = vmax.f32 %v6334_v54, 0.0 }
 0x684   : > { %v4922_v48 = vadd.f32 %v4921_v30, %v16632_v49  ;;  %v14251_v39 = vpop.f32.mrf.mxu1  ;;  %v6331_v30 = vadd.f32 %v14116_v36, %v6235_v5  ;;  %v6368_v15 = vmax.f32 %v6336_v24, 0.0  ;;  %v6333_v54 = vadd.f32 %v16634_v57, %v6237_v52 }
 0x685   : > { %v6372_v14 = vmax.f32 %v6340_v55, 0.0  ;;  %v6373_v37 = vmax.f32 %v6341_v33, 0.0  ;;  %9376 = vset.pattern.permute.xlu2 %v16563_v26  ;;  %v4960_v6 = vmax.f32 %v4873_v25, 0.0  ;;  %v6233_v33 = vmul.f32 %v14169_v10, %v14040_v60 }
 0x686   : > { %7243 = vperm.xlu2 %9376, %v9573_v1   ;;  %v4961_v35 = vmax.f32 %v4922_v48, 0.0  ;;  %v6230_v55 = vmul.f32 %v14164_v31, %v14078_v58  ;;  %v6332_v1 = vadd.f32 %v16634_v57, %v6236_v16  ;;  %v6231_v60 = vmul.f32 %v14169_v10, %v14078_v58 }
 0x687   : > { %v6405_v50 = vpack.c.bf16 %v6372_v14, %v6370_v41  ;;  %v6406_v63 = vpack.c.bf16 %v6373_v37, %v6371_v8  ;;  %9375 = vset.pattern.permute.xlu1 %v16563_v26  ;;  %v5056_v22 = vmul.f32 %v16633_v20, %v4960_v6  ;;  %v14270_v41 = vpop.permute.xlu2 %6440  ;;  %v6328_v36 = vadd.f32 %v14152_v23, %v6232_v28  ;;  %v16635_v14 = vld [vmem:[#allocation265_spill] sm:$0xff]  ;;  %v16636_v28 = vld [vmem:[#allocation150_spill] sm:$0xff] }
 0x688   : > { %7239 = vperm.xlu1 %9375, %v14200_v19   ;;  %v5057_v18 = vmul.f32 %v16633_v20, %v4961_v35  ;;  %v6403_v24 = vpack.c.bf16 %v6368_v15, %v6366_v45  ;;  %v6404_v49 = vpack.c.bf16 %v6369_v17, %v6367_v40  ;;  %v6223_v25 = vmul.f32 %v14169_v10, %v14021_v21  ;;  %v14300_v40 = vld [vmem:[%s9831_s9 + $0x3a0] sm:$0xff] }
 0x689   : > { %6519 = vmatpush.bf16.msra.mxu0 %v6405_v50  ;;  %6568 = vmatpush.bf16.msra.mxu1 %v6406_v63  ;;  %v14272_v5 = vadd.f32 %v5084_v9, %v5056_v22  ;;  %v6363_v58 = vmax.f32 %v6331_v30, 0.0  ;;  %v6329_v38 = vadd.f32 %v14152_v23, %v6233_v33  ;;  %v14283_v48 = vpop.f32.mrf.mxu0  ;;  %v6326_v52 = vadd.f32 %v16636_v28, %v6230_v55 }
 0x68a   : > { %v14275_v19 = vadd.f32 %v5105_v53, %v5057_v18  ;;  %v4874_v8 = vpop.f32.mrf.mxu2  ;;  %v6226_v53 = vmul.f32 %v14164_v31, %v14031_v44  ;;  %v6364_v21 = vmax.f32 %v6332_v1, 0.0  ;;  %v6227_v23 = vmul.f32 %v14169_v10, %v14031_v44 }
 0x68b   : > { %v14277_v16 = vpop.permute.xlu1 %6416  ;;  %v4875_v37 = vadd.f32 %v4874_v8, %v16635_v14  ;;  %v4923_v9 = vpop.f32.mrf.mxu3  ;;  %v14296_v6 = vmul.f32 %v14164_v31, %v14049_v12  ;;  %v6327_v42 = vadd.f32 %v16636_v28, %v6231_v60  ;;  %v6365_v50 = vmax.f32 %v6333_v54, 0.0 }
 0x68c   : > { %v4924_v46 = vadd.f32 %v4923_v9, %v16635_v14  ;;  %v14290_v45 = vpop.f32.mrf.mxu1  ;;  %v6220_v63 = vmul.f32 %v14164_v31, %v14056_v62  ;;  %v6322_v35 = vadd.f32 %v14139_v47, %v6226_v53  ;;  %v6360_v33 = vmax.f32 %v6328_v36, 0.0 }
 0x68d   : > { %6520 = vmatpush.bf16.msra.mxu0 %v6403_v24  ;;  %6569 = vmatpush.bf16.msra.mxu1 %v6404_v49  ;;  %v6401_v55 = vpack.c.bf16 %v6364_v21, %v6362_v2  ;;  %v6323_v44 = vadd.f32 %v14139_v47, %v6227_v23  ;;  %v6361_v30 = vmax.f32 %v6329_v38, 0.0  ;;  %v4962_v20 = vmax.f32 %v4875_v37, 0.0  ;;  %v16638_v38 = vld [vmem:[#allocation13_spill] sm:$0xff] }
 0x68e   : > { %7231 = vperm.xlu2 %9376, %v14300_v40   ;;  %v6402_v22 = vpack.c.bf16 %v6365_v50, %v6363_v58  ;;  %v6224_v57 = vmul.f32 %v14164_v31, %v14066_v56  ;;  %v6324_v1 = vadd.f32 %v14104_v61, %v14184_v51  ;;  %v4963_v15 = vmax.f32 %v4924_v46, 0.0 }
 0x68f   : > { %v6358_v17 = vmax.f32 %v6326_v52, 0.0  ;;  %v6225_v18 = vmul.f32 %v14169_v10, %v14066_v56  ;;  %v6318_v47 = vadd.f32 %v14089_v29, %v14221_v59  ;;  %v6325_v60 = vadd.f32 %v14104_v61, %v14188_v11  ;;  %v16637_v56 = vld [vmem:[#allocation98_spill] sm:$0xff]  ;;  %v14335_v21 = vpop.permute.xlu2 %6452 }
 0x690   : > { %9377 = vset.pattern.permute.xlu1 %v16604_v43  ;;  %v6359_v54 = vmax.f32 %v6327_v42, 0.0  ;;  %v6221_v31 = vmul.f32 %v14169_v10, %v14056_v62  ;;  %v6319_v51 = vadd.f32 %v14089_v29, %v6223_v25  ;;  %v6354_v2 = vmax.f32 %v6322_v35, 0.0  ;;  %v16639_v11 = vld [vmem:[#allocation146_spill] sm:$0xff]  ;;  %v9575_v35 = vld [vmem:[%s9831_s9 + $0x390] sm:$0xff] }
 0x691   : > { %7124 = vperm.xlu1 %9377, %v14158_v32   ;;  %6521 = vmatpush.bf16.msra.mxu0 %v6401_v55  ;;  %v6399_v24 = vpack.c.bf16 %v6360_v33, %v6358_v17  ;;  %v6355_v49 = vmax.f32 %v6323_v44, 0.0  ;;  %v5058_v58 = vmul.f32 %v16637_v56, %v4962_v20  ;;  %v14326_v37 = vpop.f32.mrf.mxu0  ;;  %v6320_v62 = vadd.f32 %v16639_v11, %v6224_v57 }
 0x692   : > { %6570 = vmatpush.bf16.msra.mxu1 %v6402_v22  ;;  %v4877_v8 = vpop.f32.mrf.mxu2  ;;  %v6400_v61 = vpack.c.bf16 %v6361_v30, %v6359_v54  ;;  %v6356_v29 = vmax.f32 %v6324_v1, 0.0  ;;  %v5059_v25 = vmul.f32 %v16637_v56, %v4963_v15  ;;  %v6321_v28 = vadd.f32 %v16639_v11, %v6225_v18  ;;  %v16640_v30 = vld [vmem:[#allocation253_spill] sm:$0xff] }
 0x693   : > { %v14322_v36 = vpop.permute.xlu1 %6424  ;;  %v4878_v59 = vadd.f32 %v4877_v8, %v16638_v38  ;;  %v4926_v14 = vpop.f32.mrf.mxu3  ;;  %v6350_v52 = vmax.f32 %v6318_v47, 0.0  ;;  %v6357_v46 = vmax.f32 %v6325_v60, 0.0  ;;  %v6351_v34 = vmax.f32 %v6319_v51, 0.0  ;;  %v16643_v8 = vld [vmem:[#allocation271_spill] sm:$0xff] }
 0x694   : > { %v4927_v9 = vadd.f32 %v4926_v14, %v16638_v38  ;;  %v14332_v53 = vpop.f32.mrf.mxu1  ;;  %v6316_v42 = vadd.f32 %v14130_v27, %v6220_v63  ;;  %v6397_v33 = vpack.c.bf16 %v6356_v29, %v6354_v2  ;;  %v6317_v55 = vadd.f32 %v14130_v27, %v6221_v31  ;;  %v16642_v2 = vld [vmem:[#allocation167_spill] sm:$0xff] }
 0x695   : > { %6522 = vmatpush.bf16.msra.mxu0 %v6399_v24  ;;  %v4964_v23 = vmax.f32 %v4878_v59, 0.0  ;;  %v5086_v44 = vadd.f32 %v14272_v5, %v5058_v58  ;;  %v6398_v22 = vpack.c.bf16 %v6357_v46, %v6355_v49  ;;  %v6314_v57 = vadd.f32 %v14075_v13, %v14176_v4  ;;  %v16641_v4 = vld [vmem:[#allocation217_spill] sm:$0xff]  ;;  %v4772_v46 = vpop.permute.xlu0 %4771 }
 0x696   : > { %6571 = vmatpush.bf16.msra.mxu1 %v6400_v61  ;;  %9379 = vset.pattern.permute.xlu2 %v16604_v43  ;;  %v4965_v50 = vmax.f32 %v4927_v9, 0.0  ;;  %v5107_v1 = vadd.f32 %v14275_v19, %v5059_v25  ;;  %v6352_v63 = vmax.f32 %v6320_v62, 0.0  ;;  %v6215_v17 = vmul.f32 %v14169_v10, %v14049_v12 }
 0x697   : > { %7109 = vperm.xlu2 %9379, %v9575_v35   ;;  %v5060_v20 = vmul.f32 %v16640_v30, %v4964_v23  ;;  %v6315_v27 = vadd.f32 %v14075_v13, %v14180_v0  ;;  %v6353_v18 = vmax.f32 %v6321_v28, 0.0  ;;  %v6312_v19 = vadd.f32 %v16641_v4, %v14213_v7  ;;  %v16645_v7 = vld [vmem:[#allocation141_spill] sm:$0xff]  ;;  %v14370_v25 = vpop.permute.xlu2 %6464 }
 0x698   : > { %v5061_v15 = vmul.f32 %v16640_v30, %v4965_v50  ;;  %v6348_v47 = vmax.f32 %v6316_v42, 0.0  ;;  %v6395_v51 = vpack.c.bf16 %v6352_v63, %v6350_v52  ;;  %v6313_v12 = vadd.f32 %v16641_v4, %v16642_v2  ;;  %v14373_v28 = vld [vmem:[%s9831_s9 + $0x398] sm:$0xff] }
 0x699   : > { %9378 = vset.pattern.permute.xlu1 %v16563_v26  ;;  %6523 = vmatpush.bf16.msra.mxu0 %v6397_v33  ;;  %v5087_v5 = vadd.f32 %v5086_v44, %v5060_v20  ;;  %v6349_v10 = vmax.f32 %v6317_v55, 0.0  ;;  %v14360_v24 = vpop.f32.mrf.mxu0  ;;  %v16644_v49 = vmov 2   ;;  %v6310_v56 = vadd.f32 %v16645_v7, %v14296_v6  ;;  %v16646_v33 = vld [vmem:[#allocation18_spill] sm:$0xff]  ;;  %v16647_v4 = vld [vmem:[#allocation96_spill] sm:$0xff] }
 0x69a   : > { %6572 = vmatpush.bf16.msra.mxu1 %v6398_v22  ;;  %7235 = vperm.xlu1 %9378, %v14158_v32   ;;  %v5108_v60 = vadd.f32 %v5107_v1, %v5061_v15  ;;  %v4879_v31 = vpop.f32.mrf.mxu2  ;;  %v6396_v32 = vpack.c.bf16 %v6353_v18, %v6351_v34  ;;  %v6346_v58 = vmax.f32 %v6314_v57, 0.0  ;;  %v6311_v14 = vadd.f32 %v16645_v7, %v6215_v17  ;;  %v9177_v57 = vld [vmem:[%s9826_s5 + $0x300] sm:$0xff]  ;;  %v16650_v7 = vld [vmem:[#allocation252_spill] sm:$0xff] }
 0x69b   : > { %v14355_v54 = vpop.permute.xlu1 %6436  ;;  %v4880_v0 = vadd.f32 %v4879_v31, %v16643_v8  ;;  %v4928_v13 = vpop.f32.mrf.mxu3  ;;  %9398 = vset.pattern.permute.xlu0 %v16644_v49  ;;  %v6347_v61 = vmax.f32 %v6315_v27, 0.0  ;;  %v6344_v11 = vmax.f32 %v6312_v19, 0.0  ;;  %v6345_v29 = vmax.f32 %v6313_v12, 0.0  ;;  %v8978_v12 = vld [vmem:[%s9816_s30 + $0x7] ss:$8 sm:$0x3] }
 0x69c   : > { %v4929_v38 = vadd.f32 %v4928_v13, %v16643_v8  ;;  %v14366_v59 = vpop.f32.mrf.mxu1  ;;  %v6393_v62 = vpack.c.bf16 %v6348_v47, %v6346_v58  ;;  %v6342_v23 = vmax.f32 %v6310_v56, 0.0  ;;  %v6343_v34 = vmax.f32 %v6311_v14, 0.0  ;;  %v16648_v47 = vld [vmem:[#allocation140_spill] sm:$0xff]  ;;  %v16649_v8 = vld [vmem:[#allocation270_spill] sm:$0xff]  ;;  %v16651_v14 = vld [vmem:[#allocation21_spill] sm:$0xff] }
 0x69d   : > { %6524 = vmatpush.bf16.msra.mxu0 %v6395_v51  ;;  %v4966_v9 = vmax.f32 %v4880_v0, 0.0  ;;  %v6394_v6 = vpack.c.bf16 %v6349_v10, %v6347_v61  ;;  %v14394_v0 = vld [vmem:[%s9831_s9 + $0x388] sm:$0xff] }
 0x69e   : > { %6573 = vmatpush.bf16.msra.mxu1 %v6396_v32  ;;  %v4967_v52 = vmax.f32 %v4929_v38, 0.0  ;;  %v6391_v50 = vpack.c.bf16 %v6344_v11, %v6342_v23  ;;  %v6392_v22 = vpack.c.bf16 %v6345_v29, %v6343_v34  ;;  %v16652_v11 = vld [vmem:[#allocation91_spill] sm:$0xff]  ;;  %v16653_v23 = vld [vmem:[#allocation232_spill] sm:$0xff]  ;;  %v16654_v34 = vld [vmem:[#allocation10_spill] sm:$0xff] }
 0x69f   : > { %9380 = vset.pattern.permute.xlu2 %v16563_v26  ;;  %v5062_v55 = vmul.f32 %v16646_v33, %v4966_v9  ;;  %v14381_v18 = vpop.permute.xlu2 %6687  ;;  %v14405_v9 = vperm.slane %v8978_v12, 0 }
 0x6a0   : > { %7227 = vperm.xlu2 %9380, %v14373_v28   ;;  %v5063_v1 = vmul.f32 %v16646_v33, %v4967_v52  ;;  %v5642_v52 = vadd.f32 %v14366_v59, %v16651_v14  ;;  %v16657_v59 = vld [vmem:[#allocation39_spill] sm:$0xff] }
 0x6a1   : > { %6525 = vmatpush.bf16.msra.mxu0 %v6393_v62  ;;  %v5595_v20 = vpop.f32.mrf.mxu0  ;;  %v5088_v27 = vadd.f32 %v5087_v5, %v5062_v55 }
 0x6a2   : > { %6574 = vmatpush.bf16.msra.mxu1 %v6394_v6  ;;  %7223 = vperm.xlu1 %9378, %v9575_v35   ;;  %v4882_v26 = vpop.f32.mrf.mxu2  ;;  %v5109_v31 = vadd.f32 %v5108_v60, %v5063_v1  ;;  %v5596_v5 = vadd.f32 %v5595_v20, %v16649_v8  ;;  %v14407_v6 = vperm.slane %v8978_v12, 1  ;;  %v5588_v1 = vadd.f32 %v14283_v48, %v16657_v59  ;;  %v16660_v48 = vld [vmem:[#allocation61_spill] sm:$0xff] }
 0x6a3   : > { %v14376_v42 = vpop.permute.xlu1 %6448  ;;  %v4883_v44 = vadd.f32 %v4882_v26, %v4772_v46  ;;  %v4931_v30 = vpop.f32.mrf.mxu3  ;;  %v14414_v26 = vadd.f32 %v16654_v34, %v16653_v23 }
 0x6a4   : > { %v4932_v15 = vadd.f32 %v4931_v30, %v4772_v46  ;;  %v5644_v63 = vpop.f32.mrf.mxu1  ;;  %v5677_v33 = vmax.f32 %v5596_v5, 0.0  ;;  %v16663_v5 = vld [vmem:[#allocation89_spill] sm:$0xff] }
 0x6a5   : > { %6526 = vmatpush.bf16.msra.mxu0 %v6391_v50  ;;  %v4968_v17 = vmax.f32 %v4883_v44, 0.0  ;;  %v5645_v60 = vadd.f32 %v5644_v63, %v16649_v8  ;;  %v16662_v8 = vld [vmem:[#allocation228_spill] sm:$0xff] }
 0x6a6   : > { %6575 = vmatpush.bf16.msra.mxu1 %v6392_v22  ;;  %v4969_v35 = vmax.f32 %v4932_v15, 0.0 }
 0x6a7   : > { %v5064_v19 = vmul.f32 %v16647_v4, %v4968_v17  ;;  %v5678_v30 = vmax.f32 %v5645_v60, 0.0  ;;  %v16664_v60 = vld [vmem:[#allocation183_spill] sm:$0xff] }
 0x6a8   : > { %6527 = vmatmul.bf16.vlgmr.msra.gmra.mxu0 %v9177_v57  ;;  %7215 = vperm.xlu2 %9380, %v16648_v47   ;;  %v5065_v51 = vmul.f32 %v16647_v4, %v4969_v35  ;;  %v14424_v35 = vld [vmem:[%s9831_s9 + $0x320] sm:$0xff]  ;;  %v14433_v47 = vpop.permute.xlu2 %7174 }
 0x6a9   : > { %6576 = vmatmul.bf16.vlgmr.msra.gmra.mxu1 %v9177_v57  ;;  %v14386_v2 = vadd.f32 %v5088_v27, %v5064_v19  ;;  %v5597_v38 = vpop.f32.mrf.mxu0  ;;  %v16656_v57 = vmov 4   ;;  %v16659_v27 = vld [vmem:[#allocation134_spill] sm:$0xff]  ;;  %v5676_v19 = vmax.f32 %v5642_v52, 0.0 }
 0x6aa   : > { %9382 = vset.pattern.permute.xlu1 %v16604_v43  ;;  %v14390_v10 = vadd.f32 %v5109_v31, %v5065_v51  ;;  %v4884_v32 = vpop.f32.mrf.mxu2  ;;  %v5593_v43 = vadd.f32 %v14360_v24, %v16651_v14  ;;  %v5598_v62 = vadd.f32 %v5597_v38, %v16652_v11  ;;  %v16655_v24 = vld [vmem:[#allocation33_spill] sm:$0xff]  ;;  %v16661_v51 = vld [vmem:[#allocation46_spill] sm:$0xff] }
 0x6ab   : > { %7104 = vperm.xlu1 %9382, %v14394_v0   ;;  %v14397_v13 = vpop.permute.xlu1 %6460  ;;  %v4885_v56 = vadd.f32 %v4884_v32, %v16650_v7  ;;  %v4933_v58 = vpop.f32.mrf.mxu3  ;;  %v5591_v50 = vadd.f32 %v14326_v37, %v16655_v24  ;;  %v5640_v44 = vadd.f32 %v14332_v53, %v16655_v24  ;;  %v16658_v37 = vld [vmem:[#allocation136_spill] sm:$0xff]  ;;  %v5637_v53 = vadd.f32 %v14290_v45, %v16657_v59  ;;  %v16665_v14 = vld [vmem:[#allocation273_spill] sm:$0xff]  ;;  %v9178_v52 = vld [vmem:[%s9826_s5 + $0x308] sm:$0xff] }
 0x6ac   : > { %v4934_v61 = vadd.f32 %v4933_v58, %v16650_v7  ;;  %v5646_v29 = vpop.f32.mrf.mxu1  ;;  %v5679_v55 = vmax.f32 %v5598_v62, 0.0  ;;  %v5675_v15 = vmax.f32 %v5593_v43, 0.0  ;;  %v14429_v4 = vadd.f32 %v16659_v27, %v16658_v37  ;;  %v16671_v27 = vld [vmem:[#allocation157_spill] sm:$0xff] }
 0x6ad   : > { %v5647_v46 = vadd.f32 %v5646_v29, %v16652_v11  ;;  %v4970_v20 = vmax.f32 %v4885_v56, 0.0  ;;  %v14437_v12 = vadd.f32 %v16661_v51, %v16660_v48  ;;  %v14441_v32 = vadd.f32 %v16663_v5, %v16662_v8 }
 0x6ae   : > { %v4971_v63 = vmax.f32 %v4934_v61, 0.0  ;;  %v5712_v17 = vpack.c.bf16 %v5679_v55, %v5677_v33  ;;  %v5586_v7 = vadd.f32 %v14244_v3, %v16664_v60  ;;  %v5673_v56 = vmax.f32 %v5591_v50, 0.0  ;;  %v16666_v61 = vld [vmem:[#allocation274_spill] sm:$0xff]  ;;  %v16667_v50 = vld [vmem:[#allocation188_spill] sm:$0xff] }
 0x6af   : > { %v5680_v22 = vmax.f32 %v5647_v46, 0.0  ;;  %v5635_v58 = vadd.f32 %v14251_v39, %v16664_v60  ;;  %v5674_v38 = vmax.f32 %v5640_v44, 0.0  ;;  %v5066_v43 = vmul.f32 %v16665_v14, %v4970_v20  ;;  %v14454_v46 = vld [vmem:[%s9831_s9 + $0x318] sm:$0xff] }
 0x6b0   : > { %9385 = vset.pattern.permute.xlu2 %v16656_v57  ;;  %5826 = vmatpush.bf16.msrb.mxu2 %v5712_v17  ;;  %v5671_v3 = vmax.f32 %v5588_v1, 0.0  ;;  %v5067_v34 = vmul.f32 %v16665_v14, %v4971_v63  ;;  %v5710_v39 = vpack.c.bf16 %v5675_v15, %v5673_v56  ;;  %v5632_v33 = vadd.f32 %v16667_v50, %v16662_v8  ;;  %v16668_v20 = vld [vmem:[#allocation92_spill] sm:$0xff]  ;;  %v16670_v17 = vld [vmem:[#allocation162_spill] sm:$0xff]  ;;  %v16673_v8 = vld [vmem:[#allocation219_spill] sm:$0xff] }
 0x6b1   : > { %6699 = vperm.xlu2 %9385, %v14424_v35   ;;  %v5713_v31 = vpack.c.bf16 %v5680_v22, %v5678_v30  ;;  %v5672_v55 = vmax.f32 %v5637_v53, 0.0  ;;  %v5711_v30 = vpack.c.bf16 %v5676_v19, %v5674_v38  ;;  %v16669_v22 = vld [vmem:[#allocation47_spill] sm:$0xff]  ;;  %v5669_v51 = vmax.f32 %v5586_v7, 0.0  ;;  %v16672_v63 = vld [vmem:[#allocation158_spill] sm:$0xff]  ;;  %v4784_v38 = vpop.permute.xlu0 %4783 }
 0x6b2   : > { %v4887_v45 = vpop.f32.mrf.mxu2  ;;  %v5578_v59 = vadd.f32 %v16669_v22, %v16668_v20  ;;  %v5630_v5 = vadd.f32 %v16672_v63, %v16670_v17  ;;  %v5670_v15 = vmax.f32 %v5635_v58, 0.0  ;;  %v5090_v60 = vadd.f32 %v14386_v2, %v5066_v43  ;;  %v14473_v14 = vld [vmem:[%s9831_s9 + $0x330] sm:$0xff] }
 0x6b3   : > { %9384 = vset.pattern.permute.xlu1 %v16656_v57  ;;  %5875 = vmatpush.bf16.msrb.mxu3 %v5713_v31  ;;  %v4888_v11 = vadd.f32 %v4887_v45, %v16666_v61  ;;  %v4936_v62 = vpop.f32.mrf.mxu3  ;;  %v5581_v31 = vadd.f32 %v16671_v27, %v16670_v17  ;;  %v5667_v19 = vmax.f32 %v14441_v32, 0.0  ;;  %v5111_v56 = vadd.f32 %v14390_v10, %v5067_v34  ;;  %v16674_v58 = vld [vmem:[#allocation12_spill] sm:$0xff]  ;;  %v16675_v32 = vld [vmem:[#allocation149_spill] sm:$0xff]  ;;  %v16676_v10 = vld [vmem:[#allocation223_spill] sm:$0xff]  ;;  %v7276_v17 = vpop.permute.xlu2 %7275 }
 0x6b4   : > { %v14450_v29 = vpop.permute.xlu1 %6683  ;;  %6695 = vperm.xlu1 %9384, %v14454_v46   ;;  %v4937_v24 = vadd.f32 %v4936_v62, %v16666_v61  ;;  %5827 = vmatpush.bf16.msrb.mxu2 %v5710_v39  ;;  %v5708_v7 = vpack.c.bf16 %v5671_v3, %v5669_v51  ;;  %v5627_v2 = vadd.f32 %v16674_v58, %v16668_v20  ;;  %v5668_v43 = vmax.f32 %v5632_v33, 0.0  ;;  %v16677_v34 = vld [vmem:[#allocation112_spill] sm:$0xff]  ;;  %v16678_v50 = vld [vmem:[#allocation115_spill] sm:$0xff]  ;;  %v16680_v20 = vld [vmem:[#allocation70_spill] sm:$0xff] }
 0x6b5   : > { %v4972_v44 = vmax.f32 %v4888_v11, 0.0  ;;  %v5709_v11 = vpack.c.bf16 %v5672_v55, %v5670_v15  ;;  %v14480_v62 = vadd.f32 %v16675_v32, %v16660_v48  ;;  %v5665_v3 = vmax.f32 %v5581_v31, 0.0  ;;  %v9581_v48 = vld [vmem:[%s9831_s9 + $0x328] sm:$0xff]  ;;  %v16684_v58 = vld [vmem:[#allocation113_spill] sm:$0xff] }
 0x6b6   : > { %v4973_v1 = vmax.f32 %v4937_v24, 0.0  ;;  %v5625_v33 = vadd.f32 %v16680_v20, %v16676_v10  ;;  %v5666_v22 = vmax.f32 %v5630_v5, 0.0  ;;  %v16681_v51 = vld [vmem:[#allocation214_spill] sm:$0xff]  ;;  %v5663_v31 = vmax.f32 %v5578_v59, 0.0 }
 0x6b7   : > { %v5068_v53 = vmul.f32 %v16673_v8, %v4972_v44  ;;  %5876 = vmatpush.bf16.msrb.mxu3 %v5711_v30  ;;  %v16679_v44 = vld [vmem:[#allocation22_spill] sm:$0xff]  ;;  %v7213_v20 = vmul.f32 %v14407_v6, %v14433_v47 }
 0x6b8   : > { %6532 = vmatmul.bf16.gmra.mxu0 %v9178_v52  ;;  %v5069_v45 = vmul.f32 %v16673_v8, %v4973_v1  ;;  %5828 = vmatpush.bf16.msrb.mxu2 %v5708_v7  ;;  %v5573_v30 = vadd.f32 %v16679_v44, %v16678_v50  ;;  %v16682_v1 = vld [vmem:[#allocation148_spill] sm:$0xff]  ;;  %v5706_v8 = vpack.c.bf16 %v5667_v19, %v5665_v3 }
 0x6b9   : > { %6581 = vmatmul.bf16.gmra.mxu1 %v9178_v52  ;;  %6707 = vperm.xlu2 %9385, %v14473_v14   ;;  %v5091_v61 = vadd.f32 %v5090_v60, %v5068_v53  ;;  %v5576_v52 = vadd.f32 %v16677_v34, %v16676_v10  ;;  %v5571_v63 = vadd.f32 %v16682_v1, %v16681_v51  ;;  %v16683_v53 = vld [vmem:[#allocation145_spill] sm:$0xff]  ;;  %v16686_v10 = vld [vmem:[#allocation142_spill] sm:$0xff]  ;;  %v16687_v3 = vld [vmem:[#allocation176_spill] sm:$0xff] }
 0x6ba   : > { %v5112_v24 = vadd.f32 %v5111_v56, %v5069_v45  ;;  %v4889_v39 = vpop.f32.mrf.mxu2  ;;  %v5622_v56 = vadd.f32 %v16683_v53, %v16678_v50  ;;  %v5664_v45 = vmax.f32 %v5627_v2, 0.0  ;;  %v5707_v5 = vpack.c.bf16 %v5668_v43, %v5666_v22  ;;  %v16688_v2 = vld [vmem:[#allocation32_spill] sm:$0xff] }
 0x6bb   : > { %5877 = vmatpush.bf16.msrb.mxu3 %v5709_v11  ;;  %v4890_v55 = vadd.f32 %v4889_v39, %v4784_v38  ;;  %v4938_v27 = vpop.f32.mrf.mxu3  ;;  %v16685_v11 = vld [vmem:[#allocation151_spill] sm:$0xff]  ;;  %v5620_v34 = vadd.f32 %v16686_v10, %v16681_v51  ;;  %v5661_v39 = vmax.f32 %v5576_v52, 0.0  ;;  %v5659_v59 = vmax.f32 %v5573_v30, 0.0 }
 0x6bc   : > { %6703 = vperm.xlu1 %9384, %v9581_v48   ;;  %v4939_v15 = vadd.f32 %v4938_v27, %v4784_v38  ;;  %v5568_v32 = vadd.f32 %v16685_v11, %v16684_v58  ;;  %5829 = vmatpush.bf16.msrb.mxu2 %v5706_v8  ;;  %v5662_v38 = vmax.f32 %v5625_v33, 0.0  ;;  %v7212_v19 = vmul.f32 %v14405_v9, %v14433_v47  ;;  %v14506_v52 = vld [vmem:[%s9831_s9 + $0x348] sm:$0xff]  ;;  %v9179_v11 = vld [vmem:[%s9826_s5 + $0x310] sm:$0xff] }
 0x6bd   : > { %v7170_v60 = vpop.permute.xlu1 %7169  ;;  %v4974_v7 = vmax.f32 %v4890_v55, 0.0  ;;  %v5617_v43 = vadd.f32 %v16688_v2, %v16684_v58  ;;  %v5704_v55 = vpack.c.bf16 %v5663_v31, %v5661_v39  ;;  %v5657_v30 = vmax.f32 %v5571_v63, 0.0  ;;  %v16689_v51 = vld [vmem:[#allocation255_spill] sm:$0xff] }
 0x6be   : > { %v4975_v44 = vmax.f32 %v4939_v15, 0.0  ;;  %v5660_v33 = vmax.f32 %v5622_v56, 0.0  ;;  %v5705_v48 = vpack.c.bf16 %v5664_v45, %v5662_v38  ;;  %v14511_v1 = vadd.f32 %v16689_v51, %v16658_v37  ;;  %v16691_v38 = vld [vmem:[#allocation248_spill] sm:$0xff] }
 0x6bf   : > { %v5070_v50 = vmul.f32 %v16687_v3, %v4974_v7  ;;  %5878 = vmatpush.bf16.msrb.mxu3 %v5707_v5  ;;  %v5653_v15 = vmax.f32 %v14437_v12, 0.0  ;;  %v5655_v47 = vmax.f32 %v5568_v32, 0.0  ;;  %v5658_v53 = vmax.f32 %v5620_v34, 0.0  ;;  %v16690_v5 = vld [vmem:[#allocation244_spill] sm:$0xff]  ;;  %v14524_v34 = vpop.permute.xlu2 %7263 }
 0x6c0   : > { %v5071_v22 = vmul.f32 %v16687_v3, %v4975_v44  ;;  %5830 = vmatpush.bf16.msrb.mxu2 %v5704_v55  ;;  %v7308_v7 = vadd.f32 %v7276_v17, %v7212_v19  ;;  %v5702_v56 = vpack.c.bf16 %v5659_v59, %v5657_v30  ;;  %v7309_v37 = vadd.f32 %v7276_v17, %v7213_v20  ;;  %v16692_v20 = vld [vmem:[#allocation65_spill] sm:$0xff] }
 0x6c1   : > { %6719 = vperm.xlu2 %9385, %v14506_v52   ;;  %v5092_v27 = vadd.f32 %v5091_v61, %v5070_v50  ;;  %v14517_v61 = vld [vmem:[%s9831_s9 + $0x340] sm:$0xff]  ;;  %v7210_v45 = vmul.f32 %v14405_v9, %v7170_v60  ;;  %v7211_v12 = vmul.f32 %v14407_v6, %v7170_v60  ;;  %v5654_v32 = vmax.f32 %v14480_v62, 0.0 }
 0x6c2   : > { %v5113_v8 = vadd.f32 %v5112_v24, %v5071_v22  ;;  %v4892_v31 = vpop.f32.mrf.mxu2  ;;  %v5656_v10 = vmax.f32 %v5617_v43, 0.0  ;;  %v5703_v59 = vpack.c.bf16 %v5660_v33, %v5658_v53  ;;  %v5610_v19 = vadd.f32 %v16691_v38, %v16653_v23  ;;  %v14532_v23 = vld [vmem:[%s9831_s9 + $0x358] sm:$0xff] }
 0x6c3   : > { %5879 = vmatpush.bf16.msrb.mxu3 %v5705_v48  ;;  %v4893_v63 = vadd.f32 %v4892_v31, %v16690_v5  ;;  %v4941_v58 = vpop.f32.mrf.mxu3  ;;  %v5651_v60 = vmax.f32 %v14429_v4, 0.0  ;;  %v7340_v2 = vmax.f32 %v7308_v7, 0.0  ;;  %v5700_v62 = vpack.c.bf16 %v5655_v47, %v5653_v15  ;;  %v16695_v38 = vld [vmem:[#allocation132_spill] sm:$0xff] }
 0x6c4   : > { %6715 = vperm.xlu1 %9384, %v14517_v61   ;;  %v4942_v24 = vadd.f32 %v4941_v58, %v16690_v5  ;;  %5831 = vmatpush.bf16.msrb.mxu2 %v5702_v56  ;;  %v7341_v43 = vmax.f32 %v7309_v37, 0.0  ;;  %v5652_v48 = vmax.f32 %v14511_v1, 0.0  ;;  %v5701_v51 = vpack.c.bf16 %v5656_v10, %v5654_v32  ;;  %v9169_v37 = vld [vmem:[%s9826_s5 + $0x2c0] sm:$0xff]  ;;  %v4796_v32 = vpop.permute.xlu0 %4795  ;;  %v14542_v10 = vld [vmem:[%s9831_s9 + $0x370] sm:$0xff] }
 0x6c5   : > { %v4976_v39 = vmax.f32 %v4893_v63, 0.0  ;;  %v5649_v31 = vmax.f32 %v14414_v26, 0.0  ;;  %v5650_v5 = vmax.f32 %v5610_v19, 0.0  ;;  %v16693_v63 = vld [vmem:[#allocation66_spill] sm:$0xff] }
 0x6c6   : > { %v7272_v44 = vpop.permute.xlu1 %7271  ;;  %v4977_v3 = vmax.f32 %v4942_v24, 0.0 }
 0x6c7   : > { %v7306_v17 = vadd.f32 %v7272_v44, %v7210_v45  ;;  %v7307_v50 = vadd.f32 %v7272_v44, %v7211_v12  ;;  %v5072_v22 = vmul.f32 %v16692_v20, %v4976_v39  ;;  %5880 = vmatpush.bf16.msrb.mxu3 %v5703_v59  ;;  %v7150_v26 = vpop.permute.xlu2 %7149  ;;  %v16694_v44 = vld [vmem:[#allocation56_spill] sm:$0xff] }
 0x6c8   : > { %6537 = vmatmul.bf16.gmra.mxu0 %v9179_v11  ;;  %v5073_v55 = vmul.f32 %v16692_v20, %v4977_v3  ;;  %5832 = vmatpush.bf16.msrb.mxu2 %v5700_v62  ;;  %v7206_v59 = vmul.f32 %v14405_v9, %v16694_v44  ;;  %v7207_v20 = vmul.f32 %v14407_v6, %v16694_v44 }
 0x6c9   : > { %v7338_v30 = vmax.f32 %v7306_v17, 0.0  ;;  %v7339_v33 = vmax.f32 %v7307_v50, 0.0  ;;  %6586 = vmatmul.bf16.gmra.mxu1 %v9179_v11  ;;  %6727 = vperm.xlu2 %9385, %v14532_v23   ;;  %v5093_v4 = vadd.f32 %v5092_v27, %v5072_v22  ;;  %v9585_v11 = vld [vmem:[%s9831_s9 + $0x350] sm:$0xff]  ;;  %v5698_v27 = vpack.c.bf16 %v5651_v60, %v5649_v31  ;;  %v9180_v60 = vld [vmem:[%s9826_s5 + $0x318] sm:$0xff] }
 0x6ca   : > { %v5114_v53 = vadd.f32 %v5113_v8, %v5073_v55  ;;  %v4894_v47 = vpop.f32.mrf.mxu2  ;;  %v5699_v8 = vpack.c.bf16 %v5652_v48, %v5650_v5  ;;  %v7302_v62 = vadd.f32 %v14524_v34, %v7206_v59  ;;  %v7303_v55 = vadd.f32 %v14524_v34, %v7207_v20 }
 0x6cb   : > { %v7373_v7 = vpack.c.bf16 %v7340_v2, %v7338_v30  ;;  %v7374_v15 = vpack.c.bf16 %v7341_v43, %v7339_v33  ;;  %5881 = vmatpush.bf16.msrb.mxu3 %v5701_v51  ;;  %v4895_v58 = vadd.f32 %v4894_v47, %v16693_v63  ;;  %v4943_v56 = vpop.f32.mrf.mxu3  ;;  %v9587_v2 = vld [vmem:[%s9831_s9 + $0x368] sm:$0xff] }
 0x6cc   : > { %6723 = vperm.xlu1 %9384, %v9585_v11   ;;  %v4944_v1 = vadd.f32 %v4943_v56, %v16693_v63  ;;  %5833 = vmatpush.bf16.msrb.mxu2 %v5698_v27  ;;  %v7334_v34 = vmax.f32 %v7302_v62, 0.0  ;;  %v7335_v27 = vmax.f32 %v7303_v55, 0.0 }
 0x6cd   : > { %7487 = vmatpush.bf16.msrb.mxu0 %v7373_v7  ;;  %7536 = vmatpush.bf16.msrb.mxu1 %v7374_v15  ;;  %v4978_v12 = vmax.f32 %v4895_v58, 0.0  ;;  %v16696_v15 = vld [vmem:[#allocation250_spill] sm:$0xff] }
 0x6ce   : > { %v4979_v24 = vmax.f32 %v4944_v1, 0.0  ;;  %v9588_v1 = vld [vmem:[%s9831_s9 + $0x308] sm:$0xff] }
 0x6cf   : > { %v7165_v45 = vpop.permute.xlu1 %7164  ;;  %5882 = vmatpush.bf16.msrb.mxu3 %v5699_v8  ;;  %5834 = vmatmul.bf16.vlgmr.msrb.gmra.mxu2 %v9169_v37  ;;  %v5074_v19 = vmul.f32 %v16695_v38, %v4978_v12  ;;  %v7260_v51 = vpop.permute.xlu2 %7259 }
 0x6d0   : > { %v5075_v3 = vmul.f32 %v16695_v38, %v4979_v24  ;;  %v7208_v30 = vmul.f32 %v14405_v9, %v7165_v45  ;;  %v7209_v33 = vmul.f32 %v14407_v6, %v7165_v45  ;;  %v16697_v45 = vld [vmem:[#allocation125_spill] sm:$0xff]  ;;  %v16698_v24 = vld [vmem:[#allocation235_spill] sm:$0xff] }
 0x6d1   : > { %6739 = vperm.xlu2 %9385, %v14542_v10   ;;  %v5094_v31 = vadd.f32 %v5093_v4, %v5074_v19  ;;  %v7204_v12 = vmul.f32 %v14405_v9, %v16697_v45  ;;  %v7205_v44 = vmul.f32 %v14407_v6, %v16697_v45 }
 0x6d2   : > { %5883 = vmatmul.bf16.vlgmr.msrb.gmra.mxu3 %v9169_v37  ;;  %v4897_v39 = vpop.f32.mrf.mxu2  ;;  %v5115_v7 = vadd.f32 %v5114_v53, %v5075_v3  ;;  %v9589_v3 = vld [vmem:[%s9831_s9 + $0x300] sm:$0xff] }
 0x6d3   : > { %v4898_v17 = vadd.f32 %v4897_v39, %v4796_v32  ;;  %v4946_v50 = vpop.f32.mrf.mxu3  ;;  %v7301_v20 = vadd.f32 %v7260_v51, %v7205_v44 }
 0x6d4   : > { %6735 = vperm.xlu1 %9384, %v9587_v2   ;;  %v4947_v22 = vadd.f32 %v4946_v50, %v4796_v32  ;;  %v9170_v50 = vld [vmem:[%s9826_s5 + $0x2c8] sm:$0xff]  ;;  %v7300_v2 = vadd.f32 %v7260_v51, %v7204_v12  ;;  %v14584_v12 = vld [vmem:[%s9831_s9 + $0x3f0] sm:$0xff] }
 0x6d5   : > { %v4980_v43 = vmax.f32 %v4898_v17, 0.0  ;;  %v7202_v17 = vmul.f32 %v14405_v9, %v7150_v26 }
 0x6d6   : > { %v4981_v48 = vmax.f32 %v4947_v22, 0.0 }
 0x6d7   : > { %v5076_v47 = vmul.f32 %v16696_v15, %v4980_v43 }
 0x6d8   : > { %6542 = vmatmul.bf16.gmra.mxu0 %v9180_v60  ;;  %v7268_v5 = vpop.permute.xlu1 %7267  ;;  %v5077_v63 = vmul.f32 %v16696_v15, %v4981_v48  ;;  %v16699_v48 = vmov 3  }
 0x6d9   : > { %6591 = vmatmul.bf16.gmra.mxu1 %v9180_v60  ;;  %v7304_v58 = vadd.f32 %v7268_v5, %v7208_v30  ;;  %v7305_v56 = vadd.f32 %v7268_v5, %v7209_v33  ;;  %9387 = vset.pattern.permute.xlu2 %v16644_v49  ;;  %v5095_v11 = vadd.f32 %v5094_v31, %v5076_v47  ;;  %v7248_v33 = vpop.permute.xlu2 %7247  ;;  %v7332_v31 = vmax.f32 %v7300_v2, 0.0  ;;  %v14574_v47 = vld [vmem:[%s9831_s9 + $0x3f8] sm:$0xff]  ;;  %v4808_v2 = vpop.permute.xlu0 %4807 }
 0x6da   : > { %6929 = vperm.xlu2 %9387, %v9588_v1   ;;  %v5116_v4 = vadd.f32 %v5115_v7, %v5077_v63  ;;  %v4899_v37 = vpop.f32.mrf.mxu2  ;;  %v7203_v60 = vmul.f32 %v14407_v6, %v7150_v26  ;;  %v7333_v7 = vmax.f32 %v7301_v20, 0.0  ;;  %v16700_v5 = vld [vmem:[#allocation69_spill] sm:$0xff] }
 0x6db   : > { %v7336_v53 = vmax.f32 %v7304_v58, 0.0  ;;  %v7337_v8 = vmax.f32 %v7305_v56, 0.0  ;;  %v4900_v32 = vadd.f32 %v4899_v37, %v16698_v24  ;;  %v4948_v39 = vpop.f32.mrf.mxu3  ;;  %v16701_v58 = vld [vmem:[#allocation45_spill] sm:$0xff] }
 0x6dc   : > { %9386 = vset.pattern.permute.xlu1 %v16644_v49  ;;  %v4949_v59 = vadd.f32 %v4948_v39, %v16698_v24  ;;  %v9181_v1 = vld [vmem:[%s9826_s5 + $0x320] sm:$0xff]  ;;  %v16702_v24 = vld [vmem:[#allocation128_spill] sm:$0xff] }
 0x6dd   : > { %v7371_v38 = vpack.c.bf16 %v7336_v53, %v7334_v34  ;;  %v7372_v19 = vpack.c.bf16 %v7337_v8, %v7335_v27  ;;  %6925 = vperm.xlu1 %9386, %v9589_v3   ;;  %v4982_v22 = vmax.f32 %v4900_v32, 0.0  ;;  %v7198_v32 = vmul.f32 %v14405_v9, %v16702_v24 }
 0x6de   : > { %v4983_v43 = vmax.f32 %v4949_v59, 0.0  ;;  %v7199_v44 = vmul.f32 %v14407_v6, %v16702_v24 }
 0x6df   : > { %7488 = vmatpush.bf16.msrb.mxu0 %v7371_v38  ;;  %7537 = vmatpush.bf16.msrb.mxu1 %v7372_v19  ;;  %v5078_v63 = vmul.f32 %v16700_v5, %v4982_v22  ;;  %v16703_v38 = vld [vmem:[#allocation31_spill] sm:$0xff]  ;;  %v7294_v3 = vadd.f32 %v7248_v33, %v7198_v32 }
 0x6e0   : > { %v7256_v62 = vpop.permute.xlu1 %7255  ;;  %5839 = vmatmul.bf16.gmra.mxu2 %v9170_v50  ;;  %v5079_v27 = vmul.f32 %v16700_v5, %v4983_v43  ;;  %v7295_v20 = vadd.f32 %v7248_v33, %v7199_v44 }
 0x6e1   : > { %v7298_v55 = vadd.f32 %v7256_v62, %v7202_v17  ;;  %v7299_v30 = vadd.f32 %v7256_v62, %v7203_v60  ;;  %v5096_v59 = vadd.f32 %v5095_v11, %v5078_v63  ;;  %v7135_v22 = vpop.permute.xlu2 %7134 }
 0x6e2   : > { %9389 = vset.pattern.permute.xlu2 %v16699_v48  ;;  %5888 = vmatmul.bf16.gmra.mxu3 %v9170_v50  ;;  %v4902_v51 = vpop.f32.mrf.mxu2  ;;  %v5117_v17 = vadd.f32 %v5116_v4, %v5079_v27  ;;  %v16704_v4 = vld [vmem:[#allocation164_spill] sm:$0xff]  ;;  %v7327_v5 = vmax.f32 %v7295_v20, 0.0 }
 0x6e3   : > { %v7330_v15 = vmax.f32 %v7298_v55, 0.0  ;;  %v7331_v26 = vmax.f32 %v7299_v30, 0.0  ;;  %7436 = vperm.xlu2 %9389, %v14574_v47   ;;  %v4903_v56 = vadd.f32 %v4902_v51, %v16701_v58  ;;  %v4951_v34 = vpop.f32.mrf.mxu3  ;;  %v14616_v20 = vld [vmem:[%s9831_s9 + $0x3d8] sm:$0xff] }
 0x6e4   : > { %v4952_v53 = vadd.f32 %v4951_v34, %v16701_v58  ;;  %v9171_v34 = vld [vmem:[%s9826_s5 + $0x2d0] sm:$0xff] }
 0x6e5   : > { %v7369_v8 = vpack.c.bf16 %v7332_v31, %v7330_v15  ;;  %v7370_v37 = vpack.c.bf16 %v7333_v7, %v7331_v26  ;;  %9388 = vset.pattern.permute.xlu1 %v16699_v48  ;;  %v4984_v45 = vmax.f32 %v4903_v56, 0.0  ;;  %v14596_v48 = vld [vmem:[%s9831_s9 + $0x3e8] sm:$0xff]  ;;  %v7326_v26 = vmax.f32 %v7294_v3, 0.0 }
 0x6e6   : > { %7432 = vperm.xlu1 %9388, %v14584_v12   ;;  %v4985_v39 = vmax.f32 %v4952_v53, 0.0  ;;  %v16705_v53 = vld [vmem:[#allocation229_spill] sm:$0xff]  ;;  %v9182_v3 = vld [vmem:[%s9826_s5 + $0x328] sm:$0xff] }
 0x6e7   : > { %7489 = vmatpush.bf16.msrb.mxu0 %v7369_v8  ;;  %7538 = vmatpush.bf16.msrb.mxu1 %v7370_v37  ;;  %v5080_v19 = vmul.f32 %v16703_v38, %v4984_v45 }
 0x6e8   : > { %6547 = vmatmul.bf16.gmra.mxu0 %v9181_v1  ;;  %v5081_v50 = vmul.f32 %v16703_v38, %v4985_v39 }
 0x6e9   : > { %6596 = vmatmul.bf16.gmra.mxu1 %v9181_v1  ;;  %v7145_v60 = vpop.permute.xlu1 %7144  ;;  %v5097_v62 = vadd.f32 %v5096_v59, %v5080_v19  ;;  %v14603_v1 = vld [vmem:[%s9831_s9 + $0x3e0] sm:$0xff]  ;;  %v7196_v59 = vmul.f32 %v14405_v9, %v7135_v22  ;;  %v7244_v38 = vpop.permute.xlu2 %7243 }
 0x6ea   : > { %v7200_v43 = vmul.f32 %v14405_v9, %v7145_v60  ;;  %v7201_v55 = vmul.f32 %v14407_v6, %v7145_v60  ;;  %v5118_v11 = vadd.f32 %v5117_v17, %v5081_v50  ;;  %v4904_v30 = vpop.f32.mrf.mxu2  ;;  %v14611_v17 = vld [vmem:[%s9831_s9 + $0x3c0] sm:$0xff]  ;;  %v7197_v50 = vmul.f32 %v14407_v6, %v7135_v22 }
 0x6eb   : > { %7428 = vperm.xlu2 %9389, %v14596_v48   ;;  %v4905_v15 = vadd.f32 %v4904_v30, %v4808_v2  ;;  %v4953_v33 = vpop.f32.mrf.mxu3 }
 0x6ec   : > { %v7296_v31 = vadd.f32 %v16704_v4, %v7200_v43  ;;  %v7297_v7 = vadd.f32 %v16704_v4, %v7201_v55  ;;  %v4954_v51 = vadd.f32 %v4953_v33, %v4808_v2  ;;  %v7292_v43 = vadd.f32 %v7244_v38, %v7196_v59 }
 0x6ed   : > { %v4986_v56 = vmax.f32 %v4905_v15, 0.0 }
 0x6ee   : > { %v7328_v63 = vmax.f32 %v7296_v31, 0.0  ;;  %v7329_v58 = vmax.f32 %v7297_v7, 0.0  ;;  %7424 = vperm.xlu1 %9388, %v14603_v1   ;;  %v4987_v27 = vmax.f32 %v4954_v51, 0.0  ;;  %v7324_v51 = vmax.f32 %v7292_v43, 0.0 }
 0x6ef   : > { %v5082_v8 = vmul.f32 %v16705_v53, %v4986_v56 }
 0x6f0   : > { %v7367_v37 = vpack.c.bf16 %v7328_v63, %v7326_v26  ;;  %v7368_v45 = vpack.c.bf16 %v7329_v58, %v7327_v5  ;;  %v5083_v24 = vmul.f32 %v16705_v53, %v4987_v27  ;;  %5844 = vmatmul.bf16.gmra.mxu2 %v9171_v34  ;;  %v14622_v63 = vld [vmem:[%s9831_s9 + $0x3b0] sm:$0xff] }
 0x6f1   : > { %v7130_v32 = vpop.permute.xlu1 %7129  ;;  %v5098_v39 = vadd.f32 %v5097_v62, %v5082_v8  ;;  %v7232_v53 = vpop.permute.xlu2 %7231 }
 0x6f2   : > { %7490 = vmatpush.bf16.msrb.mxu0 %v7367_v37  ;;  %v5119_v44 = vadd.f32 %v5118_v11, %v5083_v24  ;;  %5893 = vmatmul.bf16.gmra.mxu3 %v9171_v34  ;;  %v7293_v11 = vadd.f32 %v7244_v38, %v7197_v50  ;;  %v7194_v4 = vmul.f32 %v14405_v9, %v7130_v32  ;;  %v9172_v37 = vld [vmem:[%s9826_s5 + $0x2d8] sm:$0xff]  ;;  %v14634_v50 = vld [vmem:[%s9831_s9 + $0x3a8] sm:$0xff] }
 0x6f3   : > { %7539 = vmatpush.bf16.msrb.mxu1 %v7368_v45  ;;  %v5099_v19 = vrot.slane %v5098_v39, 4  ;;  %7408 = vperm.xlu2 %9389, %v14611_v17   ;;  %v7195_v31 = vmul.f32 %v14407_v6, %v7130_v32  ;;  %v14627_v45 = vld [vmem:[%s9831_s9 + $0x3c8] sm:$0xff] }
 0x6f4   : > { %v5120_v60 = vrot.slane %v5119_v44, 4  ;;  %v7325_v58 = vmax.f32 %v7293_v11, 0.0 }
 0x6f5   : > { %v5100_v2 = vadd.f32 %v5099_v19, %v5098_v39 }
 0x6f6   : > { %7420 = vperm.xlu1 %9388, %v14616_v20   ;;  %v5121_v62 = vadd.f32 %v5120_v60, %v5119_v44  ;;  %v16706_v44 = vld [vmem:[#allocation34_spill] sm:$0xff] }
 0x6f7   : > { %v5101_v55 = vrot.slane %v5100_v2, 2 }
 0x6f8   : > { %6552 = vmatmul.bf16.gmra.mxu0 %v9182_v3  ;;  %v5122_v30 = vrot.slane %v5121_v62, 2 }
 0x6f9   : > { %6601 = vmatmul.bf16.gmra.mxu1 %v9182_v3  ;;  %v5102_v22 = vadd.f32 %v5101_v55, %v5100_v2  ;;  %v9183_v3 = vld [vmem:[%s9826_s5 + $0x330] sm:$0xff]  ;;  %v7110_v60 = vpop.permute.xlu2 %7109 }
 0x6fa   : > { %v7240_v7 = vpop.permute.xlu1 %7239  ;;  %v5123_v15 = vadd.f32 %v5122_v30, %v5121_v62  ;;  %v16707_v62 = vld [vmem:[#allocation131_spill] sm:$0xff]  ;;  %v16708_v30 = vld [vmem:[#allocation54_spill] sm:$0xff] }
 0x6fb   : > { %v7290_v33 = vadd.f32 %v7240_v7, %v7194_v4  ;;  %v7291_v26 = vadd.f32 %v7240_v7, %v7195_v31  ;;  %v5103_v5 = vrot.slane %v5102_v22, 1  ;;  %7400 = vperm.xlu2 %9389, %v14622_v63   ;;  %v7190_v43 = vmul.f32 %v14405_v9, %v16707_v62 }
 0x6fc   : > { %v5124_v56 = vrot.slane %v5123_v15, 1  ;;  %v7191_v11 = vmul.f32 %v14407_v6, %v16707_v62 }
 0x6fd   : > { %v7322_v34 = vmax.f32 %v7290_v33, 0.0  ;;  %v7323_v27 = vmax.f32 %v7291_v26, 0.0  ;;  %v5104_v8 = vadd.f32 %v5103_v5, %v5102_v22  ;;  %v7286_v31 = vadd.f32 %v7232_v53, %v7190_v43 }
 0x6fe   : > { %7412 = vperm.xlu1 %9388, %v14627_v45   ;;  %v5125_v24 = vadd.f32 %v5124_v56, %v5123_v15  ;;  %v7287_v7 = vadd.f32 %v7232_v53, %v7191_v11  ;;  %v16710_v53 = vld [vmem:[#allocation116_spill] sm:$0xff] }
 0x6ff   : > { %v7365_v32 = vpack.c.bf16 %v7324_v51, %v7322_v34  ;;  %v7366_v39 = vpack.c.bf16 %v7325_v58, %v7323_v27  ;;  %v5126_v59 = vadd.f32 %v5104_v8, %v16706_v44  ;;  %v14647_v51 = vld [vmem:[%s9831_s9 + $0x380] sm:$0xff]  ;;  %v16709_v34 = vld [vmem:[#allocation127_spill] sm:$0xff] }
 0x700   : > { %v5127_v38 = vadd.f32 %v5125_v24, %v16706_v44  ;;  %5849 = vmatmul.bf16.gmra.mxu2 %v9172_v37  ;;  %v9173_v8 = vld [vmem:[%s9826_s5 + $0x2e0] sm:$0xff]  ;;  %v7318_v24 = vmax.f32 %v7286_v31, 0.0 }
 0x701   : > { %7491 = vmatpush.bf16.msrb.mxu0 %v7365_v32  ;;  %7540 = vmatpush.bf16.msrb.mxu1 %v7366_v39  ;;  %9415 = vtanh.f32 %v5126_v59  ;;  %v7319_v32 = vmax.f32 %v7287_v7, 0.0 }
 0x702   : > { %9417 = vtanh.f32 %v5127_v38  ;;  %5898 = vmatmul.bf16.gmra.mxu3 %v9172_v37  ;;  %v7228_v38 = vpop.permute.xlu2 %7227 }
 0x703   : > { %v7125_v19 = vpop.permute.xlu1 %7124  ;;  %7396 = vperm.xlu2 %9389, %v14634_v50  }
 0x704   : > { %v7192_v15 = vmul.f32 %v14405_v9, %v7125_v19 }
 0x706   : > { %7392 = vperm.xlu1 %9388, %v14300_v40   ;;  %v7193_v40 = vmul.f32 %v14407_v6, %v7125_v19  ;;  %v16711_v19 = vld [vmem:[#allocation135_spill] sm:$0xff] }
 0x707   : > { %v9416_v2 = vpop.eup %9415 }
 0x708   : > { %6557 = vmatmul.bf16.gmra.mxu0 %v9183_v3  ;;  %v9418_v55 = vpop.eup %9417  ;;  %v5130_v4 = vmul.f32 %v9416_v2, %v16708_v30  ;;  %v7189_v2 = vmul.f32 %v14407_v6, %v16711_v19 }
 0x709   : > { %6606 = vmatmul.bf16.gmra.mxu1 %v9183_v3  ;;  %v5131_v22 = vmul.f32 %v9418_v55, %v16708_v30  ;;  %v7188_v3 = vmul.f32 %v14405_v9, %v16711_v19  ;;  %v7186_v55 = vmul.f32 %v14405_v9, %v7110_v60  ;;  %v16713_v19 = vld [vmem:[#allocation169_spill] sm:$0xff] }
 0x70a   : > { %v5136_v33 = vrot.slane %v5130_v4, 4  ;;  %v7285_v4 = vadd.f32 %v7228_v38, %v7189_v2 }
 0x70b   : > { %7376 = vperm.xlu2 %9389, %v14647_v51   ;;  %v5137_v5 = vrot.slane %v5131_v22, 4  ;;  %v7284_v11 = vadd.f32 %v7228_v38, %v7188_v3  ;;  %v9184_v22 = vld [vmem:[%s9826_s5 + $0x338] sm:$0xff]  ;;  %v9174_v38 = vld [vmem:[%s9826_s5 + $0x2e8] sm:$0xff] }
 0x70c   : > { %v7236_v26 = vpop.permute.xlu1 %7235  ;;  %v14651_v27 = vadd.f32 %v5136_v33, %v16709_v34  ;;  %v7317_v33 = vmax.f32 %v7285_v4, 0.0  ;;  %v16712_v34 = vld [vmem:[#allocation138_spill] sm:$0xff] }
 0x70d   : > { %v7288_v58 = vadd.f32 %v7236_v26, %v7192_v15  ;;  %v7289_v56 = vadd.f32 %v7236_v26, %v7193_v40  ;;  %v14656_v37 = vadd.f32 %v5137_v5, %v16710_v53  ;;  %v7316_v40 = vmax.f32 %v7284_v11, 0.0 }
 0x70e   : > { %7388 = vperm.xlu1 %9388, %v14373_v28   ;;  %v7187_v28 = vmul.f32 %v14407_v6, %v7110_v60 }
 0x70f   : > { %v7320_v39 = vmax.f32 %v7288_v58, 0.0  ;;  %v7321_v59 = vmax.f32 %v7289_v56, 0.0  ;;  %v7216_v56 = vpop.permute.xlu2 %7215 }
 0x710   : > { %5854 = vmatmul.bf16.gmra.mxu2 %v9173_v8 }
 0x711   : > { %v7363_v62 = vpack.c.bf16 %v7320_v39, %v7318_v24  ;;  %v7364_v43 = vpack.c.bf16 %v7321_v59, %v7319_v32  ;;  %v9600_v24 = vld [vmem:[%s9831_s9 + $0x338] sm:$0xff] }
 0x712   : > { %5903 = vmatmul.bf16.gmra.mxu3 %v9173_v8  ;;  %v7183_v8 = vmul.f32 %v14407_v6, %v16712_v34 }
 0x713   : > { %7492 = vmatpush.bf16.msrb.mxu0 %v7363_v62  ;;  %7541 = vmatpush.bf16.msrb.mxu1 %v7364_v43 }
 0x714   : > { %v7224_v31 = vpop.permute.xlu1 %7223  ;;  %9392 = vset.pattern.permute.xlu2 %v16644_v49  ;;  %v7279_v39 = vadd.f32 %v7216_v56, %v7183_v8 }
 0x715   : > { %v7282_v7 = vadd.f32 %v7224_v31, %v7186_v55  ;;  %v7283_v15 = vadd.f32 %v7224_v31, %v7187_v28  ;;  %6941 = vperm.xlu2 %9392, %v14424_v35   ;;  %v7182_v35 = vmul.f32 %v14405_v9, %v16712_v34 }
 0x716   : > { %9391 = vset.pattern.permute.xlu1 %v16644_v49  ;;  %v7311_v43 = vmax.f32 %v7279_v39, 0.0 }
 0x717   : > { %v7314_v26 = vmax.f32 %v7282_v7, 0.0  ;;  %v7315_v60 = vmax.f32 %v7283_v15, 0.0  ;;  %6937 = vperm.xlu1 %9391, %v14454_v46   ;;  %v7278_v32 = vadd.f32 %v7216_v56, %v7182_v35 }
 0x718   : > { %6562 = vmatmul.bf16.gmra.mxu0 %v9184_v22 }
 0x719   : > { %6611 = vmatmul.bf16.gmra.mxu1 %v9184_v22  ;;  %v7361_v5 = vpack.c.bf16 %v7316_v40, %v7314_v26  ;;  %v7362_v58 = vpack.c.bf16 %v7317_v33, %v7315_v60  ;;  %v7310_v62 = vmax.f32 %v7278_v32, 0.0  ;;  %v9601_v40 = vld [vmem:[%s9831_s9 + $0x360] sm:$0xff]  ;;  %v9602_v32 = vld [vmem:[%s9831_s9 + $0x378] sm:$0xff] }
 0x71a   : > { %v16715_v33 = vld [vmem:[#allocation190_spill] sm:$0xff] }
 0x71b   : > { %7493 = vmatpush.bf16.msrb.mxu0 %v7361_v5  ;;  %7542 = vmatpush.bf16.msrb.mxu1 %v7362_v58 }
 0x71d   : > { %v7105_v53 = vpop.permute.xlu1 %7104  ;;  %6953 = vperm.xlu2 %9392, %v9600_v24   ;;  %v9194_v24 = vld [vmem:[%s9826_s5 + $0x388] sm:$0xff] }
 0x71e   : > { %v7184_v46 = vmul.f32 %v14405_v9, %v7105_v53  ;;  %v7185_v59 = vmul.f32 %v14407_v6, %v7105_v53  ;;  %v9193_v9 = vld [vmem:[%s9826_s5 + $0x380] sm:$0xff] }
 0x71f   : > { %6949 = vperm.xlu1 %9391, %v14473_v14   ;;  %v16714_v14 = vld [vmem:[#allocation35_spill] sm:$0xff] }
 0x720   : > { %v7280_v3 = vadd.f32 %v16713_v19, %v7184_v46  ;;  %v7281_v2 = vadd.f32 %v16713_v19, %v7185_v59  ;;  %5859 = vmatmul.bf16.gmra.mxu2 %v9174_v38  ;;  %v16717_v19 = vld [vmem:[#allocation28_spill] sm:$0xff] }
 0x722   : > { %v7312_v55 = vmax.f32 %v7280_v3, 0.0  ;;  %v7313_v28 = vmax.f32 %v7281_v2, 0.0  ;;  %5908 = vmatmul.bf16.gmra.mxu3 %v9174_v38 }
 0x724   : > { %v7359_v11 = vpack.c.bf16 %v7312_v55, %v7310_v62  ;;  %v7360_v4 = vpack.c.bf16 %v7313_v28, %v7311_v43  ;;  %v9176_v62 = vld [vmem:[%s9826_s5 + $0x2f8] sm:$0xff]  ;;  %v9603_v43 = vld [vmem:[%s9831_s9 + $0x390] sm:$0xff] }
 0x725   : > { %v6528_v31 = vpop.f32.mrf.mxu0  ;;  %6961 = vperm.xlu2 %9392, %v14506_v52   ;;  %v9175_v52 = vld [vmem:[%s9826_s5 + $0x2f0] sm:$0xff] }
 0x726   : > { %v6577_v6 = vpop.f32.mrf.mxu1  ;;  %7494 = vmatpush.bf16.msrb.mxu0 %v7359_v11  ;;  %7543 = vmatpush.bf16.msrb.mxu1 %v7360_v4  ;;  %v6529_v22 = vadd.f32 %v6528_v31, %v16714_v14 }
 0x727   : > { %6957 = vperm.xlu1 %9391, %v14517_v61   ;;  %v6578_v7 = vadd.f32 %v6577_v6, %v16714_v14  ;;  %v9195_v14 = vld [vmem:[%s9826_s5 + $0x390] sm:$0xff] }
 0x728   : > { %v6617_v61 = vmax.f32 %v6529_v22, 0.0 }
 0x729   : > { %7495 = vmatmul.bf16.vlgmr.msrb.gmra.mxu0 %v9193_v9  ;;  %7544 = vmatmul.bf16.vlgmr.msrb.gmra.mxu1 %v9193_v9  ;;  %v6618_v56 = vmax.f32 %v6578_v7, 0.0  ;;  %v14720_v7 = vld [vmem:[%s9831_s9 + $0x398] sm:$0xff] }
 0x72d   : > { %v6530_v15 = vpop.f32.mrf.mxu0  ;;  %6973 = vperm.xlu2 %9392, %v9601_v40  }
 0x72e   : > { %v6531_v26 = vadd.f32 %v6530_v15, %v16715_v33  ;;  %v6579_v60 = vpop.f32.mrf.mxu1 }
 0x72f   : > { %v6580_v5 = vadd.f32 %v6579_v60, %v16715_v33  ;;  %6969 = vperm.xlu1 %9391, %v14532_v23   ;;  %v14697_v23 = vpop.permute.xlu2 %6699 }
 0x730   : > { %v6619_v58 = vmax.f32 %v6531_v26, 0.0  ;;  %5864 = vmatmul.bf16.gmra.mxu2 %v9175_v52  ;;  %16716 = vst [vmem:[#allocation200_spill] sm:$0xff] %v14697_v23  ;;  %v16720_v26 = vld [vmem:[#allocation199_spill] sm:$0xff] }
 0x731   : > { %v6620_v34 = vmax.f32 %v6580_v5, 0.0  ;;  %v14728_v5 = vpop.permute.xlu1 %6695 }
 0x732   : > { %v14690_v35 = vpack.c.bf16 %v6619_v58, %v6617_v61  ;;  %5913 = vmatmul.bf16.gmra.mxu3 %v9175_v52  ;;  %v9606_v61 = vld [vmem:[%s9831_s9 + $0x3b8] sm:$0xff] }
 0x733   : > { %v14692_v8 = vpack.c.bf16 %v6620_v34, %v6618_v56 }
 0x735   : > { %v6533_v53 = vpop.f32.mrf.mxu0  ;;  %6985 = vperm.xlu2 %9392, %v9602_v32   ;;  %v5716_v32 = vpop.permute.xlu0 %5715 }
 0x736   : > { %v6582_v39 = vpop.f32.mrf.mxu1  ;;  %v6534_v46 = vadd.f32 %v6533_v53, %v14277_v16 }
 0x737   : > { %6981 = vperm.xlu1 %9391, %v14542_v10   ;;  %v6583_v59 = vadd.f32 %v6582_v39, %v14277_v16  ;;  %v14710_v31 = vpop.permute.xlu2 %6707 }
 0x738   : > { %v6621_v55 = vmax.f32 %v6534_v46, 0.0  ;;  %16718 = vst [vmem:[#allocation30_spill] sm:$0xff] %v14710_v31 }
 0x739   : > { %7500 = vmatmul.bf16.gmra.mxu0 %v9194_v24  ;;  %7549 = vmatmul.bf16.gmra.mxu1 %v9194_v24  ;;  %v6622_v16 = vmax.f32 %v6583_v59, 0.0 }
 0x73d   : > { %v6535_v38 = vpop.f32.mrf.mxu0  ;;  %9394 = vset.pattern.permute.xlu2 %v16656_v57 }
 0x73e   : > { %v6536_v3 = vadd.f32 %v6535_v38, %v16717_v19  ;;  %v6584_v2 = vpop.f32.mrf.mxu1  ;;  %7659 = vperm.xlu2 %9394, %v9603_v43   ;;  %v9196_v38 = vld [vmem:[%s9826_s5 + $0x398] sm:$0xff] }
 0x73f   : > { %v6585_v10 = vadd.f32 %v6584_v2, %v16717_v19  ;;  %9393 = vset.pattern.permute.xlu1 %v16656_v57  ;;  %v14716_v57 = vld [vmem:[%s9831_s9 + $0x3a0] sm:$0xff]  ;;  %v14725_v33 = vpop.permute.xlu2 %6719 }
 0x740   : > { %v6623_v28 = vmax.f32 %v6536_v3, 0.0  ;;  %7655 = vperm.xlu1 %9393, %v14394_v0   ;;  %5869 = vmatmul.bf16.gmra.mxu2 %v9176_v62  ;;  %16719 = vst [vmem:[#allocation81_spill] sm:$0xff] %v14725_v33 }
 0x741   : > { %v6624_v11 = vmax.f32 %v6585_v10, 0.0  ;;  %v14739_v10 = vpop.permute.xlu1 %6703 }
 0x742   : > { %v14708_v4 = vpack.c.bf16 %v6623_v28, %v6621_v55  ;;  %5918 = vmatmul.bf16.gmra.mxu3 %v9176_v62  ;;  %v9607_v62 = vld [vmem:[%s9831_s9 + $0x3d0] sm:$0xff]  ;;  %16721 = vst [vmem:[#allocation130_spill] sm:$0xff] %v14739_v10 }
 0x743   : > { %v14712_v9 = vpack.c.bf16 %v6624_v11, %v6622_v16  ;;  %v16723_v28 = vld [vmem:[#allocation175_spill] sm:$0xff] }
 0x745   : > { %v6538_v6 = vpop.f32.mrf.mxu0 }
 0x746   : > { %v6587_v22 = vpop.f32.mrf.mxu1  ;;  %7667 = vperm.xlu2 %9394, %v14716_v57   ;;  %v6539_v0 = vadd.f32 %v6538_v6, %v14322_v36 }
 0x747   : > { %v6588_v15 = vadd.f32 %v6587_v22, %v14322_v36  ;;  %v14741_v55 = vpop.permute.xlu2 %6727  ;;  %v16724_v22 = vld [vmem:[#allocation95_spill] sm:$0xff] }
 0x748   : > { %7663 = vperm.xlu1 %9393, %v14720_v7   ;;  %v6625_v56 = vmax.f32 %v6539_v0, 0.0  ;;  %16722 = vst [vmem:[#allocation20_spill] sm:$0xff] %v14741_v55 }
 0x749   : > { %7505 = vmatmul.bf16.gmra.mxu0 %v9195_v14  ;;  %7554 = vmatmul.bf16.gmra.mxu1 %v9195_v14  ;;  %v6626_v53 = vmax.f32 %v6588_v15, 0.0 }
 0x74d   : > { %v6540_v40 = vpop.f32.mrf.mxu0 }
 0x74e   : > { %v6541_v60 = vadd.f32 %v6540_v40, %v16720_v26  ;;  %v6589_v52 = vpop.f32.mrf.mxu1  ;;  %7679 = vperm.xlu2 %9394, %v9606_v61   ;;  %v14751_v61 = vpop.permute.xlu1 %6715 }
 0x74f   : > { %v6590_v58 = vadd.f32 %v6589_v52, %v16720_v26  ;;  %16725 = vst [vmem:[#allocation173_spill] sm:$0xff] %v14751_v61 }
 0x750   : > { %v6627_v34 = vmax.f32 %v6541_v60, 0.0  ;;  %7675 = vperm.xlu1 %9393, %v14622_v63  }
 0x751   : > { %v6628_v36 = vmax.f32 %v6590_v58, 0.0 }
 0x752   : > { %v14733_v24 = vpack.c.bf16 %v6627_v34, %v6625_v56  ;;  %v5835_v46 = vpop.f32.mrf.mxu2 }
 0x753   : > { %v14735_v39 = vpack.c.bf16 %v6628_v36, %v6626_v53  ;;  %v5836_v19 = vadd.f32 %v5835_v46, %v5716_v32 }
 0x755   : > { %v6543_v59 = vpop.f32.mrf.mxu0  ;;  %v5884_v3 = vpop.f32.mrf.mxu3 }
 0x756   : > { %v6592_v2 = vpop.f32.mrf.mxu1  ;;  %7691 = vperm.xlu2 %9394, %v9607_v62   ;;  %v5885_v43 = vadd.f32 %v5884_v3, %v5716_v32  ;;  %v6544_v16 = vadd.f32 %v6543_v59, %v16723_v28  ;;  %v14754_v32 = vpop.permute.xlu2 %6739  ;;  %v5924_v3 = vmax.f32 %v5836_v19, 0.0  ;;  %v16729_v19 = vld [vmem:[#allocation119_spill] sm:$0xff] }
 0x757   : > { %v6593_v11 = vadd.f32 %v6592_v2, %v16723_v28  ;;  %16726 = vst [vmem:[#allocation78_spill] sm:$0xff] %v14754_v32  ;;  %v9197_v28 = vld [vmem:[%s9826_s5 + $0x3a0] sm:$0xff]  ;;  %v5736_v32 = vpop.permute.xlu0 %5735 }
 0x758   : > { %7687 = vperm.xlu1 %9393, %v14627_v45   ;;  %v6629_v58 = vmax.f32 %v6544_v16, 0.0  ;;  %v16727_v16 = vld [vmem:[#allocation246_spill] sm:$0xff] }
 0x759   : > { %7510 = vmatmul.bf16.gmra.mxu0 %v9196_v38  ;;  %7559 = vmatmul.bf16.gmra.mxu1 %v9196_v38  ;;  %v6630_v34 = vmax.f32 %v6593_v11, 0.0 }
 0x75a   : > { %v5837_v6 = vpop.f32.mrf.mxu2 }
 0x75b   : > { %v5838_v0 = vadd.f32 %v5837_v6, %v16724_v22 }
 0x75d   : > { %v6545_v14 = vpop.f32.mrf.mxu0  ;;  %v5886_v15 = vpop.f32.mrf.mxu3  ;;  %v5926_v36 = vmax.f32 %v5838_v0, 0.0 }
 0x75e   : > { %v6546_v40 = vadd.f32 %v6545_v14, %v14355_v54  ;;  %v6594_v26 = vpop.f32.mrf.mxu1  ;;  %7703 = vperm.xlu2 %9394, %v14596_v48   ;;  %v5887_v60 = vadd.f32 %v5886_v15, %v16724_v22  ;;  %v16728_v14 = vld [vmem:[#allocation87_spill] sm:$0xff] }
 0x75f   : > { %v6595_v52 = vadd.f32 %v6594_v26, %v14355_v54  ;;  %v5925_v54 = vmax.f32 %v5885_v43, 0.0  ;;  %v6022_v6 = vmul.f32 %v16727_v16, %v5926_v36  ;;  %v9608_v26 = vld [vmem:[%s9831_s9 + $0x388] sm:$0xff]  ;;  %v6020_v43 = vmul.f32 %v16729_v19, %v5924_v3  ;;  %v14779_v3 = vpop.permute.xlu2 %6929 }
 0x760   : > { %v6631_v56 = vmax.f32 %v6546_v40, 0.0  ;;  %7699 = vperm.xlu1 %9393, %v14603_v1   ;;  %v5927_v59 = vmax.f32 %v5887_v60, 0.0 }
 0x761   : > { %v6632_v53 = vmax.f32 %v6595_v52, 0.0  ;;  %v14772_v52 = vpop.permute.xlu1 %6723 }
 0x762   : > { %v14756_v46 = vpack.c.bf16 %v6631_v56, %v6629_v58  ;;  %v6023_v15 = vmul.f32 %v16727_v16, %v5927_v59  ;;  %16730 = vst [vmem:[#allocation118_spill] sm:$0xff] %v14772_v52  ;;  %v6021_v58 = vmul.f32 %v16729_v19, %v5925_v54  ;;  %v16732_v54 = vld [vmem:[#allocation280_spill] sm:$0xff] }
 0x763   : > { %v14758_v38 = vpack.c.bf16 %v6632_v53, %v6630_v34  ;;  %v5840_v2 = vpop.f32.mrf.mxu2  ;;  %v6052_v34 = vadd.f32 %v6022_v6, %v6020_v43  ;;  %v16731_v53 = vld [vmem:[#allocation41_spill] sm:$0xff] }
 0x764   : > { %v5841_v11 = vadd.f32 %v5840_v2, %v16728_v14  ;;  %v6073_v59 = vadd.f32 %v6023_v15, %v6021_v58  ;;  %v16734_v58 = vld [vmem:[#allocation144_spill] sm:$0xff] }
 0x765   : > { %v14760_v62 = vpop.f32.mrf.mxu0  ;;  %v5889_v22 = vpop.f32.mrf.mxu3 }
 0x766   : > { %v14765_v0 = vpop.f32.mrf.mxu1  ;;  %9396 = vset.pattern.permute.xlu2 %v16644_v49  ;;  %v5890_v40 = vadd.f32 %v5889_v22, %v16728_v14  ;;  %v5928_v60 = vmax.f32 %v5841_v11, 0.0 }
 0x767   : > { %7897 = vperm.xlu2 %9396, %v9608_v26  }
 0x768   : > { %9395 = vset.pattern.permute.xlu1 %v16644_v49  ;;  %v5929_v56 = vmax.f32 %v5890_v40, 0.0  ;;  %v6024_v36 = vmul.f32 %v16731_v53, %v5928_v60  ;;  %v9198_v60 = vld [vmem:[%s9826_s5 + $0x3a8] sm:$0xff] }
 0x769   : > { %7515 = vmatmul.bf16.gmra.mxu0 %v9197_v28  ;;  %7564 = vmatmul.bf16.gmra.mxu1 %v9197_v28  ;;  %v14788_v15 = vpop.permute.xlu1 %6735 }
 0x76a   : > { %7893 = vperm.xlu1 %9395, %v14647_v51   ;;  %v6025_v2 = vmul.f32 %v16731_v53, %v5929_v56  ;;  %v6053_v16 = vadd.f32 %v6052_v34, %v6024_v36  ;;  %16733 = vst [vmem:[#allocation77_spill] sm:$0xff] %v14788_v15  ;;  %v16735_v34 = vld [vmem:[#allocation93_spill] sm:$0xff] }
 0x76b   : > { %v5842_v11 = vpop.f32.mrf.mxu2 }
 0x76c   : > { %v6074_v14 = vadd.f32 %v6073_v59, %v6025_v2  ;;  %v5843_v22 = vadd.f32 %v5842_v11, %v16732_v54 }
 0x76d   : > { %v14781_v49 = vpop.f32.mrf.mxu0  ;;  %v5891_v40 = vpop.f32.mrf.mxu3 }
 0x76e   : > { %v14784_v28 = vpop.f32.mrf.mxu1  ;;  %v5892_v6 = vadd.f32 %v5891_v40, %v16732_v54  ;;  %v5930_v51 = vmax.f32 %v5843_v22, 0.0  ;;  %v16736_v40 = vld [vmem:[#allocation48_spill] sm:$0xff] }
 0x76f   : > { %7909 = vperm.xlu2 %9396, %v14716_v57  }
 0x770   : > { %v5931_v26 = vmax.f32 %v5892_v6, 0.0  ;;  %v6026_v56 = vmul.f32 %v16734_v58, %v5930_v51 }
 0x772   : > { %7905 = vperm.xlu1 %9395, %v14720_v7   ;;  %v6027_v2 = vmul.f32 %v16734_v58, %v5931_v26  ;;  %v14801_v7 = vpop.permute.xlu2 %7436  ;;  %v6054_v22 = vadd.f32 %v6053_v16, %v6026_v56  ;;  %v14806_v58 = vpop.permute.xlu1 %6925  ;;  %v16737_v56 = vld [vmem:[#allocation153_spill] sm:$0xff] }
 0x773   : > { %v5845_v19 = vpop.f32.mrf.mxu2 }
 0x774   : > { %v5846_v53 = vadd.f32 %v5845_v19, %v16735_v34  ;;  %v6075_v51 = vadd.f32 %v6074_v14, %v6027_v2 }
 0x775   : > { %v14791_v43 = vpop.f32.mrf.mxu0  ;;  %v5894_v36 = vpop.f32.mrf.mxu3 }
 0x776   : > { %v14796_v59 = vpop.f32.mrf.mxu1  ;;  %v5895_v57 = vadd.f32 %v5894_v36, %v16735_v34  ;;  %v5932_v11 = vmax.f32 %v5846_v53, 0.0 }
 0x777   : > { %7917 = vperm.xlu2 %9396, %v14622_v63  }
 0x778   : > { %v5933_v54 = vmax.f32 %v5895_v57, 0.0  ;;  %v6028_v6 = vmul.f32 %v16736_v40, %v5932_v11 }
 0x779   : > { %7520 = vmatmul.bf16.gmra.mxu0 %v9198_v60  ;;  %7569 = vmatmul.bf16.gmra.mxu1 %v9198_v60 }
 0x77a   : > { %7913 = vperm.xlu1 %9395, %v14634_v50   ;;  %v6029_v19 = vmul.f32 %v16736_v40, %v5933_v54  ;;  %v6055_v26 = vadd.f32 %v6054_v22, %v6028_v6  ;;  %v14814_v11 = vpop.permute.xlu2 %7428 }
 0x77b   : > { %v5847_v63 = vpop.f32.mrf.mxu2 }
 0x77c   : > { %v6076_v34 = vadd.f32 %v6075_v51, %v6029_v19  ;;  %v5848_v36 = vadd.f32 %v5847_v63, %v5736_v32  ;;  %v9199_v19 = vld [vmem:[%s9826_s5 + $0x3b0] sm:$0xff]  ;;  %v16738_v63 = vld [vmem:[#allocation25_spill] sm:$0xff] }
 0x77d   : > { %v14808_v53 = vpop.f32.mrf.mxu0  ;;  %v5896_v57 = vpop.f32.mrf.mxu3 }
 0x77e   : > { %v14810_v60 = vpop.f32.mrf.mxu1  ;;  %v5897_v16 = vadd.f32 %v5896_v57, %v5736_v32  ;;  %v5934_v50 = vmax.f32 %v5848_v36, 0.0 }
 0x77f   : > { %7929 = vperm.xlu2 %9396, %v14627_v45  }
 0x780   : > { %v5935_v14 = vmax.f32 %v5897_v16, 0.0  ;;  %v6030_v2 = vmul.f32 %v16737_v56, %v5934_v50  ;;  %v14826_v50 = vpop.permute.xlu1 %7432 }
 0x782   : > { %7925 = vperm.xlu1 %9395, %v14611_v17   ;;  %v6031_v54 = vmul.f32 %v16737_v56, %v5935_v14  ;;  %v6056_v22 = vadd.f32 %v6055_v26, %v6030_v2  ;;  %v16739_v26 = vld [vmem:[#allocation247_spill] sm:$0xff]  ;;  %v14831_v2 = vpop.permute.xlu2 %7408 }
 0x783   : > { %v5850_v6 = vpop.f32.mrf.mxu2 }
 0x784   : > { %v6077_v40 = vadd.f32 %v6076_v34, %v6031_v54  ;;  %v5851_v32 = vadd.f32 %v5850_v6, %v16738_v63 }
 0x785   : > { %v14818_v51 = vpop.f32.mrf.mxu0  ;;  %v5899_v57 = vpop.f32.mrf.mxu3 }
 0x786   : > { %v14822_v45 = vpop.f32.mrf.mxu1  ;;  %v5900_v36 = vadd.f32 %v5899_v57, %v16738_v63  ;;  %v5936_v16 = vmax.f32 %v5851_v32, 0.0 }
 0x787   : > { %7941 = vperm.xlu2 %9396, %v14603_v1   ;;  %v16740_v1 = vld [vmem:[#allocation124_spill] sm:$0xff] }
 0x788   : > { %v5937_v17 = vmax.f32 %v5900_v36, 0.0  ;;  %v6032_v34 = vmul.f32 %v16739_v26, %v5936_v16  ;;  %v14836_v16 = vpop.permute.xlu1 %7424 }
 0x789   : > { %7525 = vmatmul.bf16.gmra.mxu0 %v9199_v19  ;;  %7574 = vmatmul.bf16.gmra.mxu1 %v9199_v19 }
 0x78a   : > { %7937 = vperm.xlu1 %9395, %v14616_v20   ;;  %v6033_v14 = vmul.f32 %v16739_v26, %v5937_v17  ;;  %v6057_v56 = vadd.f32 %v6056_v22, %v6032_v34  ;;  %v5748_v22 = vpop.permute.xlu0 %5747  ;;  %v16741_v34 = vld [vmem:[#allocation165_spill] sm:$0xff] }
 0x78b   : > { %v5852_v6 = vpop.f32.mrf.mxu2 }
 0x78c   : > { %v6078_v54 = vadd.f32 %v6077_v40, %v6033_v14  ;;  %v5853_v32 = vadd.f32 %v5852_v6, %v16740_v1  ;;  %v9200_v40 = vld [vmem:[%s9826_s5 + $0x3b8] sm:$0xff] }
 0x78d   : > { %v6560_v63 = vpop.f32.mrf.mxu0  ;;  %v5901_v57 = vpop.f32.mrf.mxu3 }
 0x78e   : > { %v6609_v15 = vpop.f32.mrf.mxu1  ;;  %v5902_v36 = vadd.f32 %v5901_v57, %v16740_v1  ;;  %v5938_v19 = vmax.f32 %v5853_v32, 0.0  ;;  %v14842_v57 = vpop.permute.xlu2 %7400 }
 0x78f   : > { %7949 = vperm.xlu2 %9396, %v14584_v12  }
 0x790   : > { %v5939_v20 = vmax.f32 %v5902_v36, 0.0  ;;  %v6034_v14 = vmul.f32 %v16741_v34, %v5938_v19  ;;  %v16742_v36 = vld [vmem:[#allocation42_spill] sm:$0xff]  ;;  %v14848_v23 = vpop.permute.xlu1 %7420 }
 0x792   : > { %7945 = vperm.xlu1 %9395, %v14596_v48   ;;  %v6035_v33 = vmul.f32 %v16741_v34, %v5939_v20  ;;  %v6058_v48 = vadd.f32 %v6057_v56, %v6034_v14  ;;  %v16743_v56 = vld [vmem:[#allocation82_spill] sm:$0xff] }
 0x793   : > { %v5855_v17 = vpop.f32.mrf.mxu2 }
 0x794   : > { %v5856_v55 = vadd.f32 %v5855_v17, %v5748_v22  ;;  %v6079_v31 = vadd.f32 %v6078_v54, %v6035_v33  ;;  %v6610_v54 = vadd.f32 %v6609_v15, %v14397_v13 }
 0x795   : > { %v6563_v26 = vpop.f32.mrf.mxu0  ;;  %v5904_v6 = vpop.f32.mrf.mxu3 }
 0x796   : > { %v6612_v52 = vpop.f32.mrf.mxu1  ;;  %v5905_v1 = vadd.f32 %v5904_v6, %v5748_v22  ;;  %v5940_v12 = vmax.f32 %v5856_v55, 0.0  ;;  %v6564_v10 = vadd.f32 %v6563_v26, %v14370_v25 }
 0x797   : > { %v6613_v22 = vadd.f32 %v6612_v52, %v14370_v25 }
 0x798   : > { %v5941_v32 = vmax.f32 %v5905_v1, 0.0  ;;  %v6036_v61 = vmul.f32 %v16742_v36, %v5940_v12  ;;  %v16744_v1 = vld [vmem:[#allocation155_spill] sm:$0xff]  ;;  %v16745_v12 = vld [vmem:[#allocation160_spill] sm:$0xff]  ;;  %v6645_v25 = vmax.f32 %v6564_v10, 0.0 }
 0x799   : > { %7530 = vmatmul.bf16.gmra.mxu0 %v9200_v40  ;;  %7579 = vmatmul.bf16.gmra.mxu1 %v9200_v40  ;;  %v6561_v40 = vadd.f32 %v6560_v63, %v14397_v13  ;;  %v6608_v63 = vadd.f32 %v14822_v45, %v16745_v12 }
 0x79a   : > { %7953 = vperm.xlu1 %9395, %v14574_v47   ;;  %v6037_v19 = vmul.f32 %v16742_v36, %v5941_v32  ;;  %v6059_v17 = vadd.f32 %v6058_v48, %v6036_v61  ;;  %v6646_v32 = vmax.f32 %v6613_v22, 0.0  ;;  %v14861_v36 = vpop.permute.xlu2 %7396  ;;  %v16746_v22 = vld [vmem:[#allocation171_spill] sm:$0xff] }
 0x79b   : > { %v5857_v55 = vpop.f32.mrf.mxu2  ;;  %v6643_v13 = vmax.f32 %v6561_v40, 0.0  ;;  %v6603_v40 = vadd.f32 %v14796_v59, %v14376_v42 }
 0x79c   : > { %v6080_v20 = vadd.f32 %v6079_v31, %v6037_v19  ;;  %v5858_v14 = vadd.f32 %v5857_v55, %v16743_v56  ;;  %v6559_v31 = vadd.f32 %v14818_v51, %v16745_v12  ;;  %v6556_v19 = vadd.f32 %v14808_v53, %v14335_v21 }
 0x79d   : > { %v6565_v34 = vpop.f32.mrf.mxu0  ;;  %v5906_v6 = vpop.f32.mrf.mxu3  ;;  %v6600_v53 = vadd.f32 %v14784_v28, %v16746_v22 }
 0x79e   : > { %v6566_v47 = vadd.f32 %v6565_v34, %v16744_v1  ;;  %v6614_v33 = vpop.f32.mrf.mxu1  ;;  %v5907_v61 = vadd.f32 %v5906_v6, %v16743_v56  ;;  %v5942_v15 = vmax.f32 %v5858_v14, 0.0  ;;  %v6605_v34 = vadd.f32 %v14810_v60, %v14335_v21 }
 0x79f   : > { %v6615_v26 = vadd.f32 %v6614_v33, %v16744_v1  ;;  %v6644_v56 = vmax.f32 %v6610_v54, 0.0  ;;  %v6554_v6 = vadd.f32 %v14791_v43, %v14376_v42  ;;  %v6641_v45 = vmax.f32 %v6559_v31, 0.0  ;;  %v16747_v33 = vld [vmem:[#allocation240_spill] sm:$0xff] }
 0x7a0   : > { %v6647_v52 = vmax.f32 %v6566_v47, 0.0  ;;  %v5943_v51 = vmax.f32 %v5907_v61, 0.0  ;;  %v6551_v1 = vadd.f32 %v14781_v49, %v16746_v22  ;;  %v6642_v14 = vmax.f32 %v6608_v63, 0.0  ;;  %v16748_v61 = vld [vmem:[#allocation184_spill] sm:$0xff] }
 0x7a1   : > { %v6648_v48 = vmax.f32 %v6615_v26, 0.0  ;;  %v6639_v60 = vmax.f32 %v6556_v19, 0.0  ;;  %v6678_v47 = vpack.c.bf16 %v6643_v13, %v6641_v45  ;;  %v6038_v54 = vmul.f32 %v16747_v33, %v5942_v15 }
 0x7a2   : > { %v6680_v55 = vpack.c.bf16 %v6647_v52, %v6645_v25  ;;  %v6640_v31 = vmax.f32 %v6605_v34, 0.0  ;;  %v6679_v25 = vpack.c.bf16 %v6644_v56, %v6642_v14  ;;  %v6039_v49 = vmul.f32 %v16747_v33, %v5943_v51  ;;  %v16749_v56 = vld [vmem:[#allocation242_spill] sm:$0xff]  ;;  %v5760_v14 = vpop.permute.xlu0 %5759 }
 0x7a3   : > { %v6681_v10 = vpack.c.bf16 %v6648_v48, %v6646_v32  ;;  %v5860_v21 = vpop.f32.mrf.mxu2  ;;  %v6549_v42 = vadd.f32 %v14760_v62, %v14270_v41  ;;  %v6637_v59 = vmax.f32 %v6554_v6, 0.0  ;;  %v14881_v32 = vpop.permute.xlu1 %7412  ;;  %v6598_v48 = vadd.f32 %v14765_v0, %v14270_v41 }
 0x7a4   : > { %6794 = vmatpush.bf16.msra.mxu2 %v6680_v55  ;;  %v5861_v43 = vadd.f32 %v5860_v21, %v16748_v61  ;;  %v6638_v19 = vmax.f32 %v6603_v40, 0.0  ;;  %v6635_v15 = vmax.f32 %v6551_v1, 0.0  ;;  %v6060_v34 = vadd.f32 %v6059_v17, %v6038_v54  ;;  %v7377_v6 = vpop.permute.xlu2 %7376 }
 0x7a5   : > { %6843 = vmatpush.bf16.msra.mxu3 %v6681_v10  ;;  %v5909_v26 = vpop.f32.mrf.mxu3  ;;  %v6676_v55 = vpack.c.bf16 %v6639_v60, %v6637_v59  ;;  %v6636_v10 = vmax.f32 %v6600_v53, 0.0  ;;  %v6081_v22 = vadd.f32 %v6080_v20, %v6039_v49  ;;  %v6633_v21 = vmax.f32 %v6549_v42, 0.0  ;;  %v16750_v20 = vld [vmem:[#allocation197_spill] sm:$0xff] }
 0x7a6   : > { %v7496_v12 = vpop.f32.mrf.mxu0  ;;  %v5910_v28 = vadd.f32 %v5909_v26, %v16748_v61  ;;  %v7545_v52 = vpop.f32.mrf.mxu1  ;;  %v5944_v63 = vmax.f32 %v5861_v43, 0.0  ;;  %v6677_v45 = vpack.c.bf16 %v6640_v31, %v6638_v19  ;;  %v6634_v33 = vmax.f32 %v6598_v48, 0.0 }
 0x7a7   : > { %v7497_v0 = vadd.f32 %v7496_v12, %v7377_v6  ;;  %v6674_v1 = vpack.c.bf16 %v6635_v15, %v6633_v21  ;;  %v7546_v60 = vadd.f32 %v7545_v52, %v7377_v6 }
 0x7a8   : > { %6795 = vmatpush.bf16.msra.mxu2 %v6678_v47  ;;  %v5945_v13 = vmax.f32 %v5910_v28, 0.0  ;;  %v6040_v51 = vmul.f32 %v16749_v56, %v5944_v63  ;;  %v6675_v53 = vpack.c.bf16 %v6636_v10, %v6634_v33  ;;  %v16751_v63 = vld [vmem:[#allocation122_spill] sm:$0xff]  ;;  %v16752_v10 = vld [vmem:[#allocation196_spill] sm:$0xff] }
 0x7a9   : > { %6844 = vmatpush.bf16.msra.mxu3 %v6679_v25  ;;  %v7585_v28 = vmax.f32 %v7497_v0, 0.0  ;;  %v7586_v12 = vmax.f32 %v7546_v60, 0.0 }
 0x7aa   : > { %v6041_v62 = vmul.f32 %v16749_v56, %v5945_v13  ;;  %v6061_v47 = vadd.f32 %v6060_v34, %v6040_v51 }
 0x7ab   : > { %v5862_v40 = vpop.f32.mrf.mxu2  ;;  %v14890_v19 = vpop.permute.xlu1 %7392 }
 0x7ac   : > { %6796 = vmatpush.bf16.msra.mxu2 %v6676_v55  ;;  %v6082_v41 = vadd.f32 %v6081_v22, %v6041_v62  ;;  %v5863_v17 = vadd.f32 %v5862_v40, %v5760_v14 }
 0x7ad   : > { %6845 = vmatpush.bf16.msra.mxu3 %v6677_v45  ;;  %v5911_v54 = vpop.f32.mrf.mxu3 }
 0x7ae   : > { %v7498_v61 = vpop.f32.mrf.mxu0  ;;  %v5912_v43 = vadd.f32 %v5911_v54, %v5760_v14  ;;  %v7547_v31 = vpop.f32.mrf.mxu1  ;;  %v5946_v25 = vmax.f32 %v5863_v17, 0.0  ;;  %v16755_v54 = vld [vmem:[#allocation278_spill] sm:$0xff] }
 0x7af   : > { %v7499_v26 = vadd.f32 %v7498_v61, %v16750_v20  ;;  %v7548_v49 = vadd.f32 %v7547_v31, %v16750_v20  ;;  %v9185_v31 = vld [vmem:[%s9826_s5 + $0x340] sm:$0xff] }
 0x7b0   : > { %6797 = vmatpush.bf16.msra.mxu2 %v6674_v1  ;;  %v5947_v42 = vmax.f32 %v5912_v43, 0.0  ;;  %v6042_v48 = vmul.f32 %v16751_v63, %v5946_v25  ;;  %v16754_v1 = vld [vmem:[#allocation194_spill] sm:$0xff] }
 0x7b1   : > { %v7587_v59 = vmax.f32 %v7499_v26, 0.0  ;;  %6846 = vmatpush.bf16.msra.mxu3 %v6675_v53  ;;  %v7588_v52 = vmax.f32 %v7548_v49, 0.0 }
 0x7b2   : > { %v6043_v13 = vmul.f32 %v16751_v63, %v5947_v42  ;;  %v6062_v55 = vadd.f32 %v6061_v47, %v6042_v48  ;;  %v16753_v47 = vld [vmem:[#allocation236_spill] sm:$0xff]  ;;  %v5772_v48 = vpop.permute.xlu0 %5771 }
 0x7b3   : > { %v14893_v15 = vpack.c.bf16 %v7587_v59, %v7585_v28  ;;  %v14895_v34 = vpack.c.bf16 %v7588_v52, %v7586_v12  ;;  %v5865_v51 = vpop.f32.mrf.mxu2 }
 0x7b4   : > { %6798 = vmatpush.bf16.msra.mxu2 %v14756_v46  ;;  %v6083_v56 = vadd.f32 %v6082_v41, %v6043_v13  ;;  %v5866_v45 = vadd.f32 %v5865_v51, %v16752_v10  ;;  %v7389_v41 = vpop.permute.xlu1 %7388  ;;  %v16756_v13 = vld [vmem:[#allocation129_spill] sm:$0xff] }
 0x7b5   : > { %6847 = vmatpush.bf16.msra.mxu3 %v14758_v38  ;;  %v5914_v22 = vpop.f32.mrf.mxu3 }
 0x7b6   : > { %v7501_v62 = vpop.f32.mrf.mxu0  ;;  %v5915_v6 = vadd.f32 %v5914_v22, %v16752_v10  ;;  %v7550_v14 = vpop.f32.mrf.mxu1  ;;  %v5948_v21 = vmax.f32 %v5866_v45, 0.0 }
 0x7b7   : > { %v7502_v60 = vadd.f32 %v7501_v62, %v16754_v1 }
 0x7b8   : > { %6799 = vmatpush.bf16.msra.mxu2 %v14733_v24  ;;  %v5949_v33 = vmax.f32 %v5915_v6, 0.0  ;;  %v6044_v0 = vmul.f32 %v16753_v47, %v5948_v21  ;;  %v7551_v24 = vadd.f32 %v7550_v14, %v16754_v1  ;;  %v16757_v14 = vld [vmem:[#allocation100_spill] sm:$0xff] }
 0x7b9   : > { %6848 = vmatpush.bf16.msra.mxu3 %v14735_v39 }
 0x7ba   : > { %v6045_v46 = vmul.f32 %v16753_v47, %v5949_v33  ;;  %v6063_v38 = vadd.f32 %v6062_v55, %v6044_v0 }
 0x7bb   : > { %v5867_v17 = vpop.f32.mrf.mxu2 }
 0x7bc   : > { %6800 = vmatpush.bf16.msra.mxu2 %v14708_v4  ;;  %v6084_v40 = vadd.f32 %v6083_v56, %v6045_v46  ;;  %v5868_v61 = vadd.f32 %v5867_v17, %v16755_v54  ;;  %v7589_v4 = vmax.f32 %v7502_v60, 0.0  ;;  %v16758_v17 = vld [vmem:[#allocation275_spill] sm:$0xff] }
 0x7bd   : > { %6849 = vmatpush.bf16.msra.mxu3 %v14712_v9  ;;  %v5916_v39 = vpop.f32.mrf.mxu3  ;;  %v7590_v9 = vmax.f32 %v7551_v24, 0.0 }
 0x7be   : > { %v7503_v53 = vpop.f32.mrf.mxu0  ;;  %v5917_v43 = vadd.f32 %v5916_v39, %v16755_v54  ;;  %v7552_v20 = vpop.f32.mrf.mxu1  ;;  %v5950_v28 = vmax.f32 %v5868_v61, 0.0 }
 0x7bf   : > { %v7504_v26 = vadd.f32 %v7503_v53, %v7389_v41  ;;  %v7553_v25 = vadd.f32 %v7552_v20, %v7389_v41 }
 0x7c0   : > { %6801 = vmatpush.bf16.msra.mxu2 %v14690_v35  ;;  %v5951_v59 = vmax.f32 %v5917_v43, 0.0  ;;  %v6046_v55 = vmul.f32 %v16756_v13, %v5950_v28  ;;  %v9186_v43 = vld [vmem:[%s9826_s5 + $0x348] sm:$0xff] }
 0x7c1   : > { %v7591_v49 = vmax.f32 %v7504_v26, 0.0  ;;  %6850 = vmatpush.bf16.msra.mxu3 %v14692_v8  ;;  %v7592_v42 = vmax.f32 %v7553_v25, 0.0 }
 0x7c2   : > { %v6047_v10 = vmul.f32 %v16756_v13, %v5951_v59  ;;  %v6064_v6 = vadd.f32 %v6063_v38, %v6046_v55 }
 0x7c3   : > { %6802 = vmatmul.bf16.vlgmr.msra.gmra.mxu2 %v9185_v31  ;;  %v14914_v12 = vpack.c.bf16 %v7591_v49, %v7589_v4  ;;  %v14916_v63 = vpack.c.bf16 %v7592_v42, %v7590_v9  ;;  %v5870_v52 = vpop.f32.mrf.mxu2  ;;  %v16759_v49 = vld [vmem:[#allocation231_spill] sm:$0xff] }
 0x7c4   : > { %6851 = vmatmul.bf16.vlgmr.msra.gmra.mxu3 %v9185_v31  ;;  %v5871_v56 = vadd.f32 %v5870_v52, %v5772_v48  ;;  %v6085_v33 = vadd.f32 %v6084_v40, %v6047_v10 }
 0x7c5   : > { %v5919_v35 = vpop.f32.mrf.mxu3 }
 0x7c6   : > { %v7506_v51 = vpop.f32.mrf.mxu0  ;;  %v5920_v8 = vadd.f32 %v5919_v35, %v5772_v48  ;;  %v7555_v45 = vpop.f32.mrf.mxu1  ;;  %v5952_v22 = vmax.f32 %v5871_v56, 0.0 }
 0x7c7   : > { %v7507_v41 = vadd.f32 %v7506_v51, %v14890_v19  ;;  %v7556_v60 = vadd.f32 %v7555_v45, %v14890_v19 }
 0x7c8   : > { %v5953_v62 = vmax.f32 %v5920_v8, 0.0  ;;  %v6048_v21 = vmul.f32 %v16757_v14, %v5952_v22 }
 0x7c9   : > { %v7593_v26 = vmax.f32 %v7507_v41, 0.0  ;;  %v7594_v4 = vmax.f32 %v7556_v60, 0.0  ;;  %v9187_v41 = vld [vmem:[%s9826_s5 + $0x350] sm:$0xff] }
 0x7ca   : > { %v6049_v47 = vmul.f32 %v16757_v14, %v5953_v62  ;;  %v6065_v0 = vadd.f32 %v6064_v6, %v6048_v21 }
 0x7cb   : > { %v5872_v1 = vpop.f32.mrf.mxu2 }
 0x7cc   : > { %v6086_v46 = vadd.f32 %v6085_v33, %v6049_v47  ;;  %v5873_v24 = vadd.f32 %v5872_v1, %v16758_v17  ;;  %v16760_v47 = vld [vmem:[#allocation143_spill] sm:$0xff] }
 0x7cd   : > { %v5921_v54 = vpop.f32.mrf.mxu3 }
 0x7ce   : > { %v7508_v61 = vpop.f32.mrf.mxu0  ;;  %v5922_v39 = vadd.f32 %v5921_v54, %v16758_v17  ;;  %v7557_v53 = vpop.f32.mrf.mxu1  ;;  %v5954_v40 = vmax.f32 %v5873_v24, 0.0 }
 0x7cf   : > { %v7509_v38 = vadd.f32 %v7508_v61, %v14861_v36  ;;  %v7558_v20 = vadd.f32 %v7557_v53, %v14861_v36 }
 0x7d0   : > { %v5955_v31 = vmax.f32 %v5922_v39, 0.0  ;;  %v6050_v9 = vmul.f32 %v16759_v49, %v5954_v40 }
 0x7d1   : > { %v7595_v25 = vmax.f32 %v7509_v38, 0.0  ;;  %v7596_v19 = vmax.f32 %v7558_v20, 0.0 }
 0x7d2   : > { %v6051_v28 = vmul.f32 %v16759_v49, %v5955_v31  ;;  %v6066_v59 = vadd.f32 %v6065_v0, %v6050_v9 }
 0x7d3   : > { %v14931_v42 = vpack.c.bf16 %v7595_v25, %v7593_v26  ;;  %6807 = vmatmul.bf16.gmra.mxu2 %v9186_v43  ;;  %v14933_v48 = vpack.c.bf16 %v7596_v19, %v7594_v4 }
 0x7d4   : > { %6856 = vmatmul.bf16.gmra.mxu3 %v9186_v43  ;;  %v6087_v52 = vadd.f32 %v6086_v46, %v6051_v28  ;;  %v6067_v13 = vrot.slane %v6066_v59, 4 }
 0x7d6   : > { %v7511_v55 = vpop.f32.mrf.mxu0  ;;  %v6088_v36 = vrot.slane %v6087_v52, 4  ;;  %v7560_v56 = vpop.f32.mrf.mxu1  ;;  %v6068_v35 = vadd.f32 %v6067_v13, %v6066_v59  ;;  %v9188_v59 = vld [vmem:[%s9826_s5 + $0x358] sm:$0xff] }
 0x7d7   : > { %v7512_v62 = vadd.f32 %v7511_v55, %v14842_v57  ;;  %v7561_v14 = vadd.f32 %v7560_v56, %v14842_v57 }
 0x7d8   : > { %v6089_v51 = vadd.f32 %v6088_v36, %v6087_v52  ;;  %v6069_v10 = vrot.slane %v6068_v35, 2 }
 0x7d9   : > { %v7597_v24 = vmax.f32 %v7512_v62, 0.0  ;;  %v7598_v39 = vmax.f32 %v7561_v14, 0.0  ;;  %v9190_v62 = vld [vmem:[%s9826_s5 + $0x368] sm:$0xff] }
 0x7da   : > { %v6090_v8 = vrot.slane %v6089_v51, 2  ;;  %v6070_v45 = vadd.f32 %v6069_v10, %v6068_v35 }
 0x7dc   : > { %v6091_v22 = vadd.f32 %v6090_v8, %v6089_v51  ;;  %v6071_v6 = vrot.slane %v6070_v45, 1  ;;  %v9189_v51 = vld [vmem:[%s9826_s5 + $0x360] sm:$0xff] }
 0x7de   : > { %v7513_v21 = vpop.f32.mrf.mxu0  ;;  %v6092_v33 = vrot.slane %v6091_v22, 1  ;;  %v7562_v46 = vpop.f32.mrf.mxu1  ;;  %v6072_v1 = vadd.f32 %v6071_v6, %v6070_v45 }
 0x7df   : > { %v7514_v0 = vadd.f32 %v7513_v21, %v16760_v47  ;;  %v7563_v60 = vadd.f32 %v7562_v46, %v16760_v47  ;;  %v9191_v46 = vld [vmem:[%s9826_s5 + $0x370] sm:$0xff] }
 0x7e0   : > { %v6093_v17 = vadd.f32 %v6092_v33, %v6091_v22  ;;  %v6094_v61 = vadd.f32 %v6072_v1, %v16706_v44 }
 0x7e1   : > { %v7599_v54 = vmax.f32 %v7514_v0, 0.0  ;;  %v7600_v38 = vmax.f32 %v7563_v60, 0.0 }
 0x7e2   : > { %v6095_v53 = vadd.f32 %v6093_v17, %v16706_v44  ;;  %9419 = vtanh.f32 %v6094_v61 }
 0x7e3   : > { %v14942_v43 = vpack.c.bf16 %v7599_v54, %v7597_v24  ;;  %6812 = vmatmul.bf16.gmra.mxu2 %v9187_v41  ;;  %v14944_v57 = vpack.c.bf16 %v7600_v38, %v7598_v39 }
 0x7e4   : > { %6861 = vmatmul.bf16.gmra.mxu3 %v9187_v41  ;;  %9421 = vtanh.f32 %v6095_v53 }
 0x7e6   : > { %v14946_v40 = vpop.f32.mrf.mxu0  ;;  %v14948_v20 = vpop.f32.mrf.mxu1 }
 0x7e8   : > { %v9420_v26 = vpop.eup %9419 }
 0x7e9   : > { %v6098_v25 = vmul.f32 %v9420_v26, %v16708_v30 }
 0x7ea   : > { %v9422_v31 = vpop.eup %9421 }
 0x7eb   : > { %v6099_v4 = vmul.f32 %v9422_v31, %v16708_v30  ;;  %v6104_v49 = vrot.slane %v6098_v25, 5 }
 0x7ed   : > { %v6105_v19 = vrot.slane %v6099_v4, 5  ;;  %v14954_v52 = vadd.f32 %v6104_v49, %v14651_v27 }
 0x7ee   : > { %v7518_v9 = vpop.f32.mrf.mxu0  ;;  %v7567_v28 = vpop.f32.mrf.mxu1 }
 0x7ef   : > { %v14957_v13 = vadd.f32 %v6105_v19, %v14656_v37 }
 0x7f3   : > { %6817 = vmatmul.bf16.gmra.mxu2 %v9188_v59 }
 0x7f4   : > { %6866 = vmatmul.bf16.gmra.mxu3 %v9188_v59 }
 0x7f6   : > { %v7521_v55 = vpop.f32.mrf.mxu0  ;;  %v7570_v36 = vpop.f32.mrf.mxu1 }
 0x7fe   : > { %v7523_v56 = vpop.f32.mrf.mxu0  ;;  %v7572_v35 = vpop.f32.mrf.mxu1 }
 0x7ff   : > { %v7573_v26 = vadd.f32 %v7572_v35, %v14848_v23 }
 0x803   : > { %6822 = vmatmul.bf16.gmra.mxu2 %v9189_v51 }
 0x804   : > { %6871 = vmatmul.bf16.gmra.mxu3 %v9189_v51  ;;  %v7568_v51 = vadd.f32 %v7567_v28, %v14881_v32 }
 0x806   : > { %v7526_v10 = vpop.f32.mrf.mxu0  ;;  %v7575_v8 = vpop.f32.mrf.mxu1 }
 0x807   : > { %v7527_v60 = vadd.f32 %v7526_v10, %v14836_v16  ;;  %v7576_v54 = vadd.f32 %v7575_v8, %v14836_v16  ;;  %v7519_v16 = vadd.f32 %v7518_v9, %v14881_v32  ;;  %v7608_v10 = vmax.f32 %v7573_v26, 0.0 }
 0x808   : > { %v7604_v9 = vmax.f32 %v7568_v51, 0.0 }
 0x809   : > { %v7609_v4 = vmax.f32 %v7527_v60, 0.0  ;;  %v7610_v19 = vmax.f32 %v7576_v54, 0.0 }
 0x80e   : > { %v7528_v45 = vpop.f32.mrf.mxu0  ;;  %v7577_v22 = vpop.f32.mrf.mxu1 }
 0x80f   : > { %v7529_v33 = vadd.f32 %v7528_v45, %v14814_v11  ;;  %v7578_v41 = vadd.f32 %v7577_v22, %v14814_v11  ;;  %v16761_v11 = vld [vmem:[#allocation147_spill] sm:$0xff]  ;;  %v7603_v45 = vmax.f32 %v7519_v16, 0.0 }
 0x810   : > { %v7571_v49 = vadd.f32 %v7570_v36, %v16761_v11 }
 0x811   : > { %v7611_v38 = vmax.f32 %v7529_v33, 0.0  ;;  %v7612_v31 = vmax.f32 %v7578_v41, 0.0  ;;  %v9202_v33 = vld [vmem:[%s9826_s5 + $0x3c8] sm:$0xff] }
 0x812   : > { %v7606_v36 = vmax.f32 %v7571_v49, 0.0 }
 0x813   : > { %6827 = vmatmul.bf16.gmra.mxu2 %v9190_v62  ;;  %v7647_v8 = vpack.c.bf16 %v7612_v31, %v7610_v19 }
 0x814   : > { %6876 = vmatmul.bf16.gmra.mxu3 %v9190_v62  ;;  %v7645_v62 = vpack.c.bf16 %v7608_v10, %v7606_v36  ;;  %v6942_v36 = vpop.permute.xlu2 %6941 }
 0x816   : > { %v7531_v27 = vpop.f32.mrf.mxu0  ;;  %v7580_v37 = vpop.f32.mrf.mxu1 }
 0x817   : > { %v7532_v6 = vadd.f32 %v7531_v27, %v14826_v50  ;;  %v7581_v14 = vadd.f32 %v7580_v37, %v14826_v50  ;;  %v7524_v50 = vadd.f32 %v7523_v56, %v14848_v23  ;;  %v7646_v56 = vpack.c.bf16 %v7611_v38, %v7609_v4  ;;  %v9192_v37 = vld [vmem:[%s9826_s5 + $0x378] sm:$0xff]  ;;  %v9203_v4 = vld [vmem:[%s9826_s5 + $0x3d0] sm:$0xff] }
 0x818   : > { %v7517_v23 = vadd.f32 %v14946_v40, %v14831_v2 }
 0x819   : > { %v7613_v17 = vmax.f32 %v7532_v6, 0.0  ;;  %v7614_v61 = vmax.f32 %v7581_v14, 0.0  ;;  %v7607_v59 = vmax.f32 %v7524_v50, 0.0  ;;  %v16762_v50 = vld [vmem:[#allocation227_spill] sm:$0xff] }
 0x81a   : > { %v7601_v27 = vmax.f32 %v7517_v23, 0.0 }
 0x81c   : > { %v7642_v28 = vpack.c.bf16 %v7603_v45, %v7601_v27 }
 0x81e   : > { %v7533_v21 = vpop.f32.mrf.mxu0  ;;  %v7582_v0 = vpop.f32.mrf.mxu1 }
 0x81f   : > { %v7534_v47 = vadd.f32 %v7533_v21, %v14801_v7  ;;  %v7583_v1 = vadd.f32 %v7582_v0, %v14801_v7  ;;  %v7522_v7 = vadd.f32 %v7521_v55, %v16761_v11  ;;  %v7566_v55 = vadd.f32 %v14948_v20, %v14831_v2  ;;  %v9201_v2 = vld [vmem:[%s9826_s5 + $0x3c0] sm:$0xff] }
 0x821   : > { %v7615_v24 = vmax.f32 %v7534_v47, 0.0  ;;  %v7616_v39 = vmax.f32 %v7583_v1, 0.0  ;;  %v7605_v35 = vmax.f32 %v7522_v7, 0.0  ;;  %v7602_v32 = vmax.f32 %v7566_v55, 0.0  ;;  %v6692_v1 = vpop.permute.xlu0 %6691  ;;  %v6938_v7 = vpop.permute.xlu1 %6937 }
 0x823   : > { %v7648_v53 = vpack.c.bf16 %v7615_v24, %v7613_v17  ;;  %6832 = vmatmul.bf16.gmra.mxu2 %v9191_v46  ;;  %v7649_v25 = vpack.c.bf16 %v7616_v39, %v7614_v61  ;;  %v7644_v22 = vpack.c.bf16 %v7607_v59, %v7605_v35  ;;  %v7643_v6 = vpack.c.bf16 %v7604_v9, %v7602_v32 }
 0x824   : > { %6881 = vmatmul.bf16.gmra.mxu3 %v9191_v46 }
 0x825   : > { %7762 = vmatpush.bf16.msrb.mxu2 %v7648_v53  ;;  %7811 = vmatpush.bf16.msrb.mxu3 %v7649_v25 }
 0x829   : > { %7763 = vmatpush.bf16.msrb.mxu2 %v7646_v56  ;;  %7812 = vmatpush.bf16.msrb.mxu3 %v7647_v8  ;;  %v16763_v8 = vld [vmem:[#allocation200_spill] sm:$0xff] }
 0x82d   : > { %7764 = vmatpush.bf16.msrb.mxu2 %v7644_v22  ;;  %7813 = vmatpush.bf16.msrb.mxu3 %v7645_v62 }
 0x831   : > { %7765 = vmatpush.bf16.msrb.mxu2 %v7642_v28  ;;  %7814 = vmatpush.bf16.msrb.mxu3 %v7643_v6  ;;  %v16764_v28 = vld [vmem:[#allocation130_spill] sm:$0xff] }
 0x833   : > { %6837 = vmatmul.bf16.gmra.mxu2 %v9192_v37 }
 0x834   : > { %6886 = vmatmul.bf16.gmra.mxu3 %v9192_v37 }
 0x835   : > { %7766 = vmatpush.bf16.msrb.mxu2 %v14942_v43  ;;  %7815 = vmatpush.bf16.msrb.mxu3 %v14944_v57 }
 0x839   : > { %7767 = vmatpush.bf16.msrb.mxu2 %v14931_v42  ;;  %7816 = vmatpush.bf16.msrb.mxu3 %v14933_v48 }
 0x83d   : > { %7768 = vmatpush.bf16.msrb.mxu2 %v14914_v12  ;;  %7817 = vmatpush.bf16.msrb.mxu3 %v14916_v63 }
 0x841   : > { %7769 = vmatpush.bf16.msrb.mxu2 %v14893_v15  ;;  %7818 = vmatpush.bf16.msrb.mxu3 %v14895_v34 }
 0x844   : > { %7770 = vmatmul.bf16.vlgmr.msrb.gmra.mxu2 %v9201_v2  ;;  %7819 = vmatmul.bf16.vlgmr.msrb.gmra.mxu3 %v9201_v2 }
 0x846   : > { %v6803_v40 = vpop.f32.mrf.mxu2 }
 0x847   : > { %v6852_v43 = vpop.f32.mrf.mxu3  ;;  %v6804_v57 = vadd.f32 %v6803_v40, %v14450_v29  ;;  %v9204_v40 = vld [vmem:[%s9826_s5 + $0x3d8] sm:$0xff] }
 0x848   : > { %v6853_v42 = vadd.f32 %v6852_v43, %v14450_v29 }
 0x849   : > { %v6892_v48 = vmax.f32 %v6804_v57, 0.0 }
 0x84a   : > { %v6893_v63 = vmax.f32 %v6853_v42, 0.0  ;;  %v16765_v42 = vld [vmem:[#allocation172_spill] sm:$0xff] }
 0x84b   : > { %v6988_v34 = vmul.f32 %v14806_v58, %v6892_v48 }
 0x84c   : > { %v6989_v46 = vmul.f32 %v14806_v58, %v6893_v63 }
 0x84e   : > { %v6805_v20 = vpop.f32.mrf.mxu2 }
 0x84f   : > { %v6806_v12 = vadd.f32 %v6805_v20, %v14381_v18  ;;  %v6854_v14 = vpop.f32.mrf.mxu3 }
 0x850   : > { %v6855_v21 = vadd.f32 %v6854_v14, %v14381_v18 }
 0x851   : > { %v6894_v15 = vmax.f32 %v6806_v12, 0.0 }
 0x852   : > { %v6895_v47 = vmax.f32 %v6855_v21, 0.0  ;;  %v16766_v21 = vld [vmem:[#allocation30_spill] sm:$0xff] }
 0x853   : > { %v6990_v0 = vmul.f32 %v14779_v3, %v6894_v15 }
 0x854   : > { %v6991_v41 = vmul.f32 %v14779_v3, %v6895_v47  ;;  %7775 = vmatmul.bf16.gmra.mxu2 %v9202_v33  ;;  %7824 = vmatmul.bf16.gmra.mxu3 %v9202_v33 }
 0x855   : > { %v7020_v29 = vadd.f32 %v6990_v0, %v6988_v34  ;;  %v6950_v34 = vpop.permute.xlu1 %6949 }
 0x856   : > { %v7041_v60 = vadd.f32 %v6991_v41, %v6989_v46  ;;  %v6808_v17 = vpop.f32.mrf.mxu2  ;;  %v6954_v46 = vpop.permute.xlu2 %6953 }
 0x857   : > { %v6809_v24 = vadd.f32 %v6808_v17, %v6692_v1  ;;  %v6857_v18 = vpop.f32.mrf.mxu3  ;;  %v6712_v17 = vpop.permute.xlu0 %6711 }
 0x858   : > { %v6858_v54 = vadd.f32 %v6857_v18, %v6692_v1 }
 0x859   : > { %v6896_v61 = vmax.f32 %v6809_v24, 0.0 }
 0x85a   : > { %v6897_v39 = vmax.f32 %v6858_v54, 0.0 }
 0x85b   : > { %v6992_v38 = vmul.f32 %v16762_v50, %v6896_v61 }
 0x85c   : > { %v6993_v53 = vmul.f32 %v16762_v50, %v6897_v39  ;;  %v9205_v50 = vld [vmem:[%s9826_s5 + $0x3e0] sm:$0xff] }
 0x85d   : > { %v7021_v26 = vadd.f32 %v7020_v29, %v6992_v38  ;;  %v6958_v38 = vpop.permute.xlu1 %6957 }
 0x85e   : > { %v7042_v58 = vadd.f32 %v7041_v60, %v6993_v53  ;;  %v6810_v31 = vpop.f32.mrf.mxu2 }
 0x85f   : > { %v6811_v3 = vadd.f32 %v6810_v31, %v14728_v5  ;;  %v6859_v25 = vpop.f32.mrf.mxu3 }
 0x860   : > { %v6860_v11 = vadd.f32 %v6859_v25, %v14728_v5 }
 0x861   : > { %v6898_v49 = vmax.f32 %v6811_v3, 0.0 }
 0x862   : > { %v6899_v19 = vmax.f32 %v6860_v11, 0.0 }
 0x863   : > { %v6994_v16 = vmul.f32 %v6938_v7, %v6898_v49 }
 0x864   : > { %v6995_v59 = vmul.f32 %v6938_v7, %v6899_v19  ;;  %7780 = vmatmul.bf16.gmra.mxu2 %v9203_v4  ;;  %7829 = vmatmul.bf16.gmra.mxu3 %v9203_v4  ;;  %v16767_v4 = vld [vmem:[#allocation173_spill] sm:$0xff] }
 0x865   : > { %v7022_v56 = vadd.f32 %v7021_v26, %v6994_v16  ;;  %v6962_v26 = vpop.permute.xlu2 %6961 }
 0x866   : > { %v7043_v51 = vadd.f32 %v7042_v58, %v6995_v59  ;;  %v6813_v10 = vpop.f32.mrf.mxu2 }
 0x867   : > { %v6814_v23 = vadd.f32 %v6813_v10, %v16763_v8  ;;  %v6862_v35 = vpop.f32.mrf.mxu3 }
 0x868   : > { %v6863_v55 = vadd.f32 %v6862_v35, %v16763_v8 }
 0x869   : > { %v6900_v45 = vmax.f32 %v6814_v23, 0.0 }
 0x86a   : > { %v6901_v5 = vmax.f32 %v6863_v55, 0.0 }
 0x86b   : > { %v6996_v22 = vmul.f32 %v6942_v36, %v6900_v45  ;;  %v16768_v45 = vld [vmem:[#allocation81_spill] sm:$0xff] }
 0x86c   : > { %v6997_v9 = vmul.f32 %v6942_v36, %v6901_v5 }
 0x86d   : > { %v7023_v62 = vadd.f32 %v7022_v56, %v6996_v22  ;;  %v6974_v8 = vpop.permute.xlu2 %6973 }
 0x86e   : > { %v7044_v27 = vadd.f32 %v7043_v51, %v6997_v9  ;;  %v6815_v32 = vpop.f32.mrf.mxu2  ;;  %v6970_v51 = vpop.permute.xlu1 %6969 }
 0x86f   : > { %v6816_v37 = vadd.f32 %v6815_v32, %v16764_v28  ;;  %v6864_v6 = vpop.f32.mrf.mxu3 }
 0x870   : > { %v6865_v2 = vadd.f32 %v6864_v6, %v16764_v28 }
 0x871   : > { %v6902_v43 = vmax.f32 %v6816_v37, 0.0 }
 0x872   : > { %v6903_v57 = vmax.f32 %v6865_v2, 0.0 }
 0x873   : > { %v6998_v20 = vmul.f32 %v16765_v42, %v6902_v43 }
 0x874   : > { %v6999_v48 = vmul.f32 %v16765_v42, %v6903_v57  ;;  %7785 = vmatmul.bf16.gmra.mxu2 %v9204_v40  ;;  %7834 = vmatmul.bf16.gmra.mxu3 %v9204_v40  ;;  %v16769_v42 = vld [vmem:[#allocation118_spill] sm:$0xff] }
 0x875   : > { %v7024_v12 = vadd.f32 %v7023_v62, %v6998_v20  ;;  %v9206_v62 = vld [vmem:[%s9826_s5 + $0x3e8] sm:$0xff]  ;;  %v15021_v40 = vpop.permute.xlu2 %6985 }
 0x876   : > { %v6818_v14 = vpop.f32.mrf.mxu2  ;;  %v7045_v63 = vadd.f32 %v7044_v27, %v6999_v48  ;;  %v15019_v6 = vpop.permute.xlu1 %6981 }
 0x877   : > { %v6819_v33 = vadd.f32 %v6818_v14, %v16766_v21  ;;  %v6867_v15 = vpop.f32.mrf.mxu3 }
 0x878   : > { %v6868_v47 = vadd.f32 %v6867_v15, %v16766_v21  ;;  %v16770_v21 = vld [vmem:[#allocation279_spill] sm:$0xff] }
 0x879   : > { %v6904_v0 = vmax.f32 %v6819_v33, 0.0 }
 0x87a   : > { %v6905_v41 = vmax.f32 %v6868_v47, 0.0 }
 0x87b   : > { %v7000_v29 = vmul.f32 %v6950_v34, %v6904_v0 }
 0x87c   : > { %v7001_v1 = vmul.f32 %v6950_v34, %v6905_v41  ;;  %v16771_v41 = vld [vmem:[#allocation20_spill] sm:$0xff] }
 0x87d   : > { %v7025_v60 = vadd.f32 %v7024_v12, %v7000_v29 }
 0x87e   : > { %v7046_v24 = vadd.f32 %v7045_v63, %v7001_v1  ;;  %v6820_v18 = vpop.f32.mrf.mxu2 }
 0x87f   : > { %v6821_v54 = vadd.f32 %v6820_v18, %v6712_v17  ;;  %v6869_v61 = vpop.f32.mrf.mxu3 }
 0x880   : > { %v6870_v39 = vadd.f32 %v6869_v61, %v6712_v17 }
 0x881   : > { %v6906_v53 = vmax.f32 %v6821_v54, 0.0 }
 0x882   : > { %v6907_v58 = vmax.f32 %v6870_v39, 0.0 }
 0x883   : > { %v7002_v31 = vmul.f32 %v6954_v46, %v6906_v53 }
 0x884   : > { %v7003_v3 = vmul.f32 %v6954_v46, %v6907_v58  ;;  %7790 = vmatmul.bf16.gmra.mxu2 %v9205_v50  ;;  %7839 = vmatmul.bf16.gmra.mxu3 %v9205_v50  ;;  %v15027_v46 = vpop.permute.xlu1 %7655 }
 0x885   : > { %v7026_v25 = vadd.f32 %v7025_v60, %v7002_v31  ;;  %v15030_v60 = vpop.permute.xlu2 %7659 }
 0x886   : > { %v7047_v11 = vadd.f32 %v7046_v24, %v7003_v3  ;;  %v6823_v7 = vpop.f32.mrf.mxu2  ;;  %v9207_v24 = vld [vmem:[%s9826_s5 + $0x3f0] sm:$0xff] }
 0x887   : > { %v6824_v49 = vadd.f32 %v6823_v7, %v16767_v4  ;;  %v6872_v19 = vpop.f32.mrf.mxu3 }
 0x888   : > { %v6873_v16 = vadd.f32 %v6872_v19, %v16767_v4 }
 0x889   : > { %v6908_v59 = vmax.f32 %v6824_v49, 0.0 }
 0x88a   : > { %v6909_v56 = vmax.f32 %v6873_v16, 0.0 }
 0x88b   : > { %v7004_v10 = vmul.f32 %v6958_v38, %v6908_v59 }
 0x88c   : > { %v7005_v23 = vmul.f32 %v6958_v38, %v6909_v56  ;;  %v6732_v38 = vpop.permute.xlu0 %6731 }
 0x88d   : > { %v7027_v35 = vadd.f32 %v7026_v25, %v7004_v10  ;;  %v15034_v25 = vpop.permute.xlu1 %7663  ;;  %v15036_v7 = vpop.permute.xlu2 %7667 }
 0x88e   : > { %v7048_v55 = vadd.f32 %v7047_v11, %v7005_v23  ;;  %v6825_v36 = vpop.f32.mrf.mxu2 }
 0x88f   : > { %v6826_v5 = vadd.f32 %v6825_v36, %v16768_v45  ;;  %v6874_v22 = vpop.f32.mrf.mxu3 }
 0x890   : > { %v6875_v9 = vadd.f32 %v6874_v22, %v16768_v45  ;;  %v16773_v22 = vld [vmem:[#allocation133_spill] sm:$0xff] }
 0x891   : > { %v6910_v27 = vmax.f32 %v6826_v5, 0.0 }
 0x892   : > { %v6911_v32 = vmax.f32 %v6875_v9, 0.0 }
 0x893   : > { %v7006_v28 = vmul.f32 %v6962_v26, %v6910_v27 }
 0x894   : > { %v7007_v37 = vmul.f32 %v6962_v26, %v6911_v32  ;;  %7795 = vmatmul.bf16.gmra.mxu2 %v9206_v62  ;;  %7844 = vmatmul.bf16.gmra.mxu3 %v9206_v62 }
 0x895   : > { %v7028_v2 = vadd.f32 %v7027_v35, %v7006_v28  ;;  %v15041_v5 = vpop.permute.xlu1 %7675  ;;  %v15044_v62 = vpop.permute.xlu2 %7679 }
 0x896   : > { %v7049_v43 = vadd.f32 %v7048_v55, %v7007_v37  ;;  %v6828_v57 = vpop.f32.mrf.mxu2  ;;  %v9208_v55 = vld [vmem:[%s9826_s5 + $0x3f8] sm:$0xff]  ;;  %v16774_v37 = vld [vmem:[#allocation78_spill] sm:$0xff]  ;;  %s16778_s5 = sand.u32 1, %s9679_s16  }
 0x897   : > { %v6829_v20 = vadd.f32 %v6828_v57, %v16769_v42  ;;  %v6877_v48 = vpop.f32.mrf.mxu3  ;;  %s8060_s6 = scalar_lea.sflag [#allocation3], %s16778_s5 }
 0x898   : > { %v6878_v12 = vadd.f32 %v6877_v48, %v16769_v42 }
 0x899   : > { %v6912_v14 = vmax.f32 %v6829_v20, 0.0 }
 0x89a   : > { %v6913_v63 = vmax.f32 %v6878_v12, 0.0 }
 0x89b   : > { %v7008_v33 = vmul.f32 %v16770_v21, %v6912_v14 }
 0x89c   : > { %v7009_v15 = vmul.f32 %v16770_v21, %v6913_v63 }
 0x89d   : > { %v7029_v47 = vadd.f32 %v7028_v2, %v7008_v33  ;;  %v15051_v14 = vpop.permute.xlu1 %7687  ;;  %v15053_v21 = vpop.permute.xlu2 %7691 }
 0x89e   : > { %v7050_v34 = vadd.f32 %v7049_v43, %v7009_v15  ;;  %v6830_v0 = vpop.f32.mrf.mxu2  ;;  %v6744_v33 = vpop.permute.xlu0 %6743 }
 0x89f   : > { %v6831_v29 = vadd.f32 %v6830_v0, %v16771_v41  ;;  %v6879_v1 = vpop.f32.mrf.mxu3 }
 0x8a0   : > { %v6880_v17 = vadd.f32 %v6879_v1, %v16771_v41 }
 0x8a1   : > { %v6914_v18 = vmax.f32 %v6831_v29, 0.0 }
 0x8a2   : > { %v6915_v54 = vmax.f32 %v6880_v17, 0.0 }
 0x8a3   : > { %v7010_v61 = vmul.f32 %v6970_v51, %v6914_v18 }
 0x8a4   : > { %v7011_v39 = vmul.f32 %v6970_v51, %v6915_v54  ;;  %7800 = vmatmul.bf16.gmra.mxu2 %v9207_v24  ;;  %7849 = vmatmul.bf16.gmra.mxu3 %v9207_v24  ;;  %v16772_v51 = vld [vmem:[#allocation77_spill] sm:$0xff] }
 0x8a5   : > { %v7030_v50 = vadd.f32 %v7029_v47, %v7010_v61 }
 0x8a6   : > { %v7051_v53 = vadd.f32 %v7050_v34, %v7011_v39  ;;  %v6833_v26 = vpop.f32.mrf.mxu2 }
 0x8a7   : > { %v6834_v58 = vadd.f32 %v6833_v26, %v6732_v38  ;;  %v6882_v31 = vpop.f32.mrf.mxu3 }
 0x8a8   : > { %v6883_v3 = vadd.f32 %v6882_v31, %v6732_v38  ;;  %v7652_v31 = vpop.permute.xlu0 %7651 }
 0x8a9   : > { %v6916_v11 = vmax.f32 %v6834_v58, 0.0 }
 0x8aa   : > { %v6917_v4 = vmax.f32 %v6883_v3, 0.0 }
 0x8ab   : > { %v7012_v49 = vmul.f32 %v6974_v8, %v6916_v11 }
 0x8ac   : > { %v7013_v19 = vmul.f32 %v6974_v8, %v6917_v4 }
 0x8ad   : > { %v7031_v16 = vadd.f32 %v7030_v50, %v7012_v49  ;;  %v15059_v50 = vpop.permute.xlu2 %7703 }
 0x8ae   : > { %v7052_v59 = vadd.f32 %v7051_v53, %v7013_v19  ;;  %v6835_v56 = vpop.f32.mrf.mxu2 }
 0x8af   : > { %v6836_v10 = vadd.f32 %v6835_v56, %v16772_v51  ;;  %v6884_v23 = vpop.f32.mrf.mxu3 }
 0x8b0   : > { %v6885_v35 = vadd.f32 %v6884_v23, %v16772_v51 }
 0x8b1   : > { %v6918_v36 = vmax.f32 %v6836_v10, 0.0 }
 0x8b2   : > { %v6919_v45 = vmax.f32 %v6885_v35, 0.0 }
 0x8b3   : > { %v7014_v9 = vmul.f32 %v16773_v22, %v6918_v36 }
 0x8b4   : > { %v7015_v27 = vmul.f32 %v16773_v22, %v6919_v45  ;;  %7805 = vmatmul.bf16.gmra.mxu2 %v9208_v55  ;;  %7854 = vmatmul.bf16.gmra.mxu3 %v9208_v55 }
 0x8b5   : > { %v7032_v8 = vadd.f32 %v7031_v16, %v7014_v9  ;;  %v7898_v22 = vpop.permute.xlu2 %7897 }
 0x8b6   : > { %v7053_v32 = vadd.f32 %v7052_v59, %v7015_v27  ;;  %v6838_v28 = vpop.f32.mrf.mxu2 }
 0x8b7   : > { %v6839_v2 = vadd.f32 %v6838_v28, %v16774_v37  ;;  %v6887_v43 = vpop.f32.mrf.mxu3 }
 0x8b8   : > { %v6888_v57 = vadd.f32 %v6887_v43, %v16774_v37 }
 0x8b9   : > { %v6920_v42 = vmax.f32 %v6839_v2, 0.0 }
 0x8ba   : > { %v6921_v20 = vmax.f32 %v6888_v57, 0.0 }
 0x8bb   : > { %v7016_v48 = vmul.f32 %v15019_v6, %v6920_v42 }
 0x8bc   : > { %v7017_v12 = vmul.f32 %v15019_v6, %v6921_v20  ;;  %v15057_v6 = vpop.permute.xlu1 %7699 }
 0x8bd   : > { %v7033_v63 = vadd.f32 %v7032_v8, %v7016_v48 }
 0x8be   : > { %v7054_v15 = vadd.f32 %v7053_v32, %v7017_v12  ;;  %v6840_v47 = vpop.f32.mrf.mxu2 }
 0x8bf   : > { %v6841_v34 = vadd.f32 %v6840_v47, %v6744_v33  ;;  %v6889_v0 = vpop.f32.mrf.mxu3 }
 0x8c0   : > { %v6890_v41 = vadd.f32 %v6889_v0, %v6744_v33  ;;  %v16775_v0 = vld [vmem:[#allocation26_spill] sm:$0xff] }
 0x8c1   : > { %v6922_v29 = vmax.f32 %v6841_v34, 0.0 }
 0x8c2   : > { %v6923_v1 = vmax.f32 %v6890_v41, 0.0 }
 0x8c3   : > { %v7018_v17 = vmul.f32 %v15021_v40, %v6922_v29 }
 0x8c4   : > { %v7019_v24 = vmul.f32 %v15021_v40, %v6923_v1  ;;  %v7894_v36 = vpop.permute.xlu1 %7893 }
 0x8c5   : > { %v7034_v18 = vadd.f32 %v7033_v63, %v7018_v17 }
 0x8c6   : > { %v7055_v54 = vadd.f32 %v7054_v15, %v7019_v24 }
 0x8c7   : > { %v7035_v61 = vrot.slane %v7034_v18, 4  ;;  %v7771_v39 = vpop.f32.mrf.mxu2  ;;  %v7820_v53 = vpop.f32.mrf.mxu3 }
 0x8c8   : > { %v7056_v38 = vrot.slane %v7055_v54, 4  ;;  %v7772_v4 = vadd.f32 %v7771_v39, %v7652_v31  ;;  %v7821_v19 = vadd.f32 %v7820_v53, %v7652_v31 }
 0x8c9   : > { %v7036_v26 = vadd.f32 %v7035_v61, %v7034_v18 }
 0x8ca   : > { %v7057_v58 = vadd.f32 %v7056_v38, %v7055_v54  ;;  %v7860_v51 = vmax.f32 %v7772_v4, 0.0  ;;  %v7861_v55 = vmax.f32 %v7821_v19, 0.0 }
 0x8cb   : > { %v7037_v3 = vrot.slane %v7036_v26, 2 }
 0x8cc   : > { %v7058_v11 = vrot.slane %v7057_v58, 2  ;;  %v7956_v37 = vmul.f32 %v7894_v36, %v7860_v51  ;;  %v7957_v43 = vmul.f32 %v7894_v36, %v7861_v55 }
 0x8cd   : > { %v7038_v49 = vadd.f32 %v7037_v3, %v7036_v26 }
 0x8ce   : > { %v7059_v16 = vadd.f32 %v7058_v11, %v7057_v58  ;;  %v7906_v58 = vpop.permute.xlu1 %7905 }
 0x8cf   : > { %v7039_v40 = vrot.slane %v7038_v49, 1  ;;  %v7773_v59 = vpop.f32.mrf.mxu2  ;;  %v7822_v23 = vpop.f32.mrf.mxu3 }
 0x8d0   : > { %v7060_v56 = vrot.slane %v7059_v16, 1  ;;  %v7774_v10 = vadd.f32 %v7773_v59, %v15027_v46  ;;  %v7823_v45 = vadd.f32 %v7822_v23, %v15027_v46 }
 0x8d1   : > { %v7040_v35 = vadd.f32 %v7039_v40, %v7038_v49 }
 0x8d2   : > { %v7061_v9 = vadd.f32 %v7060_v56, %v7059_v16  ;;  %v7862_v27 = vmax.f32 %v7774_v10, 0.0  ;;  %v7863_v32 = vmax.f32 %v7823_v45, 0.0 }
 0x8d3   : > { %v7062_v8 = vadd.f32 %v7040_v35, %v16706_v44 }
 0x8d4   : > { %v7063_v28 = vadd.f32 %v7061_v9, %v16706_v44  ;;  %v7958_v2 = vmul.f32 %v7898_v22, %v7862_v27  ;;  %v7959_v57 = vmul.f32 %v7898_v22, %v7863_v32 }
 0x8d5   : > { %9423 = vtanh.f32 %v7062_v8 }
 0x8d6   : > { %9425 = vtanh.f32 %v7063_v28  ;;  %v7988_v42 = vadd.f32 %v7958_v2, %v7956_v37  ;;  %v8009_v20 = vadd.f32 %v7959_v57, %v7957_v43  ;;  %v7672_v43 = vpop.permute.xlu0 %7671 }
 0x8d7   : > { %v7776_v48 = vpop.f32.mrf.mxu2  ;;  %v7825_v46 = vpop.f32.mrf.mxu3 }
 0x8d8   : > { %v7777_v12 = vadd.f32 %v7776_v48, %v15030_v60  ;;  %v7826_v63 = vadd.f32 %v7825_v46, %v15030_v60 }
 0x8da   : > { %v7864_v33 = vmax.f32 %v7777_v12, 0.0  ;;  %v7865_v47 = vmax.f32 %v7826_v63, 0.0 }
 0x8db   : > { %v9424_v15 = vpop.eup %9423 }
 0x8dc   : > { %v9426_v34 = vpop.eup %9425  ;;  %v7960_v41 = vmul.f32 %v16775_v0, %v7864_v33  ;;  %v7066_v29 = vmul.f32 %v9424_v15, %v16708_v30  ;;  %v7961_v1 = vmul.f32 %v16775_v0, %v7865_v47 }
 0x8dd   : > { %v7067_v17 = vmul.f32 %v9426_v34, %v16708_v30 }
 0x8de   : > { %v7989_v24 = vadd.f32 %v7988_v42, %v7960_v41  ;;  %v7072_v18 = vrot.slane %v7066_v29, 6  ;;  %v8010_v54 = vadd.f32 %v8009_v20, %v7961_v1  ;;  %v7914_v42 = vpop.permute.xlu1 %7913  ;;  %v7684_v48 = vpop.permute.xlu0 %7683 }
 0x8df   : > { %v7778_v61 = vpop.f32.mrf.mxu2  ;;  %v7073_v39 = vrot.slane %v7067_v17, 6  ;;  %v7827_v60 = vpop.f32.mrf.mxu3 }
 0x8e0   : > { %v7779_v38 = vadd.f32 %v7778_v61, %v15034_v25  ;;  %v15073_v53 = vadd.f32 %v7072_v18, %v14954_v52  ;;  %v7828_v26 = vadd.f32 %v7827_v60, %v15034_v25  ;;  %v7910_v52 = vpop.permute.xlu2 %7909 }
 0x8e1   : > { %v15077_v31 = vadd.f32 %v7073_v39, %v14957_v13 }
 0x8e2   : > { %v7866_v3 = vmax.f32 %v7779_v38, 0.0  ;;  %v7867_v11 = vmax.f32 %v7828_v26, 0.0 }
 0x8e4   : > { %v7962_v4 = vmul.f32 %v7906_v58, %v7866_v3  ;;  %v7963_v49 = vmul.f32 %v7906_v58, %v7867_v11 }
 0x8e6   : > { %v7990_v19 = vadd.f32 %v7989_v24, %v7962_v4  ;;  %v8011_v16 = vadd.f32 %v8010_v54, %v7963_v49  ;;  %v7926_v63 = vpop.permute.xlu1 %7925  ;;  %v7696_v29 = vpop.permute.xlu0 %7695 }
 0x8e7   : > { %v7781_v40 = vpop.f32.mrf.mxu2  ;;  %v7830_v56 = vpop.f32.mrf.mxu3 }
 0x8e8   : > { %v7782_v59 = vadd.f32 %v7781_v40, %v15036_v7  ;;  %v7831_v51 = vadd.f32 %v7830_v56, %v15036_v7  ;;  %v7918_v46 = vpop.permute.xlu2 %7917 }
 0x8ea   : > { %v7868_v10 = vmax.f32 %v7782_v59, 0.0  ;;  %v7869_v23 = vmax.f32 %v7831_v51, 0.0 }
 0x8ec   : > { %v7964_v25 = vmul.f32 %v7910_v52, %v7868_v10  ;;  %v7965_v35 = vmul.f32 %v7910_v52, %v7869_v23  ;;  %v16776_v23 = vld [vmem:[#allocation114_spill] sm:$0xff] }
 0x8ee   : > { %v7991_v55 = vadd.f32 %v7990_v19, %v7964_v25  ;;  %v8012_v13 = vadd.f32 %v8011_v16, %v7965_v35  ;;  %v7938_v49 = vpop.permute.xlu1 %7937 }
 0x8ef   : > { %v7783_v36 = vpop.f32.mrf.mxu2  ;;  %v7832_v45 = vpop.f32.mrf.mxu3 }
 0x8f0   : > { %v7784_v33 = vadd.f32 %v7783_v36, %v7672_v43  ;;  %v7833_v15 = vadd.f32 %v7832_v45, %v7672_v43  ;;  %v7930_v54 = vpop.permute.xlu2 %7929 }
 0x8f2   : > { %v7870_v1 = vmax.f32 %v7784_v33, 0.0  ;;  %v7871_v24 = vmax.f32 %v7833_v15, 0.0 }
 0x8f4   : > { %v7966_v26 = vmul.f32 %v7914_v42, %v7870_v1  ;;  %v7967_v11 = vmul.f32 %v7914_v42, %v7871_v24 }
 0x8f6   : > { %v7992_v10 = vadd.f32 %v7991_v55, %v7966_v26  ;;  %v8013_v45 = vadd.f32 %v8012_v13, %v7967_v11  ;;  %v7946_v24 = vpop.permute.xlu1 %7945 }
 0x8f7   : > { %v7786_v22 = vpop.f32.mrf.mxu2  ;;  %v7835_v9 = vpop.f32.mrf.mxu3 }
 0x8f8   : > { %v7787_v34 = vadd.f32 %v7786_v22, %v15041_v5  ;;  %v7836_v41 = vadd.f32 %v7835_v9, %v15041_v5  ;;  %v7942_v55 = vpop.permute.xlu2 %7941 }
 0x8fa   : > { %v7872_v61 = vmax.f32 %v7787_v34, 0.0  ;;  %v7873_v38 = vmax.f32 %v7836_v41, 0.0  ;;  %v16777_v41 = vld [vmem:[#allocation121_spill] sm:$0xff] }
 0x8fc   : > { %v7968_v16 = vmul.f32 %v7918_v46, %v7872_v61  ;;  %v7969_v56 = vmul.f32 %v7918_v46, %v7873_v38 }
 0x8ff   : > { %v7788_v27 = vpop.f32.mrf.mxu2  ;;  %v7837_v8 = vpop.f32.mrf.mxu3 }
 0x900   : > { %v7789_v17 = vadd.f32 %v7788_v27, %v15044_v62  ;;  %v7838_v18 = vadd.f32 %v7837_v8, %v15044_v62  ;;  %v7708_v27 = vpop.permute.xlu0 %7707  ;;  %v7993_v8 = vadd.f32 %v7992_v10, %v7968_v16 }
 0x902   : > { %v7874_v58 = vmax.f32 %v7789_v17, 0.0  ;;  %v7875_v4 = vmax.f32 %v7838_v18, 0.0 }
 0x904   : > { %v7970_v25 = vmul.f32 %v16776_v23, %v7874_v58  ;;  %v7971_v22 = vmul.f32 %v16776_v23, %v7875_v4 }
 0x907   : > { %v7791_v32 = vpop.f32.mrf.mxu2  ;;  %v7840_v28 = vpop.f32.mrf.mxu3 }
 0x908   : > { %v7792_v39 = vadd.f32 %v7791_v32, %v7684_v48  ;;  %v7841_v60 = vadd.f32 %v7840_v28, %v7684_v48 }
 0x90a   : > { %v7876_v40 = vmax.f32 %v7792_v39, 0.0  ;;  %v7877_v51 = vmax.f32 %v7841_v60, 0.0 }
 0x90c   : > { %v7972_v32 = vmul.f32 %v7926_v63, %v7876_v40  ;;  %v7973_v43 = vmul.f32 %v7926_v63, %v7877_v51 }
 0x90f   : > { %v7793_v37 = vpop.f32.mrf.mxu2  ;;  %v7842_v2 = vpop.f32.mrf.mxu3 }
 0x910   : > { %v7794_v3 = vadd.f32 %v7793_v37, %v15051_v14  ;;  %v7843_v5 = vadd.f32 %v7842_v2, %v15051_v14  ;;  %v8014_v2 = vadd.f32 %v8013_v45, %v7969_v56  ;;  %v7950_v56 = vpop.permute.xlu2 %7949 }
 0x912   : > { %v7878_v35 = vmax.f32 %v7794_v3, 0.0  ;;  %v7879_v14 = vmax.f32 %v7843_v5, 0.0  ;;  %v8015_v48 = vadd.f32 %v8014_v2, %v7971_v22 }
 0x914   : > { %v7974_v42 = vmul.f32 %v7930_v54, %v7878_v35  ;;  %v7975_v46 = vmul.f32 %v7930_v54, %v7879_v14  ;;  %v8016_v17 = vadd.f32 %v8015_v48, %v7973_v43 }
 0x916   : > { %v8017_v54 = vadd.f32 %v8016_v17, %v7975_v46 }
 0x917   : > { %v7796_v57 = vpop.f32.mrf.mxu2  ;;  %v7845_v7 = vpop.f32.mrf.mxu3 }
 0x918   : > { %v7797_v59 = vadd.f32 %v7796_v57, %v15053_v21  ;;  %v7846_v52 = vadd.f32 %v7845_v7, %v15053_v21  ;;  %v7994_v7 = vadd.f32 %v7993_v8, %v7970_v25 }
 0x91a   : > { %v7880_v28 = vmax.f32 %v7797_v59, 0.0  ;;  %v7881_v57 = vmax.f32 %v7846_v52, 0.0  ;;  %v7995_v34 = vadd.f32 %v7994_v7, %v7972_v32 }
 0x91c   : > { %v7996_v61 = vadd.f32 %v7995_v34, %v7974_v42 }
 0x91f   : > { %v7798_v20 = vpop.f32.mrf.mxu2  ;;  %v7847_v12 = vpop.f32.mrf.mxu3 }
 0x920   : > { %v7799_v36 = vadd.f32 %v7798_v20, %v7696_v29  ;;  %v7848_v9 = vadd.f32 %v7847_v12, %v7696_v29 }
 0x922   : > { %v7882_v20 = vmax.f32 %v7799_v36, 0.0  ;;  %v7883_v12 = vmax.f32 %v7848_v9, 0.0 }
 0x924   : > { %v7978_v39 = vmul.f32 %v7938_v49, %v7882_v20  ;;  %v7979_v60 = vmul.f32 %v7938_v49, %v7883_v12 }
 0x927   : > { %v7801_v47 = vpop.f32.mrf.mxu2  ;;  %v7850_v0 = vpop.f32.mrf.mxu3 }
 0x928   : > { %v7802_v37 = vadd.f32 %v7801_v47, %v15057_v6  ;;  %v7851_v21 = vadd.f32 %v7850_v0, %v15057_v6  ;;  %v7976_v47 = vmul.f32 %v16777_v41, %v7880_v28  ;;  %v7977_v6 = vmul.f32 %v16777_v41, %v7881_v57 }
 0x92a   : > { %v7884_v29 = vmax.f32 %v7802_v37, 0.0  ;;  %v7885_v0 = vmax.f32 %v7851_v21, 0.0  ;;  %v8018_v11 = vadd.f32 %v8017_v54, %v7977_v6 }
 0x92c   : > { %v7980_v58 = vmul.f32 %v7942_v55, %v7884_v29  ;;  %v7981_v4 = vmul.f32 %v7942_v55, %v7885_v0  ;;  %v8019_v59 = vadd.f32 %v8018_v11, %v7979_v60 }
 0x92e   : > { %v8020_v35 = vadd.f32 %v8019_v59, %v7981_v4 }
 0x92f   : > { %v7803_v19 = vpop.f32.mrf.mxu2  ;;  %v7852_v62 = vpop.f32.mrf.mxu3 }
 0x930   : > { %v7804_v13 = vadd.f32 %v7803_v19, %v15059_v50  ;;  %v7853_v33 = vadd.f32 %v7852_v62, %v15059_v50  ;;  %v7997_v50 = vadd.f32 %v7996_v61, %v7976_v47  ;;  %v7712_v19 = vpop.permute.xlu0 %7711 }
 0x932   : > { %v7886_v38 = vmax.f32 %v7804_v13, 0.0  ;;  %v7887_v26 = vmax.f32 %v7853_v33, 0.0  ;;  %v7998_v16 = vadd.f32 %v7997_v50, %v7978_v39 }
 0x934   : > { %v7982_v40 = vmul.f32 %v7946_v24, %v7886_v38  ;;  %v7983_v62 = vmul.f32 %v7946_v24, %v7887_v26  ;;  %v7999_v52 = vadd.f32 %v7998_v16, %v7980_v58  ;;  %v8054_v24 = vlaneseq }
 0x936   : > { %v8000_v45 = vadd.f32 %v7999_v52, %v7982_v40  ;;  %v8021_v14 = vadd.f32 %v8020_v35, %v7983_v62  ;;  %vm8056_vm2 = vcmp.lt.s32.totalorder %v8054_v24, 256 }
 0x937   : > { %v7806_v15 = vpop.f32.mrf.mxu2  ;;  %v7855_v1 = vpop.f32.mrf.mxu3 }
 0x938   : > { %v7807_v63 = vadd.f32 %v7806_v15, %v7708_v27  ;;  %v7856_v18 = vadd.f32 %v7855_v1, %v7708_v27  ;;  %v7954_v27 = vpop.permute.xlu1 %7953 }
 0x93a   : > { %v7888_v3 = vmax.f32 %v7807_v63, 0.0  ;;  %v7889_v5 = vmax.f32 %v7856_v18, 0.0  ;;  %v8046_v18 = vld [vmem:[%s9833_s13] sm:$0x3] }
 0x93c   : > { %v7984_v10 = vmul.f32 %v7950_v56, %v7888_v3  ;;  %v7985_v49 = vmul.f32 %v7950_v56, %v7889_v5 }
 0x93e   : > { %v8001_v8 = vadd.f32 %v8000_v45, %v7984_v10  ;;  %v8022_v28 = vadd.f32 %v8021_v14, %v7985_v49 }
 0x93f   : > { %v7808_v51 = vpop.f32.mrf.mxu2  ;;  %v7857_v25 = vpop.f32.mrf.mxu3 }
 0x940   : > { %v7809_v23 = vadd.f32 %v7808_v51, %v7712_v19  ;;  %v7858_v36 = vadd.f32 %v7857_v25, %v7712_v19 }
 0x942   : > { %v7890_v22 = vmax.f32 %v7809_v23, 0.0  ;;  %v7891_v9 = vmax.f32 %v7858_v36, 0.0 }
 0x944   : > { %v7986_v32 = vmul.f32 %v7954_v27, %v7890_v22  ;;  %v7987_v37 = vmul.f32 %v7954_v27, %v7891_v9 }
 0x946   : > { %v8002_v2 = vadd.f32 %v8001_v8, %v7986_v32  ;;  %v8023_v43 = vadd.f32 %v8022_v28, %v7987_v37 }
 0x948   : > { %v8003_v57 = vrot.slane %v8002_v2, 4  ;;  %v8024_v21 = vrot.slane %v8023_v43, 4 }
 0x94a   : > { %v8004_v55 = vadd.f32 %v8003_v57, %v8002_v2  ;;  %v8025_v7 = vadd.f32 %v8024_v21, %v8023_v43 }
 0x94c   : > { %v8005_v42 = vrot.slane %v8004_v55, 2  ;;  %v8026_v20 = vrot.slane %v8025_v7, 2 }
 0x94e   : > { %v8006_v13 = vadd.f32 %v8005_v42, %v8004_v55  ;;  %v8027_v48 = vadd.f32 %v8026_v20, %v8025_v7 }
 0x950   : > { %v8007_v46 = vrot.slane %v8006_v13, 1  ;;  %v8028_v12 = vrot.slane %v8027_v48, 1 }
 0x952   : > { %v8008_v33 = vadd.f32 %v8007_v46, %v8006_v13  ;;  %v8029_v15 = vadd.f32 %v8028_v12, %v8027_v48 }
 0x954   : > { %v8030_v34 = vadd.f32 %v8008_v33, %v16706_v44  ;;  %v8031_v41 = vadd.f32 %v8029_v15, %v16706_v44 }
 0x956   : > { %9427 = vtanh.f32 %v8030_v34 }
 0x957   : > { %9429 = vtanh.f32 %v8031_v41 }
 0x95c   : > { %v9428_v47 = vpop.eup %9427 }
 0x95d   : > { %v9430_v29 = vpop.eup %9429  ;;  %v8034_v63 = vmul.f32 %v9428_v47, %v16708_v30 }
 0x95e   : > { %v8035_v1 = vmul.f32 %v9430_v29, %v16708_v30 }
 0x95f   : > { %v8040_v17 = vrot.slane %v8034_v63, 7 }
 0x960   : > { %v8041_v6 = vrot.slane %v8035_v1, 7 }
 0x961   : > { %v8044_v0 = vadd.f32 %v8040_v17, %v15073_v53 }
 0x962   : > { %v8045_v44 = vadd.f32 %v8041_v6, %v15077_v31 }
 0x964   : > { %v8049_v61 = vrot.slane %v8045_v44, 7 }
 0x966   : > { %v8051_v30 = vsel %vm8050_vm1, %v8044_v0, %v8049_v61 }
 0x967   : > { %v8053_v39 = vadd.f32 %v8051_v30, %v8046_v18 }
 0x969   : > { %8058 = vst.msk [vmem:[%s9833_s13] sm:$0x3] %vm8056_vm2, %v8053_v39 }
 0x96a   : > { %9636 = shalt.err (!%p9633_p10)
}
 0x96b   : > { %9209 = dma.vmem_to_hbm [thread:$0]  (%p9783_p3), %s8073_s25, 32, %s8075_s26, %s8060_s6  }
 0x96c PF: > { %p9215_p11 = scmp.ge.s32.totalorder %s9703_s22, 2  ;;  %s8086_s30 = sand.u32 1, %s9675_s15  }
 0x96d   : > { %s8087_s19 = scalar_lea.sflag [#allocation3], %s8086_s30 }
 0x96e   : > { %p9212_p12 = pnand %p9215_p11, %p9793_p9 }
 0x970   : > { %p9213_p13 = pneg %p9212_p12 }
 0x972   : > { %9670 = dma.done.wait (%p9213_p13), %s8087_s19, 32  }
 0x973   : > { %9672 = vsyncadd (%p9213_p13), %s8087_s19, 4294967264  ;;  %s17_s22 = sadd.s32 1, %s9703_s22   ;;  %s16779_s10 = sld [smem:[#allocation9_spill]] }
 0x974   : > { %p14_p0 = scmp.ge.s32.totalorder %s17_s22, 6   ;;  %s16780_s18 = sld [smem:[#allocation5_spill]] }
 0x975   : > { %s16781_s19 = sld [smem:[#allocation6_spill]]  ;;  %s16784_s15 = smov %s9679_s16 }
 0x976   : > { %s16782_s20 = sld [smem:[#allocation7_spill]]  ;;  %s16785_s16 = smov %s9683_s17 }
 0x977   : > { %s16783_s21 = sld [smem:[#allocation8_spill]]  ;;  %16 = sbr.rel (!%p14_p0) target bundleno = 5 (0x5), region = 113 }
 0x979   : > { %s16786_s17 = smov %s16779_s10 }
 0x97c   :  { %8093 = vsyncpa [#allocation3], 1 }
 0x97d   :  { %8095 = vsyncpa [#allocation3 + $0x1], 1 }

</bundles_post_ra>
